<compile_context>
chip_gen: v5e
topology: v5e:2x2
jax: 0.10.0
libtpu: 0.0.40
codegen_flags: <defaults>
</compile_context>

<pallas_src>
import functools

import jax
import jax.numpy as jnp
from jax import lax
from jax.experimental import pallas as pl
from jax.experimental.pallas import tpu as pltpu


IMAGENET_MEAN = jnp.array([0.485, 0.456, 0.406], jnp.float32)
IMAGENET_STD = jnp.array([0.229, 0.224, 0.225], jnp.float32)


# ----------------------------- small helpers --------------------------------

def _full_spec(arr):
    """Whole-array block, kept resident in VMEM across the batch grid."""
    nd = arr.ndim

    def index_map(i):
        return (0,) * nd

    return pl.BlockSpec(arr.shape, index_map)


def _rowwise_matmul(x3, w2d):
    """(H, W, K) x (K, N) -> (H, W, N) f32, batched over H on the MXU.

    Keeps activations in their natural (spatial, spatial, channel) layout so no
    in-kernel relayout/reshape is needed; accumulation is f32.
    """
    wb = jnp.broadcast_to(w2d, (x3.shape[0],) + w2d.shape)
    return lax.dot_general(
        x3, wb, (((2,), (1,)), ((0,), (0,))),
        preferred_element_type=jnp.float32)


def _phase_decompose(x, stride=2):
    """(N, H, W, C) -> (N, stride^2, H/stride, W/stride, C) stride-phase views.

    Same byte count as the input (replaces the kh*kw-fold im2col blow-up) so the
    kernels can compute strided convs/pools from unit-stride shifted slices.
    """
    return jnp.stack(
        [x[:, p::stride, q::stride, :] for p in range(stride) for q in range(stride)],
        axis=1)


# ------------------------------ Pallas kernels -------------------------------

def _stem_kernel(x_ref, w_ref, b_ref, o_ref, *, kh, kw, stride, ho, wo):
    """Fused (normalization-folded) KHxKW stride-`stride` conv + bias + ReLU.

    x_ref : (1, stride^2, Hp/stride, Wp/stride, Cin) bf16 phase views of the
            padded raw image (padding value maps to 0 in normalized space).
    w_ref : (KH*KW, Cin, Cout) bf16 tap-major weights (scale folded in).
    b_ref : (1, Cout) f32 bias (normalization shift folded in).
    o_ref : (1, Ho, Wo, Cout) f32.
    """
    cout = w_ref.shape[-1]
    acc = jnp.zeros((ho, wo, cout), jnp.float32)
    for i in range(kh):
        for j in range(kw):
            ph = (i % stride) * stride + (j % stride)
            a, b = i // stride, j // stride
            xs = x_ref[0, ph, a:a + ho, b:b + wo, :]        # (ho, wo, cin) bf16
            acc = acc + _rowwise_matmul(xs, w_ref[i * kw + j])
    o_ref[0] = jnp.maximum(acc + b_ref[...], 0.0)


def _block_head_kernel(hp_ref, w1_ref, b1_ref, w2_ref, b2_ref, w3_ref, b3_ref,
                       wd_ref, bd_ref, wf_ref, bf_ref, o_ref, pad_ref, *, hh, ww):
    """Fused: 3x3/s2 maxpool -> bottleneck (1x1 -> 3x3 -> 1x1 + projected skip)
    -> global average pool -> fc.  One program per batch element.
    """
    cmid = w1_ref.shape[-1]

    # --- 3x3 stride-2 max pool: running max over 9 shifted phase views --------
    m = hp_ref[0, 0, 0:hh, 0:ww, :]
    for i in range(3):
        for j in range(3):
            if i == 0 and j == 0:
                continue
            ph = (i % 2) * 2 + (j % 2)
            m = jnp.maximum(
                m, hp_ref[0, ph, i // 2:i // 2 + hh, j // 2:j // 2 + ww, :])
    x_bf = m.astype(jnp.bfloat16)                                   # (hh, ww, cin)

    # --- 1x1 conv (b1) and downsample projection share the same input ---------
    y1 = jnp.maximum(_rowwise_matmul(x_bf, w1_ref[...]) + b1_ref[...], 0.0)
    res = _rowwise_matmul(x_bf, wd_ref[...]) + bd_ref[...]          # skip path, no ReLU

    # --- 3x3/s1 conv via zero-padded VMEM scratch + 9 shifted sub-matmuls ------
    pad_ref[...] = jnp.zeros((hh + 2, ww + 2, cmid), jnp.float32)
    pad_ref[1:1 + hh, 1:1 + ww, :] = y1
    acc = jnp.zeros_like(y1)
    for i in range(3):
        for j in range(3):
            xs = pad_ref[i:i + hh, j:j + ww, :].astype(jnp.bfloat16)
            acc = acc + _rowwise_matmul(xs, w2_ref[i * 3 + j])
    y2 = jnp.maximum(acc + b2_ref[...], 0.0)

    # --- 1x1 conv (b3) + residual + ReLU ---------------------------------------
    y3 = jnp.maximum(
        _rowwise_matmul(y2.astype(jnp.bfloat16), w3_ref[...]) + b3_ref[...] + res,
        0.0)                                                        # (hh, ww, cout)

    # --- global average pool + fc head ------------------------------------------
    s = jnp.sum(jnp.sum(y3, axis=1, keepdims=True), axis=0, keepdims=True)  # (1,1,cout)
    pooled = s[0] * (1.0 / float(hh * ww))                          # (1, cout)
    out = jnp.dot(pooled.astype(jnp.bfloat16), wf_ref[...],
                  preferred_element_type=jnp.float32) + bf_ref[...]  # (1, hidden)
    o_ref[0] = out


# ------------------------------ Pallas wrappers ------------------------------

def stem_conv(xph, w_taps, b_row, *, kh, kw, stride, ho, wo):
    n = xph.shape[0]
    cout = w_taps.shape[-1]
    kern = functools.partial(_stem_kernel, kh=kh, kw=kw, stride=stride, ho=ho, wo=wo)
    return pl.pallas_call(
        kern,
        out_shape=jax.ShapeDtypeStruct((n, ho, wo, cout), jnp.float32),
        grid=(n,),
        in_specs=[
            pl.BlockSpec((1,) + xph.shape[1:], lambda i: (i, 0, 0, 0, 0)),
            _full_spec(w_taps),
            _full_spec(b_row),
        ],
        out_specs=pl.BlockSpec((1, ho, wo, cout), lambda i: (i, 0, 0, 0)),
        compiler_params=pltpu.CompilerParams(dimension_semantics=("parallel",)),
    )(xph, w_taps, b_row)


def block_and_head(hp, pp, *, hh, ww):
    n = hp.shape[0]
    cmid = pp["b1_w"].shape[-1]
    hdim = pp["fc_b"].shape[-1]
    kern = functools.partial(_block_head_kernel, hh=hh, ww=ww)
    out = pl.pallas_call(
        kern,
        out_shape=jax.ShapeDtypeStruct((n, 1, hdim), jnp.float32),
        grid=(n,),
        in_specs=[
            pl.BlockSpec((1,) + hp.shape[1:], lambda i: (i, 0, 0, 0, 0)),
            _full_spec(pp["b1_w"]), _full_spec(pp["b1_b"]),
            _full_spec(pp["b2_w"]), _full_spec(pp["b2_b"]),
            _full_spec(pp["b3_w"]), _full_spec(pp["b3_b"]),
            _full_spec(pp["ds_w"]), _full_spec(pp["ds_b"]),
            _full_spec(pp["fc_w"]), _full_spec(pp["fc_b"]),
        ],
        out_specs=pl.BlockSpec((1, 1, hdim), lambda i: (i, 0, 0)),
        scratch_shapes=[pltpu.VMEM((hh + 2, ww + 2, cmid), jnp.float32)],
        compiler_params=pltpu.CompilerParams(dimension_semantics=("parallel",)),
    )(hp, pp["b1_w"], pp["b1_b"], pp["b2_w"], pp["b2_b"], pp["b3_w"], pp["b3_b"],
      pp["ds_w"], pp["ds_b"], pp["fc_w"], pp["fc_b"])
    return out[:, 0, :]


# ------------------------------ parameters -----------------------------------

def init_params(key, in_ch=3, stem_ch=16, mid_ch=16, out_ch=64, hidden_dim=32):
    """PyTorch-layout parameters for the scaled-down synthetic backbone."""
    ks = jax.random.split(key, 12)
    s = 0.05
    p = {}
    p["stem_w"] = s * jax.random.normal(ks[0], (stem_ch, in_ch, 7, 7), jnp.float32)
    p["stem_b"] = s * jax.random.normal(ks[1], (stem_ch,), jnp.float32)
    p["b1_w"] = s * jax.random.normal(ks[2], (stem_ch, mid_ch), jnp.float32)   # 1x1 conv as (in, out)
    p["b1_b"] = s * jax.random.normal(ks[3], (mid_ch,), jnp.float32)
    p["b2_w"] = s * jax.random.normal(ks[4], (mid_ch, mid_ch, 3, 3), jnp.float32)
    p["b2_b"] = s * jax.random.normal(ks[5], (mid_ch,), jnp.float32)
    p["b3_w"] = s * jax.random.normal(ks[6], (mid_ch, out_ch), jnp.float32)    # 1x1 conv as (in, out)
    p["b3_b"] = s * jax.random.normal(ks[7], (out_ch,), jnp.float32)
    p["ds_w"] = s * jax.random.normal(ks[8], (stem_ch, out_ch), jnp.float32)   # downsample projection
    p["ds_b"] = s * jax.random.normal(ks[9], (out_ch,), jnp.float32)
    p["fc_w"] = s * jax.random.normal(ks[10], (hidden_dim, out_ch), jnp.float32)  # PyTorch (out, in)
    p["fc_b"] = s * jax.random.normal(ks[11], (hidden_dim,), jnp.float32)
    return p


def prepare_params(params, mean=IMAGENET_MEAN, std=IMAGENET_STD):
    """One-time packing: fold /255 + Normalize into the stem conv, lay conv weights
    out as (tap, Cin, Cout) bf16 matmul operands, pre-transpose fc, biases (1, N) f32."""
    scale = 1.0 / (255.0 * std)                     # per-channel multiplier
    shift = -mean / std                             # per-channel offset
    sw = params["stem_w"]                           # (Cout, Cin, KH, KW)
    w_fold = sw * scale[None, :, None, None]
    b_fold = params["stem_b"] + jnp.einsum("oikl,i->o", sw, shift)

    def taps(w):                                    # (Cout, Cin, KH, KW) -> (KH*KW, Cin, Cout)
        return jnp.transpose(w, (2, 3, 1, 0)).reshape(
            w.shape[2] * w.shape[3], w.shape[1], w.shape[0])

    def rowb(b):
        return b.reshape(1, -1).astype(jnp.float32)

    return {
        "stem_w": taps(w_fold).astype(jnp.bfloat16),
        "stem_b": rowb(b_fold),
        "b1_w": params["b1_w"].astype(jnp.bfloat16),
        "b1_b": rowb(params["b1_b"]),
        "b2_w": taps(params["b2_w"]).astype(jnp.bfloat16),
        "b2_b": rowb(params["b2_b"]),
        "b3_w": params["b3_w"].astype(jnp.bfloat16),
        "b3_b": rowb(params["b3_b"]),
        "ds_w": params["ds_w"].astype(jnp.bfloat16),
        "ds_b": rowb(params["ds_b"]),
        "fc_w": jnp.transpose(params["fc_w"]).astype(jnp.bfloat16),   # (outdim, hidden)
        "fc_b": rowb(params["fc_b"]),
        # raw-pixel padding value that maps to exactly 0 after /255 + Normalize
        "pad_val": (255.0 * mean).reshape(1, 1, 1, -1),
    }


# ------------------------------ VIP.forward -----------------------------------

def vip_forward(obs_nchw, pp):
    """VIP.forward: obs (N, 3, H, W) raw 0..255 -> (N, hidden_dim) embedding."""
    _, _, h, w = obs_nchw.shape
    x = jnp.transpose(obs_nchw, (0, 2, 3, 1)).astype(jnp.float32)    # NHWC, raw pixels

    # TODO(synk): Resize(256)+CenterCrop(224) branch (obs_shape != [3,224,224]) skipped.

    # /255 + Normalize is folded into the stem conv weights; pad raw pixels with
    # 255*mean so padded positions normalize to exactly 0 (same as zero-padding
    # the normalized image, i.e. PyTorch semantics).
    pv = pp["pad_val"]
    xp = jnp.pad(x - pv, ((0, 0), (3, 3), (3, 3), (0, 0))) + pv      # (N, H+6, W+6, C)
    xph = _phase_decompose(xp, 2).astype(jnp.bfloat16)               # (N, 4, ., ., C)

    kh = kw = int(round(pp["stem_w"].shape[0] ** 0.5))
    ho = (h + 2 * 3 - kh) // 2 + 1
    wo = (w + 2 * 3 - kw) // 2 + 1
    hs = stem_conv(xph, pp["stem_w"], pp["stem_b"],
                   kh=kh, kw=kw, stride=2, ho=ho, wo=wo)             # (N, Ho, Wo, stem_ch)

    # 3x3 stride-2 pad-1 max pool: -inf pad + stride-phase views; the running max
    # itself runs inside the bottleneck kernel's prologue.
    hpad = jnp.pad(hs, ((0, 0), (1, 1), (1, 1), (0, 0)), constant_values=-jnp.inf)
    hpp = _phase_decompose(hpad, 2)                                  # (N, 4, ., ., stem_ch)
    hh = (ho + 2 - 3) // 2 + 1
    ww = (wo + 2 - 3) // 2 + 1

    # fused: maxpool + bottleneck + global average pool + fc in one pallas_call.
    return block_and_head(hpp, pp, hh=hh, ww=ww)


if __name__ == "__main__":
    key = jax.random.PRNGKey(0)
    k_obs, k_params = jax.random.split(key)
    # small shapes: batch=2, 3 channels, 16x16 spatial, hidden_dim=32 (scaled from 1024)
    obs = jax.random.randint(k_obs, (2, 3, 16, 16), 0, 256, dtype=jnp.int32).astype(
        jnp.uint8)
    params = init_params(k_params, hidden_dim=32)
    pp = prepare_params(params)

    fwd = jax.jit(vip_forward)
    out = fwd(obs, pp)
    jax.block_until_ready(out)
    assert out.shape == (2, 32), out.shape
    assert bool(jnp.all(jnp.isfinite(out)))
    print("KERNEL_OK")
</pallas_src>

<mosaic_0001>
module attributes {stable_mosaic.version = 11 : i64} {
  func.func @_stem_kernel(%arg0: i32, %arg1: memref<1x4x11x11x3xbf16, #tpu.memory_space<vmem>>, %arg2: memref<49x3x16xbf16, #tpu.memory_space<vmem>>, %arg3: memref<1x16xf32, #tpu.memory_space<vmem>>, %arg4: memref<1x8x8x16xf32, #tpu.memory_space<vmem>>) attributes {dimension_semantics = [#tpu.dimension_semantics<parallel>], iteration_bounds = array<i64: 2>, scalar_prefetch = 0 : i64, scratch_operands = 0 : i64, tpu.core_type = #tpu.core_type<tc>, window_params = [{transform_indices = @transform_0, window_bounds = array<i64: 1, 4, 11, 11, 3>}, {pipeline_mode = #tpu.pipeline_mode<synchronous>, transform_indices = @transform_1, window_bounds = array<i64: 49, 3, 16>}, {pipeline_mode = #tpu.pipeline_mode<synchronous>, transform_indices = @transform_2, window_bounds = array<i64: 1, 16>}, {transform_indices = @transform_3, window_bounds = array<i64: 1, 8, 8, 16>}]} {
    %cst = arith.constant 0.000000e+00 : f32
    %0 = vector.broadcast %cst : f32 to vector<8x8x16xf32>
    %c0 = arith.constant 0 : index
    %c0_0 = arith.constant 0 : index
    %c0_1 = arith.constant 0 : index
    %c0_2 = arith.constant 0 : index
    %c0_3 = arith.constant 0 : index
    %1 = vector.load %arg1[%c0, %c0_0, %c0_1, %c0_2, %c0_3] : memref<1x4x11x11x3xbf16, #tpu.memory_space<vmem>>, vector<1x1x8x8x3xbf16>
    %2 = vector.shape_cast %1 : vector<1x1x8x8x3xbf16> to vector<8x8x3xbf16>
    %c0_4 = arith.constant 0 : index
    %c0_5 = arith.constant 0 : index
    %c0_6 = arith.constant 0 : index
    %3 = vector.load %arg2[%c0_4, %c0_5, %c0_6] : memref<49x3x16xbf16, #tpu.memory_space<vmem>>, vector<1x3x16xbf16>
    %4 = vector.shape_cast %3 : vector<1x3x16xbf16> to vector<3x16xbf16>
    %5 = vector.shape_cast %4 : vector<3x16xbf16> to vector<1x3x16xbf16>
    %6 = vector.broadcast %5 : vector<1x3x16xbf16> to vector<8x3x16xbf16>
    %cst_7 = arith.constant dense<0.000000e+00> : vector<8x8x16xf32>
    %7 = tpu.matmul %2, %6, %cst_7 {dimension_numbers = #tpu.dot_dimension_numbers<[2], [1], [1], [2], [0, 0, 0, 1, 1, 2], [0], [0]>} : vector<8x8x3xbf16>, vector<8x3x16xbf16>, vector<8x8x16xf32> -> vector<8x8x16xf32>
    %8 = arith.addf %0, %7 : vector<8x8x16xf32>
    %c0_8 = arith.constant 0 : index
    %c1 = arith.constant 1 : index
    %c0_9 = arith.constant 0 : index
    %c0_10 = arith.constant 0 : index
    %c0_11 = arith.constant 0 : index
    %9 = vector.load %arg1[%c0_8, %c1, %c0_9, %c0_10, %c0_11] : memref<1x4x11x11x3xbf16, #tpu.memory_space<vmem>>, vector<1x1x8x8x3xbf16>
    %10 = vector.shape_cast %9 : vector<1x1x8x8x3xbf16> to vector<8x8x3xbf16>
    %c1_12 = arith.constant 1 : index
    %c0_13 = arith.constant 0 : index
    %c0_14 = arith.constant 0 : index
    %11 = vector.load %arg2[%c1_12, %c0_13, %c0_14] : memref<49x3x16xbf16, #tpu.memory_space<vmem>>, vector<1x3x16xbf16>
    %12 = vector.shape_cast %11 : vector<1x3x16xbf16> to vector<3x16xbf16>
    %13 = vector.shape_cast %12 : vector<3x16xbf16> to vector<1x3x16xbf16>
    %14 = vector.broadcast %13 : vector<1x3x16xbf16> to vector<8x3x16xbf16>
    %cst_15 = arith.constant dense<0.000000e+00> : vector<8x8x16xf32>
    %15 = tpu.matmul %10, %14, %cst_15 {dimension_numbers = #tpu.dot_dimension_numbers<[2], [1], [1], [2], [0, 0, 0, 1, 1, 2], [0], [0]>} : vector<8x8x3xbf16>, vector<8x3x16xbf16>, vector<8x8x16xf32> -> vector<8x8x16xf32>
    %16 = arith.addf %8, %15 : vector<8x8x16xf32>
    %c0_16 = arith.constant 0 : index
    %c0_17 = arith.constant 0 : index
    %c0_18 = arith.constant 0 : index
    %c1_19 = arith.constant 1 : index
    %c0_20 = arith.constant 0 : index
    %17 = vector.load %arg1[%c0_16, %c0_17, %c0_18, %c1_19, %c0_20] : memref<1x4x11x11x3xbf16, #tpu.memory_space<vmem>>, vector<1x1x8x8x3xbf16>
    %18 = vector.shape_cast %17 : vector<1x1x8x8x3xbf16> to vector<8x8x3xbf16>
    %c2 = arith.constant 2 : index
    %c0_21 = arith.constant 0 : index
    %c0_22 = arith.constant 0 : index
    %19 = vector.load %arg2[%c2, %c0_21, %c0_22] : memref<49x3x16xbf16, #tpu.memory_space<vmem>>, vector<1x3x16xbf16>
    %20 = vector.shape_cast %19 : vector<1x3x16xbf16> to vector<3x16xbf16>
    %21 = vector.shape_cast %20 : vector<3x16xbf16> to vector<1x3x16xbf16>
    %22 = vector.broadcast %21 : vector<1x3x16xbf16> to vector<8x3x16xbf16>
    %cst_23 = arith.constant dense<0.000000e+00> : vector<8x8x16xf32>
    %23 = tpu.matmul %18, %22, %cst_23 {dimension_numbers = #tpu.dot_dimension_numbers<[2], [1], [1], [2], [0, 0, 0, 1, 1, 2], [0], [0]>} : vector<8x8x3xbf16>, vector<8x3x16xbf16>, vector<8x8x16xf32> -> vector<8x8x16xf32>
    %24 = arith.addf %16, %23 : vector<8x8x16xf32>
    %c0_24 = arith.constant 0 : index
    %c1_25 = arith.constant 1 : index
    %c0_26 = arith.constant 0 : index
    %c1_27 = arith.constant 1 : index
    %c0_28 = arith.constant 0 : index
    %25 = vector.load %arg1[%c0_24, %c1_25, %c0_26, %c1_27, %c0_28] : memref<1x4x11x11x3xbf16, #tpu.memory_space<vmem>>, vector<1x1x8x8x3xbf16>
    %26 = vector.shape_cast %25 : vector<1x1x8x8x3xbf16> to vector<8x8x3xbf16>
    %c3 = arith.constant 3 : index
    %c0_29 = arith.constant 0 : index
    %c0_30 = arith.constant 0 : index
    %27 = vector.load %arg2[%c3, %c0_29, %c0_30] : memref<49x3x16xbf16, #tpu.memory_space<vmem>>, vector<1x3x16xbf16>
    %28 = vector.shape_cast %27 : vector<1x3x16xbf16> to vector<3x16xbf16>
    %29 = vector.shape_cast %28 : vector<3x16xbf16> to vector<1x3x16xbf16>
    %30 = vector.broadcast %29 : vector<1x3x16xbf16> to vector<8x3x16xbf16>
    %cst_31 = arith.constant dense<0.000000e+00> : vector<8x8x16xf32>
    %31 = tpu.matmul %26, %30, %cst_31 {dimension_numbers = #tpu.dot_dimension_numbers<[2], [1], [1], [2], [0, 0, 0, 1, 1, 2], [0], [0]>} : vector<8x8x3xbf16>, vector<8x3x16xbf16>, vector<8x8x16xf32> -> vector<8x8x16xf32>
    %32 = arith.addf %24, %31 : vector<8x8x16xf32>
    %c0_32 = arith.constant 0 : index
    %c0_33 = arith.constant 0 : index
    %c0_34 = arith.constant 0 : index
    %c2_35 = arith.constant 2 : index
    %c0_36 = arith.constant 0 : index
    %33 = vector.load %arg1[%c0_32, %c0_33, %c0_34, %c2_35, %c0_36] : memref<1x4x11x11x3xbf16, #tpu.memory_space<vmem>>, vector<1x1x8x8x3xbf16>
    %34 = vector.shape_cast %33 : vector<1x1x8x8x3xbf16> to vector<8x8x3xbf16>
    %c4 = arith.constant 4 : index
    %c0_37 = arith.constant 0 : index
    %c0_38 = arith.constant 0 : index
    %35 = vector.load %arg2[%c4, %c0_37, %c0_38] : memref<49x3x16xbf16, #tpu.memory_space<vmem>>, vector<1x3x16xbf16>
    %36 = vector.shape_cast %35 : vector<1x3x16xbf16> to vector<3x16xbf16>
    %37 = vector.shape_cast %36 : vector<3x16xbf16> to vector<1x3x16xbf16>
    %38 = vector.broadcast %37 : vector<1x3x16xbf16> to vector<8x3x16xbf16>
    %cst_39 = arith.constant dense<0.000000e+00> : vector<8x8x16xf32>
    %39 = tpu.matmul %34, %38, %cst_39 {dimension_numbers = #tpu.dot_dimension_numbers<[2], [1], [1], [2], [0, 0, 0, 1, 1, 2], [0], [0]>} : vector<8x8x3xbf16>, vector<8x3x16xbf16>, vector<8x8x16xf32> -> vector<8x8x16xf32>
    %40 = arith.addf %32, %39 : vector<8x8x16xf32>
    %c0_40 = arith.constant 0 : index
    %c1_41 = arith.constant 1 : index
    %c0_42 = arith.constant 0 : index
    %c2_43 = arith.constant 2 : index
    %c0_44 = arith.constant 0 : index
    %41 = vector.load %arg1[%c0_40, %c1_41, %c0_42, %c2_43, %c0_44] : memref<1x4x11x11x3xbf16, #tpu.memory_space<vmem>>, vector<1x1x8x8x3xbf16>
    %42 = vector.shape_cast %41 : vector<1x1x8x8x3xbf16> to vector<8x8x3xbf16>
    %c5 = arith.constant 5 : index
    %c0_45 = arith.constant 0 : index
    %c0_46 = arith.constant 0 : index
    %43 = vector.load %arg2[%c5, %c0_45, %c0_46] : memref<49x3x16xbf16, #tpu.memory_space<vmem>>, vector<1x3x16xbf16>
    %44 = vector.shape_cast %43 : vector<1x3x16xbf16> to vector<3x16xbf16>
    %45 = vector.shape_cast %44 : vector<3x16xbf16> to vector<1x3x16xbf16>
    %46 = vector.broadcast %45 : vector<1x3x16xbf16> to vector<8x3x16xbf16>
    %cst_47 = arith.constant dense<0.000000e+00> : vector<8x8x16xf32>
    %47 = tpu.matmul %42, %46, %cst_47 {dimension_numbers = #tpu.dot_dimension_numbers<[2], [1], [1], [2], [0, 0, 0, 1, 1, 2], [0], [0]>} : vector<8x8x3xbf16>, vector<8x3x16xbf16>, vector<8x8x16xf32> -> vector<8x8x16xf32>
    %48 = arith.addf %40, %47 : vector<8x8x16xf32>
    %c0_48 = arith.constant 0 : index
    %c0_49 = arith.constant 0 : index
    %c0_50 = arith.constant 0 : index
    %c3_51 = arith.constant 3 : index
    %c0_52 = arith.constant 0 : index
    %49 = vector.load %arg1[%c0_48, %c0_49, %c0_50, %c3_51, %c0_52] : memref<1x4x11x11x3xbf16, #tpu.memory_space<vmem>>, vector<1x1x8x8x3xbf16>
    %50 = vector.shape_cast %49 : vector<1x1x8x8x3xbf16> to vector<8x8x3xbf16>
    %c6 = arith.constant 6 : index
    %c0_53 = arith.constant 0 : index
    %c0_54 = arith.constant 0 : index
    %51 = vector.load %arg2[%c6, %c0_53, %c0_54] : memref<49x3x16xbf16, #tpu.memory_space<vmem>>, vector<1x3x16xbf16>
    %52 = vector.shape_cast %51 : vector<1x3x16xbf16> to vector<3x16xbf16>
    %53 = vector.shape_cast %52 : vector<3x16xbf16> to vector<1x3x16xbf16>
    %54 = vector.broadcast %53 : vector<1x3x16xbf16> to vector<8x3x16xbf16>
    %cst_55 = arith.constant dense<0.000000e+00> : vector<8x8x16xf32>
    %55 = tpu.matmul %50, %54, %cst_55 {dimension_numbers = #tpu.dot_dimension_numbers<[2], [1], [1], [2], [0, 0, 0, 1, 1, 2], [0], [0]>} : vector<8x8x3xbf16>, vector<8x3x16xbf16>, vector<8x8x16xf32> -> vector<8x8x16xf32>
    %56 = arith.addf %48, %55 : vector<8x8x16xf32>
    %c0_56 = arith.constant 0 : index
    %c2_57 = arith.constant 2 : index
    %c0_58 = arith.constant 0 : index
    %c0_59 = arith.constant 0 : index
    %c0_60 = arith.constant 0 : index
    %57 = vector.load %arg1[%c0_56, %c2_57, %c0_58, %c0_59, %c0_60] : memref<1x4x11x11x3xbf16, #tpu.memory_space<vmem>>, vector<1x1x8x8x3xbf16>
    %58 = vector.shape_cast %57 : vector<1x1x8x8x3xbf16> to vector<8x8x3xbf16>
    %c7 = arith.constant 7 : index
    %c0_61 = arith.constant 0 : index
    %c0_62 = arith.constant 0 : index
    %59 = vector.load %arg2[%c7, %c0_61, %c0_62] : memref<49x3x16xbf16, #tpu.memory_space<vmem>>, vector<1x3x16xbf16>
    %60 = vector.shape_cast %59 : vector<1x3x16xbf16> to vector<3x16xbf16>
    %61 = vector.shape_cast %60 : vector<3x16xbf16> to vector<1x3x16xbf16>
    %62 = vector.broadcast %61 : vector<1x3x16xbf16> to vector<8x3x16xbf16>
    %cst_63 = arith.constant dense<0.000000e+00> : vector<8x8x16xf32>
    %63 = tpu.matmul %58, %62, %cst_63 {dimension_numbers = #tpu.dot_dimension_numbers<[2], [1], [1], [2], [0, 0, 0, 1, 1, 2], [0], [0]>} : vector<8x8x3xbf16>, vector<8x3x16xbf16>, vector<8x8x16xf32> -> vector<8x8x16xf32>
    %64 = arith.addf %56, %63 : vector<8x8x16xf32>
    %c0_64 = arith.constant 0 : index
    %c3_65 = arith.constant 3 : index
    %c0_66 = arith.constant 0 : index
    %c0_67 = arith.constant 0 : index
    %c0_68 = arith.constant 0 : index
    %65 = vector.load %arg1[%c0_64, %c3_65, %c0_66, %c0_67, %c0_68] : memref<1x4x11x11x3xbf16, #tpu.memory_space<vmem>>, vector<1x1x8x8x3xbf16>
    %66 = vector.shape_cast %65 : vector<1x1x8x8x3xbf16> to vector<8x8x3xbf16>
    %c8 = arith.constant 8 : index
    %c0_69 = arith.constant 0 : index
    %c0_70 = arith.constant 0 : index
    %67 = vector.load %arg2[%c8, %c0_69, %c0_70] : memref<49x3x16xbf16, #tpu.memory_space<vmem>>, vector<1x3x16xbf16>
    %68 = vector.shape_cast %67 : vector<1x3x16xbf16> to vector<3x16xbf16>
    %69 = vector.shape_cast %68 : vector<3x16xbf16> to vector<1x3x16xbf16>
    %70 = vector.broadcast %69 : vector<1x3x16xbf16> to vector<8x3x16xbf16>
    %cst_71 = arith.constant dense<0.000000e+00> : vector<8x8x16xf32>
    %71 = tpu.matmul %66, %70, %cst_71 {dimension_numbers = #tpu.dot_dimension_numbers<[2], [1], [1], [2], [0, 0, 0, 1, 1, 2], [0], [0]>} : vector<8x8x3xbf16>, vector<8x3x16xbf16>, vector<8x8x16xf32> -> vector<8x8x16xf32>
    %72 = arith.addf %64, %71 : vector<8x8x16xf32>
    %c0_72 = arith.constant 0 : index
    %c2_73 = arith.constant 2 : index
    %c0_74 = arith.constant 0 : index
    %c1_75 = arith.constant 1 : index
    %c0_76 = arith.constant 0 : index
    %73 = vector.load %arg1[%c0_72, %c2_73, %c0_74, %c1_75, %c0_76] : memref<1x4x11x11x3xbf16, #tpu.memory_space<vmem>>, vector<1x1x8x8x3xbf16>
    %74 = vector.shape_cast %73 : vector<1x1x8x8x3xbf16> to vector<8x8x3xbf16>
    %c9 = arith.constant 9 : index
    %c0_77 = arith.constant 0 : index
    %c0_78 = arith.constant 0 : index
    %75 = vector.load %arg2[%c9, %c0_77, %c0_78] : memref<49x3x16xbf16, #tpu.memory_space<vmem>>, vector<1x3x16xbf16>
    %76 = vector.shape_cast %75 : vector<1x3x16xbf16> to vector<3x16xbf16>
    %77 = vector.shape_cast %76 : vector<3x16xbf16> to vector<1x3x16xbf16>
    %78 = vector.broadcast %77 : vector<1x3x16xbf16> to vector<8x3x16xbf16>
    %cst_79 = arith.constant dense<0.000000e+00> : vector<8x8x16xf32>
    %79 = tpu.matmul %74, %78, %cst_79 {dimension_numbers = #tpu.dot_dimension_numbers<[2], [1], [1], [2], [0, 0, 0, 1, 1, 2], [0], [0]>} : vector<8x8x3xbf16>, vector<8x3x16xbf16>, vector<8x8x16xf32> -> vector<8x8x16xf32>
    %80 = arith.addf %72, %79 : vector<8x8x16xf32>
    %c0_80 = arith.constant 0 : index
    %c3_81 = arith.constant 3 : index
    %c0_82 = arith.constant 0 : index
    %c1_83 = arith.constant 1 : index
    %c0_84 = arith.constant 0 : index
    %81 = vector.load %arg1[%c0_80, %c3_81, %c0_82, %c1_83, %c0_84] : memref<1x4x11x11x3xbf16, #tpu.memory_space<vmem>>, vector<1x1x8x8x3xbf16>
    %82 = vector.shape_cast %81 : vector<1x1x8x8x3xbf16> to vector<8x8x3xbf16>
    %c10 = arith.constant 10 : index
    %c0_85 = arith.constant 0 : index
    %c0_86 = arith.constant 0 : index
    %83 = vector.load %arg2[%c10, %c0_85, %c0_86] : memref<49x3x16xbf16, #tpu.memory_space<vmem>>, vector<1x3x16xbf16>
    %84 = vector.shape_cast %83 : vector<1x3x16xbf16> to vector<3x16xbf16>
    %85 = vector.shape_cast %84 : vector<3x16xbf16> to vector<1x3x16xbf16>
    %86 = vector.broadcast %85 : vector<1x3x16xbf16> to vector<8x3x16xbf16>
    %cst_87 = arith.constant dense<0.000000e+00> : vector<8x8x16xf32>
    %87 = tpu.matmul %82, %86, %cst_87 {dimension_numbers = #tpu.dot_dimension_numbers<[2], [1], [1], [2], [0, 0, 0, 1, 1, 2], [0], [0]>} : vector<8x8x3xbf16>, vector<8x3x16xbf16>, vector<8x8x16xf32> -> vector<8x8x16xf32>
    %88 = arith.addf %80, %87 : vector<8x8x16xf32>
    %c0_88 = arith.constant 0 : index
    %c2_89 = arith.constant 2 : index
    %c0_90 = arith.constant 0 : index
    %c2_91 = arith.constant 2 : index
    %c0_92 = arith.constant 0 : index
    %89 = vector.load %arg1[%c0_88, %c2_89, %c0_90, %c2_91, %c0_92] : memref<1x4x11x11x3xbf16, #tpu.memory_space<vmem>>, vector<1x1x8x8x3xbf16>
    %90 = vector.shape_cast %89 : vector<1x1x8x8x3xbf16> to vector<8x8x3xbf16>
    %c11 = arith.constant 11 : index
    %c0_93 = arith.constant 0 : index
    %c0_94 = arith.constant 0 : index
    %91 = vector.load %arg2[%c11, %c0_93, %c0_94] : memref<49x3x16xbf16, #tpu.memory_space<vmem>>, vector<1x3x16xbf16>
    %92 = vector.shape_cast %91 : vector<1x3x16xbf16> to vector<3x16xbf16>
    %93 = vector.shape_cast %92 : vector<3x16xbf16> to vector<1x3x16xbf16>
    %94 = vector.broadcast %93 : vector<1x3x16xbf16> to vector<8x3x16xbf16>
    %cst_95 = arith.constant dense<0.000000e+00> : vector<8x8x16xf32>
    %95 = tpu.matmul %90, %94, %cst_95 {dimension_numbers = #tpu.dot_dimension_numbers<[2], [1], [1], [2], [0, 0, 0, 1, 1, 2], [0], [0]>} : vector<8x8x3xbf16>, vector<8x3x16xbf16>, vector<8x8x16xf32> -> vector<8x8x16xf32>
    %96 = arith.addf %88, %95 : vector<8x8x16xf32>
    %c0_96 = arith.constant 0 : index
    %c3_97 = arith.constant 3 : index
    %c0_98 = arith.constant 0 : index
    %c2_99 = arith.constant 2 : index
    %c0_100 = arith.constant 0 : index
    %97 = vector.load %arg1[%c0_96, %c3_97, %c0_98, %c2_99, %c0_100] : memref<1x4x11x11x3xbf16, #tpu.memory_space<vmem>>, vector<1x1x8x8x3xbf16>
    %98 = vector.shape_cast %97 : vector<1x1x8x8x3xbf16> to vector<8x8x3xbf16>
    %c12 = arith.constant 12 : index
    %c0_101 = arith.constant 0 : index
    %c0_102 = arith.constant 0 : index
    %99 = vector.load %arg2[%c12, %c0_101, %c0_102] : memref<49x3x16xbf16, #tpu.memory_space<vmem>>, vector<1x3x16xbf16>
    %100 = vector.shape_cast %99 : vector<1x3x16xbf16> to vector<3x16xbf16>
    %101 = vector.shape_cast %100 : vector<3x16xbf16> to vector<1x3x16xbf16>
    %102 = vector.broadcast %101 : vector<1x3x16xbf16> to vector<8x3x16xbf16>
    %cst_103 = arith.constant dense<0.000000e+00> : vector<8x8x16xf32>
    %103 = tpu.matmul %98, %102, %cst_103 {dimension_numbers = #tpu.dot_dimension_numbers<[2], [1], [1], [2], [0, 0, 0, 1, 1, 2], [0], [0]>} : vector<8x8x3xbf16>, vector<8x3x16xbf16>, vector<8x8x16xf32> -> vector<8x8x16xf32>
    %104 = arith.addf %96, %103 : vector<8x8x16xf32>
    %c0_104 = arith.constant 0 : index
    %c2_105 = arith.constant 2 : index
    %c0_106 = arith.constant 0 : index
    %c3_107 = arith.constant 3 : index
    %c0_108 = arith.constant 0 : index
    %105 = vector.load %arg1[%c0_104, %c2_105, %c0_106, %c3_107, %c0_108] : memref<1x4x11x11x3xbf16, #tpu.memory_space<vmem>>, vector<1x1x8x8x3xbf16>
    %106 = vector.shape_cast %105 : vector<1x1x8x8x3xbf16> to vector<8x8x3xbf16>
    %c13 = arith.constant 13 : index
    %c0_109 = arith.constant 0 : index
    %c0_110 = arith.constant 0 : index
    %107 = vector.load %arg2[%c13, %c0_109, %c0_110] : memref<49x3x16xbf16, #tpu.memory_space<vmem>>, vector<1x3x16xbf16>
    %108 = vector.shape_cast %107 : vector<1x3x16xbf16> to vector<3x16xbf16>
    %109 = vector.shape_cast %108 : vector<3x16xbf16> to vector<1x3x16xbf16>
    %110 = vector.broadcast %109 : vector<1x3x16xbf16> to vector<8x3x16xbf16>
    %cst_111 = arith.constant dense<0.000000e+00> : vector<8x8x16xf32>
    %111 = tpu.matmul %106, %110, %cst_111 {dimension_numbers = #tpu.dot_dimension_numbers<[2], [1], [1], [2], [0, 0, 0, 1, 1, 2], [0], [0]>} : vector<8x8x3xbf16>, vector<8x3x16xbf16>, vector<8x8x16xf32> -> vector<8x8x16xf32>
    %112 = arith.addf %104, %111 : vector<8x8x16xf32>
    %c0_112 = arith.constant 0 : index
    %c0_113 = arith.constant 0 : index
    %c1_114 = arith.constant 1 : index
    %c0_115 = arith.constant 0 : index
    %c0_116 = arith.constant 0 : index
    %113 = vector.load %arg1[%c0_112, %c0_113, %c1_114, %c0_115, %c0_116] : memref<1x4x11x11x3xbf16, #tpu.memory_space<vmem>>, vector<1x1x8x8x3xbf16>
    %114 = vector.shape_cast %113 : vector<1x1x8x8x3xbf16> to vector<8x8x3xbf16>
    %c14 = arith.constant 14 : index
    %c0_117 = arith.constant 0 : index
    %c0_118 = arith.constant 0 : index
    %115 = vector.load %arg2[%c14, %c0_117, %c0_118] : memref<49x3x16xbf16, #tpu.memory_space<vmem>>, vector<1x3x16xbf16>
    %116 = vector.shape_cast %115 : vector<1x3x16xbf16> to vector<3x16xbf16>
    %117 = vector.shape_cast %116 : vector<3x16xbf16> to vector<1x3x16xbf16>
    %118 = vector.broadcast %117 : vector<1x3x16xbf16> to vector<8x3x16xbf16>
    %cst_119 = arith.constant dense<0.000000e+00> : vector<8x8x16xf32>
    %119 = tpu.matmul %114, %118, %cst_119 {dimension_numbers = #tpu.dot_dimension_numbers<[2], [1], [1], [2], [0, 0, 0, 1, 1, 2], [0], [0]>} : vector<8x8x3xbf16>, vector<8x3x16xbf16>, vector<8x8x16xf32> -> vector<8x8x16xf32>
    %120 = arith.addf %112, %119 : vector<8x8x16xf32>
    %c0_120 = arith.constant 0 : index
    %c1_121 = arith.constant 1 : index
    %c1_122 = arith.constant 1 : index
    %c0_123 = arith.constant 0 : index
    %c0_124 = arith.constant 0 : index
    %121 = vector.load %arg1[%c0_120, %c1_121, %c1_122, %c0_123, %c0_124] : memref<1x4x11x11x3xbf16, #tpu.memory_space<vmem>>, vector<1x1x8x8x3xbf16>
    %122 = vector.shape_cast %121 : vector<1x1x8x8x3xbf16> to vector<8x8x3xbf16>
    %c15 = arith.constant 15 : index
    %c0_125 = arith.constant 0 : index
    %c0_126 = arith.constant 0 : index
    %123 = vector.load %arg2[%c15, %c0_125, %c0_126] : memref<49x3x16xbf16, #tpu.memory_space<vmem>>, vector<1x3x16xbf16>
    %124 = vector.shape_cast %123 : vector<1x3x16xbf16> to vector<3x16xbf16>
    %125 = vector.shape_cast %124 : vector<3x16xbf16> to vector<1x3x16xbf16>
    %126 = vector.broadcast %125 : vector<1x3x16xbf16> to vector<8x3x16xbf16>
    %cst_127 = arith.constant dense<0.000000e+00> : vector<8x8x16xf32>
    %127 = tpu.matmul %122, %126, %cst_127 {dimension_numbers = #tpu.dot_dimension_numbers<[2], [1], [1], [2], [0, 0, 0, 1, 1, 2], [0], [0]>} : vector<8x8x3xbf16>, vector<8x3x16xbf16>, vector<8x8x16xf32> -> vector<8x8x16xf32>
    %128 = arith.addf %120, %127 : vector<8x8x16xf32>
    %c0_128 = arith.constant 0 : index
    %c0_129 = arith.constant 0 : index
    %c1_130 = arith.constant 1 : index
    %c1_131 = arith.constant 1 : index
    %c0_132 = arith.constant 0 : index
    %129 = vector.load %arg1[%c0_128, %c0_129, %c1_130, %c1_131, %c0_132] : memref<1x4x11x11x3xbf16, #tpu.memory_space<vmem>>, vector<1x1x8x8x3xbf16>
    %130 = vector.shape_cast %129 : vector<1x1x8x8x3xbf16> to vector<8x8x3xbf16>
    %c16 = arith.constant 16 : index
    %c0_133 = arith.constant 0 : index
    %c0_134 = arith.constant 0 : index
    %131 = vector.load %arg2[%c16, %c0_133, %c0_134] : memref<49x3x16xbf16, #tpu.memory_space<vmem>>, vector<1x3x16xbf16>
    %132 = vector.shape_cast %131 : vector<1x3x16xbf16> to vector<3x16xbf16>
    %133 = vector.shape_cast %132 : vector<3x16xbf16> to vector<1x3x16xbf16>
    %134 = vector.broadcast %133 : vector<1x3x16xbf16> to vector<8x3x16xbf16>
    %cst_135 = arith.constant dense<0.000000e+00> : vector<8x8x16xf32>
    %135 = tpu.matmul %130, %134, %cst_135 {dimension_numbers = #tpu.dot_dimension_numbers<[2], [1], [1], [2], [0, 0, 0, 1, 1, 2], [0], [0]>} : vector<8x8x3xbf16>, vector<8x3x16xbf16>, vector<8x8x16xf32> -> vector<8x8x16xf32>
    %136 = arith.addf %128, %135 : vector<8x8x16xf32>
    %c0_136 = arith.constant 0 : index
    %c1_137 = arith.constant 1 : index
    %c1_138 = arith.constant 1 : index
    %c1_139 = arith.constant 1 : index
    %c0_140 = arith.constant 0 : index
    %137 = vector.load %arg1[%c0_136, %c1_137, %c1_138, %c1_139, %c0_140] : memref<1x4x11x11x3xbf16, #tpu.memory_space<vmem>>, vector<1x1x8x8x3xbf16>
    %138 = vector.shape_cast %137 : vector<1x1x8x8x3xbf16> to vector<8x8x3xbf16>
    %c17 = arith.constant 17 : index
    %c0_141 = arith.constant 0 : index
    %c0_142 = arith.constant 0 : index
    %139 = vector.load %arg2[%c17, %c0_141, %c0_142] : memref<49x3x16xbf16, #tpu.memory_space<vmem>>, vector<1x3x16xbf16>
    %140 = vector.shape_cast %139 : vector<1x3x16xbf16> to vector<3x16xbf16>
    %141 = vector.shape_cast %140 : vector<3x16xbf16> to vector<1x3x16xbf16>
    %142 = vector.broadcast %141 : vector<1x3x16xbf16> to vector<8x3x16xbf16>
    %cst_143 = arith.constant dense<0.000000e+00> : vector<8x8x16xf32>
    %143 = tpu.matmul %138, %142, %cst_143 {dimension_numbers = #tpu.dot_dimension_numbers<[2], [1], [1], [2], [0, 0, 0, 1, 1, 2], [0], [0]>} : vector<8x8x3xbf16>, vector<8x3x16xbf16>, vector<8x8x16xf32> -> vector<8x8x16xf32>
    %144 = arith.addf %136, %143 : vector<8x8x16xf32>
    %c0_144 = arith.constant 0 : index
    %c0_145 = arith.constant 0 : index
    %c1_146 = arith.constant 1 : index
    %c2_147 = arith.constant 2 : index
    %c0_148 = arith.constant 0 : index
    %145 = vector.load %arg1[%c0_144, %c0_145, %c1_146, %c2_147, %c0_148] : memref<1x4x11x11x3xbf16, #tpu.memory_space<vmem>>, vector<1x1x8x8x3xbf16>
    %146 = vector.shape_cast %145 : vector<1x1x8x8x3xbf16> to vector<8x8x3xbf16>
    %c18 = arith.constant 18 : index
    %c0_149 = arith.constant 0 : index
    %c0_150 = arith.constant 0 : index
    %147 = vector.load %arg2[%c18, %c0_149, %c0_150] : memref<49x3x16xbf16, #tpu.memory_space<vmem>>, vector<1x3x16xbf16>
    %148 = vector.shape_cast %147 : vector<1x3x16xbf16> to vector<3x16xbf16>
    %149 = vector.shape_cast %148 : vector<3x16xbf16> to vector<1x3x16xbf16>
    %150 = vector.broadcast %149 : vector<1x3x16xbf16> to vector<8x3x16xbf16>
    %cst_151 = arith.constant dense<0.000000e+00> : vector<8x8x16xf32>
    %151 = tpu.matmul %146, %150, %cst_151 {dimension_numbers = #tpu.dot_dimension_numbers<[2], [1], [1], [2], [0, 0, 0, 1, 1, 2], [0], [0]>} : vector<8x8x3xbf16>, vector<8x3x16xbf16>, vector<8x8x16xf32> -> vector<8x8x16xf32>
    %152 = arith.addf %144, %151 : vector<8x8x16xf32>
    %c0_152 = arith.constant 0 : index
    %c1_153 = arith.constant 1 : index
    %c1_154 = arith.constant 1 : index
    %c2_155 = arith.constant 2 : index
    %c0_156 = arith.constant 0 : index
    %153 = vector.load %arg1[%c0_152, %c1_153, %c1_154, %c2_155, %c0_156] : memref<1x4x11x11x3xbf16, #tpu.memory_space<vmem>>, vector<1x1x8x8x3xbf16>
    %154 = vector.shape_cast %153 : vector<1x1x8x8x3xbf16> to vector<8x8x3xbf16>
    %c19 = arith.constant 19 : index
    %c0_157 = arith.constant 0 : index
    %c0_158 = arith.constant 0 : index
    %155 = vector.load %arg2[%c19, %c0_157, %c0_158] : memref<49x3x16xbf16, #tpu.memory_space<vmem>>, vector<1x3x16xbf16>
    %156 = vector.shape_cast %155 : vector<1x3x16xbf16> to vector<3x16xbf16>
    %157 = vector.shape_cast %156 : vector<3x16xbf16> to vector<1x3x16xbf16>
    %158 = vector.broadcast %157 : vector<1x3x16xbf16> to vector<8x3x16xbf16>
    %cst_159 = arith.constant dense<0.000000e+00> : vector<8x8x16xf32>
    %159 = tpu.matmul %154, %158, %cst_159 {dimension_numbers = #tpu.dot_dimension_numbers<[2], [1], [1], [2], [0, 0, 0, 1, 1, 2], [0], [0]>} : vector<8x8x3xbf16>, vector<8x3x16xbf16>, vector<8x8x16xf32> -> vector<8x8x16xf32>
    %160 = arith.addf %152, %159 : vector<8x8x16xf32>
    %c0_160 = arith.constant 0 : index
    %c0_161 = arith.constant 0 : index
    %c1_162 = arith.constant 1 : index
    %c3_163 = arith.constant 3 : index
    %c0_164 = arith.constant 0 : index
    %161 = vector.load %arg1[%c0_160, %c0_161, %c1_162, %c3_163, %c0_164] : memref<1x4x11x11x3xbf16, #tpu.memory_space<vmem>>, vector<1x1x8x8x3xbf16>
    %162 = vector.shape_cast %161 : vector<1x1x8x8x3xbf16> to vector<8x8x3xbf16>
    %c20 = arith.constant 20 : index
    %c0_165 = arith.constant 0 : index
    %c0_166 = arith.constant 0 : index
    %163 = vector.load %arg2[%c20, %c0_165, %c0_166] : memref<49x3x16xbf16, #tpu.memory_space<vmem>>, vector<1x3x16xbf16>
    %164 = vector.shape_cast %163 : vector<1x3x16xbf16> to vector<3x16xbf16>
    %165 = vector.shape_cast %164 : vector<3x16xbf16> to vector<1x3x16xbf16>
    %166 = vector.broadcast %165 : vector<1x3x16xbf16> to vector<8x3x16xbf16>
    %cst_167 = arith.constant dense<0.000000e+00> : vector<8x8x16xf32>
    %167 = tpu.matmul %162, %166, %cst_167 {dimension_numbers = #tpu.dot_dimension_numbers<[2], [1], [1], [2], [0, 0, 0, 1, 1, 2], [0], [0]>} : vector<8x8x3xbf16>, vector<8x3x16xbf16>, vector<8x8x16xf32> -> vector<8x8x16xf32>
    %168 = arith.addf %160, %167 : vector<8x8x16xf32>
    %c0_168 = arith.constant 0 : index
    %c2_169 = arith.constant 2 : index
    %c1_170 = arith.constant 1 : index
    %c0_171 = arith.constant 0 : index
    %c0_172 = arith.constant 0 : index
    %169 = vector.load %arg1[%c0_168, %c2_169, %c1_170, %c0_171, %c0_172] : memref<1x4x11x11x3xbf16, #tpu.memory_space<vmem>>, vector<1x1x8x8x3xbf16>
    %170 = vector.shape_cast %169 : vector<1x1x8x8x3xbf16> to vector<8x8x3xbf16>
    %c21 = arith.constant 21 : index
    %c0_173 = arith.constant 0 : index
    %c0_174 = arith.constant 0 : index
    %171 = vector.load %arg2[%c21, %c0_173, %c0_174] : memref<49x3x16xbf16, #tpu.memory_space<vmem>>, vector<1x3x16xbf16>
    %172 = vector.shape_cast %171 : vector<1x3x16xbf16> to vector<3x16xbf16>
    %173 = vector.shape_cast %172 : vector<3x16xbf16> to vector<1x3x16xbf16>
    %174 = vector.broadcast %173 : vector<1x3x16xbf16> to vector<8x3x16xbf16>
    %cst_175 = arith.constant dense<0.000000e+00> : vector<8x8x16xf32>
    %175 = tpu.matmul %170, %174, %cst_175 {dimension_numbers = #tpu.dot_dimension_numbers<[2], [1], [1], [2], [0, 0, 0, 1, 1, 2], [0], [0]>} : vector<8x8x3xbf16>, vector<8x3x16xbf16>, vector<8x8x16xf32> -> vector<8x8x16xf32>
    %176 = arith.addf %168, %175 : vector<8x8x16xf32>
    %c0_176 = arith.constant 0 : index
    %c3_177 = arith.constant 3 : index
    %c1_178 = arith.constant 1 : index
    %c0_179 = arith.constant 0 : index
    %c0_180 = arith.constant 0 : index
    %177 = vector.load %arg1[%c0_176, %c3_177, %c1_178, %c0_179, %c0_180] : memref<1x4x11x11x3xbf16, #tpu.memory_space<vmem>>, vector<1x1x8x8x3xbf16>
    %178 = vector.shape_cast %177 : vector<1x1x8x8x3xbf16> to vector<8x8x3xbf16>
    %c22 = arith.constant 22 : index
    %c0_181 = arith.constant 0 : index
    %c0_182 = arith.constant 0 : index
    %179 = vector.load %arg2[%c22, %c0_181, %c0_182] : memref<49x3x16xbf16, #tpu.memory_space<vmem>>, vector<1x3x16xbf16>
    %180 = vector.shape_cast %179 : vector<1x3x16xbf16> to vector<3x16xbf16>
    %181 = vector.shape_cast %180 : vector<3x16xbf16> to vector<1x3x16xbf16>
    %182 = vector.broadcast %181 : vector<1x3x16xbf16> to vector<8x3x16xbf16>
    %cst_183 = arith.constant dense<0.000000e+00> : vector<8x8x16xf32>
    %183 = tpu.matmul %178, %182, %cst_183 {dimension_numbers = #tpu.dot_dimension_numbers<[2], [1], [1], [2], [0, 0, 0, 1, 1, 2], [0], [0]>} : vector<8x8x3xbf16>, vector<8x3x16xbf16>, vector<8x8x16xf32> -> vector<8x8x16xf32>
    %184 = arith.addf %176, %183 : vector<8x8x16xf32>
    %c0_184 = arith.constant 0 : index
    %c2_185 = arith.constant 2 : index
    %c1_186 = arith.constant 1 : index
    %c1_187 = arith.constant 1 : index
    %c0_188 = arith.constant 0 : index
    %185 = vector.load %arg1[%c0_184, %c2_185, %c1_186, %c1_187, %c0_188] : memref<1x4x11x11x3xbf16, #tpu.memory_space<vmem>>, vector<1x1x8x8x3xbf16>
    %186 = vector.shape_cast %185 : vector<1x1x8x8x3xbf16> to vector<8x8x3xbf16>
    %c23 = arith.constant 23 : index
    %c0_189 = arith.constant 0 : index
    %c0_190 = arith.constant 0 : index
    %187 = vector.load %arg2[%c23, %c0_189, %c0_190] : memref<49x3x16xbf16, #tpu.memory_space<vmem>>, vector<1x3x16xbf16>
    %188 = vector.shape_cast %187 : vector<1x3x16xbf16> to vector<3x16xbf16>
    %189 = vector.shape_cast %188 : vector<3x16xbf16> to vector<1x3x16xbf16>
    %190 = vector.broadcast %189 : vector<1x3x16xbf16> to vector<8x3x16xbf16>
    %cst_191 = arith.constant dense<0.000000e+00> : vector<8x8x16xf32>
    %191 = tpu.matmul %186, %190, %cst_191 {dimension_numbers = #tpu.dot_dimension_numbers<[2], [1], [1], [2], [0, 0, 0, 1, 1, 2], [0], [0]>} : vector<8x8x3xbf16>, vector<8x3x16xbf16>, vector<8x8x16xf32> -> vector<8x8x16xf32>
    %192 = arith.addf %184, %191 : vector<8x8x16xf32>
    %c0_192 = arith.constant 0 : index
    %c3_193 = arith.constant 3 : index
    %c1_194 = arith.constant 1 : index
    %c1_195 = arith.constant 1 : index
    %c0_196 = arith.constant 0 : index
    %193 = vector.load %arg1[%c0_192, %c3_193, %c1_194, %c1_195, %c0_196] : memref<1x4x11x11x3xbf16, #tpu.memory_space<vmem>>, vector<1x1x8x8x3xbf16>
    %194 = vector.shape_cast %193 : vector<1x1x8x8x3xbf16> to vector<8x8x3xbf16>
    %c24 = arith.constant 24 : index
    %c0_197 = arith.constant 0 : index
    %c0_198 = arith.constant 0 : index
    %195 = vector.load %arg2[%c24, %c0_197, %c0_198] : memref<49x3x16xbf16, #tpu.memory_space<vmem>>, vector<1x3x16xbf16>
    %196 = vector.shape_cast %195 : vector<1x3x16xbf16> to vector<3x16xbf16>
    %197 = vector.shape_cast %196 : vector<3x16xbf16> to vector<1x3x16xbf16>
    %198 = vector.broadcast %197 : vector<1x3x16xbf16> to vector<8x3x16xbf16>
    %cst_199 = arith.constant dense<0.000000e+00> : vector<8x8x16xf32>
    %199 = tpu.matmul %194, %198, %cst_199 {dimension_numbers = #tpu.dot_dimension_numbers<[2], [1], [1], [2], [0, 0, 0, 1, 1, 2], [0], [0]>} : vector<8x8x3xbf16>, vector<8x3x16xbf16>, vector<8x8x16xf32> -> vector<8x8x16xf32>
    %200 = arith.addf %192, %199 : vector<8x8x16xf32>
    %c0_200 = arith.constant 0 : index
    %c2_201 = arith.constant 2 : index
    %c1_202 = arith.constant 1 : index
    %c2_203 = arith.constant 2 : index
    %c0_204 = arith.constant 0 : index
    %201 = vector.load %arg1[%c0_200, %c2_201, %c1_202, %c2_203, %c0_204] : memref<1x4x11x11x3xbf16, #tpu.memory_space<vmem>>, vector<1x1x8x8x3xbf16>
    %202 = vector.shape_cast %201 : vector<1x1x8x8x3xbf16> to vector<8x8x3xbf16>
    %c25 = arith.constant 25 : index
    %c0_205 = arith.constant 0 : index
    %c0_206 = arith.constant 0 : index
    %203 = vector.load %arg2[%c25, %c0_205, %c0_206] : memref<49x3x16xbf16, #tpu.memory_space<vmem>>, vector<1x3x16xbf16>
    %204 = vector.shape_cast %203 : vector<1x3x16xbf16> to vector<3x16xbf16>
    %205 = vector.shape_cast %204 : vector<3x16xbf16> to vector<1x3x16xbf16>
    %206 = vector.broadcast %205 : vector<1x3x16xbf16> to vector<8x3x16xbf16>
    %cst_207 = arith.constant dense<0.000000e+00> : vector<8x8x16xf32>
    %207 = tpu.matmul %202, %206, %cst_207 {dimension_numbers = #tpu.dot_dimension_numbers<[2], [1], [1], [2], [0, 0, 0, 1, 1, 2], [0], [0]>} : vector<8x8x3xbf16>, vector<8x3x16xbf16>, vector<8x8x16xf32> -> vector<8x8x16xf32>
    %208 = arith.addf %200, %207 : vector<8x8x16xf32>
    %c0_208 = arith.constant 0 : index
    %c3_209 = arith.constant 3 : index
    %c1_210 = arith.constant 1 : index
    %c2_211 = arith.constant 2 : index
    %c0_212 = arith.constant 0 : index
    %209 = vector.load %arg1[%c0_208, %c3_209, %c1_210, %c2_211, %c0_212] : memref<1x4x11x11x3xbf16, #tpu.memory_space<vmem>>, vector<1x1x8x8x3xbf16>
    %210 = vector.shape_cast %209 : vector<1x1x8x8x3xbf16> to vector<8x8x3xbf16>
    %c26 = arith.constant 26 : index
    %c0_213 = arith.constant 0 : index
    %c0_214 = arith.constant 0 : index
    %211 = vector.load %arg2[%c26, %c0_213, %c0_214] : memref<49x3x16xbf16, #tpu.memory_space<vmem>>, vector<1x3x16xbf16>
    %212 = vector.shape_cast %211 : vector<1x3x16xbf16> to vector<3x16xbf16>
    %213 = vector.shape_cast %212 : vector<3x16xbf16> to vector<1x3x16xbf16>
    %214 = vector.broadcast %213 : vector<1x3x16xbf16> to vector<8x3x16xbf16>
    %cst_215 = arith.constant dense<0.000000e+00> : vector<8x8x16xf32>
    %215 = tpu.matmul %210, %214, %cst_215 {dimension_numbers = #tpu.dot_dimension_numbers<[2], [1], [1], [2], [0, 0, 0, 1, 1, 2], [0], [0]>} : vector<8x8x3xbf16>, vector<8x3x16xbf16>, vector<8x8x16xf32> -> vector<8x8x16xf32>
    %216 = arith.addf %208, %215 : vector<8x8x16xf32>
    %c0_216 = arith.constant 0 : index
    %c2_217 = arith.constant 2 : index
    %c1_218 = arith.constant 1 : index
    %c3_219 = arith.constant 3 : index
    %c0_220 = arith.constant 0 : index
    %217 = vector.load %arg1[%c0_216, %c2_217, %c1_218, %c3_219, %c0_220] : memref<1x4x11x11x3xbf16, #tpu.memory_space<vmem>>, vector<1x1x8x8x3xbf16>
    %218 = vector.shape_cast %217 : vector<1x1x8x8x3xbf16> to vector<8x8x3xbf16>
    %c27 = arith.constant 27 : index
    %c0_221 = arith.constant 0 : index
    %c0_222 = arith.constant 0 : index
    %219 = vector.load %arg2[%c27, %c0_221, %c0_222] : memref<49x3x16xbf16, #tpu.memory_space<vmem>>, vector<1x3x16xbf16>
    %220 = vector.shape_cast %219 : vector<1x3x16xbf16> to vector<3x16xbf16>
    %221 = vector.shape_cast %220 : vector<3x16xbf16> to vector<1x3x16xbf16>
    %222 = vector.broadcast %221 : vector<1x3x16xbf16> to vector<8x3x16xbf16>
    %cst_223 = arith.constant dense<0.000000e+00> : vector<8x8x16xf32>
    %223 = tpu.matmul %218, %222, %cst_223 {dimension_numbers = #tpu.dot_dimension_numbers<[2], [1], [1], [2], [0, 0, 0, 1, 1, 2], [0], [0]>} : vector<8x8x3xbf16>, vector<8x3x16xbf16>, vector<8x8x16xf32> -> vector<8x8x16xf32>
    %224 = arith.addf %216, %223 : vector<8x8x16xf32>
    %c0_224 = arith.constant 0 : index
    %c0_225 = arith.constant 0 : index
    %c2_226 = arith.constant 2 : index
    %c0_227 = arith.constant 0 : index
    %c0_228 = arith.constant 0 : index
    %225 = vector.load %arg1[%c0_224, %c0_225, %c2_226, %c0_227, %c0_228] : memref<1x4x11x11x3xbf16, #tpu.memory_space<vmem>>, vector<1x1x8x8x3xbf16>
    %226 = vector.shape_cast %225 : vector<1x1x8x8x3xbf16> to vector<8x8x3xbf16>
    %c28 = arith.constant 28 : index
    %c0_229 = arith.constant 0 : index
    %c0_230 = arith.constant 0 : index
    %227 = vector.load %arg2[%c28, %c0_229, %c0_230] : memref<49x3x16xbf16, #tpu.memory_space<vmem>>, vector<1x3x16xbf16>
    %228 = vector.shape_cast %227 : vector<1x3x16xbf16> to vector<3x16xbf16>
    %229 = vector.shape_cast %228 : vector<3x16xbf16> to vector<1x3x16xbf16>
    %230 = vector.broadcast %229 : vector<1x3x16xbf16> to vector<8x3x16xbf16>
    %cst_231 = arith.constant dense<0.000000e+00> : vector<8x8x16xf32>
    %231 = tpu.matmul %226, %230, %cst_231 {dimension_numbers = #tpu.dot_dimension_numbers<[2], [1], [1], [2], [0, 0, 0, 1, 1, 2], [0], [0]>} : vector<8x8x3xbf16>, vector<8x3x16xbf16>, vector<8x8x16xf32> -> vector<8x8x16xf32>
    %232 = arith.addf %224, %231 : vector<8x8x16xf32>
    %c0_232 = arith.constant 0 : index
    %c1_233 = arith.constant 1 : index
    %c2_234 = arith.constant 2 : index
    %c0_235 = arith.constant 0 : index
    %c0_236 = arith.constant 0 : index
    %233 = vector.load %arg1[%c0_232, %c1_233, %c2_234, %c0_235, %c0_236] : memref<1x4x11x11x3xbf16, #tpu.memory_space<vmem>>, vector<1x1x8x8x3xbf16>
    %234 = vector.shape_cast %233 : vector<1x1x8x8x3xbf16> to vector<8x8x3xbf16>
    %c29 = arith.constant 29 : index
    %c0_237 = arith.constant 0 : index
    %c0_238 = arith.constant 0 : index
    %235 = vector.load %arg2[%c29, %c0_237, %c0_238] : memref<49x3x16xbf16, #tpu.memory_space<vmem>>, vector<1x3x16xbf16>
    %236 = vector.shape_cast %235 : vector<1x3x16xbf16> to vector<3x16xbf16>
    %237 = vector.shape_cast %236 : vector<3x16xbf16> to vector<1x3x16xbf16>
    %238 = vector.broadcast %237 : vector<1x3x16xbf16> to vector<8x3x16xbf16>
    %cst_239 = arith.constant dense<0.000000e+00> : vector<8x8x16xf32>
    %239 = tpu.matmul %234, %238, %cst_239 {dimension_numbers = #tpu.dot_dimension_numbers<[2], [1], [1], [2], [0, 0, 0, 1, 1, 2], [0], [0]>} : vector<8x8x3xbf16>, vector<8x3x16xbf16>, vector<8x8x16xf32> -> vector<8x8x16xf32>
    %240 = arith.addf %232, %239 : vector<8x8x16xf32>
    %c0_240 = arith.constant 0 : index
    %c0_241 = arith.constant 0 : index
    %c2_242 = arith.constant 2 : index
    %c1_243 = arith.constant 1 : index
    %c0_244 = arith.constant 0 : index
    %241 = vector.load %arg1[%c0_240, %c0_241, %c2_242, %c1_243, %c0_244] : memref<1x4x11x11x3xbf16, #tpu.memory_space<vmem>>, vector<1x1x8x8x3xbf16>
    %242 = vector.shape_cast %241 : vector<1x1x8x8x3xbf16> to vector<8x8x3xbf16>
    %c30 = arith.constant 30 : index
    %c0_245 = arith.constant 0 : index
    %c0_246 = arith.constant 0 : index
    %243 = vector.load %arg2[%c30, %c0_245, %c0_246] : memref<49x3x16xbf16, #tpu.memory_space<vmem>>, vector<1x3x16xbf16>
    %244 = vector.shape_cast %243 : vector<1x3x16xbf16> to vector<3x16xbf16>
    %245 = vector.shape_cast %244 : vector<3x16xbf16> to vector<1x3x16xbf16>
    %246 = vector.broadcast %245 : vector<1x3x16xbf16> to vector<8x3x16xbf16>
    %cst_247 = arith.constant dense<0.000000e+00> : vector<8x8x16xf32>
    %247 = tpu.matmul %242, %246, %cst_247 {dimension_numbers = #tpu.dot_dimension_numbers<[2], [1], [1], [2], [0, 0, 0, 1, 1, 2], [0], [0]>} : vector<8x8x3xbf16>, vector<8x3x16xbf16>, vector<8x8x16xf32> -> vector<8x8x16xf32>
    %248 = arith.addf %240, %247 : vector<8x8x16xf32>
    %c0_248 = arith.constant 0 : index
    %c1_249 = arith.constant 1 : index
    %c2_250 = arith.constant 2 : index
    %c1_251 = arith.constant 1 : index
    %c0_252 = arith.constant 0 : index
    %249 = vector.load %arg1[%c0_248, %c1_249, %c2_250, %c1_251, %c0_252] : memref<1x4x11x11x3xbf16, #tpu.memory_space<vmem>>, vector<1x1x8x8x3xbf16>
    %250 = vector.shape_cast %249 : vector<1x1x8x8x3xbf16> to vector<8x8x3xbf16>
    %c31 = arith.constant 31 : index
    %c0_253 = arith.constant 0 : index
    %c0_254 = arith.constant 0 : index
    %251 = vector.load %arg2[%c31, %c0_253, %c0_254] : memref<49x3x16xbf16, #tpu.memory_space<vmem>>, vector<1x3x16xbf16>
    %252 = vector.shape_cast %251 : vector<1x3x16xbf16> to vector<3x16xbf16>
    %253 = vector.shape_cast %252 : vector<3x16xbf16> to vector<1x3x16xbf16>
    %254 = vector.broadcast %253 : vector<1x3x16xbf16> to vector<8x3x16xbf16>
    %cst_255 = arith.constant dense<0.000000e+00> : vector<8x8x16xf32>
    %255 = tpu.matmul %250, %254, %cst_255 {dimension_numbers = #tpu.dot_dimension_numbers<[2], [1], [1], [2], [0, 0, 0, 1, 1, 2], [0], [0]>} : vector<8x8x3xbf16>, vector<8x3x16xbf16>, vector<8x8x16xf32> -> vector<8x8x16xf32>
    %256 = arith.addf %248, %255 : vector<8x8x16xf32>
    %c0_256 = arith.constant 0 : index
    %c0_257 = arith.constant 0 : index
    %c2_258 = arith.constant 2 : index
    %c2_259 = arith.constant 2 : index
    %c0_260 = arith.constant 0 : index
    %257 = vector.load %arg1[%c0_256, %c0_257, %c2_258, %c2_259, %c0_260] : memref<1x4x11x11x3xbf16, #tpu.memory_space<vmem>>, vector<1x1x8x8x3xbf16>
    %258 = vector.shape_cast %257 : vector<1x1x8x8x3xbf16> to vector<8x8x3xbf16>
    %c32 = arith.constant 32 : index
    %c0_261 = arith.constant 0 : index
    %c0_262 = arith.constant 0 : index
    %259 = vector.load %arg2[%c32, %c0_261, %c0_262] : memref<49x3x16xbf16, #tpu.memory_space<vmem>>, vector<1x3x16xbf16>
    %260 = vector.shape_cast %259 : vector<1x3x16xbf16> to vector<3x16xbf16>
    %261 = vector.shape_cast %260 : vector<3x16xbf16> to vector<1x3x16xbf16>
    %262 = vector.broadcast %261 : vector<1x3x16xbf16> to vector<8x3x16xbf16>
    %cst_263 = arith.constant dense<0.000000e+00> : vector<8x8x16xf32>
    %263 = tpu.matmul %258, %262, %cst_263 {dimension_numbers = #tpu.dot_dimension_numbers<[2], [1], [1], [2], [0, 0, 0, 1, 1, 2], [0], [0]>} : vector<8x8x3xbf16>, vector<8x3x16xbf16>, vector<8x8x16xf32> -> vector<8x8x16xf32>
    %264 = arith.addf %256, %263 : vector<8x8x16xf32>
    %c0_264 = arith.constant 0 : index
    %c1_265 = arith.constant 1 : index
    %c2_266 = arith.constant 2 : index
    %c2_267 = arith.constant 2 : index
    %c0_268 = arith.constant 0 : index
    %265 = vector.load %arg1[%c0_264, %c1_265, %c2_266, %c2_267, %c0_268] : memref<1x4x11x11x3xbf16, #tpu.memory_space<vmem>>, vector<1x1x8x8x3xbf16>
    %266 = vector.shape_cast %265 : vector<1x1x8x8x3xbf16> to vector<8x8x3xbf16>
    %c33 = arith.constant 33 : index
    %c0_269 = arith.constant 0 : index
    %c0_270 = arith.constant 0 : index
    %267 = vector.load %arg2[%c33, %c0_269, %c0_270] : memref<49x3x16xbf16, #tpu.memory_space<vmem>>, vector<1x3x16xbf16>
    %268 = vector.shape_cast %267 : vector<1x3x16xbf16> to vector<3x16xbf16>
    %269 = vector.shape_cast %268 : vector<3x16xbf16> to vector<1x3x16xbf16>
    %270 = vector.broadcast %269 : vector<1x3x16xbf16> to vector<8x3x16xbf16>
    %cst_271 = arith.constant dense<0.000000e+00> : vector<8x8x16xf32>
    %271 = tpu.matmul %266, %270, %cst_271 {dimension_numbers = #tpu.dot_dimension_numbers<[2], [1], [1], [2], [0, 0, 0, 1, 1, 2], [0], [0]>} : vector<8x8x3xbf16>, vector<8x3x16xbf16>, vector<8x8x16xf32> -> vector<8x8x16xf32>
    %272 = arith.addf %264, %271 : vector<8x8x16xf32>
    %c0_272 = arith.constant 0 : index
    %c0_273 = arith.constant 0 : index
    %c2_274 = arith.constant 2 : index
    %c3_275 = arith.constant 3 : index
    %c0_276 = arith.constant 0 : index
    %273 = vector.load %arg1[%c0_272, %c0_273, %c2_274, %c3_275, %c0_276] : memref<1x4x11x11x3xbf16, #tpu.memory_space<vmem>>, vector<1x1x8x8x3xbf16>
    %274 = vector.shape_cast %273 : vector<1x1x8x8x3xbf16> to vector<8x8x3xbf16>
    %c34 = arith.constant 34 : index
    %c0_277 = arith.constant 0 : index
    %c0_278 = arith.constant 0 : index
    %275 = vector.load %arg2[%c34, %c0_277, %c0_278] : memref<49x3x16xbf16, #tpu.memory_space<vmem>>, vector<1x3x16xbf16>
    %276 = vector.shape_cast %275 : vector<1x3x16xbf16> to vector<3x16xbf16>
    %277 = vector.shape_cast %276 : vector<3x16xbf16> to vector<1x3x16xbf16>
    %278 = vector.broadcast %277 : vector<1x3x16xbf16> to vector<8x3x16xbf16>
    %cst_279 = arith.constant dense<0.000000e+00> : vector<8x8x16xf32>
    %279 = tpu.matmul %274, %278, %cst_279 {dimension_numbers = #tpu.dot_dimension_numbers<[2], [1], [1], [2], [0, 0, 0, 1, 1, 2], [0], [0]>} : vector<8x8x3xbf16>, vector<8x3x16xbf16>, vector<8x8x16xf32> -> vector<8x8x16xf32>
    %280 = arith.addf %272, %279 : vector<8x8x16xf32>
    %c0_280 = arith.constant 0 : index
    %c2_281 = arith.constant 2 : index
    %c2_282 = arith.constant 2 : index
    %c0_283 = arith.constant 0 : index
    %c0_284 = arith.constant 0 : index
    %281 = vector.load %arg1[%c0_280, %c2_281, %c2_282, %c0_283, %c0_284] : memref<1x4x11x11x3xbf16, #tpu.memory_space<vmem>>, vector<1x1x8x8x3xbf16>
    %282 = vector.shape_cast %281 : vector<1x1x8x8x3xbf16> to vector<8x8x3xbf16>
    %c35 = arith.constant 35 : index
    %c0_285 = arith.constant 0 : index
    %c0_286 = arith.constant 0 : index
    %283 = vector.load %arg2[%c35, %c0_285, %c0_286] : memref<49x3x16xbf16, #tpu.memory_space<vmem>>, vector<1x3x16xbf16>
    %284 = vector.shape_cast %283 : vector<1x3x16xbf16> to vector<3x16xbf16>
    %285 = vector.shape_cast %284 : vector<3x16xbf16> to vector<1x3x16xbf16>
    %286 = vector.broadcast %285 : vector<1x3x16xbf16> to vector<8x3x16xbf16>
    %cst_287 = arith.constant dense<0.000000e+00> : vector<8x8x16xf32>
    %287 = tpu.matmul %282, %286, %cst_287 {dimension_numbers = #tpu.dot_dimension_numbers<[2], [1], [1], [2], [0, 0, 0, 1, 1, 2], [0], [0]>} : vector<8x8x3xbf16>, vector<8x3x16xbf16>, vector<8x8x16xf32> -> vector<8x8x16xf32>
    %288 = arith.addf %280, %287 : vector<8x8x16xf32>
    %c0_288 = arith.constant 0 : index
    %c3_289 = arith.constant 3 : index
    %c2_290 = arith.constant 2 : index
    %c0_291 = arith.constant 0 : index
    %c0_292 = arith.constant 0 : index
    %289 = vector.load %arg1[%c0_288, %c3_289, %c2_290, %c0_291, %c0_292] : memref<1x4x11x11x3xbf16, #tpu.memory_space<vmem>>, vector<1x1x8x8x3xbf16>
    %290 = vector.shape_cast %289 : vector<1x1x8x8x3xbf16> to vector<8x8x3xbf16>
    %c36 = arith.constant 36 : index
    %c0_293 = arith.constant 0 : index
    %c0_294 = arith.constant 0 : index
    %291 = vector.load %arg2[%c36, %c0_293, %c0_294] : memref<49x3x16xbf16, #tpu.memory_space<vmem>>, vector<1x3x16xbf16>
    %292 = vector.shape_cast %291 : vector<1x3x16xbf16> to vector<3x16xbf16>
    %293 = vector.shape_cast %292 : vector<3x16xbf16> to vector<1x3x16xbf16>
    %294 = vector.broadcast %293 : vector<1x3x16xbf16> to vector<8x3x16xbf16>
    %cst_295 = arith.constant dense<0.000000e+00> : vector<8x8x16xf32>
    %295 = tpu.matmul %290, %294, %cst_295 {dimension_numbers = #tpu.dot_dimension_numbers<[2], [1], [1], [2], [0, 0, 0, 1, 1, 2], [0], [0]>} : vector<8x8x3xbf16>, vector<8x3x16xbf16>, vector<8x8x16xf32> -> vector<8x8x16xf32>
    %296 = arith.addf %288, %295 : vector<8x8x16xf32>
    %c0_296 = arith.constant 0 : index
    %c2_297 = arith.constant 2 : index
    %c2_298 = arith.constant 2 : index
    %c1_299 = arith.constant 1 : index
    %c0_300 = arith.constant 0 : index
    %297 = vector.load %arg1[%c0_296, %c2_297, %c2_298, %c1_299, %c0_300] : memref<1x4x11x11x3xbf16, #tpu.memory_space<vmem>>, vector<1x1x8x8x3xbf16>
    %298 = vector.shape_cast %297 : vector<1x1x8x8x3xbf16> to vector<8x8x3xbf16>
    %c37 = arith.constant 37 : index
    %c0_301 = arith.constant 0 : index
    %c0_302 = arith.constant 0 : index
    %299 = vector.load %arg2[%c37, %c0_301, %c0_302] : memref<49x3x16xbf16, #tpu.memory_space<vmem>>, vector<1x3x16xbf16>
    %300 = vector.shape_cast %299 : vector<1x3x16xbf16> to vector<3x16xbf16>
    %301 = vector.shape_cast %300 : vector<3x16xbf16> to vector<1x3x16xbf16>
    %302 = vector.broadcast %301 : vector<1x3x16xbf16> to vector<8x3x16xbf16>
    %cst_303 = arith.constant dense<0.000000e+00> : vector<8x8x16xf32>
    %303 = tpu.matmul %298, %302, %cst_303 {dimension_numbers = #tpu.dot_dimension_numbers<[2], [1], [1], [2], [0, 0, 0, 1, 1, 2], [0], [0]>} : vector<8x8x3xbf16>, vector<8x3x16xbf16>, vector<8x8x16xf32> -> vector<8x8x16xf32>
    %304 = arith.addf %296, %303 : vector<8x8x16xf32>
    %c0_304 = arith.constant 0 : index
    %c3_305 = arith.constant 3 : index
    %c2_306 = arith.constant 2 : index
    %c1_307 = arith.constant 1 : index
    %c0_308 = arith.constant 0 : index
    %305 = vector.load %arg1[%c0_304, %c3_305, %c2_306, %c1_307, %c0_308] : memref<1x4x11x11x3xbf16, #tpu.memory_space<vmem>>, vector<1x1x8x8x3xbf16>
    %306 = vector.shape_cast %305 : vector<1x1x8x8x3xbf16> to vector<8x8x3xbf16>
    %c38 = arith.constant 38 : index
    %c0_309 = arith.constant 0 : index
    %c0_310 = arith.constant 0 : index
    %307 = vector.load %arg2[%c38, %c0_309, %c0_310] : memref<49x3x16xbf16, #tpu.memory_space<vmem>>, vector<1x3x16xbf16>
    %308 = vector.shape_cast %307 : vector<1x3x16xbf16> to vector<3x16xbf16>
    %309 = vector.shape_cast %308 : vector<3x16xbf16> to vector<1x3x16xbf16>
    %310 = vector.broadcast %309 : vector<1x3x16xbf16> to vector<8x3x16xbf16>
    %cst_311 = arith.constant dense<0.000000e+00> : vector<8x8x16xf32>
    %311 = tpu.matmul %306, %310, %cst_311 {dimension_numbers = #tpu.dot_dimension_numbers<[2], [1], [1], [2], [0, 0, 0, 1, 1, 2], [0], [0]>} : vector<8x8x3xbf16>, vector<8x3x16xbf16>, vector<8x8x16xf32> -> vector<8x8x16xf32>
    %312 = arith.addf %304, %311 : vector<8x8x16xf32>
    %c0_312 = arith.constant 0 : index
    %c2_313 = arith.constant 2 : index
    %c2_314 = arith.constant 2 : index
    %c2_315 = arith.constant 2 : index
    %c0_316 = arith.constant 0 : index
    %313 = vector.load %arg1[%c0_312, %c2_313, %c2_314, %c2_315, %c0_316] : memref<1x4x11x11x3xbf16, #tpu.memory_space<vmem>>, vector<1x1x8x8x3xbf16>
    %314 = vector.shape_cast %313 : vector<1x1x8x8x3xbf16> to vector<8x8x3xbf16>
    %c39 = arith.constant 39 : index
    %c0_317 = arith.constant 0 : index
    %c0_318 = arith.constant 0 : index
    %315 = vector.load %arg2[%c39, %c0_317, %c0_318] : memref<49x3x16xbf16, #tpu.memory_space<vmem>>, vector<1x3x16xbf16>
    %316 = vector.shape_cast %315 : vector<1x3x16xbf16> to vector<3x16xbf16>
    %317 = vector.shape_cast %316 : vector<3x16xbf16> to vector<1x3x16xbf16>
    %318 = vector.broadcast %317 : vector<1x3x16xbf16> to vector<8x3x16xbf16>
    %cst_319 = arith.constant dense<0.000000e+00> : vector<8x8x16xf32>
    %319 = tpu.matmul %314, %318, %cst_319 {dimension_numbers = #tpu.dot_dimension_numbers<[2], [1], [1], [2], [0, 0, 0, 1, 1, 2], [0], [0]>} : vector<8x8x3xbf16>, vector<8x3x16xbf16>, vector<8x8x16xf32> -> vector<8x8x16xf32>
    %320 = arith.addf %312, %319 : vector<8x8x16xf32>
    %c0_320 = arith.constant 0 : index
    %c3_321 = arith.constant 3 : index
    %c2_322 = arith.constant 2 : index
    %c2_323 = arith.constant 2 : index
    %c0_324 = arith.constant 0 : index
    %321 = vector.load %arg1[%c0_320, %c3_321, %c2_322, %c2_323, %c0_324] : memref<1x4x11x11x3xbf16, #tpu.memory_space<vmem>>, vector<1x1x8x8x3xbf16>
    %322 = vector.shape_cast %321 : vector<1x1x8x8x3xbf16> to vector<8x8x3xbf16>
    %c40 = arith.constant 40 : index
    %c0_325 = arith.constant 0 : index
    %c0_326 = arith.constant 0 : index
    %323 = vector.load %arg2[%c40, %c0_325, %c0_326] : memref<49x3x16xbf16, #tpu.memory_space<vmem>>, vector<1x3x16xbf16>
    %324 = vector.shape_cast %323 : vector<1x3x16xbf16> to vector<3x16xbf16>
    %325 = vector.shape_cast %324 : vector<3x16xbf16> to vector<1x3x16xbf16>
    %326 = vector.broadcast %325 : vector<1x3x16xbf16> to vector<8x3x16xbf16>
    %cst_327 = arith.constant dense<0.000000e+00> : vector<8x8x16xf32>
    %327 = tpu.matmul %322, %326, %cst_327 {dimension_numbers = #tpu.dot_dimension_numbers<[2], [1], [1], [2], [0, 0, 0, 1, 1, 2], [0], [0]>} : vector<8x8x3xbf16>, vector<8x3x16xbf16>, vector<8x8x16xf32> -> vector<8x8x16xf32>
    %328 = arith.addf %320, %327 : vector<8x8x16xf32>
    %c0_328 = arith.constant 0 : index
    %c2_329 = arith.constant 2 : index
    %c2_330 = arith.constant 2 : index
    %c3_331 = arith.constant 3 : index
    %c0_332 = arith.constant 0 : index
    %329 = vector.load %arg1[%c0_328, %c2_329, %c2_330, %c3_331, %c0_332] : memref<1x4x11x11x3xbf16, #tpu.memory_space<vmem>>, vector<1x1x8x8x3xbf16>
    %330 = vector.shape_cast %329 : vector<1x1x8x8x3xbf16> to vector<8x8x3xbf16>
    %c41 = arith.constant 41 : index
    %c0_333 = arith.constant 0 : index
    %c0_334 = arith.constant 0 : index
    %331 = vector.load %arg2[%c41, %c0_333, %c0_334] : memref<49x3x16xbf16, #tpu.memory_space<vmem>>, vector<1x3x16xbf16>
    %332 = vector.shape_cast %331 : vector<1x3x16xbf16> to vector<3x16xbf16>
    %333 = vector.shape_cast %332 : vector<3x16xbf16> to vector<1x3x16xbf16>
    %334 = vector.broadcast %333 : vector<1x3x16xbf16> to vector<8x3x16xbf16>
    %cst_335 = arith.constant dense<0.000000e+00> : vector<8x8x16xf32>
    %335 = tpu.matmul %330, %334, %cst_335 {dimension_numbers = #tpu.dot_dimension_numbers<[2], [1], [1], [2], [0, 0, 0, 1, 1, 2], [0], [0]>} : vector<8x8x3xbf16>, vector<8x3x16xbf16>, vector<8x8x16xf32> -> vector<8x8x16xf32>
    %336 = arith.addf %328, %335 : vector<8x8x16xf32>
    %c0_336 = arith.constant 0 : index
    %c0_337 = arith.constant 0 : index
    %c3_338 = arith.constant 3 : index
    %c0_339 = arith.constant 0 : index
    %c0_340 = arith.constant 0 : index
    %337 = vector.load %arg1[%c0_336, %c0_337, %c3_338, %c0_339, %c0_340] : memref<1x4x11x11x3xbf16, #tpu.memory_space<vmem>>, vector<1x1x8x8x3xbf16>
    %338 = vector.shape_cast %337 : vector<1x1x8x8x3xbf16> to vector<8x8x3xbf16>
    %c42 = arith.constant 42 : index
    %c0_341 = arith.constant 0 : index
    %c0_342 = arith.constant 0 : index
    %339 = vector.load %arg2[%c42, %c0_341, %c0_342] : memref<49x3x16xbf16, #tpu.memory_space<vmem>>, vector<1x3x16xbf16>
    %340 = vector.shape_cast %339 : vector<1x3x16xbf16> to vector<3x16xbf16>
    %341 = vector.shape_cast %340 : vector<3x16xbf16> to vector<1x3x16xbf16>
    %342 = vector.broadcast %341 : vector<1x3x16xbf16> to vector<8x3x16xbf16>
    %cst_343 = arith.constant dense<0.000000e+00> : vector<8x8x16xf32>
    %343 = tpu.matmul %338, %342, %cst_343 {dimension_numbers = #tpu.dot_dimension_numbers<[2], [1], [1], [2], [0, 0, 0, 1, 1, 2], [0], [0]>} : vector<8x8x3xbf16>, vector<8x3x16xbf16>, vector<8x8x16xf32> -> vector<8x8x16xf32>
    %344 = arith.addf %336, %343 : vector<8x8x16xf32>
    %c0_344 = arith.constant 0 : index
    %c1_345 = arith.constant 1 : index
    %c3_346 = arith.constant 3 : index
    %c0_347 = arith.constant 0 : index
    %c0_348 = arith.constant 0 : index
    %345 = vector.load %arg1[%c0_344, %c1_345, %c3_346, %c0_347, %c0_348] : memref<1x4x11x11x3xbf16, #tpu.memory_space<vmem>>, vector<1x1x8x8x3xbf16>
    %346 = vector.shape_cast %345 : vector<1x1x8x8x3xbf16> to vector<8x8x3xbf16>
    %c43 = arith.constant 43 : index
    %c0_349 = arith.constant 0 : index
    %c0_350 = arith.constant 0 : index
    %347 = vector.load %arg2[%c43, %c0_349, %c0_350] : memref<49x3x16xbf16, #tpu.memory_space<vmem>>, vector<1x3x16xbf16>
    %348 = vector.shape_cast %347 : vector<1x3x16xbf16> to vector<3x16xbf16>
    %349 = vector.shape_cast %348 : vector<3x16xbf16> to vector<1x3x16xbf16>
    %350 = vector.broadcast %349 : vector<1x3x16xbf16> to vector<8x3x16xbf16>
    %cst_351 = arith.constant dense<0.000000e+00> : vector<8x8x16xf32>
    %351 = tpu.matmul %346, %350, %cst_351 {dimension_numbers = #tpu.dot_dimension_numbers<[2], [1], [1], [2], [0, 0, 0, 1, 1, 2], [0], [0]>} : vector<8x8x3xbf16>, vector<8x3x16xbf16>, vector<8x8x16xf32> -> vector<8x8x16xf32>
    %352 = arith.addf %344, %351 : vector<8x8x16xf32>
    %c0_352 = arith.constant 0 : index
    %c0_353 = arith.constant 0 : index
    %c3_354 = arith.constant 3 : index
    %c1_355 = arith.constant 1 : index
    %c0_356 = arith.constant 0 : index
    %353 = vector.load %arg1[%c0_352, %c0_353, %c3_354, %c1_355, %c0_356] : memref<1x4x11x11x3xbf16, #tpu.memory_space<vmem>>, vector<1x1x8x8x3xbf16>
    %354 = vector.shape_cast %353 : vector<1x1x8x8x3xbf16> to vector<8x8x3xbf16>
    %c44 = arith.constant 44 : index
    %c0_357 = arith.constant 0 : index
    %c0_358 = arith.constant 0 : index
    %355 = vector.load %arg2[%c44, %c0_357, %c0_358] : memref<49x3x16xbf16, #tpu.memory_space<vmem>>, vector<1x3x16xbf16>
    %356 = vector.shape_cast %355 : vector<1x3x16xbf16> to vector<3x16xbf16>
    %357 = vector.shape_cast %356 : vector<3x16xbf16> to vector<1x3x16xbf16>
    %358 = vector.broadcast %357 : vector<1x3x16xbf16> to vector<8x3x16xbf16>
    %cst_359 = arith.constant dense<0.000000e+00> : vector<8x8x16xf32>
    %359 = tpu.matmul %354, %358, %cst_359 {dimension_numbers = #tpu.dot_dimension_numbers<[2], [1], [1], [2], [0, 0, 0, 1, 1, 2], [0], [0]>} : vector<8x8x3xbf16>, vector<8x3x16xbf16>, vector<8x8x16xf32> -> vector<8x8x16xf32>
    %360 = arith.addf %352, %359 : vector<8x8x16xf32>
    %c0_360 = arith.constant 0 : index
    %c1_361 = arith.constant 1 : index
    %c3_362 = arith.constant 3 : index
    %c1_363 = arith.constant 1 : index
    %c0_364 = arith.constant 0 : index
    %361 = vector.load %arg1[%c0_360, %c1_361, %c3_362, %c1_363, %c0_364] : memref<1x4x11x11x3xbf16, #tpu.memory_space<vmem>>, vector<1x1x8x8x3xbf16>
    %362 = vector.shape_cast %361 : vector<1x1x8x8x3xbf16> to vector<8x8x3xbf16>
    %c45 = arith.constant 45 : index
    %c0_365 = arith.constant 0 : index
    %c0_366 = arith.constant 0 : index
    %363 = vector.load %arg2[%c45, %c0_365, %c0_366] : memref<49x3x16xbf16, #tpu.memory_space<vmem>>, vector<1x3x16xbf16>
    %364 = vector.shape_cast %363 : vector<1x3x16xbf16> to vector<3x16xbf16>
    %365 = vector.shape_cast %364 : vector<3x16xbf16> to vector<1x3x16xbf16>
    %366 = vector.broadcast %365 : vector<1x3x16xbf16> to vector<8x3x16xbf16>
    %cst_367 = arith.constant dense<0.000000e+00> : vector<8x8x16xf32>
    %367 = tpu.matmul %362, %366, %cst_367 {dimension_numbers = #tpu.dot_dimension_numbers<[2], [1], [1], [2], [0, 0, 0, 1, 1, 2], [0], [0]>} : vector<8x8x3xbf16>, vector<8x3x16xbf16>, vector<8x8x16xf32> -> vector<8x8x16xf32>
    %368 = arith.addf %360, %367 : vector<8x8x16xf32>
    %c0_368 = arith.constant 0 : index
    %c0_369 = arith.constant 0 : index
    %c3_370 = arith.constant 3 : index
    %c2_371 = arith.constant 2 : index
    %c0_372 = arith.constant 0 : index
    %369 = vector.load %arg1[%c0_368, %c0_369, %c3_370, %c2_371, %c0_372] : memref<1x4x11x11x3xbf16, #tpu.memory_space<vmem>>, vector<1x1x8x8x3xbf16>
    %370 = vector.shape_cast %369 : vector<1x1x8x8x3xbf16> to vector<8x8x3xbf16>
    %c46 = arith.constant 46 : index
    %c0_373 = arith.constant 0 : index
    %c0_374 = arith.constant 0 : index
    %371 = vector.load %arg2[%c46, %c0_373, %c0_374] : memref<49x3x16xbf16, #tpu.memory_space<vmem>>, vector<1x3x16xbf16>
    %372 = vector.shape_cast %371 : vector<1x3x16xbf16> to vector<3x16xbf16>
    %373 = vector.shape_cast %372 : vector<3x16xbf16> to vector<1x3x16xbf16>
    %374 = vector.broadcast %373 : vector<1x3x16xbf16> to vector<8x3x16xbf16>
    %cst_375 = arith.constant dense<0.000000e+00> : vector<8x8x16xf32>
    %375 = tpu.matmul %370, %374, %cst_375 {dimension_numbers = #tpu.dot_dimension_numbers<[2], [1], [1], [2], [0, 0, 0, 1, 1, 2], [0], [0]>} : vector<8x8x3xbf16>, vector<8x3x16xbf16>, vector<8x8x16xf32> -> vector<8x8x16xf32>
    %376 = arith.addf %368, %375 : vector<8x8x16xf32>
    %c0_376 = arith.constant 0 : index
    %c1_377 = arith.constant 1 : index
    %c3_378 = arith.constant 3 : index
    %c2_379 = arith.constant 2 : index
    %c0_380 = arith.constant 0 : index
    %377 = vector.load %arg1[%c0_376, %c1_377, %c3_378, %c2_379, %c0_380] : memref<1x4x11x11x3xbf16, #tpu.memory_space<vmem>>, vector<1x1x8x8x3xbf16>
    %378 = vector.shape_cast %377 : vector<1x1x8x8x3xbf16> to vector<8x8x3xbf16>
    %c47 = arith.constant 47 : index
    %c0_381 = arith.constant 0 : index
    %c0_382 = arith.constant 0 : index
    %379 = vector.load %arg2[%c47, %c0_381, %c0_382] : memref<49x3x16xbf16, #tpu.memory_space<vmem>>, vector<1x3x16xbf16>
    %380 = vector.shape_cast %379 : vector<1x3x16xbf16> to vector<3x16xbf16>
    %381 = vector.shape_cast %380 : vector<3x16xbf16> to vector<1x3x16xbf16>
    %382 = vector.broadcast %381 : vector<1x3x16xbf16> to vector<8x3x16xbf16>
    %cst_383 = arith.constant dense<0.000000e+00> : vector<8x8x16xf32>
    %383 = tpu.matmul %378, %382, %cst_383 {dimension_numbers = #tpu.dot_dimension_numbers<[2], [1], [1], [2], [0, 0, 0, 1, 1, 2], [0], [0]>} : vector<8x8x3xbf16>, vector<8x3x16xbf16>, vector<8x8x16xf32> -> vector<8x8x16xf32>
    %384 = arith.addf %376, %383 : vector<8x8x16xf32>
    %c0_384 = arith.constant 0 : index
    %c0_385 = arith.constant 0 : index
    %c3_386 = arith.constant 3 : index
    %c3_387 = arith.constant 3 : index
    %c0_388 = arith.constant 0 : index
    %385 = vector.load %arg1[%c0_384, %c0_385, %c3_386, %c3_387, %c0_388] : memref<1x4x11x11x3xbf16, #tpu.memory_space<vmem>>, vector<1x1x8x8x3xbf16>
    %386 = vector.shape_cast %385 : vector<1x1x8x8x3xbf16> to vector<8x8x3xbf16>
    %c48 = arith.constant 48 : index
    %c0_389 = arith.constant 0 : index
    %c0_390 = arith.constant 0 : index
    %387 = vector.load %arg2[%c48, %c0_389, %c0_390] : memref<49x3x16xbf16, #tpu.memory_space<vmem>>, vector<1x3x16xbf16>
    %388 = vector.shape_cast %387 : vector<1x3x16xbf16> to vector<3x16xbf16>
    %389 = vector.shape_cast %388 : vector<3x16xbf16> to vector<1x3x16xbf16>
    %390 = vector.broadcast %389 : vector<1x3x16xbf16> to vector<8x3x16xbf16>
    %cst_391 = arith.constant dense<0.000000e+00> : vector<8x8x16xf32>
    %391 = tpu.matmul %386, %390, %cst_391 {dimension_numbers = #tpu.dot_dimension_numbers<[2], [1], [1], [2], [0, 0, 0, 1, 1, 2], [0], [0]>} : vector<8x8x3xbf16>, vector<8x3x16xbf16>, vector<8x8x16xf32> -> vector<8x8x16xf32>
    %392 = arith.addf %384, %391 : vector<8x8x16xf32>
    %c0_392 = arith.constant 0 : index
    %c0_393 = arith.constant 0 : index
    %393 = vector.load %arg3[%c0_392, %c0_393] : memref<1x16xf32, #tpu.memory_space<vmem>>, vector<1x16xf32>
    %394 = vector.shape_cast %393 : vector<1x16xf32> to vector<1x1x16xf32>
    %395 = vector.broadcast %394 : vector<1x1x16xf32> to vector<8x8x16xf32>
    %396 = arith.addf %392, %395 : vector<8x8x16xf32>
    %cst_394 = arith.constant 0.000000e+00 : f32
    %397 = vector.broadcast %cst_394 : f32 to vector<8x8x16xf32>
    %398 = arith.maximumf %396, %397 : vector<8x8x16xf32>
    %c0_395 = arith.constant 0 : index
    %c0_396 = arith.constant 0 : index
    %c0_397 = arith.constant 0 : index
    %c0_398 = arith.constant 0 : index
    %399 = vector.load %arg4[%c0_395, %c0_396, %c0_397, %c0_398] : memref<1x8x8x16xf32, #tpu.memory_space<vmem>>, vector<1x8x8x16xf32>
    %400 = vector.shape_cast %399 : vector<1x8x8x16xf32> to vector<8x8x16xf32>
    %401 = vector.shape_cast %398 : vector<8x8x16xf32> to vector<1x8x8x16xf32>
    tpu.vector_store %arg4[%c0_395, %c0_396, %c0_397, %c0_398], %401 {strides = array<i32>} : memref<1x8x8x16xf32, #tpu.memory_space<vmem>>, vector<1x8x8x16xf32>,
    return
  }
  func.func @transform_0(%arg0: i32) -> (i32, i32, i32, i32, i32) {
    %c0_i32 = arith.constant 0 : i32
    %c0_i32_0 = arith.constant 0 : i32
    %c0_i32_1 = arith.constant 0 : i32
    %c0_i32_2 = arith.constant 0 : i32
    %c0_i32_3 = arith.constant 0 : i32
    return %arg0, %c0_i32, %c0_i32_0, %c0_i32_1, %c0_i32_2 : i32, i32, i32, i32, i32
  }
  func.func @transform_1(%arg0: i32) -> (i32, i32, i32) {
    %c0_i32 = arith.constant 0 : i32
    %c0_i32_0 = arith.constant 0 : i32
    %c0_i32_1 = arith.constant 0 : i32
    %c0_i32_2 = arith.constant 0 : i32
    return %c0_i32, %c0_i32_0, %c0_i32_1 : i32, i32, i32
  }
  func.func @transform_2(%arg0: i32) -> (i32, i32) {
    %c0_i32 = arith.constant 0 : i32
    %c0_i32_0 = arith.constant 0 : i32
    %c0_i32_1 = arith.constant 0 : i32
    return %c0_i32, %c0_i32_0 : i32, i32
  }
  func.func @transform_3(%arg0: i32) -> (i32, i32, i32, i32) {
    %c0_i32 = arith.constant 0 : i32
    %c0_i32_0 = arith.constant 0 : i32
    %c0_i32_1 = arith.constant 0 : i32
    %c0_i32_2 = arith.constant 0 : i32
    return %arg0, %c0_i32, %c0_i32_0, %c0_i32_1 : i32, i32, i32, i32
  }
}

module attributes {stable_mosaic.version = 11 : i64} {
  func.func @_block_head_kernel(%arg0: i32, %arg1: memref<1x4x5x5x16xf32, #tpu.memory_space<vmem>>, %arg2: memref<16x16xbf16, #tpu.memory_space<vmem>>, %arg3: memref<1x16xf32, #tpu.memory_space<vmem>>, %arg4: memref<9x16x16xbf16, #tpu.memory_space<vmem>>, %arg5: memref<1x16xf32, #tpu.memory_space<vmem>>, %arg6: memref<16x64xbf16, #tpu.memory_space<vmem>>, %arg7: memref<1x64xf32, #tpu.memory_space<vmem>>, %arg8: memref<16x64xbf16, #tpu.memory_space<vmem>>, %arg9: memref<1x64xf32, #tpu.memory_space<vmem>>, %arg10: memref<64x32xbf16, #tpu.memory_space<vmem>>, %arg11: memref<1x32xf32, #tpu.memory_space<vmem>>, %arg12: memref<1x1x32xf32, #tpu.memory_space<vmem>>, %arg13: memref<6x6x16xf32, #tpu.memory_space<vmem>>) attributes {dimension_semantics = [#tpu.dimension_semantics<parallel>], iteration_bounds = array<i64: 2>, scalar_prefetch = 0 : i64, scratch_operands = 1 : i64, tpu.core_type = #tpu.core_type<tc>, window_params = [{transform_indices = @transform_0, window_bounds = array<i64: 1, 4, 5, 5, 16>}, {pipeline_mode = #tpu.pipeline_mode<synchronous>, transform_indices = @transform_1, window_bounds = array<i64: 16, 16>}, {pipeline_mode = #tpu.pipeline_mode<synchronous>, transform_indices = @transform_2, window_bounds = array<i64: 1, 16>}, {pipeline_mode = #tpu.pipeline_mode<synchronous>, transform_indices = @transform_3, window_bounds = array<i64: 9, 16, 16>}, {pipeline_mode = #tpu.pipeline_mode<synchronous>, transform_indices = @transform_4, window_bounds = array<i64: 1, 16>}, {pipeline_mode = #tpu.pipeline_mode<synchronous>, transform_indices = @transform_5, window_bounds = array<i64: 16, 64>}, {pipeline_mode = #tpu.pipeline_mode<synchronous>, transform_indices = @transform_6, window_bounds = array<i64: 1, 64>}, {pipeline_mode = #tpu.pipeline_mode<synchronous>, transform_indices = @transform_7, window_bounds = array<i64: 16, 64>}, {pipeline_mode = #tpu.pipeline_mode<synchronous>, transform_indices = @transform_8, window_bounds = array<i64: 1, 64>}, {pipeline_mode = #tpu.pipeline_mode<synchronous>, transform_indices = @transform_9, window_bounds = array<i64: 64, 32>}, {pipeline_mode = #tpu.pipeline_mode<synchronous>, transform_indices = @transform_10, window_bounds = array<i64: 1, 32>}, {transform_indices = @transform_11, window_bounds = array<i64: 1, 1, 32>}]} {
    %c0 = arith.constant 0 : index
    %c0_0 = arith.constant 0 : index
    %c0_1 = arith.constant 0 : index
    %c0_2 = arith.constant 0 : index
    %c0_3 = arith.constant 0 : index
    %0 = vector.load %arg1[%c0, %c0_0, %c0_1, %c0_2, %c0_3] : memref<1x4x5x5x16xf32, #tpu.memory_space<vmem>>, vector<1x1x4x4x16xf32>
    %1 = vector.shape_cast %0 : vector<1x1x4x4x16xf32> to vector<4x4x16xf32>
    %c0_4 = arith.constant 0 : index
    %c1 = arith.constant 1 : index
    %c0_5 = arith.constant 0 : index
    %c0_6 = arith.constant 0 : index
    %c0_7 = arith.constant 0 : index
    %2 = vector.load %arg1[%c0_4, %c1, %c0_5, %c0_6, %c0_7] : memref<1x4x5x5x16xf32, #tpu.memory_space<vmem>>, vector<1x1x4x4x16xf32>
    %3 = vector.shape_cast %2 : vector<1x1x4x4x16xf32> to vector<4x4x16xf32>
    %4 = arith.maximumf %1, %3 : vector<4x4x16xf32>
    %c0_8 = arith.constant 0 : index
    %c0_9 = arith.constant 0 : index
    %c0_10 = arith.constant 0 : index
    %c1_11 = arith.constant 1 : index
    %c0_12 = arith.constant 0 : index
    %5 = vector.load %arg1[%c0_8, %c0_9, %c0_10, %c1_11, %c0_12] : memref<1x4x5x5x16xf32, #tpu.memory_space<vmem>>, vector<1x1x4x4x16xf32>
    %6 = vector.shape_cast %5 : vector<1x1x4x4x16xf32> to vector<4x4x16xf32>
    %7 = arith.maximumf %4, %6 : vector<4x4x16xf32>
    %c0_13 = arith.constant 0 : index
    %c2 = arith.constant 2 : index
    %c0_14 = arith.constant 0 : index
    %c0_15 = arith.constant 0 : index
    %c0_16 = arith.constant 0 : index
    %8 = vector.load %arg1[%c0_13, %c2, %c0_14, %c0_15, %c0_16] : memref<1x4x5x5x16xf32, #tpu.memory_space<vmem>>, vector<1x1x4x4x16xf32>
    %9 = vector.shape_cast %8 : vector<1x1x4x4x16xf32> to vector<4x4x16xf32>
    %10 = arith.maximumf %7, %9 : vector<4x4x16xf32>
    %c0_17 = arith.constant 0 : index
    %c3 = arith.constant 3 : index
    %c0_18 = arith.constant 0 : index
    %c0_19 = arith.constant 0 : index
    %c0_20 = arith.constant 0 : index
    %11 = vector.load %arg1[%c0_17, %c3, %c0_18, %c0_19, %c0_20] : memref<1x4x5x5x16xf32, #tpu.memory_space<vmem>>, vector<1x1x4x4x16xf32>
    %12 = vector.shape_cast %11 : vector<1x1x4x4x16xf32> to vector<4x4x16xf32>
    %13 = arith.maximumf %10, %12 : vector<4x4x16xf32>
    %c0_21 = arith.constant 0 : index
    %c2_22 = arith.constant 2 : index
    %c0_23 = arith.constant 0 : index
    %c1_24 = arith.constant 1 : index
    %c0_25 = arith.constant 0 : index
    %14 = vector.load %arg1[%c0_21, %c2_22, %c0_23, %c1_24, %c0_25] : memref<1x4x5x5x16xf32, #tpu.memory_space<vmem>>, vector<1x1x4x4x16xf32>
    %15 = vector.shape_cast %14 : vector<1x1x4x4x16xf32> to vector<4x4x16xf32>
    %16 = arith.maximumf %13, %15 : vector<4x4x16xf32>
    %c0_26 = arith.constant 0 : index
    %c0_27 = arith.constant 0 : index
    %c1_28 = arith.constant 1 : index
    %c0_29 = arith.constant 0 : index
    %c0_30 = arith.constant 0 : index
    %17 = vector.load %arg1[%c0_26, %c0_27, %c1_28, %c0_29, %c0_30] : memref<1x4x5x5x16xf32, #tpu.memory_space<vmem>>, vector<1x1x4x4x16xf32>
    %18 = vector.shape_cast %17 : vector<1x1x4x4x16xf32> to vector<4x4x16xf32>
    %19 = arith.maximumf %16, %18 : vector<4x4x16xf32>
    %c0_31 = arith.constant 0 : index
    %c1_32 = arith.constant 1 : index
    %c1_33 = arith.constant 1 : index
    %c0_34 = arith.constant 0 : index
    %c0_35 = arith.constant 0 : index
    %20 = vector.load %arg1[%c0_31, %c1_32, %c1_33, %c0_34, %c0_35] : memref<1x4x5x5x16xf32, #tpu.memory_space<vmem>>, vector<1x1x4x4x16xf32>
    %21 = vector.shape_cast %20 : vector<1x1x4x4x16xf32> to vector<4x4x16xf32>
    %22 = arith.maximumf %19, %21 : vector<4x4x16xf32>
    %c0_36 = arith.constant 0 : index
    %c0_37 = arith.constant 0 : index
    %c1_38 = arith.constant 1 : index
    %c1_39 = arith.constant 1 : index
    %c0_40 = arith.constant 0 : index
    %23 = vector.load %arg1[%c0_36, %c0_37, %c1_38, %c1_39, %c0_40] : memref<1x4x5x5x16xf32, #tpu.memory_space<vmem>>, vector<1x1x4x4x16xf32>
    %24 = vector.shape_cast %23 : vector<1x1x4x4x16xf32> to vector<4x4x16xf32>
    %25 = arith.maximumf %22, %24 : vector<4x4x16xf32>
    %26 = arith.truncf %25 : vector<4x4x16xf32> to vector<4x4x16xbf16>
    %c0_41 = arith.constant 0 : index
    %c0_42 = arith.constant 0 : index
    %27 = vector.load %arg2[%c0_41, %c0_42] : memref<16x16xbf16, #tpu.memory_space<vmem>>, vector<16x16xbf16>
    %28 = vector.shape_cast %27 : vector<16x16xbf16> to vector<1x16x16xbf16>
    %29 = vector.broadcast %28 : vector<1x16x16xbf16> to vector<4x16x16xbf16>
    %cst = arith.constant dense<0.000000e+00> : vector<4x4x16xf32>
    %30 = tpu.matmul %26, %29, %cst {dimension_numbers = #tpu.dot_dimension_numbers<[2], [1], [1], [2], [0, 0, 0, 1, 1, 2], [0], [0]>} : vector<4x4x16xbf16>, vector<4x16x16xbf16>, vector<4x4x16xf32> -> vector<4x4x16xf32>
    %c0_43 = arith.constant 0 : index
    %c0_44 = arith.constant 0 : index
    %31 = vector.load %arg3[%c0_43, %c0_44] : memref<1x16xf32, #tpu.memory_space<vmem>>, vector<1x16xf32>
    %32 = vector.shape_cast %31 : vector<1x16xf32> to vector<1x1x16xf32>
    %33 = vector.broadcast %32 : vector<1x1x16xf32> to vector<4x4x16xf32>
    %34 = arith.addf %30, %33 : vector<4x4x16xf32>
    %cst_45 = arith.constant 0.000000e+00 : f32
    %35 = vector.broadcast %cst_45 : f32 to vector<4x4x16xf32>
    %36 = arith.maximumf %34, %35 : vector<4x4x16xf32>
    %c0_46 = arith.constant 0 : index
    %c0_47 = arith.constant 0 : index
    %37 = vector.load %arg8[%c0_46, %c0_47] : memref<16x64xbf16, #tpu.memory_space<vmem>>, vector<16x64xbf16>
    %38 = vector.shape_cast %37 : vector<16x64xbf16> to vector<1x16x64xbf16>
    %39 = vector.broadcast %38 : vector<1x16x64xbf16> to vector<4x16x64xbf16>
    %cst_48 = arith.constant dense<0.000000e+00> : vector<4x4x64xf32>
    %40 = tpu.matmul %26, %39, %cst_48 {dimension_numbers = #tpu.dot_dimension_numbers<[2], [1], [1], [2], [0, 0, 0, 1, 1, 2], [0], [0]>} : vector<4x4x16xbf16>, vector<4x16x64xbf16>, vector<4x4x64xf32> -> vector<4x4x64xf32>
    %c0_49 = arith.constant 0 : index
    %c0_50 = arith.constant 0 : index
    %41 = vector.load %arg9[%c0_49, %c0_50] : memref<1x64xf32, #tpu.memory_space<vmem>>, vector<1x64xf32>
    %42 = vector.shape_cast %41 : vector<1x64xf32> to vector<1x1x64xf32>
    %43 = vector.broadcast %42 : vector<1x1x64xf32> to vector<4x4x64xf32>
    %44 = arith.addf %40, %43 : vector<4x4x64xf32>
    %cst_51 = arith.constant 0.000000e+00 : f32
    %45 = vector.broadcast %cst_51 : f32 to vector<6x6x16xf32>
    %c0_52 = arith.constant 0 : index
    %c0_53 = arith.constant 0 : index
    %c0_54 = arith.constant 0 : index
    %46 = vector.load %arg13[%c0_52, %c0_53, %c0_54] : memref<6x6x16xf32, #tpu.memory_space<vmem>>, vector<6x6x16xf32>
    tpu.vector_store %arg13[%c0_52, %c0_53, %c0_54], %45 {strides = array<i32>} : memref<6x6x16xf32, #tpu.memory_space<vmem>>, vector<6x6x16xf32>,
    %c1_55 = arith.constant 1 : index
    %c1_56 = arith.constant 1 : index
    %c0_57 = arith.constant 0 : index
    %47 = vector.load %arg13[%c1_55, %c1_56, %c0_57] : memref<6x6x16xf32, #tpu.memory_space<vmem>>, vector<4x4x16xf32>
    tpu.vector_store %arg13[%c1_55, %c1_56, %c0_57], %36 {strides = array<i32>} : memref<6x6x16xf32, #tpu.memory_space<vmem>>, vector<4x4x16xf32>,
    %cst_58 = arith.constant 0.000000e+00 : f32
    %48 = vector.broadcast %cst_58 : f32 to vector<4x4x16xf32>
    %c0_59 = arith.constant 0 : index
    %c0_60 = arith.constant 0 : index
    %c0_61 = arith.constant 0 : index
    %49 = vector.load %arg13[%c0_59, %c0_60, %c0_61] : memref<6x6x16xf32, #tpu.memory_space<vmem>>, vector<4x4x16xf32>
    %50 = arith.truncf %49 : vector<4x4x16xf32> to vector<4x4x16xbf16>
    %c0_62 = arith.constant 0 : index
    %c0_63 = arith.constant 0 : index
    %c0_64 = arith.constant 0 : index
    %51 = vector.load %arg4[%c0_62, %c0_63, %c0_64] : memref<9x16x16xbf16, #tpu.memory_space<vmem>>, vector<1x16x16xbf16>
    %52 = vector.shape_cast %51 : vector<1x16x16xbf16> to vector<16x16xbf16>
    %53 = vector.shape_cast %52 : vector<16x16xbf16> to vector<1x16x16xbf16>
    %54 = vector.broadcast %53 : vector<1x16x16xbf16> to vector<4x16x16xbf16>
    %cst_65 = arith.constant dense<0.000000e+00> : vector<4x4x16xf32>
    %55 = tpu.matmul %50, %54, %cst_65 {dimension_numbers = #tpu.dot_dimension_numbers<[2], [1], [1], [2], [0, 0, 0, 1, 1, 2], [0], [0]>} : vector<4x4x16xbf16>, vector<4x16x16xbf16>, vector<4x4x16xf32> -> vector<4x4x16xf32>
    %56 = arith.addf %48, %55 : vector<4x4x16xf32>
    %c0_66 = arith.constant 0 : index
    %c1_67 = arith.constant 1 : index
    %c0_68 = arith.constant 0 : index
    %57 = vector.load %arg13[%c0_66, %c1_67, %c0_68] : memref<6x6x16xf32, #tpu.memory_space<vmem>>, vector<4x4x16xf32>
    %58 = arith.truncf %57 : vector<4x4x16xf32> to vector<4x4x16xbf16>
    %c1_69 = arith.constant 1 : index
    %c0_70 = arith.constant 0 : index
    %c0_71 = arith.constant 0 : index
    %59 = vector.load %arg4[%c1_69, %c0_70, %c0_71] : memref<9x16x16xbf16, #tpu.memory_space<vmem>>, vector<1x16x16xbf16>
    %60 = vector.shape_cast %59 : vector<1x16x16xbf16> to vector<16x16xbf16>
    %61 = vector.shape_cast %60 : vector<16x16xbf16> to vector<1x16x16xbf16>
    %62 = vector.broadcast %61 : vector<1x16x16xbf16> to vector<4x16x16xbf16>
    %cst_72 = arith.constant dense<0.000000e+00> : vector<4x4x16xf32>
    %63 = tpu.matmul %58, %62, %cst_72 {dimension_numbers = #tpu.dot_dimension_numbers<[2], [1], [1], [2], [0, 0, 0, 1, 1, 2], [0], [0]>} : vector<4x4x16xbf16>, vector<4x16x16xbf16>, vector<4x4x16xf32> -> vector<4x4x16xf32>
    %64 = arith.addf %56, %63 : vector<4x4x16xf32>
    %c0_73 = arith.constant 0 : index
    %c2_74 = arith.constant 2 : index
    %c0_75 = arith.constant 0 : index
    %65 = vector.load %arg13[%c0_73, %c2_74, %c0_75] : memref<6x6x16xf32, #tpu.memory_space<vmem>>, vector<4x4x16xf32>
    %66 = arith.truncf %65 : vector<4x4x16xf32> to vector<4x4x16xbf16>
    %c2_76 = arith.constant 2 : index
    %c0_77 = arith.constant 0 : index
    %c0_78 = arith.constant 0 : index
    %67 = vector.load %arg4[%c2_76, %c0_77, %c0_78] : memref<9x16x16xbf16, #tpu.memory_space<vmem>>, vector<1x16x16xbf16>
    %68 = vector.shape_cast %67 : vector<1x16x16xbf16> to vector<16x16xbf16>
    %69 = vector.shape_cast %68 : vector<16x16xbf16> to vector<1x16x16xbf16>
    %70 = vector.broadcast %69 : vector<1x16x16xbf16> to vector<4x16x16xbf16>
    %cst_79 = arith.constant dense<0.000000e+00> : vector<4x4x16xf32>
    %71 = tpu.matmul %66, %70, %cst_79 {dimension_numbers = #tpu.dot_dimension_numbers<[2], [1], [1], [2], [0, 0, 0, 1, 1, 2], [0], [0]>} : vector<4x4x16xbf16>, vector<4x16x16xbf16>, vector<4x4x16xf32> -> vector<4x4x16xf32>
    %72 = arith.addf %64, %71 : vector<4x4x16xf32>
    %c1_80 = arith.constant 1 : index
    %c0_81 = arith.constant 0 : index
    %c0_82 = arith.constant 0 : index
    %73 = vector.load %arg13[%c1_80, %c0_81, %c0_82] : memref<6x6x16xf32, #tpu.memory_space<vmem>>, vector<4x4x16xf32>
    %74 = arith.truncf %73 : vector<4x4x16xf32> to vector<4x4x16xbf16>
    %c3_83 = arith.constant 3 : index
    %c0_84 = arith.constant 0 : index
    %c0_85 = arith.constant 0 : index
    %75 = vector.load %arg4[%c3_83, %c0_84, %c0_85] : memref<9x16x16xbf16, #tpu.memory_space<vmem>>, vector<1x16x16xbf16>
    %76 = vector.shape_cast %75 : vector<1x16x16xbf16> to vector<16x16xbf16>
    %77 = vector.shape_cast %76 : vector<16x16xbf16> to vector<1x16x16xbf16>
    %78 = vector.broadcast %77 : vector<1x16x16xbf16> to vector<4x16x16xbf16>
    %cst_86 = arith.constant dense<0.000000e+00> : vector<4x4x16xf32>
    %79 = tpu.matmul %74, %78, %cst_86 {dimension_numbers = #tpu.dot_dimension_numbers<[2], [1], [1], [2], [0, 0, 0, 1, 1, 2], [0], [0]>} : vector<4x4x16xbf16>, vector<4x16x16xbf16>, vector<4x4x16xf32> -> vector<4x4x16xf32>
    %80 = arith.addf %72, %79 : vector<4x4x16xf32>
    %c1_87 = arith.constant 1 : index
    %c1_88 = arith.constant 1 : index
    %c0_89 = arith.constant 0 : index
    %81 = vector.load %arg13[%c1_87, %c1_88, %c0_89] : memref<6x6x16xf32, #tpu.memory_space<vmem>>, vector<4x4x16xf32>
    %82 = arith.truncf %81 : vector<4x4x16xf32> to vector<4x4x16xbf16>
    %c4 = arith.constant 4 : index
    %c0_90 = arith.constant 0 : index
    %c0_91 = arith.constant 0 : index
    %83 = vector.load %arg4[%c4, %c0_90, %c0_91] : memref<9x16x16xbf16, #tpu.memory_space<vmem>>, vector<1x16x16xbf16>
    %84 = vector.shape_cast %83 : vector<1x16x16xbf16> to vector<16x16xbf16>
    %85 = vector.shape_cast %84 : vector<16x16xbf16> to vector<1x16x16xbf16>
    %86 = vector.broadcast %85 : vector<1x16x16xbf16> to vector<4x16x16xbf16>
    %cst_92 = arith.constant dense<0.000000e+00> : vector<4x4x16xf32>
    %87 = tpu.matmul %82, %86, %cst_92 {dimension_numbers = #tpu.dot_dimension_numbers<[2], [1], [1], [2], [0, 0, 0, 1, 1, 2], [0], [0]>} : vector<4x4x16xbf16>, vector<4x16x16xbf16>, vector<4x4x16xf32> -> vector<4x4x16xf32>
    %88 = arith.addf %80, %87 : vector<4x4x16xf32>
    %c1_93 = arith.constant 1 : index
    %c2_94 = arith.constant 2 : index
    %c0_95 = arith.constant 0 : index
    %89 = vector.load %arg13[%c1_93, %c2_94, %c0_95] : memref<6x6x16xf32, #tpu.memory_space<vmem>>, vector<4x4x16xf32>
    %90 = arith.truncf %89 : vector<4x4x16xf32> to vector<4x4x16xbf16>
    %c5 = arith.constant 5 : index
    %c0_96 = arith.constant 0 : index
    %c0_97 = arith.constant 0 : index
    %91 = vector.load %arg4[%c5, %c0_96, %c0_97] : memref<9x16x16xbf16, #tpu.memory_space<vmem>>, vector<1x16x16xbf16>
    %92 = vector.shape_cast %91 : vector<1x16x16xbf16> to vector<16x16xbf16>
    %93 = vector.shape_cast %92 : vector<16x16xbf16> to vector<1x16x16xbf16>
    %94 = vector.broadcast %93 : vector<1x16x16xbf16> to vector<4x16x16xbf16>
    %cst_98 = arith.constant dense<0.000000e+00> : vector<4x4x16xf32>
    %95 = tpu.matmul %90, %94, %cst_98 {dimension_numbers = #tpu.dot_dimension_numbers<[2], [1], [1], [2], [0, 0, 0, 1, 1, 2], [0], [0]>} : vector<4x4x16xbf16>, vector<4x16x16xbf16>, vector<4x4x16xf32> -> vector<4x4x16xf32>
    %96 = arith.addf %88, %95 : vector<4x4x16xf32>
    %c2_99 = arith.constant 2 : index
    %c0_100 = arith.constant 0 : index
    %c0_101 = arith.constant 0 : index
    %97 = vector.load %arg13[%c2_99, %c0_100, %c0_101] : memref<6x6x16xf32, #tpu.memory_space<vmem>>, vector<4x4x16xf32>
    %98 = arith.truncf %97 : vector<4x4x16xf32> to vector<4x4x16xbf16>
    %c6 = arith.constant 6 : index
    %c0_102 = arith.constant 0 : index
    %c0_103 = arith.constant 0 : index
    %99 = vector.load %arg4[%c6, %c0_102, %c0_103] : memref<9x16x16xbf16, #tpu.memory_space<vmem>>, vector<1x16x16xbf16>
    %100 = vector.shape_cast %99 : vector<1x16x16xbf16> to vector<16x16xbf16>
    %101 = vector.shape_cast %100 : vector<16x16xbf16> to vector<1x16x16xbf16>
    %102 = vector.broadcast %101 : vector<1x16x16xbf16> to vector<4x16x16xbf16>
    %cst_104 = arith.constant dense<0.000000e+00> : vector<4x4x16xf32>
    %103 = tpu.matmul %98, %102, %cst_104 {dimension_numbers = #tpu.dot_dimension_numbers<[2], [1], [1], [2], [0, 0, 0, 1, 1, 2], [0], [0]>} : vector<4x4x16xbf16>, vector<4x16x16xbf16>, vector<4x4x16xf32> -> vector<4x4x16xf32>
    %104 = arith.addf %96, %103 : vector<4x4x16xf32>
    %c2_105 = arith.constant 2 : index
    %c1_106 = arith.constant 1 : index
    %c0_107 = arith.constant 0 : index
    %105 = vector.load %arg13[%c2_105, %c1_106, %c0_107] : memref<6x6x16xf32, #tpu.memory_space<vmem>>, vector<4x4x16xf32>
    %106 = arith.truncf %105 : vector<4x4x16xf32> to vector<4x4x16xbf16>
    %c7 = arith.constant 7 : index
    %c0_108 = arith.constant 0 : index
    %c0_109 = arith.constant 0 : index
    %107 = vector.load %arg4[%c7, %c0_108, %c0_109] : memref<9x16x16xbf16, #tpu.memory_space<vmem>>, vector<1x16x16xbf16>
    %108 = vector.shape_cast %107 : vector<1x16x16xbf16> to vector<16x16xbf16>
    %109 = vector.shape_cast %108 : vector<16x16xbf16> to vector<1x16x16xbf16>
    %110 = vector.broadcast %109 : vector<1x16x16xbf16> to vector<4x16x16xbf16>
    %cst_110 = arith.constant dense<0.000000e+00> : vector<4x4x16xf32>
    %111 = tpu.matmul %106, %110, %cst_110 {dimension_numbers = #tpu.dot_dimension_numbers<[2], [1], [1], [2], [0, 0, 0, 1, 1, 2], [0], [0]>} : vector<4x4x16xbf16>, vector<4x16x16xbf16>, vector<4x4x16xf32> -> vector<4x4x16xf32>
    %112 = arith.addf %104, %111 : vector<4x4x16xf32>
    %c2_111 = arith.constant 2 : index
    %c2_112 = arith.constant 2 : index
    %c0_113 = arith.constant 0 : index
    %113 = vector.load %arg13[%c2_111, %c2_112, %c0_113] : memref<6x6x16xf32, #tpu.memory_space<vmem>>, vector<4x4x16xf32>
    %114 = arith.truncf %113 : vector<4x4x16xf32> to vector<4x4x16xbf16>
    %c8 = arith.constant 8 : index
    %c0_114 = arith.constant 0 : index
    %c0_115 = arith.constant 0 : index
    %115 = vector.load %arg4[%c8, %c0_114, %c0_115] : memref<9x16x16xbf16, #tpu.memory_space<vmem>>, vector<1x16x16xbf16>
    %116 = vector.shape_cast %115 : vector<1x16x16xbf16> to vector<16x16xbf16>
    %117 = vector.shape_cast %116 : vector<16x16xbf16> to vector<1x16x16xbf16>
    %118 = vector.broadcast %117 : vector<1x16x16xbf16> to vector<4x16x16xbf16>
    %cst_116 = arith.constant dense<0.000000e+00> : vector<4x4x16xf32>
    %119 = tpu.matmul %114, %118, %cst_116 {dimension_numbers = #tpu.dot_dimension_numbers<[2], [1], [1], [2], [0, 0, 0, 1, 1, 2], [0], [0]>} : vector<4x4x16xbf16>, vector<4x16x16xbf16>, vector<4x4x16xf32> -> vector<4x4x16xf32>
    %120 = arith.addf %112, %119 : vector<4x4x16xf32>
    %c0_117 = arith.constant 0 : index
    %c0_118 = arith.constant 0 : index
    %121 = vector.load %arg5[%c0_117, %c0_118] : memref<1x16xf32, #tpu.memory_space<vmem>>, vector<1x16xf32>
    %122 = vector.shape_cast %121 : vector<1x16xf32> to vector<1x1x16xf32>
    %123 = vector.broadcast %122 : vector<1x1x16xf32> to vector<4x4x16xf32>
    %124 = arith.addf %120, %123 : vector<4x4x16xf32>
    %cst_119 = arith.constant 0.000000e+00 : f32
    %125 = vector.broadcast %cst_119 : f32 to vector<4x4x16xf32>
    %126 = arith.maximumf %124, %125 : vector<4x4x16xf32>
    %127 = arith.truncf %126 : vector<4x4x16xf32> to vector<4x4x16xbf16>
    %c0_120 = arith.constant 0 : index
    %c0_121 = arith.constant 0 : index
    %128 = vector.load %arg6[%c0_120, %c0_121] : memref<16x64xbf16, #tpu.memory_space<vmem>>, vector<16x64xbf16>
    %129 = vector.shape_cast %128 : vector<16x64xbf16> to vector<1x16x64xbf16>
    %130 = vector.broadcast %129 : vector<1x16x64xbf16> to vector<4x16x64xbf16>
    %cst_122 = arith.constant dense<0.000000e+00> : vector<4x4x64xf32>
    %131 = tpu.matmul %127, %130, %cst_122 {dimension_numbers = #tpu.dot_dimension_numbers<[2], [1], [1], [2], [0, 0, 0, 1, 1, 2], [0], [0]>} : vector<4x4x16xbf16>, vector<4x16x64xbf16>, vector<4x4x64xf32> -> vector<4x4x64xf32>
    %c0_123 = arith.constant 0 : index
    %c0_124 = arith.constant 0 : index
    %132 = vector.load %arg7[%c0_123, %c0_124] : memref<1x64xf32, #tpu.memory_space<vmem>>, vector<1x64xf32>
    %133 = vector.shape_cast %132 : vector<1x64xf32> to vector<1x1x64xf32>
    %134 = vector.broadcast %133 : vector<1x1x64xf32> to vector<4x4x64xf32>
    %135 = arith.addf %131, %134 : vector<4x4x64xf32>
    %136 = arith.addf %135, %44 : vector<4x4x64xf32>
    %cst_125 = arith.constant 0.000000e+00 : f32
    %137 = vector.broadcast %cst_125 : f32 to vector<4x4x64xf32>
    %138 = arith.maximumf %136, %137 : vector<4x4x64xf32>
    %cst_126 = arith.constant dense<0.000000e+00> : vector<4x64xf32>
    %139 = vector.multi_reduction <add>, %138, %cst_126 [1] : vector<4x4x64xf32> to vector<4x64xf32>
    %140 = vector.shape_cast %139 : vector<4x64xf32> to vector<4x1x64xf32>
    %cst_127 = arith.constant dense<0.000000e+00> : vector<1x64xf32>
    %141 = vector.multi_reduction <add>, %140, %cst_127 [0] : vector<4x1x64xf32> to vector<1x64xf32>
    %142 = vector.shape_cast %141 : vector<1x64xf32> to vector<1x1x64xf32>
    %143 = vector.shape_cast %142 : vector<1x1x64xf32> to vector<1x64xf32>
    %cst_128 = arith.constant 6.250000e-02 : f32
    %144 = vector.broadcast %cst_128 : f32 to vector<1x64xf32>
    %145 = arith.mulf %143, %144 : vector<1x64xf32>
    %146 = arith.truncf %145 : vector<1x64xf32> to vector<1x64xbf16>
    %c0_129 = arith.constant 0 : index
    %c0_130 = arith.constant 0 : index
    %147 = vector.load %arg10[%c0_129, %c0_130] : memref<64x32xbf16, #tpu.memory_space<vmem>>, vector<64x32xbf16>
    %cst_131 = arith.constant dense<0.000000e+00> : vector<1x32xf32>
    %148 = tpu.matmul %146, %147, %cst_131 {dimension_numbers = #tpu.dot_dimension_numbers<[1], [0], [0], [1], [0, 0, 1, 1], [], []>} : vector<1x64xbf16>, vector<64x32xbf16>, vector<1x32xf32> -> vector<1x32xf32>
    %c0_132 = arith.constant 0 : index
    %c0_133 = arith.constant 0 : index
    %149 = vector.load %arg11[%c0_132, %c0_133] : memref<1x32xf32, #tpu.memory_space<vmem>>, vector<1x32xf32>
    %150 = arith.addf %148, %149 : vector<1x32xf32>
    %c0_134 = arith.constant 0 : index
    %c0_135 = arith.constant 0 : index
    %c0_136 = arith.constant 0 : index
    %151 = vector.load %arg12[%c0_134, %c0_135, %c0_136] : memref<1x1x32xf32, #tpu.memory_space<vmem>>, vector<1x1x32xf32>
    %152 = vector.shape_cast %151 : vector<1x1x32xf32> to vector<1x32xf32>
    %153 = vector.shape_cast %150 : vector<1x32xf32> to vector<1x1x32xf32>
    tpu.vector_store %arg12[%c0_134, %c0_135, %c0_136], %153 {strides = array<i32>} : memref<1x1x32xf32, #tpu.memory_space<vmem>>, vector<1x1x32xf32>,
    return
  }
  func.func @transform_0(%arg0: i32) -> (i32, i32, i32, i32, i32) {
    %c0_i32 = arith.constant 0 : i32
    %c0_i32_0 = arith.constant 0 : i32
    %c0_i32_1 = arith.constant 0 : i32
    %c0_i32_2 = arith.constant 0 : i32
    %c0_i32_3 = arith.constant 0 : i32
    return %arg0, %c0_i32, %c0_i32_0, %c0_i32_1, %c0_i32_2 : i32, i32, i32, i32, i32
  }
  func.func @transform_1(%arg0: i32) -> (i32, i32) {
    %c0_i32 = arith.constant 0 : i32
    %c0_i32_0 = arith.constant 0 : i32
    %c0_i32_1 = arith.constant 0 : i32
    return %c0_i32, %c0_i32_0 : i32, i32
  }
  func.func @transform_2(%arg0: i32) -> (i32, i32) {
    %c0_i32 = arith.constant 0 : i32
    %c0_i32_0 = arith.constant 0 : i32
    %c0_i32_1 = arith.constant 0 : i32
    return %c0_i32, %c0_i32_0 : i32, i32
  }
  func.func @transform_3(%arg0: i32) -> (i32, i32, i32) {
    %c0_i32 = arith.constant 0 : i32
    %c0_i32_0 = arith.constant 0 : i32
    %c0_i32_1 = arith.constant 0 : i32
    %c0_i32_2 = arith.constant 0 : i32
    return %c0_i32, %c0_i32_0, %c0_i32_1 : i32, i32, i32
  }
  func.func @transform_4(%arg0: i32) -> (i32, i32) {
    %c0_i32 = arith.constant 0 : i32
    %c0_i32_0 = arith.constant 0 : i32
    %c0_i32_1 = arith.constant 0 : i32
    return %c0_i32, %c0_i32_0 : i32, i32
  }
  func.func @transform_5(%arg0: i32) -> (i32, i32) {
    %c0_i32 = arith.constant 0 : i32
    %c0_i32_0 = arith.constant 0 : i32
    %c0_i32_1 = arith.constant 0 : i32
    return %c0_i32, %c0_i32_0 : i32, i32
  }
  func.func @transform_6(%arg0: i32) -> (i32, i32) {
    %c0_i32 = arith.constant 0 : i32
    %c0_i32_0 = arith.constant 0 : i32
    %c0_i32_1 = arith.constant 0 : i32
    return %c0_i32, %c0_i32_0 : i32, i32
  }
  func.func @transform_7(%arg0: i32) -> (i32, i32) {
    %c0_i32 = arith.constant 0 : i32
    %c0_i32_0 = arith.constant 0 : i32
    %c0_i32_1 = arith.constant 0 : i32
    return %c0_i32, %c0_i32_0 : i32, i32
  }
  func.func @transform_8(%arg0: i32) -> (i32, i32) {
    %c0_i32 = arith.constant 0 : i32
    %c0_i32_0 = arith.constant 0 : i32
    %c0_i32_1 = arith.constant 0 : i32
    return %c0_i32, %c0_i32_0 : i32, i32
  }
  func.func @transform_9(%arg0: i32) -> (i32, i32) {
    %c0_i32 = arith.constant 0 : i32
    %c0_i32_0 = arith.constant 0 : i32
    %c0_i32_1 = arith.constant 0 : i32
    return %c0_i32, %c0_i32_0 : i32, i32
  }
  func.func @transform_10(%arg0: i32) -> (i32, i32) {
    %c0_i32 = arith.constant 0 : i32
    %c0_i32_0 = arith.constant 0 : i32
    %c0_i32_1 = arith.constant 0 : i32
    return %c0_i32, %c0_i32_0 : i32, i32
  }
  func.func @transform_11(%arg0: i32) -> (i32, i32, i32) {
    %c0_i32 = arith.constant 0 : i32
    %c0_i32_0 = arith.constant 0 : i32
    %c0_i32_1 = arith.constant 0 : i32
    return %arg0, %c0_i32, %c0_i32_0 : i32, i32, i32
  }
}

</mosaic_0001>

<bundles_post_ra>
// kernel: vip_forward.3
= control target key start
LH: loop header
LB: loop body
LE: loop exit
PB: predicated region body
PF: predicated region fallthrough
CT: control target
= control target key end

     0   :  { %s2280_s0 = inlined_call_operand.vmem [shape: f32[2,4,5,5,16], index: 0, kind: input, shape index: {}]   ;;  %s2281_s1 = inlined_call_operand.vmem [shape: bf16[16,16], index: 1, kind: input, shape index: {}]   ;;  %s2282_s2 = inlined_call_operand.vmem [shape: f32[1,16], index: 2, kind: input, shape index: {}]   ;;  %s2283_s3 = inlined_call_operand.vmem [shape: bf16[9,16,16], index: 3, kind: input, shape index: {}]   ;;  %s2284_s4 = inlined_call_operand.vmem [shape: f32[1,16], index: 4, kind: input, shape index: {}]   ;;  %s2285_s5 = inlined_call_operand.vmem [shape: bf16[16,64], index: 5, kind: input, shape index: {}]   ;;  %s2286_s6 = inlined_call_operand.vmem [shape: f32[1,64], index: 6, kind: input, shape index: {}]   ;;  %s2287_s7 = inlined_call_operand.vmem [shape: bf16[16,64], index: 7, kind: input, shape index: {}]   ;;  %s2288_s8 = inlined_call_operand.vmem [shape: f32[1,64], index: 8, kind: input, shape index: {}]   ;;  %s2289_s9 = inlined_call_operand.vmem [shape: bf16[64,32], index: 9, kind: input, shape index: {}]   ;;  %s2290_s10 = inlined_call_operand.vmem [shape: f32[1,32], index: 10, kind: input, shape index: {}]   ;;  %s2291_s11 = inlined_call_operand.hbm [shape: f32[2,1,32], index: 11, kind: output, shape index: {}]  }
   0x1   :  { %2292 = sst [smem:[#allocation6_spill]] %s2280_s0 }
   0x2   :  { %2293 = sst [smem:[#allocation7_spill]] %s2281_s1 }
   0x3   :  { %16 = vsyncpa [#allocation4], 0 }
   0x4   :  { %18 = vsyncpa [#allocation4 + $0x1], 0  ;;  %s1985_s17 = smov 0   ;;  %s1987_s18 = smov 0  }
   0x5   :  { %s1989_s19 = smov 0   ;;  %s1991_s20 = smov 0  }
   0x6 LB: > { %s2006_s21 = sadd.s32 4294967295, %s1922_s20   ;;  %s1635_s22 = sadd.s32 4294967294, %s1922_s20   ;;  %s1922_s20 = sphi %s1991_s20, %s2301_s20   ;;  %s1918_s19 = sphi %s1989_s19, %s2300_s19   ;;  %s1914_s18 = sphi %s1987_s18, %s2299_s18   ;;  %s1910_s17 = sphi %s1985_s17, %s2298_s17  }
   0x7   : > { %s2010_s23 = sadd.s32 1, %s1922_s20   ;;  %s267_s24 = sadd.s32 1, %s1918_s19 }
   0x8   : > { %s264_s25 = ssub.s32 %s1922_s20, %s2010_s23  ;;  %p277_p0 = scmp.ne.s32.totalorder %s1918_s19, %s1914_s18 }
   0x9   : > { %p265_p1 = scmp.eq.s32.totalorder %s264_s25, 0  ;;  %p278_p2 = scmp.eq.s32.totalorder %s2006_s21, 1 }
   0xa   : > { %p283_p3 = scmp.ne.s32.totalorder %s1914_s18, %s1910_s17  ;;  %p284_p4 = scmp.eq.s32.totalorder %s1635_s22, 1 }
   0xb   : > { %s2021_s26 = scalar_select %p265_p1, %s1918_s19, %s267_s24  }
   0xc   : > { %p2023_p5 = por %p278_p2, %p277_p0  ;;  %p2027_p6 = por %p284_p4, %p283_p3 }
   0xd   : > { %p1638_p7 = scmp.ge.s32.totalorder %s1922_s20, 1  ;;  %p340_p8 = scmp.lt.s32.totalorder %s1922_s20, 3 }
   0xf   : > { %p341_p9 = pnand %p1638_p7, %p340_p8 }
  0x10   : > { %s2296_s1 = sld [smem:[#allocation7_spill]] (!%p341_p9)  ;;  %p379_p10 = scmp.lt.s32.totalorder (!%p341_p9), %s2006_s21, 1 }
  0x11   : > { %344 = sbr.rel (%p341_p9) target bundleno = 757 (0x2f5), region = 64  ;;  %s2297_s0 = sld [smem:[#allocation6_spill]] (!%p341_p9) }
  0x12   : > { %s1880_s22 = scalar_lea.hbm (!%p341_p9), %s2291_s11, 2 }
  0x16   : > { %v1799_v0 = vld [vmem:[%s2296_s1] sm:$0xff]  ;;  %s380_s12 = scalar_select %p379_p10, %s2006_s21, 1  ;;  %vm607_vm0 = vcmask 128000   ;;  %v1924_v48 = vmov 0.0   ;;  %vm474_vm1 = vcmask 130048   ;;  %v1802_v59 = vld [vmem:[%s2283_s3 + $0x8] sm:$0xff] }
  0x17   : > { %485 = vmatpush.bf16.msra.mxu0 %v1799_v0  ;;  %501 = vmatpush.bf16.msra.mxu1 %v1799_v0  ;;  %v1800_v1 = vld [vmem:[%s2287_s7] sm:$0xff]  ;;  %608 = vst.msk [vmem:[#allocation2] sm:$0x3f] %vm607_vm0, %v1924_v48  ;;  %vm615_vm2 = vcmask 125952   ;;  %vm1477_vm3 = vcmask 519168   ;;  %vm1506_vm4 = vcmask 523264  }
  0x18   : > { %517 = vmatpush.bf16.msra.mxu2 %v1799_v0  ;;  %533 = vmatpush.bf16.msra.mxu3 %v1799_v0  ;;  %s1815_s15 = smul.u32 160, %s380_s12  ;;  %609 = vst.msk [vmem:[#allocation2 + $0x8] sm:$0x3f] %vm607_vm0, %v1924_v48  ;;  %vm1565_vm5 = vcmask 253952  }
  0x19   : > { %610 = vst.msk [vmem:[#allocation2 + $0x10] sm:$0x3f] %vm607_vm0, %v1924_v48 }
  0x1a   : > { %s2044_s24 = scalar_lea.vmem %s2297_s0, %s1815_s15  ;;  %611 = vst.msk [vmem:[#allocation2 + $0x18] sm:$0x3f] %vm607_vm0, %v1924_v48  ;;  %s377_s15 = sand.u32 1, %s1914_s18  }
  0x1b   : > { %562 = vmatpush.bf16.msrb.mxu0 %v1800_v1  ;;  %575 = vmatpush.bf16.msrb.mxu1 %v1800_v1  ;;  %v385_v2 = vld [vmem:[%s2044_s24] sm:$0xf]  ;;  %v1640_v3 = vld [vmem:[%s2044_s24 + $0x28] sm:$0xf]  ;;  %v1644_v6 = vld [vmem:[%s2044_s24 + $0x50] sm:$0xf] }
  0x1c   : > { %588 = vmatpush.bf16.msrb.mxu2 %v1800_v1  ;;  %601 = vmatpush.bf16.msrb.mxu3 %v1800_v1  ;;  %v398_v4 = vld [vmem:[%s2044_s24 + $0x1] sm:$0xf]  ;;  %v394_v5 = vmax.f32 %v385_v2, %v1640_v3  ;;  %v386_v8 = vld [vmem:[%s2044_s24 + $0x8] sm:$0xf]  ;;  %v1641_v9 = vld [vmem:[%s2044_s24 + $0x30] sm:$0xf] }
  0x1d   : > { %v399_v10 = vld [vmem:[%s2044_s24 + $0x9] sm:$0xf]  ;;  %v1648_v11 = vld [vmem:[%s2044_s24 + $0x78] sm:$0xf]  ;;  %v395_v12 = vmax.f32 %v386_v8, %v1641_v9  ;;  %v1652_v14 = vld [vmem:[%s2044_s24 + $0x51] sm:$0xf] }
  0x1e   : > { %v402_v7 = vmax.f32 %v394_v5, %v398_v4  ;;  %v1645_v15 = vld [vmem:[%s2044_s24 + $0x58] sm:$0xf]  ;;  %v387_v17 = vld [vmem:[%s2044_s24 + $0x10] sm:$0xf]  ;;  %v1649_v21 = vld [vmem:[%s2044_s24 + $0x80] sm:$0xf] }
  0x1f   : > { %v403_v16 = vmax.f32 %v395_v12, %v399_v10  ;;  %v1642_v18 = vld [vmem:[%s2044_s24 + $0x38] sm:$0xf]  ;;  %v400_v19 = vld [vmem:[%s2044_s24 + $0x11] sm:$0xf]  ;;  %v1656_v23 = vld [vmem:[%s2044_s24 + $0x8] sm:$0xf] }
  0x20   : > { %v411_v13 = vmax.f32 %v402_v7, %v1644_v6  ;;  %v396_v22 = vmax.f32 %v387_v17, %v1642_v18  ;;  %v1653_v25 = vld [vmem:[%s2044_s24 + $0x59] sm:$0xf]  ;;  %v1646_v26 = vld [vmem:[%s2044_s24 + $0x60] sm:$0xf]  ;;  %v1660_v32 = vld [vmem:[%s2044_s24 + $0x30] sm:$0xf] }
  0x21   : > { %v412_v24 = vmax.f32 %v403_v16, %v1645_v15  ;;  %v388_v29 = vld [vmem:[%s2044_s24 + $0x18] sm:$0xf]  ;;  %v1643_v30 = vld [vmem:[%s2044_s24 + $0x40] sm:$0xf]  ;;  %v1650_v34 = vld [vmem:[%s2044_s24 + $0x88] sm:$0xf] }
  0x22   : > { %v420_v20 = vmax.f32 %v411_v13, %v1648_v11  ;;  %v404_v28 = vmax.f32 %v396_v22, %v400_v19  ;;  %v401_v31 = vld [vmem:[%s2044_s24 + $0x19] sm:$0xf]  ;;  %v397_v35 = vmax.f32 %v388_v29, %v1643_v30  ;;  %v1657_v37 = vld [vmem:[%s2044_s24 + $0x10] sm:$0xf]  ;;  %v1647_v39 = vld [vmem:[%s2044_s24 + $0x68] sm:$0xf] }
  0x23   : > { %v421_v33 = vmax.f32 %v412_v24, %v1649_v21  ;;  %v1664_v40 = vld [vmem:[%s2044_s24 + $0x9] sm:$0xf]  ;;  %v1654_v42 = vld [vmem:[%s2044_s24 + $0x61] sm:$0xf]  ;;  %v1661_v45 = vld [vmem:[%s2044_s24 + $0x38] sm:$0xf] }
  0x24   : > { %v428_v27 = vmax.f32 %v420_v20, %v1652_v14  ;;  %v413_v38 = vmax.f32 %v404_v28, %v1646_v26  ;;  %v405_v43 = vmax.f32 %v397_v35, %v401_v31  ;;  %v1651_v47 = vld [vmem:[%s2044_s24 + $0x90] sm:$0xf]  ;;  %v1658_v50 = vld [vmem:[%s2044_s24 + $0x18] sm:$0xf]  ;;  %v1655_v55 = vld [vmem:[%s2044_s24 + $0x69] sm:$0xf] }
  0x25   : > { %v429_v41 = vmax.f32 %v421_v33, %v1653_v25  ;;  %v1665_v53 = vld [vmem:[%s2044_s24 + $0x11] sm:$0xf]  ;;  %v1662_v57 = vld [vmem:[%s2044_s24 + $0x40] sm:$0xf]  ;;  %612 = vst.msk [vmem:[#allocation2 + $0x20] sm:$0x3f] %vm607_vm0, %v1924_v48 }
  0x26   : > { %v437_v36 = vmax.f32 %v428_v27, %v1656_v23  ;;  %v422_v46 = vmax.f32 %v413_v38, %v1650_v34  ;;  %v414_v51 = vmax.f32 %v405_v43, %v1647_v39  ;;  %v1659_v62 = vld [vmem:[%s2044_s24 + $0x20] sm:$0xf]  ;;  %v1666_v0 = vld [vmem:[%s2044_s24 + $0x19] sm:$0xf]  ;;  %613 = vst.msk [vmem:[#allocation2 + $0x28] sm:$0x3f] %vm607_vm0, %v1924_v48 }
  0x27   : > { %v438_v49 = vmax.f32 %v429_v41, %v1657_v37  ;;  %v1663_v3 = vld [vmem:[%s2044_s24 + $0x48] sm:$0xf]  ;;  %v1667_v7 = vld [vmem:[%s2044_s24 + $0x21] sm:$0xf]  ;;  %v1803_v15 = vld [vmem:[%s2283_s3 + $0x10] sm:$0xff]  ;;  %s1576_s24 = scalar_lea.hbm %s2291_s11, %s2006_s21  ;;  %s378_s30 = scalar_lea.vmem [#allocation3], %s377_s15 }
  0x28   : > { %v446_v44 = vmax.f32 %v437_v36, %v1660_v32  ;;  %v430_v54 = vmax.f32 %v422_v46, %v1654_v42  ;;  %v423_v58 = vmax.f32 %v414_v51, %v1651_v47  ;;  %v1801_v12 = vld [vmem:[%s2283_s3] sm:$0xff]  ;;  %v1804_v20 = vld [vmem:[%s2283_s3 + $0x18] sm:$0xff]  ;;  %v2125_v34 = vld [vmem:[%s2283_s3 + $0x28] sm:$0xff]  ;;  %s1578_s12 = sshll.u32 %s378_s30, 4  ;;  %s1580_s13 = sshll.u32 %s1576_s24, 4  ;;  %s1579_s12 = int_to_ptr.vmem [resolvable:$true] %s1578_s12  ;;  %s1581_s13 = int_to_ptr.hbm [resolvable:$true] %s1580_s13 }
  0x29   : > { %v447_v56 = vmax.f32 %v438_v49, %v1661_v45  ;;  %v630_v13 = vld [vmem:[#allocation2 + $0x1] sm:$0xf]  ;;  %v1856_v22 = vld [vmem:[%s2282_s2] ss:$0 sm:$0xff]  ;;  %s1568_s14 = scalar_lea.sflag [#allocation4], %s377_s15  ;;  %s1874_s0 = sshra.s32 %s1581_s13, 4  ;;  %s1875_s0 = int_to_ptr.hbm [resolvable:$true] %s1874_s0 }
  0x2a   : > { %v454_v52 = vmax.f32 %v446_v44, %v1664_v40  ;;  %v439_v61 = vmax.f32 %v430_v54, %v1658_v50  ;;  %v431_v1 = vmax.f32 %v423_v58, %v1655_v55  ;;  %v634_v14 = vpack.c.bf16 %v630_v13, %v630_v13  ;;  %v620_v16 = vld [vmem:[#allocation2] sm:$0xf]  ;;  %v2137_v50 = vld [vmem:[%s2283_s3 + $0x30] sm:$0xff]  ;;  %s1876_s1 = scalar_lea.hbm %s1875_s0, 1  ;;  %p1881_p0 = scmp.lt.s32.totalorder %s1875_s0, %s2291_s11 }
  0x2b   : > { %v455_v63 = vmax.f32 %v447_v56, %v1665_v53  ;;  %v624_v17 = vpack.c.bf16 %v620_v16, %v620_v16  ;;  %v781_v18 = vld [vmem:[#allocation2 + $0x2] sm:$0xf]  ;;  %p1877_p11 = scmp.ne.s32.totalorder %s1875_s0, %s1876_s1  ;;  %p1882_p1 = scmp.lt.s32.totalorder %s1880_s22, %s1876_s1 }
  0x2c   : > { %v458_v60 = vpack.c.bf16 %v454_v52, %v454_v52  ;;  %v448_v2 = vmax.f32 %v439_v61, %v1662_v57  ;;  %v440_v5 = vmax.f32 %v431_v1, %v1659_v62  ;;  %v785_v19 = vpack.c.bf16 %v781_v18, %v781_v18  ;;  %v2114_v21 = vld [vmem:[%s2283_s3 + $0x20] sm:$0xff] }
  0x2d   : > { %v459_v4 = vpack.c.bf16 %v455_v63, %v455_v63  ;;  %p1878_p12 = pnand %p1877_p11, %p2023_p5  ;;  %p1883_p2 = por %p1882_p1, %p1881_p0 }
  0x2e   : > { %1672 = vmatmul.msk.bf16.vlgmr.msra.gmra.mxu0 %vm474_vm1, %v458_v60  ;;  %v456_v6 = vmax.f32 %v448_v2, %v1666_v0  ;;  %v449_v8 = vmax.f32 %v440_v5, %v1663_v3 }
  0x2f   : > { %657 = vmatpush.bf16.msra.mxu0 %v1802_v59  ;;  %1673 = vmatmul.msk.bf16.vlgmr.msra.gmra.mxu1 %vm474_vm1, %v459_v4  ;;  %p1879_p13 = pneg %p1878_p12 }
  0x30   : > { %v460_v9 = vpack.c.bf16 %v456_v6, %v456_v6  ;;  %673 = vmatpush.bf16.msra.mxu1 %v1802_v59  ;;  %v457_v10 = vmax.f32 %v449_v8, %v1667_v7  ;;  %v2162_v7 = vld [vmem:[%s2283_s3 + $0x40] sm:$0xff] }
  0x31   : > { %p1884_p3 = pnand %p1883_p2, %p1879_p13 }
  0x32   : > { %1674 = vmatmul.msk.bf16.vlgmr.msra.gmra.mxu2 %vm474_vm1, %v460_v9  ;;  %v461_v11 = vpack.c.bf16 %v457_v10, %v457_v10 }
  0x33   : > { %689 = vmatpush.bf16.msra.mxu2 %v1802_v59 }
  0x34   : > { %1675 = vmatmul.msk.bf16.vlgmr.msra.gmra.mxu3 %vm474_vm1, %v461_v11 }
  0x35   : > { %705 = vmatpush.bf16.msra.mxu3 %v1802_v59 }
  0x3e   : > { %1680 = vmatmul.msk.bf16.vlgmr.msrb.gmra.mxu0 %vm474_vm1, %v458_v60  ;;  %v2149_v60 = vld [vmem:[%s2283_s3 + $0x38] sm:$0xff] }
  0x3f   : > { %727 = vmatpush.bf16.msrb.mxu0 %v1801_v12  ;;  %1681 = vmatmul.msk.bf16.vlgmr.msrb.gmra.mxu1 %vm474_vm1, %v459_v4 }
  0x40   : > { %743 = vmatpush.bf16.msrb.mxu1 %v1801_v12 }
  0x42   : > { %1682 = vmatmul.msk.bf16.vlgmr.msrb.gmra.mxu2 %vm474_vm1, %v460_v9 }
  0x43   : > { %759 = vmatpush.bf16.msrb.mxu2 %v1801_v12 }
  0x44   : > { %1683 = vmatmul.msk.bf16.vlgmr.msrb.gmra.mxu3 %vm474_vm1, %v461_v11 }
  0x45   : > { %775 = vmatpush.bf16.msrb.mxu3 %v1801_v12 }
  0x4e   : > { %1690 = vmatmul.msk.bf16.vlgmr.msra.gmra.mxu0 %vm474_vm1, %v634_v14 }
  0x4f   : > { %808 = vmatpush.bf16.msra.mxu0 %v1803_v15 }
  0x5e   : > { %1698 = vmatmul.msk.bf16.vlgmr.msrb.gmra.mxu0 %vm474_vm1, %v624_v17 }
  0x5f   : > { %893 = vmatpush.bf16.msrb.mxu0 %v1804_v20 }
  0x6e   : > { %1708 = vmatmul.msk.bf16.vlgmr.msra.gmra.mxu0 %vm474_vm1, %v785_v19 }
  0x6f   : > { %978 = vmatpush.bf16.msra.mxu0 %v2114_v21 }
  0xab   : > { %v487_v23 = vpop.f32.mrf.mxu0 }
  0xac   : > { %v488_v24 = vadd.f32 %v1856_v22, %v487_v23  ;;  %v503_v26 = vpop.f32.mrf.mxu1 }
  0xad   : > { %v504_v27 = vadd.f32 %v1856_v22, %v503_v26 }
  0xae   : > { %v539_v25 = vmax.f32 %v488_v24, 0.0 }
  0xaf   : > { %v540_v28 = vmax.f32 %v504_v27, 0.0 }
  0xb0   : > { %616 = vst.msk [vmem:[#allocation2 + $0x9] sm:$0xf] %vm615_vm2, %v539_v25 }
  0xb1   : > { %617 = vst.msk [vmem:[#allocation2 + $0x11] sm:$0xf] %vm615_vm2, %v540_v28 }
  0xb3   : > { %v489_v29 = vpop.f32.mrf.mxu0 }
  0xb4   : > { %v505_v30 = vpop.f32.mrf.mxu1 }
  0xb5   : > { %v519_v31 = vpop.f32.mrf.mxu2 }
  0xb6   : > { %v520_v35 = vadd.f32 %v1856_v22, %v519_v31 }
  0xb7   : > { %v631_v32 = vld [vmem:[#allocation2 + $0x9] sm:$0xf]  ;;  %v535_v40 = vpop.f32.mrf.mxu3 }
  0xb8   : > { %v866_v33 = vld [vmem:[#allocation2 + $0x8] sm:$0xf]  ;;  %v635_v36 = vpack.c.bf16 %v631_v32, %v631_v32  ;;  %v541_v38 = vmax.f32 %v520_v35, 0.0  ;;  %v632_v39 = vld [vmem:[#allocation2 + $0x11] sm:$0xf]  ;;  %v536_v42 = vadd.f32 %v1856_v22, %v535_v40 }
  0xb9   : > { %v870_v37 = vpack.c.bf16 %v866_v33, %v866_v33  ;;  %v636_v41 = vpack.c.bf16 %v632_v39, %v632_v39  ;;  %v621_v48 = vld [vmem:[#allocation2 + $0x8] sm:$0xf]  ;;  %v622_v52 = vld [vmem:[#allocation2 + $0x10] sm:$0xf] }
  0xba   : > { %1691 = vmatmul.msk.bf16.vlgmr.msra.gmra.mxu1 %vm474_vm1, %v635_v36  ;;  %618 = vst.msk [vmem:[#allocation2 + $0x19] sm:$0xf] %vm615_vm2, %v541_v38  ;;  %v542_v43 = vmax.f32 %v536_v42, 0.0  ;;  %v951_v49 = vld [vmem:[#allocation2 + $0x9] sm:$0xf]  ;;  %v625_v51 = vpack.c.bf16 %v621_v48, %v621_v48  ;;  %v626_v54 = vpack.c.bf16 %v622_v52, %v622_v52 }
  0xbb   : > { %1718 = vmatmul.msk.bf16.vlgmr.msrb.gmra.mxu0 %vm474_vm1, %v870_v37  ;;  %824 = vmatpush.bf16.msra.mxu1 %v1803_v15  ;;  %v955_v53 = vpack.c.bf16 %v951_v49, %v951_v49  ;;  %v782_v57 = vld [vmem:[#allocation2 + $0xa] sm:$0xf]  ;;  %v2144_v59 = vpop.f32.mrf.mxu0  ;;  %v783_v62 = vld [vmem:[#allocation2 + $0x12] sm:$0xf] }
  0xbc   : > { %1063 = vmatpush.bf16.msrb.mxu0 %v2125_v34  ;;  %1692 = vmatmul.msk.bf16.vlgmr.msra.gmra.mxu2 %vm474_vm1, %v636_v41  ;;  %619 = vst.msk [vmem:[#allocation2 + $0x21] sm:$0xf] %vm615_vm2, %v542_v43  ;;  %v1036_v58 = vld [vmem:[#allocation2 + $0xa] sm:$0xf]  ;;  %v786_v61 = vpack.c.bf16 %v782_v57, %v782_v57  ;;  %v787_v0 = vpack.c.bf16 %v783_v62, %v783_v62  ;;  %v867_v4 = vld [vmem:[#allocation2 + $0x10] sm:$0xf]  ;;  %v2178_v28 = vpop.f32.mrf.mxu1 }
  0xbd   : > { %840 = vmatpush.bf16.msra.mxu2 %v1803_v15  ;;  %v521_v44 = vpop.f32.mrf.mxu2  ;;  %v1040_v63 = vpack.c.bf16 %v1036_v58, %v1036_v58  ;;  %v1122_v5 = vld [vmem:[#allocation2 + $0x10] sm:$0xf]  ;;  %v871_v8 = vpack.c.bf16 %v867_v4, %v867_v4 }
  0xbe   : > { %v1126_v10 = vpack.c.bf16 %v1122_v5, %v1122_v5  ;;  %v1207_v16 = vld [vmem:[#allocation2 + $0x11] sm:$0xf] }
  0xbf   : > { %v537_v45 = vpop.f32.mrf.mxu3  ;;  %v1037_v26 = vld [vmem:[#allocation2 + $0x12] sm:$0xf] }
  0xc0   : > { %v1292_v27 = vld [vmem:[#allocation2 + $0x12] sm:$0xf]  ;;  %v1041_v32 = vpack.c.bf16 %v1037_v26, %v1037_v26 }
  0xc1   : > { %v633_v46 = vld [vmem:[#allocation2 + $0x19] sm:$0xf] }
  0xc2   : > { %v637_v47 = vpack.c.bf16 %v633_v46, %v633_v46  ;;  %v623_v55 = vld [vmem:[#allocation2 + $0x18] sm:$0xf] }
  0xc3   : > { %v627_v56 = vpack.c.bf16 %v623_v55, %v623_v55  ;;  %v566_v1 = vpop.f32.mrf.mxu0  ;;  %v784_v2 = vld [vmem:[#allocation2 + $0x1a] sm:$0xf]  ;;  %v869_v13 = vld [vmem:[#allocation2 + $0x20] sm:$0xf] }
  0xc4   : > { %1693 = vmatmul.msk.bf16.vlgmr.msra.gmra.mxu3 %vm474_vm1, %v637_v47  ;;  %v788_v3 = vpack.c.bf16 %v784_v2, %v784_v2  ;;  %v868_v9 = vld [vmem:[#allocation2 + $0x18] sm:$0xf]  ;;  %v873_v14 = vpack.c.bf16 %v869_v13, %v869_v13  ;;  %v954_v24 = vld [vmem:[#allocation2 + $0x21] sm:$0xf]  ;;  %v579_v37 = vpop.f32.mrf.mxu1  ;;  %v1125_v47 = vld [vmem:[#allocation2 + $0x28] sm:$0xf] }
  0xc5   : > { %856 = vmatpush.bf16.msra.mxu3 %v1803_v15  ;;  %v872_v11 = vpack.c.bf16 %v868_v9, %v868_v9  ;;  %v952_v15 = vld [vmem:[#allocation2 + $0x11] sm:$0xf]  ;;  %v958_v25 = vpack.c.bf16 %v954_v24, %v954_v24  ;;  %v2181_v31 = vpop.f32.mrf.mxu2  ;;  %v1038_v33 = vld [vmem:[#allocation2 + $0x1a] sm:$0xf]  ;;  %v1039_v40 = vld [vmem:[#allocation2 + $0x22] sm:$0xf]  ;;  %v1129_v48 = vpack.c.bf16 %v1125_v47, %v1125_v47 }
  0xc6   : > { %v956_v19 = vpack.c.bf16 %v952_v15, %v952_v15  ;;  %v1042_v35 = vpack.c.bf16 %v1038_v33, %v1038_v33  ;;  %v1043_v41 = vpack.c.bf16 %v1039_v40, %v1039_v40  ;;  %v1123_v42 = vld [vmem:[#allocation2 + $0x18] sm:$0xf]  ;;  %v1124_v45 = vld [vmem:[#allocation2 + $0x20] sm:$0xf]  ;;  %v1295_v1 = vld [vmem:[#allocation2 + $0x2a] sm:$0xf] }
  0xc7   : > { %v2187_v36 = vpop.f32.mrf.mxu3  ;;  %v1127_v44 = vpack.c.bf16 %v1123_v42, %v1123_v42  ;;  %v1128_v46 = vpack.c.bf16 %v1124_v45, %v1124_v45  ;;  %v1208_v49 = vld [vmem:[#allocation2 + $0x19] sm:$0xf] }
  0xc8   : > { %v1293_v55 = vld [vmem:[#allocation2 + $0x1a] sm:$0xf] }
  0xca   : > { %1699 = vmatmul.msk.bf16.vlgmr.msrb.gmra.mxu1 %vm474_vm1, %v625_v51  ;;  %v1209_v51 = vld [vmem:[#allocation2 + $0x21] sm:$0xf] }
  0xcb   : > { %1728 = vmatmul.msk.bf16.vlgmr.msra.gmra.mxu0 %vm474_vm1, %v955_v53  ;;  %909 = vmatpush.bf16.msrb.mxu1 %v1804_v20  ;;  %v659_v6 = vpop.f32.mrf.mxu0  ;;  %v1213_v52 = vpack.c.bf16 %v1209_v51, %v1209_v51  ;;  %v1210_v53 = vld [vmem:[#allocation2 + $0x29] sm:$0xf] }
  0xcc   : > { %1149 = vmatpush.bf16.msra.mxu0 %v2137_v50  ;;  %1700 = vmatmul.msk.bf16.vlgmr.msrb.gmra.mxu2 %vm474_vm1, %v626_v54  ;;  %v1214_v54 = vpack.c.bf16 %v1210_v53, %v1210_v53  ;;  %v1858_v53 = vld [vmem:[%s2284_s4] ss:$0 sm:$0xff] }
  0xcd   : > { %925 = vmatpush.bf16.msrb.mxu2 %v1804_v20  ;;  %v592_v39 = vpop.f32.mrf.mxu2 }
  0xce   : > { %v1810_v39 = vld [vmem:[%s2285_s5] sm:$0xff] }
  0xcf   : > { %v605_v43 = vpop.f32.mrf.mxu3 }
  0xd3   : > { %v661_v12 = vpop.f32.mrf.mxu0 }
  0xd4   : > { %1701 = vmatmul.msk.bf16.vlgmr.msrb.gmra.mxu3 %vm474_vm1, %v627_v56 }
  0xd5   : > { %941 = vmatpush.bf16.msrb.mxu3 %v1804_v20  ;;  %v953_v20 = vld [vmem:[#allocation2 + $0x19] sm:$0xf] }
  0xd6   : > { %v957_v22 = vpack.c.bf16 %v953_v20, %v953_v20 }
  0xda   : > { %1709 = vmatmul.msk.bf16.vlgmr.msra.gmra.mxu1 %vm474_vm1, %v786_v61  ;;  %v1294_v61 = vld [vmem:[#allocation2 + $0x22] sm:$0xf] }
  0xdb   : > { %1738 = vmatmul.msk.bf16.vlgmr.msrb.gmra.mxu0 %vm474_vm1, %v1040_v63  ;;  %994 = vmatpush.bf16.msra.mxu1 %v2114_v21  ;;  %v729_v17 = vpop.f32.mrf.mxu0  ;;  %v1298_v62 = vpack.c.bf16 %v1294_v61, %v1294_v61 }
  0xdc   : > { %1234 = vmatpush.bf16.msrb.mxu0 %v2149_v60  ;;  %1710 = vmatmul.msk.bf16.vlgmr.msra.gmra.mxu2 %vm474_vm1, %v787_v0  ;;  %v730_v18 = vadd.f32 %v729_v17, %v659_v6 }
  0xdd   : > { %1010 = vmatpush.bf16.msra.mxu2 %v2114_v21 }
  0xe3   : > { %v731_v23 = vpop.f32.mrf.mxu0 }
  0xe4   : > { %1711 = vmatmul.msk.bf16.vlgmr.msra.gmra.mxu3 %vm474_vm1, %v788_v3  ;;  %v1299_v3 = vpack.c.bf16 %v1295_v1, %v1295_v1 }
  0xe5   : > { %1026 = vmatpush.bf16.msra.mxu3 %v2114_v21  ;;  %v1211_v21 = vpack.c.bf16 %v1207_v16, %v1207_v16 }
  0xea   : > { %1719 = vmatmul.msk.bf16.vlgmr.msrb.gmra.mxu1 %vm474_vm1, %v871_v8 }
  0xeb   : > { %1748 = vmatmul.msk.bf16.vlgmr.msra.gmra.mxu0 %vm474_vm1, %v1126_v10  ;;  %1079 = vmatpush.bf16.msrb.mxu1 %v2125_v34  ;;  %v810_v29 = vpop.f32.mrf.mxu0 }
  0xec   : > { %1319 = vmatpush.bf16.msra.mxu0 %v2162_v7  ;;  %1720 = vmatmul.msk.bf16.vlgmr.msrb.gmra.mxu2 %vm474_vm1, %v872_v11  ;;  %v862_v30 = vadd.f32 %v810_v29, %v730_v18 }
  0xed   : > { %1095 = vmatpush.bf16.msrb.mxu2 %v2125_v34 }
  0xf3   : > { %v812_v38 = vpop.f32.mrf.mxu0 }
  0xf4   : > { %1721 = vmatmul.msk.bf16.vlgmr.msrb.gmra.mxu3 %vm474_vm1, %v873_v14 }
  0xf5   : > { %1111 = vmatpush.bf16.msrb.mxu3 %v2125_v34  ;;  %v1296_v34 = vpack.c.bf16 %v1292_v27, %v1292_v27 }
  0xfa   : > { %1729 = vmatmul.msk.bf16.vlgmr.msra.gmra.mxu1 %vm474_vm1, %v956_v19 }
  0xfb   : > { %1758 = vmatmul.msk.bf16.vlgmr.msrb.gmra.mxu0 %vm474_vm1, %v1211_v21  ;;  %1165 = vmatpush.bf16.msra.mxu1 %v2137_v50 }
  0xfc   : > { %1730 = vmatmul.msk.bf16.vlgmr.msra.gmra.mxu2 %vm474_vm1, %v957_v22  ;;  %1415 = vmatpush.bf16.msrb.mxu0 %v1810_v39 }
  0xfd   : > { %1181 = vmatpush.bf16.msra.mxu2 %v2137_v50 }
 0x104   : > { %1731 = vmatmul.msk.bf16.vlgmr.msra.gmra.mxu3 %vm474_vm1, %v958_v25 }
 0x105   : > { %1197 = vmatpush.bf16.msra.mxu3 %v2137_v50  ;;  %v1212_v50 = vpack.c.bf16 %v1208_v49, %v1208_v49 }
 0x10a   : > { %1739 = vmatmul.msk.bf16.vlgmr.msrb.gmra.mxu1 %vm474_vm1, %v1041_v32 }
 0x10b   : > { %1768 = vmatmul.msk.bf16.vlgmr.msra.gmra.mxu0 %vm474_vm1, %v1296_v34  ;;  %1250 = vmatpush.bf16.msrb.mxu1 %v2149_v60 }
 0x10c   : > { %1740 = vmatmul.msk.bf16.vlgmr.msrb.gmra.mxu2 %vm474_vm1, %v1042_v35 }
 0x10d   : > { %1266 = vmatpush.bf16.msrb.mxu2 %v2149_v60 }
 0x114   : > { %1741 = vmatmul.msk.bf16.vlgmr.msrb.gmra.mxu3 %vm474_vm1, %v1043_v41 }
 0x115   : > { %1282 = vmatpush.bf16.msrb.mxu3 %v2149_v60  ;;  %v1297_v60 = vpack.c.bf16 %v1293_v55, %v1293_v55 }
 0x11a   : > { %1749 = vmatmul.msk.bf16.vlgmr.msra.gmra.mxu1 %vm474_vm1, %v1127_v44 }
 0x11b   : > { %1335 = vmatpush.bf16.msra.mxu1 %v2162_v7 }
 0x11c   : > { %1750 = vmatmul.msk.bf16.vlgmr.msra.gmra.mxu2 %vm474_vm1, %v1128_v46 }
 0x11d   : > { %1351 = vmatpush.bf16.msra.mxu2 %v2162_v7 }
 0x124   : > { %1751 = vmatmul.msk.bf16.vlgmr.msra.gmra.mxu3 %vm474_vm1, %v1129_v48 }
 0x125   : > { %1367 = vmatpush.bf16.msra.mxu3 %v2162_v7 }
 0x12a   : > { %1759 = vmatmul.msk.bf16.vlgmr.msrb.gmra.mxu1 %vm474_vm1, %v1212_v50 }
 0x12b   : > { %1431 = vmatpush.bf16.msrb.mxu1 %v1810_v39 }
 0x12c   : > { %1760 = vmatmul.msk.bf16.vlgmr.msrb.gmra.mxu2 %vm474_vm1, %v1213_v52 }
 0x12d   : > { %1447 = vmatpush.bf16.msrb.mxu2 %v1810_v39 }
 0x134   : > { %1761 = vmatmul.msk.bf16.vlgmr.msrb.gmra.mxu3 %vm474_vm1, %v1214_v54 }
 0x135   : > { %1463 = vmatpush.bf16.msrb.mxu3 %v1810_v39 }
 0x137   : > { %v675_v56 = vpop.f32.mrf.mxu1 }
 0x138   : > { %v895_v57 = vpop.f32.mrf.mxu0 }
 0x139   : > { %v947_v58 = vadd.f32 %v895_v57, %v862_v30 }
 0x13a   : > { %1769 = vmatmul.msk.bf16.vlgmr.msra.gmra.mxu1 %vm474_vm1, %v1297_v60 }
 0x13c   : > { %1770 = vmatmul.msk.bf16.vlgmr.msra.gmra.mxu2 %vm474_vm1, %v1298_v62 }
 0x13f   : > { %v677_v63 = vpop.f32.mrf.mxu1  ;;  %v691_v2 = vpop.f32.mrf.mxu2 }
 0x140   : > { %v897_v0 = vpop.f32.mrf.mxu0 }
 0x144   : > { %1771 = vmatmul.msk.bf16.vlgmr.msra.gmra.mxu3 %vm474_vm1, %v1299_v3 }
 0x147   : > { %v745_v4 = vpop.f32.mrf.mxu1  ;;  %v693_v6 = vpop.f32.mrf.mxu2 }
 0x148   : > { %v980_v5 = vpop.f32.mrf.mxu0  ;;  %v746_v7 = vadd.f32 %v745_v4, %v675_v56  ;;  %v707_v8 = vpop.f32.mrf.mxu3 }
 0x149   : > { %v1032_v47 = vadd.f32 %v980_v5, %v947_v58 }
 0x14f   : > { %v747_v9 = vpop.f32.mrf.mxu1  ;;  %v761_v11 = vpop.f32.mrf.mxu2 }
 0x150   : > { %v982_v10 = vpop.f32.mrf.mxu0  ;;  %v709_v12 = vpop.f32.mrf.mxu3  ;;  %v762_v13 = vadd.f32 %v761_v11, %v691_v2 }
 0x157   : > { %v826_v14 = vpop.f32.mrf.mxu1  ;;  %v763_v16 = vpop.f32.mrf.mxu2 }
 0x158   : > { %v1065_v15 = vpop.f32.mrf.mxu0  ;;  %v863_v17 = vadd.f32 %v826_v14, %v746_v7  ;;  %v777_v18 = vpop.f32.mrf.mxu3 }
 0x159   : > { %v778_v19 = vadd.f32 %v777_v18, %v707_v8  ;;  %v1117_v50 = vadd.f32 %v1065_v15, %v1032_v47 }
 0x15f   : > { %v828_v20 = vpop.f32.mrf.mxu1  ;;  %v842_v22 = vpop.f32.mrf.mxu2 }
 0x160   : > { %v1067_v21 = vpop.f32.mrf.mxu0  ;;  %v779_v23 = vpop.f32.mrf.mxu3  ;;  %v864_v24 = vadd.f32 %v842_v22, %v762_v13 }
 0x167   : > { %v911_v25 = vpop.f32.mrf.mxu1  ;;  %v844_v27 = vpop.f32.mrf.mxu2 }
 0x168   : > { %v1151_v26 = vpop.f32.mrf.mxu0  ;;  %v948_v29 = vadd.f32 %v911_v25, %v863_v17  ;;  %v858_v30 = vpop.f32.mrf.mxu3 }
 0x169   : > { %v865_v32 = vadd.f32 %v858_v30, %v778_v19  ;;  %v1203_v51 = vadd.f32 %v1151_v26, %v1117_v50 }
 0x16f   : > { %v913_v33 = vpop.f32.mrf.mxu1  ;;  %v927_v35 = vpop.f32.mrf.mxu2 }
 0x170   : > { %v1153_v34 = vpop.f32.mrf.mxu0  ;;  %v860_v37 = vpop.f32.mrf.mxu3  ;;  %v949_v38 = vadd.f32 %v927_v35, %v864_v24 }
 0x177   : > { %v996_v40 = vpop.f32.mrf.mxu1  ;;  %v929_v42 = vpop.f32.mrf.mxu2 }
 0x178   : > { %v1236_v41 = vpop.f32.mrf.mxu0  ;;  %v943_v43 = vpop.f32.mrf.mxu3  ;;  %v1033_v13 = vadd.f32 %v996_v40, %v948_v29 }
 0x179   : > { %v950_v44 = vadd.f32 %v943_v43, %v865_v32  ;;  %v1288_v52 = vadd.f32 %v1236_v41, %v1203_v51 }
 0x17f   : > { %v998_v45 = vpop.f32.mrf.mxu1  ;;  %v1012_v48 = vpop.f32.mrf.mxu2 }
 0x180   : > { %v1238_v46 = vpop.f32.mrf.mxu0  ;;  %v945_v49 = vpop.f32.mrf.mxu3  ;;  %v1034_v22 = vadd.f32 %v1012_v48, %v949_v38 }
 0x187   : > { %v1081_v54 = vpop.f32.mrf.mxu1  ;;  %v1014_v56 = vpop.f32.mrf.mxu2 }
 0x188   : > { %v1321_v55 = vpop.f32.mrf.mxu0  ;;  %v1028_v60 = vpop.f32.mrf.mxu3  ;;  %v1118_v16 = vadd.f32 %v1081_v54, %v1033_v13 }
 0x189   : > { %v1373_v57 = vadd.f32 %v1321_v55, %v1288_v52  ;;  %v1035_v37 = vadd.f32 %v1028_v60, %v950_v44  ;;  %v1859_v44 = vld [vmem:[%s2286_s6] ss:$0 sm:$0xff] }
 0x18a   : > { %v1857_v52 = vld [vmem:[%s2288_s8] ss:$0 sm:$0xff] }
 0x18b   : > { %v1381_v61 = vadd.f32 %v1858_v53, %v1373_v57  ;;  %v565_v55 = vadd.f32 %v1857_v52, %v2144_v59 }
 0x18d   : > { %v1385_v62 = vmax.f32 %v1381_v61, 0.0 }
 0x18f   : > { %v1389_v63 = vpack.c.bf16 %v1385_v62, %v1385_v62  ;;  %v1083_v0 = vpop.f32.mrf.mxu1  ;;  %v1097_v58 = vpop.f32.mrf.mxu2 }
 0x190   : > { %v1323_v1 = vpop.f32.mrf.mxu0  ;;  %v1030_v2 = vpop.f32.mrf.mxu3  ;;  %v1119_v25 = vadd.f32 %v1097_v58, %v1034_v22 }
 0x191   : > { %1776 = vmatmul.msk.bf16.vlgmr.msrb.gmra.mxu0 %vm474_vm1, %v1389_v63  ;;  %v578_v1 = vadd.f32 %v1857_v52, %v2178_v28  ;;  %v1812_v28 = vld [vmem:[%s2289_s9 + $0x8] sm:$0xff] }
 0x197   : > { %v1167_v3 = vpop.f32.mrf.mxu1  ;;  %v1099_v4 = vpop.f32.mrf.mxu2 }
 0x198   : > { %v1113_v5 = vpop.f32.mrf.mxu3  ;;  %v1204_v17 = vadd.f32 %v1167_v3, %v1118_v16  ;;  %v1814_v4 = vld [vmem:[%s2289_s9 + $0x18] sm:$0xff]  ;;  %v591_v16 = vadd.f32 %v1857_v52, %v2181_v31  ;;  %v604_v31 = vadd.f32 %v1857_v52, %v2187_v36 }
 0x199   : > { %v1120_v40 = vadd.f32 %v1113_v5, %v1035_v37  ;;  %1556 = vmatpush.bf16.msra.mxu0 %v1814_v4 }
 0x19f   : > { %v1169_v6 = vpop.f32.mrf.mxu1  ;;  %v1183_v7 = vpop.f32.mrf.mxu2 }
 0x1a0   : > { %v1115_v8 = vpop.f32.mrf.mxu3  ;;  %v1205_v27 = vadd.f32 %v1183_v7, %v1119_v25 }
 0x1a7   : > { %v1252_v9 = vpop.f32.mrf.mxu1  ;;  %v1185_v10 = vpop.f32.mrf.mxu2 }
 0x1a8   : > { %v1199_v11 = vpop.f32.mrf.mxu3  ;;  %v1289_v18 = vadd.f32 %v1252_v9, %v1204_v17  ;;  %v1813_v9 = vld [vmem:[%s2289_s9 + $0x10] sm:$0xff] }
 0x1a9   : > { %v1206_v42 = vadd.f32 %v1199_v11, %v1120_v40  ;;  %1557 = vmatpush.bf16.msra.mxu0 %v1813_v9 }
 0x1ad   : > { %1558 = vmatpush.bf16.msra.mxu0 %v1812_v28 }
 0x1af   : > { %v1254_v12 = vpop.f32.mrf.mxu1  ;;  %v1268_v14 = vpop.f32.mrf.mxu2 }
 0x1b0   : > { %v1201_v15 = vpop.f32.mrf.mxu3  ;;  %v1290_v32 = vadd.f32 %v1268_v14, %v1205_v27  ;;  %v1811_v14 = vld [vmem:[%s2289_s9] sm:$0xff] }
 0x1b1   : > { %1559 = vmatpush.bf16.msra.mxu0 %v1811_v14 }
 0x1b7   : > { %v1337_v19 = vpop.f32.mrf.mxu1  ;;  %v1270_v20 = vpop.f32.mrf.mxu2 }
 0x1b8   : > { %v1374_v21 = vadd.f32 %v1337_v19, %v1289_v18  ;;  %v1284_v23 = vpop.f32.mrf.mxu3 }
 0x1b9   : > { %v1291_v38 = vadd.f32 %v1284_v23, %v1206_v42 }
 0x1ba   : > { %v1382_v24 = vadd.f32 %v1858_v53, %v1374_v21 }
 0x1bc   : > { %v1386_v26 = vmax.f32 %v1382_v24, 0.0 }
 0x1be   : > { %v1390_v30 = vpack.c.bf16 %v1386_v26, %v1386_v26 }
 0x1bf   : > { %v1339_v33 = vpop.f32.mrf.mxu1  ;;  %v1353_v34 = vpop.f32.mrf.mxu2 }
 0x1c0   : > { %1777 = vmatmul.msk.bf16.vlgmr.msrb.gmra.mxu1 %vm474_vm1, %v1390_v30  ;;  %v1286_v29 = vpop.f32.mrf.mxu3  ;;  %v1375_v35 = vadd.f32 %v1353_v34, %v1290_v32 }
 0x1c2   : > { %v1383_v39 = vadd.f32 %v1858_v53, %v1375_v35 }
 0x1c4   : > { %v1387_v41 = vmax.f32 %v1383_v39, 0.0 }
 0x1c6   : > { %v1391_v43 = vpack.c.bf16 %v1387_v41, %v1387_v41 }
 0x1c7   : > { %v1355_v45 = vpop.f32.mrf.mxu2 }
 0x1c8   : > { %v1369_v46 = vpop.f32.mrf.mxu3  ;;  %1778 = vmatmul.msk.bf16.vlgmr.msrb.gmra.mxu2 %vm474_vm1, %v1391_v43 }
 0x1c9   : > { %v1376_v47 = vadd.f32 %v1369_v46, %v1291_v38 }
 0x1cb   : > { %v1384_v48 = vadd.f32 %v1858_v53, %v1376_v47 }
 0x1cd   : > { %v1388_v49 = vmax.f32 %v1384_v48, 0.0 }
 0x1cf   : > { %v1392_v50 = vpack.c.bf16 %v1388_v49, %v1388_v49 }
 0x1d0   : > { %v1371_v51 = vpop.f32.mrf.mxu3 }
 0x1d1   : > { %1779 = vmatmul.msk.bf16.vlgmr.msrb.gmra.mxu3 %vm474_vm1, %v1392_v50 }
 0x20e   : > { %v1417_v54 = vpop.f32.mrf.mxu0 }
 0x20f   : > { %v1418_v56 = vadd.f32 %v1859_v44, %v1417_v54 }
 0x211   : > { %v1469_v57 = vadd.f32 %v1418_v56, %v565_v55  ;;  %v1524_v55 = vld [vmem:[%s2290_s10] sm:$0x1] }
 0x213   : > { %v1473_v53 = vmax.f32 %v1469_v57, 0.0 }
 0x215   : > { %v1478_v61 = vsel %vm1477_vm3, %v1473_v53, 0.0 }
 0x216   : > { %v1419_v60 = vpop.f32.mrf.mxu0  ;;  %v1479_v62 = vrot.slane %v1478_v61, 4 }
 0x218   : > { %v1480_v63 = vadd.f32 %v1479_v62, %v1478_v61 }
 0x21a   : > { %v1481_v3 = vrot.slane %v1480_v63, 2 }
 0x21c   : > { %v1482_v6 = vadd.f32 %v1481_v3, %v1480_v63 }
 0x21e   : > { %v1483_v11 = vrot.slane %v1482_v6, 1 }
 0x220   : > { %v1484_v17 = vadd.f32 %v1483_v11, %v1482_v6 }
 0x222   : > { %v1507_v23 = vsel %vm1506_vm4, %v1484_v17, 0.0 }
 0x23d   : > { %v1433_v0 = vpop.f32.mrf.mxu1 }
 0x23e   : > { %v1434_v58 = vadd.f32 %v1859_v44, %v1433_v0 }
 0x240   : > { %v1470_v2 = vadd.f32 %v1434_v58, %v578_v1 }
 0x242   : > { %v1474_v59 = vmax.f32 %v1470_v2, 0.0 }
 0x244   : > { %v1485_v5 = vsel %vm1477_vm3, %v1474_v59, 0.0 }
 0x245   : > { %v1486_v7 = vrot.slane %v1485_v5, 4  ;;  %v1435_v8 = vpop.f32.mrf.mxu1 }
 0x247   : > { %v1487_v10 = vadd.f32 %v1486_v7, %v1485_v5 }
 0x249   : > { %v1488_v12 = vrot.slane %v1487_v10, 2 }
 0x24b   : > { %v1489_v13 = vadd.f32 %v1488_v12, %v1487_v10  ;;  %v1449_v15 = vpop.f32.mrf.mxu2 }
 0x24c   : > { %v1450_v19 = vadd.f32 %v1859_v44, %v1449_v15 }
 0x24d   : > { %v1490_v18 = vrot.slane %v1489_v13, 1 }
 0x24e   : > { %v1471_v21 = vadd.f32 %v1450_v19, %v591_v16 }
 0x24f   : > { %v1491_v20 = vadd.f32 %v1490_v18, %v1489_v13 }
 0x250   : > { %v1475_v22 = vmax.f32 %v1471_v21, 0.0 }
 0x251   : > { %v1508_v24 = vsel %vm1506_vm4, %v1491_v20, 0.0 }
 0x252   : > { %v1509_v25 = vadd.f32 %v1508_v24, %v1507_v23  ;;  %v1492_v26 = vsel %vm1477_vm3, %v1475_v22, 0.0 }
 0x253   : > { %v1493_v27 = vrot.slane %v1492_v26, 4  ;;  %v1451_v30 = vpop.f32.mrf.mxu2 }
 0x254   : > { %v1465_v32 = vpop.f32.mrf.mxu3 }
 0x255   : > { %v1494_v33 = vadd.f32 %v1493_v27, %v1492_v26  ;;  %v1466_v34 = vadd.f32 %v1859_v44, %v1465_v32 }
 0x257   : > { %v1495_v29 = vrot.slane %v1494_v33, 2  ;;  %v1472_v35 = vadd.f32 %v1466_v34, %v604_v31 }
 0x259   : > { %v1496_v37 = vadd.f32 %v1495_v29, %v1494_v33  ;;  %v1476_v39 = vmax.f32 %v1472_v35, 0.0 }
 0x25b   : > { %v1497_v40 = vrot.slane %v1496_v37, 1  ;;  %v1499_v41 = vsel %vm1477_vm3, %v1476_v39, 0.0 }
 0x25c   : > { %v1500_v42 = vrot.slane %v1499_v41, 4  ;;  %v1467_v43 = vpop.f32.mrf.mxu3 }
 0x25d   : > { %v1498_v38 = vadd.f32 %v1497_v40, %v1496_v37 }
 0x25e   : > { %v1501_v45 = vadd.f32 %v1500_v42, %v1499_v41 }
 0x25f   : > { %v1510_v46 = vsel %vm1506_vm4, %v1498_v38, 0.0 }
 0x260   : > { %v1502_v47 = vrot.slane %v1501_v45, 2  ;;  %v1511_v48 = vadd.f32 %v1510_v46, %v1509_v25 }
 0x262   : > { %v1503_v36 = vadd.f32 %v1502_v47, %v1501_v45 }
 0x264   : > { %v1504_v49 = vrot.slane %v1503_v36, 1 }
 0x266   : > { %v1505_v50 = vadd.f32 %v1504_v49, %v1503_v36 }
 0x268   : > { %v1512_v51 = vsel %vm1506_vm4, %v1505_v50, 0.0 }
 0x269   : > { %v1513_v44 = vadd.f32 %v1512_v51, %v1511_v48 }
 0x26b   : > { %v1514_v52 = vmul.f32 0.0625, %v1513_v44 }
 0x26d   : > { %v1515_v54 = vpack.c.bf16 %v1514_v52, %v1514_v52 }
 0x26f   : > { %1796 = vmatmul.msk.bf16.vlgmr.msra.gmra.mxu0 %vm1506_vm4, %v1515_v54 }
 0x2ec   : > { %v1561_v56 = vpop.f32.mrf.mxu0 }
 0x2ed   : > { %v1562_v57 = vadd.f32 %v1561_v56, %v1524_v55 }
 0x2ef   : > { %1566 = vst.msk [vmem:[%s378_s30] sm:$0x1] %vm1565_vm5, %v1562_v57 }
 0x2f0   : > { %1887 = shalt.err (!%p1884_p3)
}
 0x2f1   : > { %1816 = dma.vmem_to_hbm [thread:$0]  (%p2023_p5), %s1579_s12, 16, %s1581_s13, %s1568_s14  }
 0x2f4   : > { %v1563_v60 = vpop.f32.mrf.mxu0 }
 0x2f5 PF: > { %p1822_p4 = scmp.ge.s32.totalorder %s1922_s20, 2  ;;  %s1592_s15 = sand.u32 1, %s1910_s17  }
 0x2f6   : > { %s1593_s29 = scalar_lea.sflag [#allocation4], %s1592_s15 }
 0x2f7   : > { %p1819_p7 = pnand %p1822_p4, %p2027_p6 }
 0x2f9   : > { %p1820_p8 = pneg %p1819_p7 }
 0x2fb   : > { %1905 = dma.done.wait (%p1820_p8), %s1593_s29, 16  }
 0x2fc   : > { %1907 = vsyncadd (%p1820_p8), %s1593_s29, 4294967280  ;;  %p21_p9 = scmp.ge.s32.totalorder %s2010_s23, 4   ;;  %s2298_s17 = smov %s1914_s18 }
 0x2fd   : > { %s2299_s18 = smov %s1918_s19  ;;  %s2300_s19 = smov %s2021_s26 }
 0x2fe   : > { %s2301_s20 = smov %s2010_s23  ;;  %23 = sbr.rel (!%p21_p9) target bundleno = 6 (0x6), region = 114 }
 0x303   :  { %1598 = vsyncpa [#allocation4], 1 }
 0x304   :  { %1600 = vsyncpa [#allocation4 + $0x1], 1 }

// kernel: vip_forward.2
= control target key start
LH: loop header
LB: loop body
LE: loop exit
PB: predicated region body
PF: predicated region fallthrough
CT: control target
= control target key end

     0   :  { %s11033_s12 = smov 0   ;;  %s14301_s0 = inlined_call_operand.vmem [shape: bf16[2,4,11,11,3], index: 0, kind: input, shape index: {}]   ;;  %s14302_s1 = inlined_call_operand.vmem [shape: bf16[49,3,16], index: 1, kind: input, shape index: {}]   ;;  %s14303_s2 = inlined_call_operand.vmem [shape: f32[1,16], index: 2, kind: input, shape index: {}]   ;;  %s14304_s3 = inlined_call_operand.vmem [shape: f32[2,8,8,16], index: 3, kind: output, shape index: {}]  }
   0x1 LB: > { %s10078_s13 = sadd.s32 4294967295, %s11010_s12   ;;  %p10082_p0 = scmp.ge.s32.totalorder %s11010_s12, 1  ;;  %s11010_s12 = sphi %s11033_s12, %s13_s12  }
   0x2   : > { %p137_p1 = scmp.lt.s32.totalorder %s11010_s12, 3 }
   0x4   : > { %p138_p2 = pnand %p10082_p0, %p137_p1 }
   0x5   : > { %p161_p3 = scmp.lt.s32.totalorder (!%p138_p2), %s10078_s13, 1 }
   0x6   : > { %141 = sbr.rel (%p138_p2) target bundleno = 1712 (0x6b0), region = 32 }
   0xb   : > { %v10094_v0 = vld [vmem:[%s14302_s1 + $0x2] sm:$0x3]  ;;  %vm196_vm0 = vcmask 1040384   ;;  %vm197_vm1 = vcmask 1041408   ;;  %v11012_v1 = vmov 65535   ;;  %s14330_s13 = smov (!%p161_p3, %s10078_s13), 1 }
   0xc   : > { %v198_v2 = vsel %vm196_vm0, 4294967295, %v11012_v1  ;;  %s10993_s16 = smul.u32 352, %s14330_s13  ;;  %v180_v5 = vld [vmem:[%s14302_s1] sm:$0x3]  ;;  %vm192_vm2 = vcmask 23552   ;;  %s10992_s20 = sshll.u32 %s14330_s13, 6 }
   0xd   : > { %v11044_v3 = vsel %vm197_vm1, %v198_v2, 0  ;;  %v10111_v15 = vld [vmem:[%s14302_s1 + $0x4] sm:$0x3]  ;;  %s14274_s24 = scalar_lea.vmem %s14304_s3, %s10992_s20  ;;  %vm10014_vm3 = vcmask 130048  }
   0xe   : > { %v201_v4 = vand.u32 %v10094_v0, %v11044_v3  ;;  %s11056_s21 = scalar_lea.vmem %s14301_s0, %s10993_s16  ;;  %v332_v9 = vand.u32 %v11044_v3, %v180_v5  ;;  %v493_v20 = vand.u32 %v10111_v15, %v11044_v3 }
   0xf   : > { %v10086_v6 = vld [vmem:[%s11056_s21 + $0x58] sm:$0xf]  ;;  %v10087_v7 = vld [vmem:[%s11056_s21 + $0x60] sm:$0xf]  ;;  %v10088_v8 = vld [vmem:[%s11056_s21 + $0x68] sm:$0xf] }
  0x10   : > { %210 = vmatpush.bf16.msra.mxu0 %v201_v4  ;;  %226 = vmatpush.bf16.msra.mxu1 %v201_v4  ;;  %v10089_v10 = vld [vmem:[%s11056_s21 + $0x70] sm:$0xf]  ;;  %v10090_v11 = vld [vmem:[%s11056_s21 + $0x78] sm:$0xf]  ;;  %v10091_v12 = vld [vmem:[%s11056_s21 + $0x80] sm:$0xf] }
  0x11   : > { %242 = vmatpush.bf16.msra.mxu2 %v201_v4  ;;  %258 = vmatpush.bf16.msra.mxu3 %v201_v4  ;;  %v10092_v13 = vld [vmem:[%s11056_s21 + $0x88] sm:$0xf]  ;;  %v10093_v14 = vld [vmem:[%s11056_s21 + $0x90] sm:$0xf]  ;;  %v172_v16 = vld [vmem:[%s11056_s21] sm:$0xf] }
  0x12   : > { %v173_v17 = vld [vmem:[%s11056_s21 + $0x8] sm:$0xf]  ;;  %v174_v18 = vld [vmem:[%s11056_s21 + $0x10] sm:$0xf]  ;;  %v175_v19 = vld [vmem:[%s11056_s21 + $0x18] sm:$0xf] }
  0x13   : > { %10095 = vmatmul.msk.bf16.vlgmr.msra.gmra.mxu0 %vm192_vm2, %v10086_v6  ;;  %10096 = vmatmul.msk.bf16.vlgmr.msra.gmra.mxu1 %vm192_vm2, %v10087_v7  ;;  %v459_v21 = vld [vmem:[%s11056_s21] sm:$0xf]  ;;  %v11089_v22 = vld [vmem:[%s11056_s21 + $0x4] sm:$0x1]  ;;  %v461_v23 = vld [vmem:[%s11056_s21 + $0x8] sm:$0xf] }
  0x14   : > { %10097 = vmatmul.msk.bf16.vlgmr.msra.gmra.mxu2 %vm192_vm2, %v10088_v8  ;;  %10098 = vmatmul.msk.bf16.vlgmr.msra.gmra.mxu3 %vm192_vm2, %v10089_v10  ;;  %v11093_v24 = vld [vmem:[%s11056_s21 + $0xc] sm:$0x1]  ;;  %v463_v25 = vld [vmem:[%s11056_s21 + $0x10] sm:$0xf]  ;;  %v11097_v26 = vld [vmem:[%s11056_s21 + $0x14] sm:$0x1]  ;;  %v479_v29 = vunpack.c.l.b16 %v459_v21  ;;  %v480_v30 = vunpack.c.l.b16 %v11089_v22  ;;  %v510_v31 = vunpack.c.l.b16 %v461_v23 }
  0x15   : > { %306 = vmatpush.bf16.msrb.mxu2 %v201_v4  ;;  %322 = vmatpush.bf16.msrb.mxu3 %v201_v4  ;;  %v465_v27 = vld [vmem:[%s11056_s21 + $0x18] sm:$0xf]  ;;  %v11101_v28 = vld [vmem:[%s11056_s21 + $0x1c] sm:$0x1]  ;;  %v511_v32 = vunpack.c.l.b16 %v11093_v24  ;;  %v538_v33 = vunpack.c.l.b16 %v463_v25  ;;  %v539_v34 = vunpack.c.l.b16 %v11097_v26  ;;  %v176_v37 = vld [vmem:[%s11056_s21 + $0x20] sm:$0xf] }
  0x16   : > { %274 = vmatpush.bf16.msrb.mxu0 %v201_v4  ;;  %290 = vmatpush.bf16.msrb.mxu1 %v201_v4  ;;  %v566_v35 = vunpack.c.l.b16 %v465_v27  ;;  %v567_v36 = vunpack.c.l.b16 %v11101_v28  ;;  %v177_v38 = vld [vmem:[%s11056_s21 + $0x28] sm:$0xf]  ;;  %v178_v39 = vld [vmem:[%s11056_s21 + $0x30] sm:$0xf]  ;;  %v179_v40 = vld [vmem:[%s11056_s21 + $0x38] sm:$0xf]  ;;  %v481_v41 = vpack.c.b16 %v480_v30, %v479_v29 }
  0x17   : > { %v512_v42 = vpack.c.b16 %v511_v32, %v510_v31  ;;  %v540_v43 = vpack.c.b16 %v539_v34, %v538_v33  ;;  %v467_v49 = vld [vmem:[%s11056_s21 + $0x20] sm:$0xf]  ;;  %v11125_v50 = vld [vmem:[%s11056_s21 + $0x24] sm:$0x1]  ;;  %v469_v57 = vld [vmem:[%s11056_s21 + $0x28] sm:$0xf] }
  0x18   : > { %v568_v44 = vpack.c.b16 %v567_v36, %v566_v35  ;;  %v485_v45 = vshll.u32 %v481_v41, 16  ;;  %v483_v51 = vshrl.u32 %v481_v41, 16  ;;  %v11129_v58 = vld [vmem:[%s11056_s21 + $0x2c] sm:$0x1]  ;;  %v594_v61 = vunpack.c.l.b16 %v467_v49  ;;  %v471_v63 = vld [vmem:[%s11056_s21 + $0x30] sm:$0xf] }
  0x19   : > { %373 = vmatpush.bf16.msra.mxu2 %v332_v9  ;;  %389 = vmatpush.bf16.msra.mxu3 %v332_v9  ;;  %v516_v46 = vshll.u32 %v512_v42, 16  ;;  %v544_v47 = vshll.u32 %v540_v43, 16  ;;  %v514_v53 = vshrl.u32 %v512_v42, 16  ;;  %v542_v55 = vshrl.u32 %v540_v43, 16  ;;  %v11135_v2 = vld [vmem:[%s11056_s21 + $0x34] sm:$0x1] }
  0x1a   : > { %341 = vmatpush.bf16.msra.mxu0 %v332_v9  ;;  %357 = vmatpush.bf16.msra.mxu1 %v332_v9  ;;  %v572_v48 = vshll.u32 %v568_v44, 16  ;;  %v487_v52 = vrot.slane %v485_v45, 1  ;;  %v570_v56 = vshrl.u32 %v568_v44, 16  ;;  %v595_v62 = vunpack.c.l.b16 %v11125_v50  ;;  %v473_v4 = vld [vmem:[%s11056_s21 + $0x38] sm:$0xf] }
  0x1b   : > { %v518_v54 = vrot.slane %v516_v46, 1  ;;  %v546_v59 = vrot.slane %v544_v47, 1  ;;  %v622_v0 = vunpack.c.l.b16 %v469_v57  ;;  %v623_v1 = vunpack.c.l.b16 %v11129_v58  ;;  %v11139_v5 = vld [vmem:[%s11056_s21 + $0x3c] sm:$0x1]  ;;  %v10136_v7 = vld [vmem:[%s14302_s1 + $0x6] sm:$0x3] }
  0x1c   : > { %v574_v60 = vrot.slane %v572_v48, 1  ;;  %v488_v6 = vor.u32 %v487_v52, %v483_v51  ;;  %v679_v15 = vunpack.c.l.b16 %v11139_v5  ;;  %v10120_v35 = vld [vmem:[%s11056_s21 + $0x58] sm:$0xf]  ;;  %v11169_v41 = vld [vmem:[%s11056_s21 + $0x6c] sm:$0x1] }
  0x1d   : > { %v519_v8 = vor.u32 %v518_v54, %v514_v53  ;;  %v10126_v42 = vld [vmem:[%s11056_s21 + $0x70] sm:$0xf]  ;;  %v11173_v43 = vld [vmem:[%s11056_s21 + $0x74] sm:$0x1]  ;;  %v732_v48 = vunpack.c.l.b16 %v10120_v35  ;;  %v792_v54 = vunpack.c.l.b16 %v11169_v41  ;;  %v10162_v22 = vld [vmem:[%s14302_s1 + $0xa] sm:$0x3] }
  0x1e   : > { %v575_v10 = vor.u32 %v574_v60, %v570_v56  ;;  %v820_v56 = vunpack.c.l.b16 %v11173_v43  ;;  %v10134_v35 = vld [vmem:[%s11056_s21 + $0x90] sm:$0xf]  ;;  %v11276_v28 = vld [vmem:[%s11056_s21 + $0x20] sm:$0xe] }
  0x1f   : > { %v10155_v5 = vld [vmem:[%s11056_s21 + $0x60] sm:$0xe] }
  0x23   : > { %10099 = vmatmul.msk.bf16.vlgmr.msrb.gmra.mxu0 %vm192_vm2, %v10090_v11  ;;  %10100 = vmatmul.msk.bf16.vlgmr.msrb.gmra.mxu1 %vm192_vm2, %v10091_v12  ;;  %v596_v11 = vpack.c.b16 %v595_v62, %v594_v61  ;;  %v650_v12 = vunpack.c.l.b16 %v471_v63 }
  0x24   : > { %10101 = vmatmul.msk.bf16.vlgmr.msrb.gmra.mxu2 %vm192_vm2, %v10092_v13  ;;  %10102 = vmatmul.msk.bf16.vlgmr.msrb.gmra.mxu3 %vm192_vm2, %v10093_v14  ;;  %v651_v13 = vunpack.c.l.b16 %v11135_v2  ;;  %v678_v14 = vunpack.c.l.b16 %v473_v4  ;;  %v10154_v2 = vld [vmem:[%s11056_s21 + $0x58] sm:$0xe] }
  0x25   : > { %437 = vmatpush.bf16.msrb.mxu2 %v332_v9  ;;  %453 = vmatpush.bf16.msrb.mxu3 %v332_v9  ;;  %v598_v23 = vshrl.u32 %v596_v11, 16 }
  0x26   : > { %405 = vmatpush.bf16.msrb.mxu0 %v332_v9  ;;  %421 = vmatpush.bf16.msrb.mxu1 %v332_v9  ;;  %v547_v9 = vor.u32 %v546_v59, %v542_v55  ;;  %v819_v55 = vunpack.c.l.b16 %v10126_v42 }
  0x33   : > { %10103 = vmatmul.msk.bf16.vlgmr.msra.gmra.mxu0 %vm192_vm2, %v172_v16  ;;  %10104 = vmatmul.msk.bf16.vlgmr.msra.gmra.mxu1 %vm192_vm2, %v173_v17  ;;  %v624_v16 = vpack.c.b16 %v623_v1, %v622_v0  ;;  %v746_v17 = vand.u32 %v10136_v7, %v11044_v3 }
  0x34   : > { %10105 = vmatmul.msk.bf16.vlgmr.msra.gmra.mxu2 %vm192_vm2, %v174_v18  ;;  %10106 = vmatmul.msk.bf16.vlgmr.msra.gmra.mxu3 %vm192_vm2, %v175_v19  ;;  %v600_v18 = vshll.u32 %v596_v11, 16  ;;  %v652_v19 = vpack.c.b16 %v651_v13, %v650_v12 }
  0x35   : > { %558 = vmatpush.bf16.msra.mxu2 %v493_v20  ;;  %586 = vmatpush.bf16.msra.mxu3 %v493_v20  ;;  %v628_v21 = vshll.u32 %v624_v16, 16  ;;  %v626_v31 = vshrl.u32 %v624_v16, 16 }
  0x36   : > { %502 = vmatpush.bf16.msra.mxu0 %v493_v20  ;;  %530 = vmatpush.bf16.msra.mxu1 %v493_v20  ;;  %v602_v25 = vrot.slane %v600_v18, 1  ;;  %v656_v27 = vshll.u32 %v652_v19, 16  ;;  %v654_v44 = vshrl.u32 %v652_v19, 16 }
  0x37   : > { %v630_v33 = vrot.slane %v628_v21, 1 }
  0x38   : > { %v658_v45 = vrot.slane %v656_v27, 1  ;;  %v603_v57 = vor.u32 %v602_v25, %v598_v23  ;;  %v10128_v23 = vld [vmem:[%s11056_s21 + $0x78] sm:$0xf]  ;;  %v11193_v25 = vld [vmem:[%s11056_s21 + $0x7c] sm:$0x1] }
  0x39   : > { %v631_v59 = vor.u32 %v630_v33, %v626_v31  ;;  %v10130_v27 = vld [vmem:[%s11056_s21 + $0x80] sm:$0xf]  ;;  %v10132_v31 = vld [vmem:[%s11056_s21 + $0x88] sm:$0xf]  ;;  %v11201_v33 = vld [vmem:[%s11056_s21 + $0x8c] sm:$0x1] }
  0x3a   : > { %v659_v60 = vor.u32 %v658_v45, %v654_v44  ;;  %v10145_v45 = vld [vmem:[%s14302_s1 + $0x8] sm:$0x3] }
  0x43   : > { %10107 = vmatmul.msk.bf16.vlgmr.msrb.gmra.mxu0 %vm192_vm2, %v176_v37  ;;  %10108 = vmatmul.msk.bf16.vlgmr.msrb.gmra.mxu1 %vm192_vm2, %v177_v38  ;;  %v11161_v37 = vld [vmem:[%s11056_s21 + $0x5c] sm:$0x1]  ;;  %v10122_v38 = vld [vmem:[%s11056_s21 + $0x60] sm:$0xf] }
  0x44   : > { %10109 = vmatmul.msk.bf16.vlgmr.msrb.gmra.mxu2 %vm192_vm2, %v178_v39  ;;  %10110 = vmatmul.msk.bf16.vlgmr.msrb.gmra.mxu3 %vm192_vm2, %v179_v40  ;;  %v11165_v39 = vld [vmem:[%s11056_s21 + $0x64] sm:$0x1]  ;;  %v10124_v40 = vld [vmem:[%s11056_s21 + $0x68] sm:$0xf]  ;;  %v733_v49 = vunpack.c.l.b16 %v11161_v37  ;;  %v763_v51 = vunpack.c.l.b16 %v10122_v38 }
  0x45   : > { %670 = vmatpush.bf16.msrb.mxu2 %v493_v20  ;;  %698 = vmatpush.bf16.msrb.mxu3 %v493_v20  ;;  %v764_v52 = vunpack.c.l.b16 %v11165_v39  ;;  %v791_v53 = vunpack.c.l.b16 %v10124_v40 }
  0x46   : > { %614 = vmatpush.bf16.msrb.mxu0 %v493_v20  ;;  %642 = vmatpush.bf16.msrb.mxu1 %v493_v20  ;;  %v680_v20 = vpack.c.b16 %v679_v15, %v678_v14  ;;  %v734_v63 = vpack.c.b16 %v733_v49, %v732_v48  ;;  %v875_v48 = vunpack.c.l.b16 %v10130_v27 }
  0x47   : > { %v765_v0 = vpack.c.b16 %v764_v52, %v763_v51  ;;  %v793_v4 = vpack.c.b16 %v792_v54, %v791_v53  ;;  %v903_v53 = vunpack.c.l.b16 %v10132_v31 }
  0x48   : > { %v684_v29 = vshll.u32 %v680_v20, 16  ;;  %v682_v46 = vshrl.u32 %v680_v20, 16  ;;  %v738_v7 = vshll.u32 %v734_v63, 16  ;;  %v736_v11 = vshrl.u32 %v734_v63, 16 }
  0x49   : > { %v767_v14 = vshrl.u32 %v765_v0, 16  ;;  %v795_v18 = vshrl.u32 %v793_v4, 16 }
  0x4a   : > { %v686_v47 = vrot.slane %v684_v29, 1  ;;  %v740_v12 = vrot.slane %v738_v7, 1  ;;  %v11197_v29 = vld [vmem:[%s11056_s21 + $0x84] sm:$0x1] }
  0x4b   : > { %v876_v51 = vunpack.c.l.b16 %v11197_v29 }
  0x4c   : > { %v687_v61 = vor.u32 %v686_v47, %v682_v46  ;;  %v741_v38 = vor.u32 %v740_v12, %v736_v11  ;;  %v847_v46 = vunpack.c.l.b16 %v10128_v23  ;;  %v848_v47 = vunpack.c.l.b16 %v11193_v25 }
  0x4d   : > { %v877_v63 = vpack.c.b16 %v876_v51, %v875_v48 }
  0x4f   : > { %v881_v7 = vshll.u32 %v877_v63, 16  ;;  %v879_v12 = vshrl.u32 %v877_v63, 16 }
  0x53   : > { %10112 = vmatmul.msk.bf16.vlgmr.msra.gmra.mxu0 %vm192_vm2, %v488_v6  ;;  %10113 = vmatmul.msk.bf16.vlgmr.msra.gmra.mxu1 %vm192_vm2, %v519_v8  ;;  %v821_v6 = vpack.c.b16 %v820_v56, %v819_v55  ;;  %v769_v8 = vshll.u32 %v765_v0, 16  ;;  %v904_v55 = vunpack.c.l.b16 %v11201_v33 }
  0x54   : > { %10114 = vmatmul.msk.bf16.vlgmr.msra.gmra.mxu2 %vm192_vm2, %v547_v9  ;;  %10115 = vmatmul.msk.bf16.vlgmr.msra.gmra.mxu3 %vm192_vm2, %v575_v10  ;;  %v797_v9 = vshll.u32 %v793_v4, 16 }
  0x55   : > { %811 = vmatpush.bf16.msra.mxu2 %v746_v17  ;;  %839 = vmatpush.bf16.msra.mxu3 %v746_v17  ;;  %v825_v10 = vshll.u32 %v821_v6, 16  ;;  %v771_v16 = vrot.slane %v769_v8, 1  ;;  %v823_v20 = vshrl.u32 %v821_v6, 16  ;;  %v905_v0 = vpack.c.b16 %v904_v55, %v903_v53 }
  0x56   : > { %755 = vmatpush.bf16.msra.mxu0 %v746_v17  ;;  %783 = vmatpush.bf16.msra.mxu1 %v746_v17  ;;  %v799_v19 = vrot.slane %v797_v9, 1 }
  0x57   : > { %v827_v21 = vrot.slane %v825_v10, 1  ;;  %v772_v40 = vor.u32 %v771_v16, %v767_v14  ;;  %v909_v8 = vshll.u32 %v905_v0, 16  ;;  %v883_v14 = vrot.slane %v881_v7, 1 }
  0x58   : > { %v800_v42 = vor.u32 %v799_v19, %v795_v18  ;;  %v907_v16 = vshrl.u32 %v905_v0, 16 }
  0x59   : > { %v828_v44 = vor.u32 %v827_v21, %v823_v20  ;;  %v911_v18 = vrot.slane %v909_v8, 1  ;;  %v884_v23 = vor.u32 %v883_v14, %v879_v12 }
  0x5b   : > { %v912_v27 = vor.u32 %v911_v18, %v907_v16 }
  0x63   : > { %10116 = vmatmul.msk.bf16.vlgmr.msrb.gmra.mxu0 %vm192_vm2, %v603_v57  ;;  %10117 = vmatmul.msk.bf16.vlgmr.msrb.gmra.mxu1 %vm192_vm2, %v631_v59  ;;  %v931_v57 = vunpack.c.l.b16 %v10134_v35  ;;  %v11232_v35 = vld [vmem:[%s11056_s21] sm:$0xe] }
  0x64   : > { %10118 = vmatmul.msk.bf16.vlgmr.msrb.gmra.mxu2 %vm192_vm2, %v659_v60  ;;  %10119 = vmatmul.msk.bf16.vlgmr.msrb.gmra.mxu3 %vm192_vm2, %v687_v61  ;;  %v983_v60 = vand.u32 %v10145_v45, %v11044_v3  ;;  %v849_v61 = vpack.c.b16 %v848_v47, %v847_v46 }
  0x65   : > { %923 = vmatpush.bf16.msrb.mxu2 %v746_v17  ;;  %951 = vmatpush.bf16.msrb.mxu3 %v746_v17 }
  0x66   : > { %867 = vmatpush.bf16.msrb.mxu0 %v746_v17  ;;  %895 = vmatpush.bf16.msrb.mxu1 %v746_v17  ;;  %v11205_v17 = vld [vmem:[%s11056_s21 + $0x94] sm:$0x1]  ;;  %v853_v6 = vshll.u32 %v849_v61, 16  ;;  %v851_v10 = vshrl.u32 %v849_v61, 16 }
  0x67   : > { %v932_v59 = vunpack.c.l.b16 %v11205_v17 }
  0x68   : > { %v855_v11 = vrot.slane %v853_v6, 1  ;;  %v11285_v6 = vld [vmem:[%s11056_s21 + $0x38] sm:$0xe] }
  0x69   : > { %v933_v4 = vpack.c.b16 %v932_v59, %v931_v57  ;;  %v1119_v16 = vunpack.c.l.b16 %v11285_v6 }
  0x6a   : > { %v856_v21 = vor.u32 %v855_v11, %v851_v10 }
  0x6b   : > { %v937_v9 = vshll.u32 %v933_v4, 16  ;;  %v935_v19 = vshrl.u32 %v933_v4, 16  ;;  %v11282_v4 = vld [vmem:[%s11056_s21 + $0x30] sm:$0xe] }
  0x6c   : > { %v1099_v14 = vunpack.c.l.b16 %v11282_v4 }
  0x6d   : > { %v939_v20 = vrot.slane %v937_v9, 1  ;;  %v1059_v9 = vunpack.c.l.b16 %v11276_v28 }
  0x6f   : > { %v940_v31 = vor.u32 %v939_v20, %v935_v19  ;;  %v1060_v18 = vpack.c.b16 %v595_v62, %v1059_v9  ;;  %v1100_v20 = vpack.c.b16 %v651_v13, %v1099_v14  ;;  %v10156_v13 = vld [vmem:[%s11056_s21 + $0x68] sm:$0xe] }
  0x73   : > { %10137 = vmatmul.msk.bf16.vlgmr.msra.gmra.mxu0 %vm192_vm2, %v741_v38  ;;  %10138 = vmatmul.msk.bf16.vlgmr.msra.gmra.mxu1 %vm192_vm2, %v772_v40  ;;  %v11235_v38 = vld [vmem:[%s11056_s21 + $0x8] sm:$0xe]  ;;  %v11238_v40 = vld [vmem:[%s11056_s21 + $0x10] sm:$0xe] }
  0x74   : > { %10139 = vmatmul.msk.bf16.vlgmr.msra.gmra.mxu2 %vm192_vm2, %v800_v42  ;;  %10140 = vmatmul.msk.bf16.vlgmr.msra.gmra.mxu3 %vm192_vm2, %v828_v44  ;;  %v11241_v42 = vld [vmem:[%s11056_s21 + $0x18] sm:$0xe]  ;;  %v976_v44 = vunpack.c.l.b16 %v11232_v35  ;;  %v999_v45 = vunpack.c.l.b16 %v11235_v38  ;;  %v1019_v46 = vunpack.c.l.b16 %v11238_v40 }
  0x75   : > { %1032 = vmatpush.bf16.msra.mxu2 %v983_v60  ;;  %1052 = vmatpush.bf16.msra.mxu3 %v983_v60  ;;  %v1039_v48 = vunpack.c.l.b16 %v11241_v42 }
  0x76   : > { %992 = vmatpush.bf16.msra.mxu0 %v983_v60  ;;  %1012 = vmatpush.bf16.msra.mxu1 %v983_v60  ;;  %v977_v53 = vpack.c.b16 %v480_v30, %v976_v44  ;;  %v1000_v57 = vpack.c.b16 %v511_v32, %v999_v45 }
  0x77   : > { %v1040_v61 = vpack.c.b16 %v567_v36, %v1039_v48  ;;  %v11279_v36 = vld [vmem:[%s11056_s21 + $0x28] sm:$0xe] }
  0x78   : > { %v978_v24 = vrot.slane %v977_v53, 1  ;;  %v1001_v30 = vrot.slane %v1000_v57, 1  ;;  %v1079_v10 = vunpack.c.l.b16 %v11279_v36 }
  0x79   : > { %v1041_v0 = vrot.slane %v1040_v61, 1  ;;  %v1157_v61 = vunpack.c.l.b16 %v10154_v2 }
  0x7a   : > { %v1080_v19 = vpack.c.b16 %v623_v1, %v1079_v10 }
  0x83   : > { %10141 = vmatmul.msk.bf16.vlgmr.msrb.gmra.mxu0 %vm192_vm2, %v856_v21  ;;  %10142 = vmatmul.msk.bf16.vlgmr.msrb.gmra.mxu1 %vm192_vm2, %v884_v23  ;;  %v1120_v21 = vpack.c.b16 %v679_v15, %v1119_v16  ;;  %v1061_v23 = vrot.slane %v1060_v18, 1  ;;  %v10157_v15 = vld [vmem:[%s11056_s21 + $0x70] sm:$0xe] }
  0x84   : > { %10143 = vmatmul.msk.bf16.vlgmr.msrb.gmra.mxu2 %vm192_vm2, %v912_v27  ;;  %10144 = vmatmul.msk.bf16.vlgmr.msrb.gmra.mxu3 %vm192_vm2, %v940_v31  ;;  %v1081_v27 = vrot.slane %v1080_v19, 1  ;;  %v1101_v31 = vrot.slane %v1100_v20, 1  ;;  %v10171_v19 = vld [vmem:[%s14302_s1 + $0xc] sm:$0x3] }
  0x85   : > { %1112 = vmatpush.bf16.msrb.mxu2 %v983_v60  ;;  %1132 = vmatpush.bf16.msrb.mxu3 %v983_v60  ;;  %v1121_v53 = vrot.slane %v1120_v21, 1 }
  0x86   : > { %1072 = vmatpush.bf16.msrb.mxu0 %v983_v60  ;;  %1092 = vmatpush.bf16.msrb.mxu1 %v983_v60  ;;  %v1020_v60 = vpack.c.b16 %v539_v34, %v1019_v46  ;;  %v1164_v34 = vand.u32 %v10162_v22, %v11044_v3  ;;  %v1180_v22 = vunpack.c.l.b16 %v10155_v5 }
  0x88   : > { %v1021_v26 = vrot.slane %v1020_v60, 1 }
  0x90   : > { %v11266_v32 = vpop.f32.mrf.mxu0  ;;  %v11268_v63 = vpop.f32.mrf.mxu1 }
  0x93   : > { %10146 = vmatmul.msk.bf16.vlgmr.msra.gmra.mxu0 %vm192_vm2, %v978_v24  ;;  %10147 = vmatmul.msk.bf16.vlgmr.msra.gmra.mxu1 %vm192_vm2, %v1001_v30 }
  0x94   : > { %10148 = vmatmul.msk.bf16.vlgmr.msra.gmra.mxu2 %vm192_vm2, %v1021_v26  ;;  %10149 = vmatmul.msk.bf16.vlgmr.msra.gmra.mxu3 %vm192_vm2, %v1041_v0  ;;  %v1200_v26 = vunpack.c.l.b16 %v10156_v13  ;;  %v1220_v0 = vunpack.c.l.b16 %v10157_v15 }
  0x95   : > { %1213 = vmatpush.bf16.msra.mxu2 %v1164_v34  ;;  %1233 = vmatpush.bf16.msra.mxu3 %v1164_v34 }
  0x96   : > { %1173 = vmatpush.bf16.msra.mxu0 %v1164_v34  ;;  %1193 = vmatpush.bf16.msra.mxu1 %v1164_v34  ;;  %v1201_v18 = vpack.c.b16 %v792_v54, %v1200_v26 }
  0x97   : > { %v11287_v7 = vpop.f32.mrf.mxu2  ;;  %v11289_v8 = vpop.f32.mrf.mxu3 }
  0x98   : > { %v214_v11 = vpop.f32.mrf.mxu0  ;;  %v230_v12 = vpop.f32.mrf.mxu1 }
  0x99   : > { %v1158_v11 = vpack.c.b16 %v733_v49, %v1157_v61  ;;  %v1181_v12 = vpack.c.b16 %v764_v52, %v1180_v22 }
  0x9b   : > { %v1159_v37 = vrot.slane %v1158_v11, 1  ;;  %v1182_v49 = vrot.slane %v1181_v12, 1  ;;  %v1328_v11 = vld [vmem:[%s11056_s21 + $0xc] sm:$0x3]  ;;  %v1329_v12 = vld [vmem:[%s11056_s21 + $0x14] sm:$0x3] }
  0x9f   : > { %v246_v50 = vpop.f32.mrf.mxu2  ;;  %v262_v62 = vpop.f32.mrf.mxu3 }
  0xa0   : > { %v11311_v58 = vpop.f32.mrf.mxu0  ;;  %v11313_v1 = vpop.f32.mrf.mxu1  ;;  %v1202_v50 = vrot.slane %v1201_v18, 1  ;;  %v10158_v62 = vld [vmem:[%s11056_s21 + $0x78] sm:$0xe]  ;;  %v1330_v18 = vld [vmem:[%s11056_s21 + $0x1c] sm:$0x3] }
  0xa3   : > { %10150 = vmatmul.msk.bf16.vlgmr.msrb.gmra.mxu0 %vm192_vm2, %v1061_v23  ;;  %10151 = vmatmul.msk.bf16.vlgmr.msrb.gmra.mxu1 %vm192_vm2, %v1081_v27  ;;  %v10159_v23 = vld [vmem:[%s11056_s21 + $0x80] sm:$0xe]  ;;  %v10160_v27 = vld [vmem:[%s11056_s21 + $0x88] sm:$0xe] }
  0xa4   : > { %10152 = vmatmul.msk.bf16.vlgmr.msrb.gmra.mxu2 %vm192_vm2, %v1101_v31  ;;  %10153 = vmatmul.msk.bf16.vlgmr.msrb.gmra.mxu3 %vm192_vm2, %v1121_v53  ;;  %v10161_v31 = vld [vmem:[%s11056_s21 + $0x90] sm:$0xe]  ;;  %v1240_v53 = vunpack.c.l.b16 %v10158_v62  ;;  %v1260_v2 = vunpack.c.l.b16 %v10159_v23  ;;  %v1280_v22 = vunpack.c.l.b16 %v10160_v27 }
  0xa5   : > { %1293 = vmatpush.bf16.msrb.mxu2 %v1164_v34  ;;  %1313 = vmatpush.bf16.msrb.mxu3 %v1164_v34 }
  0xa6   : > { %1253 = vmatpush.bf16.msrb.mxu0 %v1164_v34  ;;  %1273 = vmatpush.bf16.msrb.mxu1 %v1164_v34  ;;  %v1221_v34 = vpack.c.b16 %v820_v56, %v1220_v0  ;;  %v1352_v56 = vand.u32 %v10171_v19, %v11044_v3  ;;  %v1241_v26 = vpack.c.b16 %v848_v47, %v1240_v53  ;;  %v1368_v19 = vunpack.c.l.b16 %v1328_v11 }
  0xa7   : > { %v11323_v57 = vpop.f32.mrf.mxu2  ;;  %v11325_v60 = vpop.f32.mrf.mxu3  ;;  %v1261_v0 = vpack.c.b16 %v876_v51, %v1260_v2  ;;  %v1422_v47 = vunpack.c.l.b16 %v1330_v18 }
  0xa8   : > { %v278_v24 = vpop.f32.mrf.mxu0  ;;  %v294_v30 = vpop.f32.mrf.mxu1  ;;  %v1222_v41 = vrot.slane %v1221_v34, 1 }
  0xa9   : > { %v1300_v24 = vunpack.c.l.b16 %v10161_v31  ;;  %v1327_v30 = vld [vmem:[%s11056_s21 + $0x4] sm:$0x3]  ;;  %v1262_v25 = vrot.slane %v1261_v0, 1  ;;  %v1334_v0 = vld [vmem:[%s11056_s21 + $0x3c] sm:$0x3] }
  0xaa   : > { %v1338_v34 = vunpack.c.l.b16 %v1327_v30  ;;  %v1332_v30 = vld [vmem:[%s11056_s21 + $0x2c] sm:$0x3] }
  0xac   : > { %v1339_v17 = vpack.c.b16 %v1338_v34, %v976_v44 }
  0xae   : > { %v1341_v35 = vshrl.u32 %v1339_v17, 16  ;;  %v1344_v44 = vshll.u32 %v1339_v17, 16 }
  0xaf   : > { %v310_v20 = vpop.f32.mrf.mxu2  ;;  %v326_v21 = vpop.f32.mrf.mxu3 }
  0xb0   : > { %v343_v39 = vpop.f32.mrf.mxu0  ;;  %v359_v52 = vpop.f32.mrf.mxu1  ;;  %v1395_v20 = vunpack.c.l.b16 %v1329_v12  ;;  %v1343_v31 = vrot.slane %v1341_v35, 1 }
  0xb1   : > { %v11339_v54 = vadd.f32 %v343_v39, %v11266_v32  ;;  %v11342_v43 = vadd.f32 %v359_v52, %v11268_v63 }
  0xb3   : > { %10163 = vmatmul.msk.bf16.vlgmr.msra.gmra.mxu0 %vm192_vm2, %v1159_v37  ;;  %10164 = vmatmul.msk.bf16.vlgmr.msra.gmra.mxu1 %vm192_vm2, %v1182_v49  ;;  %v1242_v49 = vrot.slane %v1241_v26, 1  ;;  %v1333_v26 = vld [vmem:[%s11056_s21 + $0x34] sm:$0x3] }
  0xb4   : > { %10165 = vmatmul.msk.bf16.vlgmr.msra.gmra.mxu2 %vm192_vm2, %v1202_v50  ;;  %10166 = vmatmul.msk.bf16.vlgmr.msra.gmra.mxu3 %vm192_vm2, %v1222_v41  ;;  %v1503_v12 = vunpack.c.l.b16 %v1333_v26 }
  0xb5   : > { %1415 = vmatpush.bf16.msra.mxu2 %v1352_v56  ;;  %1442 = vmatpush.bf16.msra.mxu3 %v1352_v56 }
  0xb6   : > { %1361 = vmatpush.bf16.msra.mxu0 %v1352_v56  ;;  %1388 = vmatpush.bf16.msra.mxu1 %v1352_v56 }
  0xb7   : > { %v375_v32 = vpop.f32.mrf.mxu2  ;;  %v391_v63 = vpop.f32.mrf.mxu3 }
  0xb8   : > { %v11354_v5 = vadd.f32 %v375_v32, %v11287_v7  ;;  %v11357_v13 = vadd.f32 %v391_v63, %v11289_v8  ;;  %v345_v15 = vpop.f32.mrf.mxu0  ;;  %v361_v61 = vpop.f32.mrf.mxu1  ;;  %v1281_v7 = vpack.c.b16 %v904_v55, %v1280_v22  ;;  %v1301_v8 = vpack.c.b16 %v932_v59, %v1300_v24 }
  0xb9   : > { %v1369_v55 = vpack.c.b16 %v1368_v19, %v999_v45  ;;  %v1396_v59 = vpack.c.b16 %v1395_v20, %v1019_v46  ;;  %v1346_v32 = vrot.slane %v1344_v44, 2  ;;  %v1331_v61 = vld [vmem:[%s11056_s21 + $0x24] sm:$0x3]  ;;  %v1530_v19 = vunpack.c.l.b16 %v1334_v0 }
  0xba   : > { %v1282_v51 = vrot.slane %v1281_v7, 1  ;;  %v1302_v52 = vrot.slane %v1301_v8, 1  ;;  %v1449_v11 = vunpack.c.l.b16 %v1331_v61 }
  0xbb   : > { %v1371_v38 = vshrl.u32 %v1369_v55, 16  ;;  %v1374_v40 = vshll.u32 %v1369_v55, 16  ;;  %v1398_v45 = vshrl.u32 %v1396_v59, 16  ;;  %v1401_v46 = vshll.u32 %v1396_v59, 16 }
  0xbc   : > { %v1347_v18 = vor.u32 %v1346_v32, %v1343_v31 }
  0xbd   : > { %v1373_v63 = vrot.slane %v1371_v38, 1  ;;  %v1376_v53 = vrot.slane %v1374_v40, 2  ;;  %v1400_v2 = vrot.slane %v1398_v45, 1  ;;  %v1403_v15 = vrot.slane %v1401_v46, 2 }
  0xbf   : > { %v377_v21 = vpop.f32.mrf.mxu2  ;;  %v393_v37 = vpop.f32.mrf.mxu3  ;;  %v1377_v34 = vor.u32 %v1376_v53, %v1373_v63 }
  0xc0   : > { %v407_v39 = vpop.f32.mrf.mxu0  ;;  %v423_v29 = vpop.f32.mrf.mxu1  ;;  %v1404_v37 = vor.u32 %v1403_v15, %v1400_v2 }
  0xc1   : > { %v11372_v50 = vadd.f32 %v407_v39, %v11311_v58  ;;  %v11375_v33 = vadd.f32 %v423_v29, %v11313_v1  ;;  %v1423_v58 = vpack.c.b16 %v1422_v47, %v1039_v48  ;;  %v1450_v29 = vpack.c.b16 %v1449_v11, %v1059_v9 }
  0xc3   : > { %10167 = vmatmul.msk.bf16.vlgmr.msrb.gmra.mxu0 %vm192_vm2, %v1242_v49  ;;  %10168 = vmatmul.msk.bf16.vlgmr.msrb.gmra.mxu1 %vm192_vm2, %v1262_v25  ;;  %v1425_v42 = vshrl.u32 %v1423_v58, 16  ;;  %v1428_v48 = vshll.u32 %v1423_v58, 16  ;;  %v1452_v28 = vshrl.u32 %v1450_v29, 16  ;;  %v1455_v9 = vshll.u32 %v1450_v29, 16 }
  0xc4   : > { %10169 = vmatmul.msk.bf16.vlgmr.msrb.gmra.mxu2 %vm192_vm2, %v1282_v51  ;;  %10170 = vmatmul.msk.bf16.vlgmr.msrb.gmra.mxu3 %vm192_vm2, %v1302_v52  ;;  %v1504_v52 = vpack.c.b16 %v1503_v12, %v1099_v14  ;;  %v10181_v12 = vld [vmem:[%s11056_s21 + $0xb8] sm:$0xf] }
  0xc5   : > { %1523 = vmatpush.bf16.msrb.mxu2 %v1352_v56  ;;  %1550 = vmatpush.bf16.msrb.mxu3 %v1352_v56  ;;  %v1427_v22 = vrot.slane %v1425_v42, 1  ;;  %v1430_v24 = vrot.slane %v1428_v48, 2  ;;  %v1454_v44 = vrot.slane %v1452_v28, 1  ;;  %v1457_v38 = vrot.slane %v1455_v9, 2  ;;  %v10186_v9 = vld [vmem:[%s11056_s21 + $0xe0] sm:$0xf] }
  0xc6   : > { %1469 = vmatpush.bf16.msrb.mxu0 %v1352_v56  ;;  %1496 = vmatpush.bf16.msrb.mxu1 %v1352_v56  ;;  %v1509_v14 = vshll.u32 %v1504_v52, 16 }
  0xc7   : > { %v439_v1 = vpop.f32.mrf.mxu2  ;;  %v455_v41 = vpop.f32.mrf.mxu3  ;;  %v1431_v49 = vor.u32 %v1430_v24, %v1427_v22 }
  0xc8   : > { %v11390_v62 = vadd.f32 %v439_v1, %v11323_v57  ;;  %v11393_v23 = vadd.f32 %v455_v41, %v11325_v60  ;;  %v409_v27 = vpop.f32.mrf.mxu0  ;;  %v425_v56 = vpop.f32.mrf.mxu1  ;;  %v10188_v57 = vld [vmem:[%s14302_s1 + $0xe] sm:$0x3]  ;;  %v1476_v60 = vunpack.c.l.b16 %v1332_v30  ;;  %v1511_v1 = vrot.slane %v1509_v14, 2  ;;  %v10205_v30 = vld [vmem:[%s14302_s1 + $0x10] sm:$0x3] }
  0xc9   : > { %v1579_v39 = vand.u32 %v10188_v57, %v11044_v3  ;;  %v1458_v56 = vor.u32 %v1457_v38, %v1454_v44  ;;  %v10197_v44 = vld [vmem:[%s11056_s21 + $0x108] sm:$0xf]  ;;  %v10198_v38 = vld [vmem:[%s11056_s21 + $0x110] sm:$0xf] }
  0xca   : > { %v1477_v51 = vpack.c.b16 %v1476_v60, %v1079_v10  ;;  %v1506_v10 = vshrl.u32 %v1504_v52, 16  ;;  %v10180_v60 = vld [vmem:[%s11056_s21 + $0xb0] sm:$0xf]  ;;  %v10185_v52 = vld [vmem:[%s11056_s21 + $0xd8] sm:$0xf] }
  0xcc   : > { %v1479_v36 = vshrl.u32 %v1477_v51, 16  ;;  %v1482_v4 = vshll.u32 %v1477_v51, 16  ;;  %v1508_v46 = vrot.slane %v1506_v10, 1  ;;  %v10184_v51 = vld [vmem:[%s11056_s21 + $0xd0] sm:$0xf] }
  0xce   : > { %v1481_v40 = vrot.slane %v1479_v36, 1  ;;  %v1484_v45 = vrot.slane %v1482_v4, 2  ;;  %v1512_v53 = vor.u32 %v1511_v1, %v1508_v46  ;;  %v10187_v36 = vld [vmem:[%s11056_s21 + $0xe8] sm:$0xf]  ;;  %v10199_v46 = vld [vmem:[%s11056_s21 + $0x118] sm:$0xf] }
  0xcf   : > { %v441_v7 = vpop.f32.mrf.mxu2  ;;  %v457_v8 = vpop.f32.mrf.mxu3  ;;  %v10200_v1 = vld [vmem:[%s11056_s21 + $0x120] sm:$0xf] }
  0xd0   : > { %v504_v20 = vpop.f32.mrf.mxu0  ;;  %v532_v21 = vpop.f32.mrf.mxu1  ;;  %v1485_v31 = vor.u32 %v1484_v45, %v1481_v40 }
  0xd1   : > { %v11403_v25 = vadd.f32 %v504_v20, %v11339_v54  ;;  %v11406_v47 = vadd.f32 %v532_v21, %v11342_v43  ;;  %v1531_v54 = vpack.c.b16 %v1530_v19, %v1119_v16 }
  0xd3   : > { %10172 = vmatmul.msk.bf16.vlgmr.msra.gmra.mxu0 %vm192_vm2, %v1347_v18  ;;  %10173 = vmatmul.msk.bf16.vlgmr.msra.gmra.mxu1 %vm192_vm2, %v1377_v34  ;;  %v1533_v55 = vshrl.u32 %v1531_v54, 16  ;;  %v1536_v59 = vshll.u32 %v1531_v54, 16  ;;  %v10182_v18 = vld [vmem:[%s11056_s21 + $0xc0] sm:$0xf] }
  0xd4   : > { %10174 = vmatmul.msk.bf16.vlgmr.msra.gmra.mxu2 %vm192_vm2, %v1404_v37  ;;  %10175 = vmatmul.msk.bf16.vlgmr.msra.gmra.mxu3 %vm192_vm2, %v1431_v49 }
  0xd5   : > { %1620 = vmatpush.bf16.msra.mxu2 %v1579_v39  ;;  %1636 = vmatpush.bf16.msra.mxu3 %v1579_v39  ;;  %v1535_v41 = vrot.slane %v1533_v55, 1  ;;  %v1538_v42 = vrot.slane %v1536_v59, 2  ;;  %v10230_v59 = vld [vmem:[%s14302_s1 + $0x12] sm:$0x3] }
  0xd6   : > { %1588 = vmatpush.bf16.msra.mxu0 %v1579_v39  ;;  %1604 = vmatpush.bf16.msra.mxu1 %v1579_v39 }
  0xd7   : > { %v560_v43 = vpop.f32.mrf.mxu2  ;;  %v588_v17 = vpop.f32.mrf.mxu3 }
  0xd8   : > { %v706_v6 = vadd.f32 %v560_v43, %v11354_v5  ;;  %v707_v16 = vadd.f32 %v588_v17, %v11357_v13  ;;  %v506_v58 = vpop.f32.mrf.mxu0  ;;  %v534_v35 = vpop.f32.mrf.mxu1  ;;  %v1539_v5 = vor.u32 %v1538_v42, %v1535_v41  ;;  %v1898_v41 = vand.u32 %v10230_v59, %v11044_v3 }
  0xdf   : > { %v562_v48 = vpop.f32.mrf.mxu2  ;;  %v590_v27 = vpop.f32.mrf.mxu3 }
  0xe0   : > { %v616_v32 = vpop.f32.mrf.mxu0  ;;  %v644_v63 = vpop.f32.mrf.mxu1 }
  0xe1   : > { %v708_v13 = vadd.f32 %v616_v32, %v11372_v50  ;;  %v709_v2 = vadd.f32 %v644_v63, %v11375_v33  ;;  %v10214_v63 = vld [vmem:[%s11056_s21 + $0xb0] sm:$0xf] }
  0xe3   : > { %10176 = vmatmul.msk.bf16.vlgmr.msrb.gmra.mxu0 %vm192_vm2, %v1458_v56  ;;  %10177 = vmatmul.msk.bf16.vlgmr.msrb.gmra.mxu1 %vm192_vm2, %v1485_v31 }
  0xe4   : > { %10178 = vmatmul.msk.bf16.vlgmr.msrb.gmra.mxu2 %vm192_vm2, %v1512_v53  ;;  %10179 = vmatmul.msk.bf16.vlgmr.msrb.gmra.mxu3 %vm192_vm2, %v1539_v5  ;;  %v11483_v53 = vld [vmem:[%s11056_s21 + $0xb4] sm:$0x1]  ;;  %v10216_v5 = vld [vmem:[%s11056_s21 + $0xb8] sm:$0xf] }
  0xe5   : > { %1684 = vmatpush.bf16.msrb.mxu2 %v1579_v39  ;;  %1700 = vmatpush.bf16.msrb.mxu3 %v1579_v39 }
  0xe6   : > { %1652 = vmatpush.bf16.msrb.mxu0 %v1579_v39  ;;  %1668 = vmatpush.bf16.msrb.mxu1 %v1579_v39 }
  0xe7   : > { %v672_v15 = vpop.f32.mrf.mxu2  ;;  %v700_v50 = vpop.f32.mrf.mxu3 }
  0xe8   : > { %v710_v33 = vadd.f32 %v672_v15, %v11390_v62  ;;  %v711_v61 = vadd.f32 %v700_v50, %v11393_v23  ;;  %v618_v22 = vpop.f32.mrf.mxu0  ;;  %v646_v24 = vpop.f32.mrf.mxu1  ;;  %v10183_v62 = vld [vmem:[%s11056_s21 + $0xc8] sm:$0xf]  ;;  %v1729_v23 = vand.u32 %v10205_v30, %v11044_v3  ;;  %v11491_v15 = vld [vmem:[%s11056_s21 + $0xc4] sm:$0x1] }
  0xe9   : > { %v10220_v50 = vld [vmem:[%s11056_s21 + $0xc8] sm:$0xf]  ;;  %v1885_v22 = vunpack.c.l.b16 %v11483_v53  ;;  %v10289_v53 = vld [vmem:[%s14302_s1 + $0x18] sm:$0x3] }
  0xef   : > { %v674_v26 = vpop.f32.mrf.mxu2  ;;  %v702_v0 = vpop.f32.mrf.mxu3 }
  0xf0   : > { %v757_v11 = vpop.f32.mrf.mxu0  ;;  %v785_v57 = vpop.f32.mrf.mxu1  ;;  %v1915_v26 = vunpack.c.l.b16 %v10216_v5 }
  0xf1   : > { %v957_v7 = vadd.f32 %v757_v11, %v11403_v25  ;;  %v958_v8 = vadd.f32 %v785_v57, %v11406_v47  ;;  %v1944_v57 = vunpack.c.l.b16 %v11491_v15 }
  0xf3   : > { %10189 = vmatmul.msk.bf16.vlgmr.msra.gmra.mxu0 %vm192_vm2, %v10180_v60  ;;  %10190 = vmatmul.msk.bf16.vlgmr.msra.gmra.mxu1 %vm192_vm2, %v10181_v12 }
  0xf4   : > { %10191 = vmatmul.msk.bf16.vlgmr.msra.gmra.mxu2 %vm192_vm2, %v10182_v18  ;;  %10192 = vmatmul.msk.bf16.vlgmr.msra.gmra.mxu3 %vm192_vm2, %v10183_v62  ;;  %v1971_v18 = vunpack.c.l.b16 %v10220_v50 }
  0xf5   : > { %1770 = vmatpush.bf16.msra.mxu2 %v1729_v23  ;;  %1786 = vmatpush.bf16.msra.mxu3 %v1729_v23 }
  0xf6   : > { %1738 = vmatpush.bf16.msra.mxu0 %v1729_v23  ;;  %1754 = vmatpush.bf16.msra.mxu1 %v1729_v23 }
  0xf7   : > { %v813_v34 = vpop.f32.mrf.mxu2  ;;  %v841_v19 = vpop.f32.mrf.mxu3 }
  0xf8   : > { %v959_v20 = vadd.f32 %v813_v34, %v706_v6  ;;  %v960_v21 = vadd.f32 %v841_v19, %v707_v16  ;;  %v759_v37 = vpop.f32.mrf.mxu0  ;;  %v787_v49 = vpop.f32.mrf.mxu1  ;;  %v10203_v19 = vld [vmem:[%s11056_s21 + $0x138] sm:$0xf] }
  0xff   : > { %v815_v25 = vpop.f32.mrf.mxu2  ;;  %v843_v47 = vpop.f32.mrf.mxu3 }
 0x100   : > { %v869_v39 = vpop.f32.mrf.mxu0  ;;  %v897_v29 = vpop.f32.mrf.mxu1 }
 0x101   : > { %v11447_v54 = vadd.f32 %v869_v39, %v708_v13  ;;  %v11449_v28 = vadd.f32 %v897_v29, %v709_v2  ;;  %v11487_v13 = vld [vmem:[%s11056_s21 + $0xbc] sm:$0x1]  ;;  %v10218_v2 = vld [vmem:[%s11056_s21 + $0xc0] sm:$0xf] }
 0x102   : > { %v1916_v0 = vunpack.c.l.b16 %v11487_v13  ;;  %v1943_v11 = vunpack.c.l.b16 %v10218_v2  ;;  %v10255_v2 = vld [vmem:[%s14302_s1 + $0x14] sm:$0x3] }
 0x103   : > { %10193 = vmatmul.msk.bf16.vlgmr.msrb.gmra.mxu0 %vm192_vm2, %v10184_v51  ;;  %10194 = vmatmul.msk.bf16.vlgmr.msrb.gmra.mxu1 %vm192_vm2, %v10185_v52 }
 0x104   : > { %10195 = vmatmul.msk.bf16.vlgmr.msrb.gmra.mxu2 %vm192_vm2, %v10186_v9  ;;  %10196 = vmatmul.msk.bf16.vlgmr.msrb.gmra.mxu3 %vm192_vm2, %v10187_v36  ;;  %v1917_v37 = vpack.c.b16 %v1916_v0, %v1915_v26  ;;  %v1945_v49 = vpack.c.b16 %v1944_v57, %v1943_v11 }
 0x105   : > { %1834 = vmatpush.bf16.msrb.mxu2 %v1729_v23  ;;  %1850 = vmatpush.bf16.msrb.mxu3 %v1729_v23 }
 0x106   : > { %1802 = vmatpush.bf16.msrb.mxu0 %v1729_v23  ;;  %1818 = vmatpush.bf16.msrb.mxu1 %v1729_v23  ;;  %v1921_v51 = vshll.u32 %v1917_v37, 16  ;;  %v1949_v52 = vshll.u32 %v1945_v49, 16 }
 0x107   : > { %v925_v4 = vpop.f32.mrf.mxu2  ;;  %v953_v10 = vpop.f32.mrf.mxu3 }
 0x108   : > { %v11457_v14 = vadd.f32 %v925_v4, %v710_v33  ;;  %v11459_v43 = vadd.f32 %v953_v10, %v711_v61  ;;  %v871_v17 = vpop.f32.mrf.mxu0  ;;  %v899_v55 = vpop.f32.mrf.mxu1  ;;  %v11495_v33 = vld [vmem:[%s11056_s21 + $0xcc] sm:$0x1]  ;;  %v1884_v61 = vunpack.c.l.b16 %v10214_v63  ;;  %v10222_v10 = vld [vmem:[%s11056_s21 + $0xd0] sm:$0xf] }
 0x109   : > { %v1972_v62 = vunpack.c.l.b16 %v11495_v33  ;;  %v11531_v17 = vld [vmem:[%s11056_s21 + $0xd4] sm:$0x1]  ;;  %v11545_v63 = vld [vmem:[%s11056_s21 + $0xec] sm:$0x1] }
 0x10b   : > { %v1973_v25 = vpack.c.b16 %v1972_v62, %v1971_v18 }
 0x10d   : > { %v1977_v4 = vshll.u32 %v1973_v25, 16 }
 0x10f   : > { %v927_v6 = vpop.f32.mrf.mxu2  ;;  %v955_v16 = vpop.f32.mrf.mxu3 }
 0x110   : > { %v994_v58 = vpop.f32.mrf.mxu0  ;;  %v1014_v35 = vpop.f32.mrf.mxu1  ;;  %v10224_v6 = vld [vmem:[%s11056_s21 + $0xd8] sm:$0xf]  ;;  %v11535_v16 = vld [vmem:[%s11056_s21 + $0xdc] sm:$0x1] }
 0x111   : > { %v11466_v40 = vadd.f32 %v994_v58, %v957_v7  ;;  %v11468_v45 = vadd.f32 %v1014_v35, %v958_v8  ;;  %v10201_v7 = vld [vmem:[%s11056_s21 + $0x128] sm:$0xf]  ;;  %v10202_v8 = vld [vmem:[%s11056_s21 + $0x130] sm:$0xf]  ;;  %v1923_v58 = vrot.slane %v1921_v51, 1  ;;  %v1947_v35 = vshrl.u32 %v1945_v49, 16 }
 0x112   : > { %v11563_v49 = vand.u32 %v10255_v2, %v11044_v3 }
 0x113   : > { %10206 = vmatmul.msk.bf16.vlgmr.msra.gmra.mxu0 %vm192_vm2, %v10197_v44  ;;  %10207 = vmatmul.msk.bf16.vlgmr.msra.gmra.mxu1 %vm192_vm2, %v10198_v38  ;;  %v1975_v44 = vshrl.u32 %v1973_v25, 16  ;;  %v1979_v38 = vrot.slane %v1977_v4, 1 }
 0x114   : > { %10208 = vmatmul.msk.bf16.vlgmr.msra.gmra.mxu2 %vm192_vm2, %v10199_v46  ;;  %10209 = vmatmul.msk.bf16.vlgmr.msra.gmra.mxu3 %vm192_vm2, %v10200_v1  ;;  %v1999_v46 = vunpack.c.l.b16 %v10222_v10  ;;  %v2000_v1 = vunpack.c.l.b16 %v11531_v17 }
 0x115   : > { %1963 = vmatpush.bf16.msra.mxu2 %v1898_v41  ;;  %1991 = vmatpush.bf16.msra.mxu3 %v1898_v41 }
 0x116   : > { %1907 = vmatpush.bf16.msra.mxu0 %v1898_v41  ;;  %1935 = vmatpush.bf16.msra.mxu1 %v1898_v41 }
 0x117   : > { %v1034_v42 = vpop.f32.mrf.mxu2  ;;  %v1054_v48 = vpop.f32.mrf.mxu3 }
 0x118   : > { %v11477_v27 = vadd.f32 %v1034_v42, %v959_v20  ;;  %v11479_v56 = vadd.f32 %v1054_v48, %v960_v21  ;;  %v996_v31 = vpop.f32.mrf.mxu0  ;;  %v1016_v32 = vpop.f32.mrf.mxu1  ;;  %v10204_v20 = vld [vmem:[%s11056_s21 + $0x140] sm:$0xf]  ;;  %v1886_v21 = vpack.c.b16 %v1885_v22, %v1884_v61  ;;  %v11540_v42 = vld [vmem:[%s11056_s21 + $0xe4] sm:$0x1]  ;;  %v2027_v48 = vunpack.c.l.b16 %v10224_v6 }
 0x119   : > { %v2028_v31 = vunpack.c.l.b16 %v11535_v16  ;;  %v10228_v32 = vld [vmem:[%s11056_s21 + $0xe8] sm:$0xf]  ;;  %v2056_v11 = vunpack.c.l.b16 %v11540_v42 }
 0x11a   : > { %v1890_v47 = vshll.u32 %v1886_v21, 16  ;;  %v1888_v55 = vshrl.u32 %v1886_v21, 16  ;;  %v2083_v18 = vunpack.c.l.b16 %v10228_v32 }
 0x11c   : > { %v1892_v59 = vrot.slane %v1890_v47, 1 }
 0x11e   : > { %v1893_v5 = vor.u32 %v1892_v59, %v1888_v55 }
 0x11f   : > { %v1036_v24 = vpop.f32.mrf.mxu2  ;;  %v1056_v30 = vpop.f32.mrf.mxu3 }
 0x120   : > { %v1074_v60 = vpop.f32.mrf.mxu0  ;;  %v1094_v12 = vpop.f32.mrf.mxu1 }
 0x121   : > { %v11504_v23 = vadd.f32 %v1074_v60, %v11447_v54  ;;  %v11507_v34 = vadd.f32 %v1094_v12, %v11449_v28 }
 0x123   : > { %10210 = vmatmul.msk.bf16.vlgmr.msrb.gmra.mxu0 %vm192_vm2, %v10201_v7  ;;  %10211 = vmatmul.msk.bf16.vlgmr.msrb.gmra.mxu1 %vm192_vm2, %v10202_v8  ;;  %v1980_v7 = vor.u32 %v1979_v38, %v1975_v44  ;;  %v2001_v8 = vpack.c.b16 %v2000_v1, %v1999_v46  ;;  %v11589_v44 = vld [vmem:[%s11056_s21 + $0x114] sm:$0x1]  ;;  %v10243_v38 = vld [vmem:[%s11056_s21 + $0x118] sm:$0xf]  ;;  %v11593_v46 = vld [vmem:[%s11056_s21 + $0x11c] sm:$0x1] }
 0x124   : > { %10212 = vmatmul.msk.bf16.vlgmr.msrb.gmra.mxu2 %vm192_vm2, %v10203_v19  ;;  %10213 = vmatmul.msk.bf16.vlgmr.msrb.gmra.mxu3 %vm192_vm2, %v10204_v20  ;;  %v2084_v19 = vunpack.c.l.b16 %v11545_v63  ;;  %v10281_v63 = vld [vmem:[%s11056_s21 + $0x108] sm:$0xe] }
 0x125   : > { %2075 = vmatpush.bf16.msrb.mxu2 %v1898_v41  ;;  %2103 = vmatpush.bf16.msrb.mxu3 %v1898_v41  ;;  %v2003_v51 = vshrl.u32 %v2001_v8, 16 }
 0x126   : > { %2019 = vmatpush.bf16.msrb.mxu0 %v1898_v41  ;;  %2047 = vmatpush.bf16.msrb.mxu1 %v1898_v41  ;;  %v10226_v41 = vld [vmem:[%s11056_s21 + $0xe0] sm:$0xf] }
 0x127   : > { %v1114_v39 = vpop.f32.mrf.mxu2  ;;  %v1134_v29 = vpop.f32.mrf.mxu3  ;;  %v2055_v26 = vunpack.c.l.b16 %v10226_v41  ;;  %v11597_v41 = vld [vmem:[%s11056_s21 + $0x124] sm:$0x1] }
 0x128   : > { %v11524_v54 = vadd.f32 %v1114_v39, %v11457_v14  ;;  %v11527_v28 = vadd.f32 %v1134_v29, %v11459_v43  ;;  %v1076_v9 = vpop.f32.mrf.mxu0  ;;  %v1096_v36 = vpop.f32.mrf.mxu1  ;;  %v1919_v14 = vshrl.u32 %v1917_v37, 16  ;;  %v1951_v43 = vrot.slane %v1949_v52, 1 }
 0x129   : > { %v2029_v37 = vpack.c.b16 %v2028_v31, %v2027_v48  ;;  %v2057_v25 = vpack.c.b16 %v2056_v11, %v2055_v26  ;;  %v2197_v26 = vunpack.c.l.b16 %v11593_v46 }
 0x12a   : > { %v1924_v24 = vor.u32 %v1923_v58, %v1919_v14  ;;  %v1952_v30 = vor.u32 %v1951_v43, %v1947_v35  ;;  %v10239_v58 = vld [vmem:[%s11056_s21 + $0x108] sm:$0xf]  ;;  %v11585_v35 = vld [vmem:[%s11056_s21 + $0x10c] sm:$0x1]  ;;  %v10241_v43 = vld [vmem:[%s11056_s21 + $0x110] sm:$0xf] }
 0x12b   : > { %v2033_v47 = vshll.u32 %v2029_v37, 16  ;;  %v2061_v52 = vshll.u32 %v2057_v25, 16  ;;  %v2031_v6 = vshrl.u32 %v2029_v37, 16  ;;  %v2137_v2 = vunpack.c.l.b16 %v10239_v58 }
 0x12d   : > { %v2035_v14 = vrot.slane %v2033_v47, 1  ;;  %v2063_v48 = vrot.slane %v2061_v52, 1 }
 0x12f   : > { %v1116_v50 = vpop.f32.mrf.mxu2  ;;  %v1136_v61 = vpop.f32.mrf.mxu3  ;;  %v2036_v37 = vor.u32 %v2035_v14, %v2031_v6 }
 0x130   : > { %v1175_v60 = vpop.f32.mrf.mxu0  ;;  %v1195_v12 = vpop.f32.mrf.mxu1  ;;  %v2138_v50 = vunpack.c.l.b16 %v11585_v35  ;;  %v2168_v61 = vunpack.c.l.b16 %v10241_v43 }
 0x131   : > { %v11555_v20 = vadd.f32 %v1175_v60, %v11466_v40  ;;  %v11558_v21 = vadd.f32 %v1195_v12, %v11468_v45  ;;  %v2005_v40 = vshll.u32 %v2001_v8, 16  ;;  %v2085_v45 = vpack.c.b16 %v2084_v19, %v2083_v18 }
 0x132   : > { %v2225_v12 = vunpack.c.l.b16 %v11597_v41  ;;  %v2139_v52 = vpack.c.b16 %v2138_v50, %v2137_v2 }
 0x133   : > { %10231 = vmatmul.msk.bf16.vlgmr.msra.gmra.mxu0 %vm192_vm2, %v1893_v5  ;;  %10232 = vmatmul.msk.bf16.vlgmr.msra.gmra.mxu1 %vm192_vm2, %v1924_v24  ;;  %v2007_v55 = vrot.slane %v2005_v40, 1  ;;  %v2089_v59 = vshll.u32 %v2085_v45, 16  ;;  %v2087_v32 = vshrl.u32 %v2085_v45, 16  ;;  %v2169_v24 = vunpack.c.l.b16 %v11589_v44 }
 0x134   : > { %10233 = vmatmul.msk.bf16.vlgmr.msra.gmra.mxu2 %vm192_vm2, %v1952_v30  ;;  %10234 = vmatmul.msk.bf16.vlgmr.msra.gmra.mxu3 %vm192_vm2, %v1980_v7  ;;  %v2196_v30 = vunpack.c.l.b16 %v10243_v38 }
 0x135   : > { %2216 = vmatpush.bf16.msra.mxu2 %v11563_v49  ;;  %2244 = vmatpush.bf16.msra.mxu3 %v11563_v49  ;;  %v2091_v5 = vrot.slane %v2089_v59, 1  ;;  %v2008_v18 = vor.u32 %v2007_v55, %v2003_v51 }
 0x136   : > { %2160 = vmatpush.bf16.msra.mxu0 %v11563_v49  ;;  %2188 = vmatpush.bf16.msra.mxu1 %v11563_v49  ;;  %v2198_v51 = vpack.c.b16 %v2197_v26, %v2196_v30 }
 0x137   : > { %v1215_v39 = vpop.f32.mrf.mxu2  ;;  %v1235_v29 = vpop.f32.mrf.mxu3  ;;  %v2092_v47 = vor.u32 %v2091_v5, %v2087_v32 }
 0x138   : > { %v11578_v9 = vadd.f32 %v1215_v39, %v11477_v27  ;;  %v11581_v36 = vadd.f32 %v1235_v29, %v11479_v56  ;;  %v1177_v4 = vpop.f32.mrf.mxu0  ;;  %v1197_v10 = vpop.f32.mrf.mxu1  ;;  %v10245_v27 = vld [vmem:[%s11056_s21 + $0x120] sm:$0xf]  ;;  %v2059_v56 = vshrl.u32 %v2057_v25, 16  ;;  %v2202_v55 = vshll.u32 %v2198_v51, 16 }
 0x139   : > { %v2224_v60 = vunpack.c.l.b16 %v10245_v27  ;;  %v2170_v4 = vpack.c.b16 %v2169_v24, %v2168_v61  ;;  %v2200_v32 = vshrl.u32 %v2198_v51, 16 }
 0x13a   : > { %v2064_v45 = vor.u32 %v2063_v48, %v2059_v56  ;;  %v2141_v56 = vshrl.u32 %v2139_v52, 16  ;;  %v2204_v2 = vrot.slane %v2202_v55, 1 }
 0x13b   : > { %v2226_v10 = vpack.c.b16 %v2225_v12, %v2224_v60  ;;  %v10247_v60 = vld [vmem:[%s11056_s21 + $0x128] sm:$0xf] }
 0x13d   : > { %v2230_v59 = vshll.u32 %v2226_v10, 16  ;;  %v2228_v61 = vshrl.u32 %v2226_v10, 16 }
 0x13f   : > { %v1217_v7 = vpop.f32.mrf.mxu2  ;;  %v1237_v8 = vpop.f32.mrf.mxu3  ;;  %v2232_v30 = vrot.slane %v2230_v59, 1 }
 0x140   : > { %v1255_v25 = vpop.f32.mrf.mxu0  ;;  %v1275_v40 = vpop.f32.mrf.mxu1  ;;  %v10249_v7 = vld [vmem:[%s11056_s21 + $0x130] sm:$0xf]  ;;  %v11637_v8 = vld [vmem:[%s11056_s21 + $0x134] sm:$0x1] }
 0x141   : > { %v11604_v39 = vadd.f32 %v1255_v25, %v11504_v23  ;;  %v11607_v29 = vadd.f32 %v1275_v40, %v11507_v34  ;;  %v2143_v23 = vshll.u32 %v2139_v52, 16  ;;  %v2174_v34 = vshll.u32 %v2170_v4, 16  ;;  %v11645_v25 = vld [vmem:[%s11056_s21 + $0x144] sm:$0x1] }
 0x142   : > { %v2233_v52 = vor.u32 %v2232_v30, %v2228_v61  ;;  %v2280_v55 = vunpack.c.l.b16 %v10249_v7  ;;  %v2281_v59 = vunpack.c.l.b16 %v11637_v8 }
 0x143   : > { %10235 = vmatmul.msk.bf16.vlgmr.msrb.gmra.mxu0 %vm192_vm2, %v2008_v18  ;;  %10236 = vmatmul.msk.bf16.vlgmr.msrb.gmra.mxu1 %vm192_vm2, %v2036_v37  ;;  %v2145_v48 = vrot.slane %v2143_v23, 1  ;;  %v2176_v5 = vrot.slane %v2174_v34, 1  ;;  %v11641_v18 = vld [vmem:[%s11056_s21 + $0x13c] sm:$0x1]  ;;  %v10253_v37 = vld [vmem:[%s11056_s21 + $0x140] sm:$0xf]  ;;  %v2252_v23 = vunpack.c.l.b16 %v10247_v60 }
 0x144   : > { %10237 = vmatmul.msk.bf16.vlgmr.msrb.gmra.mxu2 %vm192_vm2, %v2064_v45  ;;  %10238 = vmatmul.msk.bf16.vlgmr.msrb.gmra.mxu3 %vm192_vm2, %v2092_v47  ;;  %v2205_v47 = vor.u32 %v2204_v2, %v2200_v32  ;;  %v2282_v61 = vpack.c.b16 %v2281_v59, %v2280_v55 }
 0x145   : > { %2328 = vmatpush.bf16.msrb.mxu2 %v11563_v49  ;;  %2356 = vmatpush.bf16.msrb.mxu3 %v11563_v49  ;;  %v2146_v40 = vor.u32 %v2145_v48, %v2141_v56  ;;  %v2336_v56 = vunpack.c.l.b16 %v10253_v37  ;;  %v14305_v48 = vunpack.c.l.b16 %v11645_v25 }
 0x146   : > { %2272 = vmatpush.bf16.msrb.mxu0 %v11563_v49  ;;  %2300 = vmatpush.bf16.msrb.mxu1 %v11563_v49  ;;  %v2172_v49 = vshrl.u32 %v2170_v4, 16  ;;  %v10272_v4 = vld [vmem:[%s14302_s1 + $0x16] sm:$0x3] }
 0x147   : > { %v1295_v6 = vpop.f32.mrf.mxu2  ;;  %v1315_v14 = vpop.f32.mrf.mxu3 }
 0x148   : > { %v11626_v58 = vadd.f32 %v1295_v6, %v11524_v54  ;;  %v11629_v43 = vadd.f32 %v1315_v14, %v11527_v28  ;;  %v1257_v38 = vpop.f32.mrf.mxu0  ;;  %v1277_v27 = vpop.f32.mrf.mxu1  ;;  %v11633_v54 = vld [vmem:[%s11056_s21 + $0x12c] sm:$0x1]  ;;  %v10251_v28 = vld [vmem:[%s11056_s21 + $0x138] sm:$0xf]  ;;  %v2177_v45 = vor.u32 %v2176_v5, %v2172_v49  ;;  %v2388_v5 = vand.u32 %v10272_v4, %v11044_v3 }
 0x149   : > { %v2253_v34 = vunpack.c.l.b16 %v11633_v54  ;;  %v2308_v38 = vunpack.c.l.b16 %v10251_v28  ;;  %v14306_v27 = vunpack.c.l.b16 %v11641_v18  ;;  %v2286_v28 = vshll.u32 %v2282_v61, 16 }
 0x14b   : > { %v2254_v2 = vpack.c.b16 %v2253_v34, %v2252_v23  ;;  %v2284_v23 = vshrl.u32 %v2282_v61, 16  ;;  %v2288_v55 = vrot.slane %v2286_v28, 1 }
 0x14d   : > { %v2258_v7 = vshll.u32 %v2254_v2, 16 }
 0x14f   : > { %v1297_v51 = vpop.f32.mrf.mxu2  ;;  %v1317_v10 = vpop.f32.mrf.mxu3 }
 0x150   : > { %v1363_v6 = vpop.f32.mrf.mxu0  ;;  %v1390_v14 = vpop.f32.mrf.mxu1  ;;  %v2256_v51 = vshrl.u32 %v2254_v2, 16  ;;  %v2260_v10 = vrot.slane %v2258_v7, 1  ;;  %v11699_v7 = vld [vmem:[%s11056_s21 + $0xc8] sm:$0xe] }
 0x151   : > { %v11655_v49 = vadd.f32 %v1363_v6, %v11555_v20  ;;  %v11658_v32 = vadd.f32 %v1390_v14, %v11558_v21  ;;  %v2310_v20 = vpack.c.b16 %v14306_v27, %v2308_v38  ;;  %v2338_v21 = vpack.c.b16 %v14305_v48, %v2336_v56 }
 0x153   : > { %10256 = vmatmul.msk.bf16.vlgmr.msra.gmra.mxu0 %vm192_vm2, %v2146_v40  ;;  %10257 = vmatmul.msk.bf16.vlgmr.msra.gmra.mxu1 %vm192_vm2, %v2177_v45  ;;  %v2342_v4 = vshll.u32 %v2338_v21, 16  ;;  %v2312_v6 = vshrl.u32 %v2310_v20, 16  ;;  %v2340_v38 = vshrl.u32 %v2338_v21, 16  ;;  %v11696_v21 = vld [vmem:[%s11056_s21 + $0xc0] sm:$0xe] }
 0x154   : > { %10258 = vmatmul.msk.bf16.vlgmr.msra.gmra.mxu2 %vm192_vm2, %v2205_v47  ;;  %10259 = vmatmul.msk.bf16.vlgmr.msra.gmra.mxu3 %vm192_vm2, %v2233_v52  ;;  %v2314_v52 = vshll.u32 %v2310_v20, 16  ;;  %v11693_v20 = vld [vmem:[%s11056_s21 + $0xb8] sm:$0xe] }
 0x155   : > { %2437 = vmatpush.bf16.msra.mxu2 %v2388_v5  ;;  %2457 = vmatpush.bf16.msra.mxu3 %v2388_v5  ;;  %v2344_v56 = vrot.slane %v2342_v4, 1 }
 0x156   : > { %2397 = vmatpush.bf16.msra.mxu0 %v2388_v5  ;;  %2417 = vmatpush.bf16.msra.mxu1 %v2388_v5  ;;  %v2316_v14 = vrot.slane %v2314_v52, 1  ;;  %v2404_v52 = vunpack.c.l.b16 %v11693_v20 }
 0x157   : > { %v1417_v30 = vpop.f32.mrf.mxu2  ;;  %v1444_v60 = vpop.f32.mrf.mxu3  ;;  %v2345_v27 = vor.u32 %v2344_v56, %v2340_v38 }
 0x158   : > { %v11674_v37 = vadd.f32 %v1417_v30, %v11578_v9  ;;  %v11677_v40 = vadd.f32 %v1444_v60, %v11581_v36  ;;  %v1365_v45 = vpop.f32.mrf.mxu0  ;;  %v1392_v47 = vpop.f32.mrf.mxu1  ;;  %v2261_v36 = vor.u32 %v2260_v10, %v2256_v51  ;;  %v2289_v30 = vor.u32 %v2288_v55, %v2284_v23 }
 0x159   : > { %v2317_v47 = vor.u32 %v2316_v14, %v2312_v6  ;;  %v2424_v23 = vunpack.c.l.b16 %v11696_v21  ;;  %v2444_v55 = vunpack.c.l.b16 %v11699_v7 }
 0x15b   : > { %v2445_v6 = vpack.c.b16 %v1972_v62, %v2444_v55  ;;  %v2569_v62 = vand.u32 %v10289_v53, %v11044_v3 }
 0x15d   : > { %v2446_v56 = vrot.slane %v2445_v6, 1 }
 0x15f   : > { %v1419_v48 = vpop.f32.mrf.mxu2  ;;  %v1446_v9 = vpop.f32.mrf.mxu3 }
 0x160   : > { %v1471_v60 = vpop.f32.mrf.mxu0  ;;  %v1498_v45 = vpop.f32.mrf.mxu1  ;;  %v11690_v48 = vld [vmem:[%s11056_s21 + $0xb0] sm:$0xe] }
 0x161   : > { %v11680_v2 = vadd.f32 %v1471_v60, %v11604_v39  ;;  %v11683_v61 = vadd.f32 %v1498_v45, %v11607_v29  ;;  %v2381_v28 = vunpack.c.l.b16 %v11690_v48  ;;  %v11748_v60 = vld [vmem:[%s11056_s21 + $0xe0] sm:$0xe] }
 0x163   : > { %10260 = vmatmul.msk.bf16.vlgmr.msrb.gmra.mxu0 %vm192_vm2, %v2261_v36  ;;  %10261 = vmatmul.msk.bf16.vlgmr.msrb.gmra.mxu1 %vm192_vm2, %v2289_v30  ;;  %v11742_v36 = vld [vmem:[%s11056_s21 + $0xd0] sm:$0xe]  ;;  %v11745_v30 = vld [vmem:[%s11056_s21 + $0xd8] sm:$0xe] }
 0x164   : > { %10262 = vmatmul.msk.bf16.vlgmr.msrb.gmra.mxu2 %vm192_vm2, %v2317_v47  ;;  %10263 = vmatmul.msk.bf16.vlgmr.msrb.gmra.mxu3 %vm192_vm2, %v2345_v27  ;;  %v2464_v47 = vunpack.c.l.b16 %v11742_v36 }
 0x165   : > { %2517 = vmatpush.bf16.msrb.mxu2 %v2388_v5  ;;  %2537 = vmatpush.bf16.msrb.mxu3 %v2388_v5 }
 0x166   : > { %2477 = vmatpush.bf16.msrb.mxu0 %v2388_v5  ;;  %2497 = vmatpush.bf16.msrb.mxu1 %v2388_v5  ;;  %v2382_v5 = vpack.c.b16 %v1885_v22, %v2381_v28  ;;  %v2465_v6 = vpack.c.b16 %v2000_v1, %v2464_v47 }
 0x167   : > { %v1525_v39 = vpop.f32.mrf.mxu2  ;;  %v1552_v29 = vpop.f32.mrf.mxu3 }
 0x168   : > { %v11704_v27 = vadd.f32 %v1525_v39, %v11626_v58  ;;  %v11707_v4 = vadd.f32 %v1552_v29, %v11629_v43  ;;  %v1473_v51 = vpop.f32.mrf.mxu0  ;;  %v1500_v10 = vpop.f32.mrf.mxu1  ;;  %v2405_v58 = vpack.c.b16 %v1916_v0, %v2404_v52  ;;  %v2425_v43 = vpack.c.b16 %v1944_v57, %v2424_v23 }
 0x169   : > { %v2383_v13 = vrot.slane %v2382_v5, 1  ;;  %v2484_v39 = vunpack.c.l.b16 %v11745_v30  ;;  %v2466_v1 = vrot.slane %v2465_v6, 1 }
 0x16a   : > { %v2406_v0 = vrot.slane %v2405_v58, 1  ;;  %v2426_v57 = vrot.slane %v2425_v43, 1  ;;  %v2504_v58 = vunpack.c.l.b16 %v11748_v60 }
 0x16f   : > { %v1527_v22 = vpop.f32.mrf.mxu2  ;;  %v1554_v14 = vpop.f32.mrf.mxu3 }
 0x170   : > { %v1590_v38 = vpop.f32.mrf.mxu0  ;;  %v1606_v15 = vpop.f32.mrf.mxu1 }
 0x171   : > { %v11731_v9 = vadd.f32 %v1590_v38, %v11655_v49  ;;  %v11734_v33 = vadd.f32 %v1606_v15, %v11658_v32  ;;  %v11751_v49 = vld [vmem:[%s11056_s21 + $0xe8] sm:$0xe]  ;;  %v10283_v38 = vld [vmem:[%s11056_s21 + $0x118] sm:$0xe]  ;;  %v10284_v15 = vld [vmem:[%s11056_s21 + $0x120] sm:$0xe] }
 0x172   : > { %v2524_v43 = vunpack.c.l.b16 %v11751_v49  ;;  %v2605_v6 = vunpack.c.l.b16 %v10283_v38 }
 0x173   : > { %10273 = vmatmul.msk.bf16.vlgmr.msra.gmra.mxu0 %vm192_vm2, %v2383_v13  ;;  %10274 = vmatmul.msk.bf16.vlgmr.msra.gmra.mxu1 %vm192_vm2, %v2406_v0 }
 0x174   : > { %10275 = vmatmul.msk.bf16.vlgmr.msra.gmra.mxu2 %vm192_vm2, %v2426_v57  ;;  %10276 = vmatmul.msk.bf16.vlgmr.msra.gmra.mxu3 %vm192_vm2, %v2446_v56  ;;  %v2525_v53 = vpack.c.b16 %v2084_v19, %v2524_v43  ;;  %v10282_v19 = vld [vmem:[%s11056_s21 + $0x110] sm:$0xe] }
 0x175   : > { %2618 = vmatpush.bf16.msra.mxu2 %v2569_v62  ;;  %2638 = vmatpush.bf16.msra.mxu3 %v2569_v62  ;;  %v2585_v56 = vunpack.c.l.b16 %v10282_v19 }
 0x176   : > { %2578 = vmatpush.bf16.msra.mxu0 %v2569_v62  ;;  %2598 = vmatpush.bf16.msra.mxu1 %v2569_v62  ;;  %v2526_v0 = vrot.slane %v2525_v53, 1  ;;  %v2606_v53 = vpack.c.b16 %v2197_v26, %v2605_v6  ;;  %v14317_v6 = vunpack.c.l.b16 %v11641_v18 }
 0x177   : > { %v1622_v32 = vpop.f32.mrf.mxu2  ;;  %v1638_v45 = vpop.f32.mrf.mxu3 }
 0x178   : > { %v11756_v29 = vadd.f32 %v1622_v32, %v11674_v37  ;;  %v11759_v51 = vadd.f32 %v1638_v45, %v11677_v40  ;;  %v1592_v10 = vpop.f32.mrf.mxu0  ;;  %v1608_v5 = vpop.f32.mrf.mxu1  ;;  %v2485_v37 = vpack.c.b16 %v2028_v31, %v2484_v39  ;;  %v2505_v40 = vpack.c.b16 %v2056_v11, %v2504_v58 }
 0x17a   : > { %v2486_v14 = vrot.slane %v2485_v37, 1  ;;  %v2506_v13 = vrot.slane %v2505_v40, 1  ;;  %v2625_v37 = vunpack.c.l.b16 %v10284_v15 }
 0x17f   : > { %v1624_v22 = vpop.f32.mrf.mxu2  ;;  %v1640_v17 = vpop.f32.mrf.mxu3 }
 0x180   : > { %v1654_v16 = vpop.f32.mrf.mxu0  ;;  %v1670_v31 = vpop.f32.mrf.mxu1 }
 0x181   : > { %v11780_v42 = vadd.f32 %v1654_v16, %v11680_v2  ;;  %v11783_v11 = vadd.f32 %v1670_v31, %v11683_v61  ;;  %v2562_v61 = vunpack.c.l.b16 %v10281_v63  ;;  %v10286_v16 = vld [vmem:[%s11056_s21 + $0x130] sm:$0xe]  ;;  %v10287_v31 = vld [vmem:[%s11056_s21 + $0x138] sm:$0xe] }
 0x182   : > { %v2665_v63 = vunpack.c.l.b16 %v10286_v16 }
 0x183   : > { %10277 = vmatmul.msk.bf16.vlgmr.msrb.gmra.mxu0 %vm192_vm2, %v2466_v1  ;;  %10278 = vmatmul.msk.bf16.vlgmr.msrb.gmra.mxu1 %vm192_vm2, %v2486_v14  ;;  %v2563_v40 = vpack.c.b16 %v2138_v50, %v2562_v61  ;;  %v2607_v1 = vrot.slane %v2606_v53, 1  ;;  %v10285_v14 = vld [vmem:[%s11056_s21 + $0x128] sm:$0xe]  ;;  %v10301_v53 = vld [vmem:[%s11056_s21 + $0xcc] sm:$0x3] }
 0x184   : > { %10279 = vmatmul.msk.bf16.vlgmr.msrb.gmra.mxu2 %vm192_vm2, %v2506_v13  ;;  %10280 = vmatmul.msk.bf16.vlgmr.msrb.gmra.mxu3 %vm192_vm2, %v2526_v0  ;;  %v10288_v13 = vld [vmem:[%s11056_s21 + $0x140] sm:$0xe]  ;;  %v2645_v0 = vunpack.c.l.b16 %v10285_v14 }
 0x185   : > { %2698 = vmatpush.bf16.msrb.mxu2 %v2569_v62  ;;  %2718 = vmatpush.bf16.msrb.mxu3 %v2569_v62  ;;  %v2564_v35 = vrot.slane %v2563_v40, 1  ;;  %v2705_v61 = vunpack.c.l.b16 %v10288_v13 }
 0x186   : > { %2658 = vmatpush.bf16.msrb.mxu0 %v2569_v62  ;;  %2678 = vmatpush.bf16.msrb.mxu1 %v2569_v62  ;;  %v2586_v62 = vpack.c.b16 %v2169_v24, %v2585_v56  ;;  %v2646_v56 = vpack.c.b16 %v2253_v34, %v2645_v0 }
 0x187   : > { %v1686_v2 = vpop.f32.mrf.mxu2  ;;  %v1702_v57 = vpop.f32.mrf.mxu3 }
 0x188   : > { %v11794_v32 = vadd.f32 %v1686_v2, %v11704_v27  ;;  %v11797_v45 = vadd.f32 %v1702_v57, %v11707_v4  ;;  %v1656_v10 = vpop.f32.mrf.mxu0  ;;  %v1672_v5 = vpop.f32.mrf.mxu1  ;;  %v2626_v27 = vpack.c.b16 %v2225_v12, %v2625_v37  ;;  %v10306_v4 = vld [vmem:[%s14302_s1 + $0x1a] sm:$0x3]  ;;  %v2587_v50 = vrot.slane %v2586_v62, 1  ;;  %v10299_v62 = vld [vmem:[%s11056_s21 + $0xbc] sm:$0x3] }
 0x189   : > { %v2757_v12 = vand.u32 %v10306_v4, %v11044_v3  ;;  %v2685_v57 = vunpack.c.l.b16 %v10287_v31  ;;  %v2666_v10 = vpack.c.b16 %v2281_v59, %v2665_v63  ;;  %v10298_v5 = vld [vmem:[%s11056_s21 + $0xb4] sm:$0x3]  ;;  %v2773_v54 = vunpack.c.l.b16 %v10299_v62 }
 0x18a   : > { %v2627_v46 = vrot.slane %v2626_v27, 1  ;;  %v2743_v27 = vunpack.c.l.b16 %v10298_v5  ;;  %v10304_v5 = vld [vmem:[%s11056_s21 + $0xe4] sm:$0x3] }
 0x18b   : > { %v2686_v37 = vpack.c.b16 %v14317_v6, %v2685_v57  ;;  %v10305_v6 = vld [vmem:[%s11056_s21 + $0xec] sm:$0x3] }
 0x18d   : > { %v2687_v59 = vrot.slane %v2686_v37, 1 }
 0x18f   : > { %v1688_v22 = vpop.f32.mrf.mxu2  ;;  %v1704_v17 = vpop.f32.mrf.mxu3 }
 0x190   : > { %v1740_v44 = vpop.f32.mrf.mxu0  ;;  %v1756_v24 = vpop.f32.mrf.mxu1  ;;  %v2647_v17 = vrot.slane %v2646_v56, 1 }
 0x191   : > { %v11811_v26 = vadd.f32 %v1740_v44, %v11731_v9  ;;  %v11814_v41 = vadd.f32 %v1756_v24, %v11734_v33  ;;  %v2827_v24 = vunpack.c.l.b16 %v10301_v53 }
 0x193   : > { %10290 = vmatmul.msk.bf16.vlgmr.msra.gmra.mxu0 %vm192_vm2, %v2564_v35  ;;  %10291 = vmatmul.msk.bf16.vlgmr.msra.gmra.mxu1 %vm192_vm2, %v2587_v50  ;;  %v2667_v35 = vrot.slane %v2666_v10, 1 }
 0x194   : > { %10292 = vmatmul.msk.bf16.vlgmr.msra.gmra.mxu2 %vm192_vm2, %v2607_v1  ;;  %10293 = vmatmul.msk.bf16.vlgmr.msra.gmra.mxu3 %vm192_vm2, %v2627_v46  ;;  %v2744_v1 = vpack.c.b16 %v2743_v27, %v2381_v28  ;;  %v2774_v46 = vpack.c.b16 %v2773_v54, %v2404_v52  ;;  %v2908_v27 = vunpack.c.l.b16 %v10304_v5  ;;  %v2935_v54 = vunpack.c.l.b16 %v10305_v6 }
 0x195   : > { %2820 = vmatpush.bf16.msra.mxu2 %v2757_v12  ;;  %2847 = vmatpush.bf16.msra.mxu3 %v2757_v12 }
 0x196   : > { %2766 = vmatpush.bf16.msra.mxu0 %v2757_v12  ;;  %2793 = vmatpush.bf16.msra.mxu1 %v2757_v12  ;;  %v2746_v48 = vshrl.u32 %v2744_v1, 16  ;;  %v2749_v28 = vshll.u32 %v2744_v1, 16  ;;  %v2776_v20 = vshrl.u32 %v2774_v46, 16  ;;  %v2779_v52 = vshll.u32 %v2774_v46, 16 }
 0x197   : > { %v1772_v9 = vpop.f32.mrf.mxu2  ;;  %v1788_v33 = vpop.f32.mrf.mxu3 }
 0x198   : > { %v11826_v19 = vadd.f32 %v1772_v9, %v11756_v29  ;;  %v11829_v38 = vadd.f32 %v1788_v33, %v11759_v51  ;;  %v1742_v15 = vpop.f32.mrf.mxu0  ;;  %v1758_v2 = vpop.f32.mrf.mxu1  ;;  %v14318_v29 = vunpack.c.l.b16 %v11645_v25  ;;  %v10300_v51 = vld [vmem:[%s11056_s21 + $0xc4] sm:$0x3]  ;;  %v2748_v33 = vrot.slane %v2746_v48, 1 }
 0x199   : > { %v2800_v34 = vunpack.c.l.b16 %v10300_v51  ;;  %v2751_v0 = vrot.slane %v2749_v28, 2  ;;  %v2778_v63 = vrot.slane %v2776_v20, 1  ;;  %v2781_v15 = vrot.slane %v2779_v52, 2 }
 0x19a   : > { %v2706_v40 = vpack.c.b16 %v14318_v29, %v2705_v61  ;;  %v10302_v61 = vld [vmem:[%s11056_s21 + $0xd4] sm:$0x3] }
 0x19b   : > { %v2801_v14 = vpack.c.b16 %v2800_v34, %v2424_v23  ;;  %v2854_v37 = vunpack.c.l.b16 %v10302_v61  ;;  %v2752_v62 = vor.u32 %v2751_v0, %v2748_v33  ;;  %v2782_v51 = vor.u32 %v2781_v15, %v2778_v63 }
 0x19c   : > { %v2707_v44 = vrot.slane %v2706_v40, 1 }
 0x19d   : > { %v2803_v21 = vshrl.u32 %v2801_v14, 16  ;;  %v2806_v23 = vshll.u32 %v2801_v14, 16 }
 0x19f   : > { %v1774_v4 = vpop.f32.mrf.mxu2  ;;  %v1790_v22 = vpop.f32.mrf.mxu3  ;;  %v2805_v2 = vrot.slane %v2803_v21, 1  ;;  %v2808_v57 = vrot.slane %v2806_v23, 2 }
 0x1a0   : > { %v1804_v50 = vpop.f32.mrf.mxu0  ;;  %v1820_v8 = vpop.f32.mrf.mxu1 }
 0x1a1   : > { %v11844_v18 = vadd.f32 %v1804_v50, %v11780_v42  ;;  %v11847_v25 = vadd.f32 %v1820_v8, %v11783_v11  ;;  %v2828_v42 = vpack.c.b16 %v2827_v24, %v2444_v55  ;;  %v2909_v24 = vpack.c.b16 %v2908_v27, %v2504_v58 }
 0x1a3   : > { %10294 = vmatmul.msk.bf16.vlgmr.msrb.gmra.mxu0 %vm192_vm2, %v2647_v17  ;;  %10295 = vmatmul.msk.bf16.vlgmr.msrb.gmra.mxu1 %vm192_vm2, %v2667_v35  ;;  %v2830_v9 = vshrl.u32 %v2828_v42, 16  ;;  %v2809_v17 = vor.u32 %v2808_v57, %v2805_v2  ;;  %v2911_v46 = vshrl.u32 %v2909_v24, 16  ;;  %v2914_v60 = vshll.u32 %v2909_v24, 16  ;;  %v10320_v24 = vld [vmem:[%s11056_s21 + $0x30] sm:$0xf] }
 0x1a4   : > { %10296 = vmatmul.msk.bf16.vlgmr.msrb.gmra.mxu2 %vm192_vm2, %v2687_v59  ;;  %10297 = vmatmul.msk.bf16.vlgmr.msrb.gmra.mxu3 %vm192_vm2, %v2707_v44  ;;  %v2855_v59 = vpack.c.b16 %v2854_v37, %v2464_v47 }
 0x1a5   : > { %2928 = vmatpush.bf16.msrb.mxu2 %v2757_v12  ;;  %2955 = vmatpush.bf16.msrb.mxu3 %v2757_v12  ;;  %v2832_v56 = vrot.slane %v2830_v9, 1  ;;  %v2913_v52 = vrot.slane %v2911_v46, 1  ;;  %v2916_v21 = vrot.slane %v2914_v60, 2 }
 0x1a6   : > { %2874 = vmatpush.bf16.msrb.mxu0 %v2757_v12  ;;  %2901 = vmatpush.bf16.msrb.mxu1 %v2757_v12  ;;  %v2833_v12 = vshll.u32 %v2828_v42, 16  ;;  %v2857_v36 = vshrl.u32 %v2855_v59, 16  ;;  %v2860_v47 = vshll.u32 %v2855_v59, 16 }
 0x1a7   : > { %v1836_v11 = vpop.f32.mrf.mxu2  ;;  %v1852_v16 = vpop.f32.mrf.mxu3  ;;  %v2917_v63 = vor.u32 %v2916_v21, %v2913_v52  ;;  %v10334_v52 = vld [vmem:[%s11056_s21 + $0x70] sm:$0xf]  ;;  %v10335_v21 = vld [vmem:[%s11056_s21 + $0x78] sm:$0xf] }
 0x1a8   : > { %v11862_v31 = vadd.f32 %v1836_v11, %v11794_v32  ;;  %v11865_v7 = vadd.f32 %v1852_v16, %v11797_v45  ;;  %v1806_v55 = vpop.f32.mrf.mxu0  ;;  %v1822_v13 = vpop.f32.mrf.mxu1  ;;  %v2835_v10 = vrot.slane %v2833_v12, 2  ;;  %v10303_v32 = vld [vmem:[%s11056_s21 + $0xdc] sm:$0x3]  ;;  %v2859_v28 = vrot.slane %v2857_v36, 1 }
 0x1a9   : > { %v10323_v45 = vld [vmem:[%s14302_s1 + $0x1c] sm:$0x3]  ;;  %v2881_v53 = vunpack.c.l.b16 %v10303_v32  ;;  %v2862_v11 = vrot.slane %v2860_v47, 2  ;;  %v10340_v32 = vld [vmem:[%s14302_s1 + $0x1e] sm:$0x3] }
 0x1aa   : > { %v2836_v35 = vor.u32 %v2835_v10, %v2832_v56  ;;  %v2984_v8 = vand.u32 %v10323_v45, %v11044_v3  ;;  %v10321_v47 = vld [vmem:[%s11056_s21 + $0x38] sm:$0xf] }
 0x1ab   : > { %v2882_v44 = vpack.c.b16 %v2881_v53, %v2484_v39  ;;  %v2863_v12 = vor.u32 %v2862_v11, %v2859_v28  ;;  %v10317_v53 = vld [vmem:[%s11056_s21 + $0x18] sm:$0xf]  ;;  %v10332_v28 = vld [vmem:[%s11056_s21 + $0x60] sm:$0xf]  ;;  %v10333_v11 = vld [vmem:[%s11056_s21 + $0x68] sm:$0xf] }
 0x1ad   : > { %v2884_v30 = vshrl.u32 %v2882_v44, 16  ;;  %v2887_v39 = vshll.u32 %v2882_v44, 16  ;;  %v10319_v44 = vld [vmem:[%s11056_s21 + $0x28] sm:$0xf] }
 0x1af   : > { %v1838_v29 = vpop.f32.mrf.mxu2  ;;  %v1854_v40 = vpop.f32.mrf.mxu3  ;;  %v2886_v16 = vrot.slane %v2884_v30, 1  ;;  %v2889_v20 = vrot.slane %v2887_v39, 2 }
 0x1b0   : > { %v1909_v4 = vpop.f32.mrf.mxu0  ;;  %v1937_v22 = vpop.f32.mrf.mxu1  ;;  %v10315_v29 = vld [vmem:[%s11056_s21 + $0x8] sm:$0xf]  ;;  %v10316_v40 = vld [vmem:[%s11056_s21 + $0x10] sm:$0xf] }
 0x1b1   : > { %v11875_v34 = vadd.f32 %v1909_v4, %v11811_v26  ;;  %v11878_v50 = vadd.f32 %v1937_v22, %v11814_v41  ;;  %v2936_v26 = vpack.c.b16 %v2935_v54, %v2524_v43  ;;  %v2890_v33 = vor.u32 %v2889_v20, %v2886_v16 }
 0x1b3   : > { %10307 = vmatmul.msk.bf16.vlgmr.msra.gmra.mxu0 %vm192_vm2, %v2752_v62  ;;  %10308 = vmatmul.msk.bf16.vlgmr.msra.gmra.mxu1 %vm192_vm2, %v2782_v51  ;;  %v2938_v49 = vshrl.u32 %v2936_v26, 16  ;;  %v2941_v43 = vshll.u32 %v2936_v26, 16 }
 0x1b4   : > { %10309 = vmatmul.msk.bf16.vlgmr.msra.gmra.mxu2 %vm192_vm2, %v2809_v17  ;;  %10310 = vmatmul.msk.bf16.vlgmr.msra.gmra.mxu3 %vm192_vm2, %v2836_v35 }
 0x1b5   : > { %3025 = vmatpush.bf16.msra.mxu2 %v2984_v8  ;;  %3041 = vmatpush.bf16.msra.mxu3 %v2984_v8  ;;  %v2940_v23 = vrot.slane %v2938_v49, 1  ;;  %v2943_v55 = vrot.slane %v2941_v43, 2 }
 0x1b6   : > { %2993 = vmatpush.bf16.msra.mxu0 %v2984_v8  ;;  %3009 = vmatpush.bf16.msra.mxu1 %v2984_v8 }
 0x1b7   : > { %v1965_v41 = vpop.f32.mrf.mxu2  ;;  %v1993_v1 = vpop.f32.mrf.mxu3 }
 0x1b8   : > { %v2111_v58 = vadd.f32 %v1965_v41, %v11826_v19  ;;  %v2112_v14 = vadd.f32 %v1993_v1, %v11829_v38  ;;  %v1911_v42 = vpop.f32.mrf.mxu0  ;;  %v1939_v48 = vpop.f32.mrf.mxu1  ;;  %v2944_v38 = vor.u32 %v2943_v55, %v2940_v23  ;;  %v10322_v41 = vld [vmem:[%s11056_s21 + $0x40] sm:$0xf] }
 0x1bf   : > { %v1967_v13 = vpop.f32.mrf.mxu2  ;;  %v1995_v9 = vpop.f32.mrf.mxu3 }
 0x1c0   : > { %v2021_v0 = vpop.f32.mrf.mxu0  ;;  %v2049_v19 = vpop.f32.mrf.mxu1 }
 0x1c1   : > { %v2113_v15 = vadd.f32 %v2021_v0, %v11844_v18  ;;  %v2114_v2 = vadd.f32 %v2049_v19, %v11847_v25  ;;  %v10349_v19 = vld [vmem:[%s11056_s21 + $0x8] sm:$0xf] }
 0x1c3   : > { %10311 = vmatmul.msk.bf16.vlgmr.msrb.gmra.mxu0 %vm192_vm2, %v2863_v12  ;;  %10312 = vmatmul.msk.bf16.vlgmr.msrb.gmra.mxu1 %vm192_vm2, %v2890_v33 }
 0x1c4   : > { %10313 = vmatmul.msk.bf16.vlgmr.msrb.gmra.mxu2 %vm192_vm2, %v2917_v63  ;;  %10314 = vmatmul.msk.bf16.vlgmr.msrb.gmra.mxu3 %vm192_vm2, %v2944_v38  ;;  %v11955_v63 = vld [vmem:[%s11056_s21 + $0xc] sm:$0x1]  ;;  %v10351_v38 = vld [vmem:[%s11056_s21 + $0x10] sm:$0xf] }
 0x1c5   : > { %3089 = vmatpush.bf16.msrb.mxu2 %v2984_v8  ;;  %3105 = vmatpush.bf16.msrb.mxu3 %v2984_v8 }
 0x1c6   : > { %3057 = vmatpush.bf16.msrb.mxu0 %v2984_v8  ;;  %3073 = vmatpush.bf16.msrb.mxu1 %v2984_v8 }
 0x1c7   : > { %v2077_v57 = vpop.f32.mrf.mxu2  ;;  %v2105_v18 = vpop.f32.mrf.mxu3 }
 0x1c8   : > { %v2115_v25 = vadd.f32 %v2077_v57, %v11862_v31  ;;  %v2116_v61 = vadd.f32 %v2105_v18, %v11865_v7  ;;  %v2023_v56 = vpop.f32.mrf.mxu0  ;;  %v2051_v10 = vpop.f32.mrf.mxu1  ;;  %v10318_v31 = vld [vmem:[%s11056_s21 + $0x20] sm:$0xf]  ;;  %v3134_v7 = vand.u32 %v10340_v32, %v11044_v3  ;;  %v11963_v57 = vld [vmem:[%s11056_s21 + $0x1c] sm:$0x1] }
 0x1c9   : > { %v10355_v18 = vld [vmem:[%s11056_s21 + $0x20] sm:$0xf]  ;;  %v3290_v56 = vunpack.c.l.b16 %v11955_v63  ;;  %v10424_v63 = vld [vmem:[%s14302_s1 + $0x26] sm:$0x3] }
 0x1cf   : > { %v2079_v5 = vpop.f32.mrf.mxu2  ;;  %v2107_v6 = vpop.f32.mrf.mxu3 }
 0x1d0   : > { %v2162_v37 = vpop.f32.mrf.mxu0  ;;  %v2190_v45 = vpop.f32.mrf.mxu1  ;;  %v3320_v5 = vunpack.c.l.b16 %v10351_v38 }
 0x1d1   : > { %v2362_v62 = vadd.f32 %v2162_v37, %v11875_v34  ;;  %v2363_v51 = vadd.f32 %v2190_v45, %v11878_v50  ;;  %v3349_v45 = vunpack.c.l.b16 %v11963_v57 }
 0x1d3   : > { %10324 = vmatmul.msk.bf16.vlgmr.msra.gmra.mxu0 %vm192_vm2, %v10315_v29  ;;  %10325 = vmatmul.msk.bf16.vlgmr.msra.gmra.mxu1 %vm192_vm2, %v10316_v40 }
 0x1d4   : > { %10326 = vmatmul.msk.bf16.vlgmr.msra.gmra.mxu2 %vm192_vm2, %v10317_v53  ;;  %10327 = vmatmul.msk.bf16.vlgmr.msra.gmra.mxu3 %vm192_vm2, %v10318_v31  ;;  %v3376_v53 = vunpack.c.l.b16 %v10355_v18 }
 0x1d5   : > { %3175 = vmatpush.bf16.msra.mxu2 %v3134_v7  ;;  %3191 = vmatpush.bf16.msra.mxu3 %v3134_v7 }
 0x1d6   : > { %3143 = vmatpush.bf16.msra.mxu0 %v3134_v7  ;;  %3159 = vmatpush.bf16.msra.mxu1 %v3134_v7 }
 0x1d7   : > { %v2218_v27 = vpop.f32.mrf.mxu2  ;;  %v2246_v4 = vpop.f32.mrf.mxu3 }
 0x1d8   : > { %v2364_v22 = vadd.f32 %v2218_v27, %v2111_v58  ;;  %v2365_v17 = vadd.f32 %v2246_v4, %v2112_v14  ;;  %v2164_v35 = vpop.f32.mrf.mxu0  ;;  %v2192_v54 = vpop.f32.mrf.mxu1  ;;  %v10365_v14 = vld [vmem:[%s14302_s1 + $0x20] sm:$0x3]  ;;  %v10338_v4 = vld [vmem:[%s11056_s21 + $0x90] sm:$0xf] }
 0x1d9   : > { %v3303_v23 = vand.u32 %v10365_v14, %v11044_v3 }
 0x1df   : > { %v2220_v34 = vpop.f32.mrf.mxu2  ;;  %v2248_v50 = vpop.f32.mrf.mxu3 }
 0x1e0   : > { %v2274_v8 = vpop.f32.mrf.mxu0  ;;  %v2302_v59 = vpop.f32.mrf.mxu1 }
 0x1e1   : > { %v11919_v26 = vadd.f32 %v2274_v8, %v2113_v15  ;;  %v11921_v36 = vadd.f32 %v2302_v59, %v2114_v2  ;;  %v11959_v15 = vld [vmem:[%s11056_s21 + $0x14] sm:$0x1]  ;;  %v10353_v2 = vld [vmem:[%s11056_s21 + $0x18] sm:$0xf] }
 0x1e2   : > { %v3321_v6 = vunpack.c.l.b16 %v11959_v15  ;;  %v3348_v37 = vunpack.c.l.b16 %v10353_v2  ;;  %v10390_v2 = vld [vmem:[%s14302_s1 + $0x22] sm:$0x3] }
 0x1e3   : > { %10328 = vmatmul.msk.bf16.vlgmr.msrb.gmra.mxu0 %vm192_vm2, %v10319_v44  ;;  %10329 = vmatmul.msk.bf16.vlgmr.msrb.gmra.mxu1 %vm192_vm2, %v10320_v24 }
 0x1e4   : > { %10330 = vmatmul.msk.bf16.vlgmr.msrb.gmra.mxu2 %vm192_vm2, %v10321_v47  ;;  %10331 = vmatmul.msk.bf16.vlgmr.msrb.gmra.mxu3 %vm192_vm2, %v10322_v41  ;;  %v3322_v35 = vpack.c.b16 %v3321_v6, %v3320_v5  ;;  %v3350_v54 = vpack.c.b16 %v3349_v45, %v3348_v37 }
 0x1e5   : > { %3239 = vmatpush.bf16.msrb.mxu2 %v3134_v7  ;;  %3255 = vmatpush.bf16.msrb.mxu3 %v3134_v7 }
 0x1e6   : > { %3207 = vmatpush.bf16.msrb.mxu0 %v3134_v7  ;;  %3223 = vmatpush.bf16.msrb.mxu1 %v3134_v7  ;;  %v3326_v44 = vshll.u32 %v3322_v35, 16  ;;  %v3354_v24 = vshll.u32 %v3350_v54, 16 }
 0x1e7   : > { %v2330_v1 = vpop.f32.mrf.mxu2  ;;  %v2358_v30 = vpop.f32.mrf.mxu3 }
 0x1e8   : > { %v11929_v39 = vadd.f32 %v2330_v1, %v2115_v25  ;;  %v11931_v46 = vadd.f32 %v2358_v30, %v2116_v61  ;;  %v2276_v60 = vpop.f32.mrf.mxu0  ;;  %v2304_v58 = vpop.f32.mrf.mxu1  ;;  %v11967_v25 = vld [vmem:[%s11056_s21 + $0x24] sm:$0x1]  ;;  %v3289_v61 = vunpack.c.l.b16 %v10349_v19  ;;  %v10357_v30 = vld [vmem:[%s11056_s21 + $0x28] sm:$0xf] }
 0x1e9   : > { %v3377_v31 = vunpack.c.l.b16 %v11967_v25  ;;  %v12003_v60 = vld [vmem:[%s11056_s21 + $0x2c] sm:$0x1]  ;;  %v12017_v19 = vld [vmem:[%s11056_s21 + $0x44] sm:$0x1] }
 0x1eb   : > { %v3378_v34 = vpack.c.b16 %v3377_v31, %v3376_v53 }
 0x1ed   : > { %v3382_v1 = vshll.u32 %v3378_v34, 16 }
 0x1ef   : > { %v2332_v42 = vpop.f32.mrf.mxu2  ;;  %v2360_v48 = vpop.f32.mrf.mxu3 }
 0x1f0   : > { %v2399_v49 = vpop.f32.mrf.mxu0  ;;  %v2419_v43 = vpop.f32.mrf.mxu1  ;;  %v10359_v42 = vld [vmem:[%s11056_s21 + $0x30] sm:$0xf]  ;;  %v12007_v48 = vld [vmem:[%s11056_s21 + $0x34] sm:$0x1] }
 0x1f1   : > { %v11938_v16 = vadd.f32 %v2399_v49, %v2362_v62  ;;  %v11940_v20 = vadd.f32 %v2419_v43, %v2363_v51  ;;  %v10336_v62 = vld [vmem:[%s11056_s21 + $0x80] sm:$0xf]  ;;  %v10337_v51 = vld [vmem:[%s11056_s21 + $0x88] sm:$0xf]  ;;  %v3328_v49 = vrot.slane %v3326_v44, 1  ;;  %v3352_v43 = vshrl.u32 %v3350_v54, 16 }
 0x1f2   : > { %v12035_v54 = vand.u32 %v10390_v2, %v11044_v3 }
 0x1f3   : > { %10341 = vmatmul.msk.bf16.vlgmr.msra.gmra.mxu0 %vm192_vm2, %v10332_v28  ;;  %10342 = vmatmul.msk.bf16.vlgmr.msra.gmra.mxu1 %vm192_vm2, %v10333_v11  ;;  %v3380_v28 = vshrl.u32 %v3378_v34, 16  ;;  %v3384_v11 = vrot.slane %v3382_v1, 1 }
 0x1f4   : > { %10343 = vmatmul.msk.bf16.vlgmr.msra.gmra.mxu2 %vm192_vm2, %v10334_v52  ;;  %10344 = vmatmul.msk.bf16.vlgmr.msra.gmra.mxu3 %vm192_vm2, %v10335_v21  ;;  %v3404_v52 = vunpack.c.l.b16 %v10357_v30  ;;  %v3405_v21 = vunpack.c.l.b16 %v12003_v60 }
 0x1f5   : > { %3368 = vmatpush.bf16.msra.mxu2 %v3303_v23  ;;  %3396 = vmatpush.bf16.msra.mxu3 %v3303_v23 }
 0x1f6   : > { %3312 = vmatpush.bf16.msra.mxu0 %v3303_v23  ;;  %3340 = vmatpush.bf16.msra.mxu1 %v3303_v23 }
 0x1f7   : > { %v2439_v55 = vpop.f32.mrf.mxu2  ;;  %v2459_v13 = vpop.f32.mrf.mxu3 }
 0x1f8   : > { %v11949_v9 = vadd.f32 %v2439_v55, %v2364_v22  ;;  %v11951_v12 = vadd.f32 %v2459_v13, %v2365_v17  ;;  %v2401_v33 = vpop.f32.mrf.mxu0  ;;  %v2421_v0 = vpop.f32.mrf.mxu1  ;;  %v10339_v22 = vld [vmem:[%s11056_s21 + $0x98] sm:$0xf]  ;;  %v3291_v17 = vpack.c.b16 %v3290_v56, %v3289_v61  ;;  %v12012_v55 = vld [vmem:[%s11056_s21 + $0x3c] sm:$0x1]  ;;  %v3432_v13 = vunpack.c.l.b16 %v10359_v42 }
 0x1f9   : > { %v3433_v33 = vunpack.c.l.b16 %v12007_v48  ;;  %v10363_v0 = vld [vmem:[%s11056_s21 + $0x40] sm:$0xf]  ;;  %v3461_v37 = vunpack.c.l.b16 %v12012_v55 }
 0x1fa   : > { %v3295_v50 = vshll.u32 %v3291_v17, 16  ;;  %v3293_v58 = vshrl.u32 %v3291_v17, 16  ;;  %v3488_v53 = vunpack.c.l.b16 %v10363_v0 }
 0x1fc   : > { %v3297_v14 = vrot.slane %v3295_v50, 1 }
 0x1fe   : > { %v3298_v38 = vor.u32 %v3297_v14, %v3293_v58 }
 0x1ff   : > { %v2441_v10 = vpop.f32.mrf.mxu2  ;;  %v2461_v32 = vpop.f32.mrf.mxu3 }
 0x200   : > { %v2479_v29 = vpop.f32.mrf.mxu0  ;;  %v2499_v40 = vpop.f32.mrf.mxu1 }
 0x201   : > { %v11976_v7 = vadd.f32 %v2479_v29, %v11919_v26  ;;  %v11979_v27 = vadd.f32 %v2499_v40, %v11921_v36 }
 0x203   : > { %10345 = vmatmul.msk.bf16.vlgmr.msrb.gmra.mxu0 %vm192_vm2, %v10336_v62  ;;  %10346 = vmatmul.msk.bf16.vlgmr.msrb.gmra.mxu1 %vm192_vm2, %v10337_v51  ;;  %v3385_v62 = vor.u32 %v3384_v11, %v3380_v28  ;;  %v3406_v51 = vpack.c.b16 %v3405_v21, %v3404_v52  ;;  %v12061_v28 = vld [vmem:[%s11056_s21 + $0x6c] sm:$0x1]  ;;  %v10378_v11 = vld [vmem:[%s11056_s21 + $0x70] sm:$0xf]  ;;  %v12065_v52 = vld [vmem:[%s11056_s21 + $0x74] sm:$0x1] }
 0x204   : > { %10347 = vmatmul.msk.bf16.vlgmr.msrb.gmra.mxu2 %vm192_vm2, %v10338_v4  ;;  %10348 = vmatmul.msk.bf16.vlgmr.msrb.gmra.mxu3 %vm192_vm2, %v10339_v22  ;;  %v3489_v4 = vunpack.c.l.b16 %v12017_v19  ;;  %v10416_v19 = vld [vmem:[%s11056_s21 + $0x60] sm:$0xe] }
 0x205   : > { %3480 = vmatpush.bf16.msrb.mxu2 %v3303_v23  ;;  %3508 = vmatpush.bf16.msrb.mxu3 %v3303_v23  ;;  %v3408_v44 = vshrl.u32 %v3406_v51, 16 }
 0x206   : > { %3424 = vmatpush.bf16.msrb.mxu0 %v3303_v23  ;;  %3452 = vmatpush.bf16.msrb.mxu1 %v3303_v23  ;;  %v10361_v23 = vld [vmem:[%s11056_s21 + $0x38] sm:$0xf] }
 0x207   : > { %v2519_v8 = vpop.f32.mrf.mxu2  ;;  %v2539_v59 = vpop.f32.mrf.mxu3  ;;  %v3460_v5 = vunpack.c.l.b16 %v10361_v23  ;;  %v12069_v23 = vld [vmem:[%s11056_s21 + $0x7c] sm:$0x1] }
 0x208   : > { %v11996_v26 = vadd.f32 %v2519_v8, %v11929_v39  ;;  %v11999_v36 = vadd.f32 %v2539_v59, %v11931_v46  ;;  %v2481_v47 = vpop.f32.mrf.mxu0  ;;  %v2501_v41 = vpop.f32.mrf.mxu1  ;;  %v3324_v39 = vshrl.u32 %v3322_v35, 16  ;;  %v3356_v46 = vrot.slane %v3354_v24, 1 }
 0x209   : > { %v3434_v35 = vpack.c.b16 %v3433_v33, %v3432_v13  ;;  %v3462_v34 = vpack.c.b16 %v3461_v37, %v3460_v5  ;;  %v3602_v5 = vunpack.c.l.b16 %v12065_v52 }
 0x20a   : > { %v3329_v10 = vor.u32 %v3328_v49, %v3324_v39  ;;  %v3357_v32 = vor.u32 %v3356_v46, %v3352_v43  ;;  %v10374_v49 = vld [vmem:[%s11056_s21 + $0x60] sm:$0xf]  ;;  %v12057_v43 = vld [vmem:[%s11056_s21 + $0x64] sm:$0x1]  ;;  %v10376_v46 = vld [vmem:[%s11056_s21 + $0x68] sm:$0xf] }
 0x20b   : > { %v3438_v50 = vshll.u32 %v3434_v35, 16  ;;  %v3466_v24 = vshll.u32 %v3462_v34, 16  ;;  %v3436_v42 = vshrl.u32 %v3434_v35, 16  ;;  %v3542_v2 = vunpack.c.l.b16 %v10374_v49 }
 0x20d   : > { %v3440_v39 = vrot.slane %v3438_v50, 1  ;;  %v3468_v13 = vrot.slane %v3466_v24, 1 }
 0x20f   : > { %v2521_v18 = vpop.f32.mrf.mxu2  ;;  %v2541_v61 = vpop.f32.mrf.mxu3  ;;  %v3441_v35 = vor.u32 %v3440_v39, %v3436_v42 }
 0x210   : > { %v2580_v29 = vpop.f32.mrf.mxu0  ;;  %v2600_v40 = vpop.f32.mrf.mxu1  ;;  %v3543_v18 = vunpack.c.l.b16 %v12057_v43  ;;  %v3573_v61 = vunpack.c.l.b16 %v10376_v46 }
 0x211   : > { %v12027_v22 = vadd.f32 %v2580_v29, %v11938_v16  ;;  %v12030_v17 = vadd.f32 %v2600_v40, %v11940_v20  ;;  %v3410_v16 = vshll.u32 %v3406_v51, 16  ;;  %v3490_v20 = vpack.c.b16 %v3489_v4, %v3488_v53 }
 0x212   : > { %v3630_v40 = vunpack.c.l.b16 %v12069_v23  ;;  %v3544_v24 = vpack.c.b16 %v3543_v18, %v3542_v2 }
 0x213   : > { %10366 = vmatmul.msk.bf16.vlgmr.msra.gmra.mxu0 %vm192_vm2, %v3298_v38  ;;  %10367 = vmatmul.msk.bf16.vlgmr.msra.gmra.mxu1 %vm192_vm2, %v3329_v10  ;;  %v3412_v58 = vrot.slane %v3410_v16, 1  ;;  %v3494_v14 = vshll.u32 %v3490_v20, 16  ;;  %v3492_v0 = vshrl.u32 %v3490_v20, 16  ;;  %v3574_v10 = vunpack.c.l.b16 %v12061_v28 }
 0x214   : > { %10368 = vmatmul.msk.bf16.vlgmr.msra.gmra.mxu2 %vm192_vm2, %v3357_v32  ;;  %10369 = vmatmul.msk.bf16.vlgmr.msra.gmra.mxu3 %vm192_vm2, %v3385_v62  ;;  %v3601_v32 = vunpack.c.l.b16 %v10378_v11 }
 0x215   : > { %3621 = vmatpush.bf16.msra.mxu2 %v12035_v54  ;;  %3649 = vmatpush.bf16.msra.mxu3 %v12035_v54  ;;  %v3496_v38 = vrot.slane %v3494_v14, 1  ;;  %v3413_v53 = vor.u32 %v3412_v58, %v3408_v44 }
 0x216   : > { %3565 = vmatpush.bf16.msra.mxu0 %v12035_v54  ;;  %3593 = vmatpush.bf16.msra.mxu1 %v12035_v54  ;;  %v3603_v44 = vpack.c.b16 %v3602_v5, %v3601_v32 }
 0x217   : > { %v2620_v8 = vpop.f32.mrf.mxu2  ;;  %v2640_v59 = vpop.f32.mrf.mxu3  ;;  %v3497_v50 = vor.u32 %v3496_v38, %v3492_v0 }
 0x218   : > { %v12050_v47 = vadd.f32 %v2620_v8, %v11949_v9  ;;  %v12053_v41 = vadd.f32 %v2640_v59, %v11951_v12  ;;  %v2582_v1 = vpop.f32.mrf.mxu0  ;;  %v2602_v30 = vpop.f32.mrf.mxu1  ;;  %v10380_v9 = vld [vmem:[%s11056_s21 + $0x78] sm:$0xf]  ;;  %v3464_v12 = vshrl.u32 %v3462_v34, 16  ;;  %v3607_v58 = vshll.u32 %v3603_v44, 16 }
 0x219   : > { %v3629_v29 = vunpack.c.l.b16 %v10380_v9  ;;  %v3575_v1 = vpack.c.b16 %v3574_v10, %v3573_v61  ;;  %v3605_v0 = vshrl.u32 %v3603_v44, 16 }
 0x21a   : > { %v3469_v20 = vor.u32 %v3468_v13, %v3464_v12  ;;  %v3546_v12 = vshrl.u32 %v3544_v24, 16  ;;  %v3609_v2 = vrot.slane %v3607_v58, 1 }
 0x21b   : > { %v3631_v30 = vpack.c.b16 %v3630_v40, %v3629_v29  ;;  %v10382_v29 = vld [vmem:[%s11056_s21 + $0x80] sm:$0xf] }
 0x21d   : > { %v3635_v14 = vshll.u32 %v3631_v30, 16  ;;  %v3633_v61 = vshrl.u32 %v3631_v30, 16 }
 0x21f   : > { %v2622_v62 = vpop.f32.mrf.mxu2  ;;  %v2642_v51 = vpop.f32.mrf.mxu3  ;;  %v3637_v32 = vrot.slane %v3635_v14, 1 }
 0x220   : > { %v2660_v34 = vpop.f32.mrf.mxu0  ;;  %v2680_v16 = vpop.f32.mrf.mxu1  ;;  %v10384_v62 = vld [vmem:[%s11056_s21 + $0x88] sm:$0xf]  ;;  %v12109_v51 = vld [vmem:[%s11056_s21 + $0x8c] sm:$0x1] }
 0x221   : > { %v12076_v8 = vadd.f32 %v2660_v34, %v11976_v7  ;;  %v12079_v59 = vadd.f32 %v2680_v16, %v11979_v27  ;;  %v3548_v7 = vshll.u32 %v3544_v24, 16  ;;  %v3579_v27 = vshll.u32 %v3575_v1, 16  ;;  %v12117_v34 = vld [vmem:[%s11056_s21 + $0x9c] sm:$0x1] }
 0x222   : > { %v3638_v24 = vor.u32 %v3637_v32, %v3633_v61  ;;  %v3685_v58 = vunpack.c.l.b16 %v10384_v62  ;;  %v3686_v14 = vunpack.c.l.b16 %v12109_v51 }
 0x223   : > { %10370 = vmatmul.msk.bf16.vlgmr.msrb.gmra.mxu0 %vm192_vm2, %v3413_v53  ;;  %10371 = vmatmul.msk.bf16.vlgmr.msrb.gmra.mxu1 %vm192_vm2, %v3441_v35  ;;  %v3550_v13 = vrot.slane %v3548_v7, 1  ;;  %v3581_v38 = vrot.slane %v3579_v27, 1  ;;  %v12113_v53 = vld [vmem:[%s11056_s21 + $0x94] sm:$0x1]  ;;  %v10388_v35 = vld [vmem:[%s11056_s21 + $0x98] sm:$0xf]  ;;  %v3657_v7 = vunpack.c.l.b16 %v10382_v29 }
 0x224   : > { %10372 = vmatmul.msk.bf16.vlgmr.msrb.gmra.mxu2 %vm192_vm2, %v3469_v20  ;;  %10373 = vmatmul.msk.bf16.vlgmr.msrb.gmra.mxu3 %vm192_vm2, %v3497_v50  ;;  %v3610_v50 = vor.u32 %v3609_v2, %v3605_v0  ;;  %v3687_v61 = vpack.c.b16 %v3686_v14, %v3685_v58 }
 0x225   : > { %3733 = vmatpush.bf16.msrb.mxu2 %v12035_v54  ;;  %3761 = vmatpush.bf16.msrb.mxu3 %v12035_v54  ;;  %v3551_v16 = vor.u32 %v3550_v13, %v3546_v12  ;;  %v3741_v12 = vunpack.c.l.b16 %v10388_v35  ;;  %v14307_v13 = vunpack.c.l.b16 %v12117_v34 }
 0x226   : > { %3677 = vmatpush.bf16.msrb.mxu0 %v12035_v54  ;;  %3705 = vmatpush.bf16.msrb.mxu1 %v12035_v54  ;;  %v3577_v54 = vshrl.u32 %v3575_v1, 16  ;;  %v10407_v1 = vld [vmem:[%s14302_s1 + $0x24] sm:$0x3] }
 0x227   : > { %v2700_v42 = vpop.f32.mrf.mxu2  ;;  %v2720_v39 = vpop.f32.mrf.mxu3 }
 0x228   : > { %v12098_v49 = vadd.f32 %v2700_v42, %v11996_v26  ;;  %v12101_v46 = vadd.f32 %v2720_v39, %v11999_v36  ;;  %v2662_v11 = vpop.f32.mrf.mxu0  ;;  %v2682_v9 = vpop.f32.mrf.mxu1  ;;  %v12105_v26 = vld [vmem:[%s11056_s21 + $0x84] sm:$0x1]  ;;  %v10386_v36 = vld [vmem:[%s11056_s21 + $0x90] sm:$0xf]  ;;  %v3582_v20 = vor.u32 %v3581_v38, %v3577_v54  ;;  %v3793_v38 = vand.u32 %v10407_v1, %v11044_v3 }
 0x229   : > { %v3658_v27 = vunpack.c.l.b16 %v12105_v26  ;;  %v3713_v11 = vunpack.c.l.b16 %v10386_v36  ;;  %v14308_v9 = vunpack.c.l.b16 %v12113_v53  ;;  %v3691_v36 = vshll.u32 %v3687_v61, 16 }
 0x22b   : > { %v3659_v2 = vpack.c.b16 %v3658_v27, %v3657_v7  ;;  %v3689_v7 = vshrl.u32 %v3687_v61, 16  ;;  %v3693_v58 = vrot.slane %v3691_v36, 1 }
 0x22d   : > { %v3663_v62 = vshll.u32 %v3659_v2, 16 }
 0x22f   : > { %v2702_v44 = vpop.f32.mrf.mxu2  ;;  %v2722_v30 = vpop.f32.mrf.mxu3 }
 0x230   : > { %v2768_v42 = vpop.f32.mrf.mxu0  ;;  %v2795_v39 = vpop.f32.mrf.mxu1  ;;  %v3661_v44 = vshrl.u32 %v3659_v2, 16  ;;  %v3665_v30 = vrot.slane %v3663_v62, 1  ;;  %v12171_v62 = vld [vmem:[%s11056_s21 + $0x20] sm:$0xe] }
 0x231   : > { %v12127_v54 = vadd.f32 %v2768_v42, %v12027_v22  ;;  %v12130_v0 = vadd.f32 %v2795_v39, %v12030_v17  ;;  %v3715_v22 = vpack.c.b16 %v14308_v9, %v3713_v11  ;;  %v3743_v17 = vpack.c.b16 %v14307_v13, %v3741_v12 }
 0x233   : > { %10391 = vmatmul.msk.bf16.vlgmr.msra.gmra.mxu0 %vm192_vm2, %v3551_v16  ;;  %10392 = vmatmul.msk.bf16.vlgmr.msra.gmra.mxu1 %vm192_vm2, %v3582_v20  ;;  %v3747_v1 = vshll.u32 %v3743_v17, 16  ;;  %v3717_v42 = vshrl.u32 %v3715_v22, 16  ;;  %v3745_v11 = vshrl.u32 %v3743_v17, 16  ;;  %v12168_v17 = vld [vmem:[%s11056_s21 + $0x18] sm:$0xe] }
 0x234   : > { %10393 = vmatmul.msk.bf16.vlgmr.msra.gmra.mxu2 %vm192_vm2, %v3610_v50  ;;  %10394 = vmatmul.msk.bf16.vlgmr.msra.gmra.mxu3 %vm192_vm2, %v3638_v24  ;;  %v3719_v24 = vshll.u32 %v3715_v22, 16  ;;  %v12165_v22 = vld [vmem:[%s11056_s21 + $0x10] sm:$0xe] }
 0x235   : > { %3842 = vmatpush.bf16.msra.mxu2 %v3793_v38  ;;  %3862 = vmatpush.bf16.msra.mxu3 %v3793_v38  ;;  %v3749_v12 = vrot.slane %v3747_v1, 1 }
 0x236   : > { %3802 = vmatpush.bf16.msra.mxu0 %v3793_v38  ;;  %3822 = vmatpush.bf16.msra.mxu1 %v3793_v38  ;;  %v3721_v39 = vrot.slane %v3719_v24, 1  ;;  %v3809_v24 = vunpack.c.l.b16 %v12165_v22 }
 0x237   : > { %v2822_v32 = vpop.f32.mrf.mxu2  ;;  %v2849_v29 = vpop.f32.mrf.mxu3  ;;  %v3750_v9 = vor.u32 %v3749_v12, %v3745_v11 }
 0x238   : > { %v12146_v35 = vadd.f32 %v2822_v32, %v12050_v47  ;;  %v12149_v16 = vadd.f32 %v2849_v29, %v12053_v41  ;;  %v2770_v20 = vpop.f32.mrf.mxu0  ;;  %v2797_v50 = vpop.f32.mrf.mxu1  ;;  %v3666_v41 = vor.u32 %v3665_v30, %v3661_v44  ;;  %v3694_v32 = vor.u32 %v3693_v58, %v3689_v7 }
 0x239   : > { %v3722_v50 = vor.u32 %v3721_v39, %v3717_v42  ;;  %v3829_v7 = vunpack.c.l.b16 %v12168_v17  ;;  %v3849_v58 = vunpack.c.l.b16 %v12171_v62 }
 0x23b   : > { %v3850_v42 = vpack.c.b16 %v3377_v31, %v3849_v58  ;;  %v3974_v31 = vand.u32 %v10424_v63, %v11044_v3 }
 0x23d   : > { %v3851_v12 = vrot.slane %v3850_v42, 1 }
 0x23f   : > { %v2824_v13 = vpop.f32.mrf.mxu2  ;;  %v2851_v47 = vpop.f32.mrf.mxu3 }
 0x240   : > { %v2876_v29 = vpop.f32.mrf.mxu0  ;;  %v2903_v20 = vpop.f32.mrf.mxu1  ;;  %v12162_v13 = vld [vmem:[%s11056_s21 + $0x8] sm:$0xe] }
 0x241   : > { %v12152_v2 = vadd.f32 %v2876_v29, %v12076_v8  ;;  %v12155_v61 = vadd.f32 %v2903_v20, %v12079_v59  ;;  %v3786_v36 = vunpack.c.l.b16 %v12162_v13  ;;  %v12220_v29 = vld [vmem:[%s11056_s21 + $0x38] sm:$0xe] }
 0x243   : > { %10395 = vmatmul.msk.bf16.vlgmr.msrb.gmra.mxu0 %vm192_vm2, %v3666_v41  ;;  %10396 = vmatmul.msk.bf16.vlgmr.msrb.gmra.mxu1 %vm192_vm2, %v3694_v32  ;;  %v12214_v41 = vld [vmem:[%s11056_s21 + $0x28] sm:$0xe]  ;;  %v12217_v32 = vld [vmem:[%s11056_s21 + $0x30] sm:$0xe] }
 0x244   : > { %10397 = vmatmul.msk.bf16.vlgmr.msrb.gmra.mxu2 %vm192_vm2, %v3722_v50  ;;  %10398 = vmatmul.msk.bf16.vlgmr.msrb.gmra.mxu3 %vm192_vm2, %v3750_v9  ;;  %v3869_v50 = vunpack.c.l.b16 %v12214_v41 }
 0x245   : > { %3922 = vmatpush.bf16.msrb.mxu2 %v3793_v38  ;;  %3942 = vmatpush.bf16.msrb.mxu3 %v3793_v38 }
 0x246   : > { %3882 = vmatpush.bf16.msrb.mxu0 %v3793_v38  ;;  %3902 = vmatpush.bf16.msrb.mxu1 %v3793_v38  ;;  %v3787_v38 = vpack.c.b16 %v3290_v56, %v3786_v36  ;;  %v3870_v42 = vpack.c.b16 %v3405_v21, %v3869_v50 }
 0x247   : > { %v2930_v8 = vpop.f32.mrf.mxu2  ;;  %v2957_v59 = vpop.f32.mrf.mxu3 }
 0x248   : > { %v12176_v9 = vadd.f32 %v2930_v8, %v12098_v49  ;;  %v12179_v1 = vadd.f32 %v2957_v59, %v12101_v46  ;;  %v2878_v44 = vpop.f32.mrf.mxu0  ;;  %v2905_v30 = vpop.f32.mrf.mxu1  ;;  %v3810_v49 = vpack.c.b16 %v3321_v6, %v3809_v24  ;;  %v3830_v46 = vpack.c.b16 %v3349_v45, %v3829_v7 }
 0x249   : > { %v3788_v15 = vrot.slane %v3787_v38, 1  ;;  %v3889_v8 = vunpack.c.l.b16 %v12217_v32  ;;  %v3871_v21 = vrot.slane %v3870_v42, 1 }
 0x24a   : > { %v3811_v6 = vrot.slane %v3810_v49, 1  ;;  %v3831_v45 = vrot.slane %v3830_v46, 1  ;;  %v3909_v49 = vunpack.c.l.b16 %v12220_v29 }
 0x24f   : > { %v2932_v56 = vpop.f32.mrf.mxu2  ;;  %v2959_v39 = vpop.f32.mrf.mxu3 }
 0x250   : > { %v2995_v11 = vpop.f32.mrf.mxu0  ;;  %v3011_v57 = vpop.f32.mrf.mxu1 }
 0x251   : > { %v12203_v47 = vadd.f32 %v2995_v11, %v12127_v54  ;;  %v12206_v25 = vadd.f32 %v3011_v57, %v12130_v0  ;;  %v12223_v54 = vld [vmem:[%s11056_s21 + $0x40] sm:$0xe]  ;;  %v10418_v11 = vld [vmem:[%s11056_s21 + $0x70] sm:$0xe]  ;;  %v10419_v57 = vld [vmem:[%s11056_s21 + $0x78] sm:$0xe] }
 0x252   : > { %v3929_v46 = vunpack.c.l.b16 %v12223_v54  ;;  %v4010_v42 = vunpack.c.l.b16 %v10418_v11 }
 0x253   : > { %10408 = vmatmul.msk.bf16.vlgmr.msra.gmra.mxu0 %vm192_vm2, %v3788_v15  ;;  %10409 = vmatmul.msk.bf16.vlgmr.msra.gmra.mxu1 %vm192_vm2, %v3811_v6 }
 0x254   : > { %10410 = vmatmul.msk.bf16.vlgmr.msra.gmra.mxu2 %vm192_vm2, %v3831_v45  ;;  %10411 = vmatmul.msk.bf16.vlgmr.msra.gmra.mxu3 %vm192_vm2, %v3851_v12  ;;  %v3930_v63 = vpack.c.b16 %v3489_v4, %v3929_v46  ;;  %v10417_v4 = vld [vmem:[%s11056_s21 + $0x68] sm:$0xe] }
 0x255   : > { %4023 = vmatpush.bf16.msra.mxu2 %v3974_v31  ;;  %4043 = vmatpush.bf16.msra.mxu3 %v3974_v31  ;;  %v3990_v12 = vunpack.c.l.b16 %v10417_v4 }
 0x256   : > { %3983 = vmatpush.bf16.msra.mxu0 %v3974_v31  ;;  %4003 = vmatpush.bf16.msra.mxu1 %v3974_v31  ;;  %v3931_v6 = vrot.slane %v3930_v63, 1  ;;  %v4011_v63 = vpack.c.b16 %v3602_v5, %v4010_v42  ;;  %v14319_v42 = vunpack.c.l.b16 %v12113_v53 }
 0x257   : > { %v3027_v0 = vpop.f32.mrf.mxu2  ;;  %v3043_v20 = vpop.f32.mrf.mxu3 }
 0x258   : > { %v12228_v59 = vadd.f32 %v3027_v0, %v12146_v35  ;;  %v12231_v44 = vadd.f32 %v3043_v20, %v12149_v16  ;;  %v2997_v30 = vpop.f32.mrf.mxu0  ;;  %v3013_v38 = vpop.f32.mrf.mxu1  ;;  %v3890_v35 = vpack.c.b16 %v3433_v33, %v3889_v8  ;;  %v3910_v16 = vpack.c.b16 %v3461_v37, %v3909_v49 }
 0x25a   : > { %v3891_v39 = vrot.slane %v3890_v35, 1  ;;  %v3911_v15 = vrot.slane %v3910_v16, 1  ;;  %v4030_v35 = vunpack.c.l.b16 %v10419_v57 }
 0x25f   : > { %v3029_v56 = vpop.f32.mrf.mxu2  ;;  %v3045_v60 = vpop.f32.mrf.mxu3 }
 0x260   : > { %v3059_v48 = vpop.f32.mrf.mxu0  ;;  %v3075_v33 = vpop.f32.mrf.mxu1 }
 0x261   : > { %v12252_v55 = vadd.f32 %v3059_v48, %v12152_v2  ;;  %v12255_v37 = vadd.f32 %v3075_v33, %v12155_v61  ;;  %v3967_v61 = vunpack.c.l.b16 %v10416_v19  ;;  %v10421_v48 = vld [vmem:[%s11056_s21 + $0x88] sm:$0xe]  ;;  %v10422_v33 = vld [vmem:[%s11056_s21 + $0x90] sm:$0xe] }
 0x262   : > { %v4070_v19 = vunpack.c.l.b16 %v10421_v48 }
 0x263   : > { %10412 = vmatmul.msk.bf16.vlgmr.msrb.gmra.mxu0 %vm192_vm2, %v3871_v21  ;;  %10413 = vmatmul.msk.bf16.vlgmr.msrb.gmra.mxu1 %vm192_vm2, %v3891_v39  ;;  %v3968_v16 = vpack.c.b16 %v3543_v18, %v3967_v61  ;;  %v4012_v21 = vrot.slane %v4011_v63, 1  ;;  %v10420_v39 = vld [vmem:[%s11056_s21 + $0x80] sm:$0xe]  ;;  %v10436_v63 = vld [vmem:[%s11056_s21 + $0x24] sm:$0x3] }
 0x264   : > { %10414 = vmatmul.msk.bf16.vlgmr.msrb.gmra.mxu2 %vm192_vm2, %v3911_v15  ;;  %10415 = vmatmul.msk.bf16.vlgmr.msrb.gmra.mxu3 %vm192_vm2, %v3931_v6  ;;  %v10423_v15 = vld [vmem:[%s11056_s21 + $0x98] sm:$0xe]  ;;  %v4050_v6 = vunpack.c.l.b16 %v10420_v39 }
 0x265   : > { %4103 = vmatpush.bf16.msrb.mxu2 %v3974_v31  ;;  %4123 = vmatpush.bf16.msrb.mxu3 %v3974_v31  ;;  %v3969_v43 = vrot.slane %v3968_v16, 1  ;;  %v4110_v61 = vunpack.c.l.b16 %v10423_v15 }
 0x266   : > { %4063 = vmatpush.bf16.msrb.mxu0 %v3974_v31  ;;  %4083 = vmatpush.bf16.msrb.mxu1 %v3974_v31  ;;  %v3991_v31 = vpack.c.b16 %v3574_v10, %v3990_v12  ;;  %v4051_v12 = vpack.c.b16 %v3658_v27, %v4050_v6 }
 0x267   : > { %v3091_v2 = vpop.f32.mrf.mxu2  ;;  %v3107_v45 = vpop.f32.mrf.mxu3 }
 0x268   : > { %v12266_v0 = vadd.f32 %v3091_v2, %v12176_v9  ;;  %v12269_v20 = vadd.f32 %v3107_v45, %v12179_v1  ;;  %v3061_v30 = vpop.f32.mrf.mxu0  ;;  %v3077_v38 = vpop.f32.mrf.mxu1  ;;  %v4031_v9 = vpack.c.b16 %v3630_v40, %v4030_v35  ;;  %v10441_v1 = vld [vmem:[%s14302_s1 + $0x28] sm:$0x3]  ;;  %v3992_v18 = vrot.slane %v3991_v31, 1  ;;  %v10434_v31 = vld [vmem:[%s11056_s21 + $0x14] sm:$0x3] }
 0x269   : > { %v4162_v40 = vand.u32 %v10441_v1, %v11044_v3  ;;  %v4090_v45 = vunpack.c.l.b16 %v10422_v33  ;;  %v4071_v30 = vpack.c.b16 %v3686_v14, %v4070_v19  ;;  %v10433_v38 = vld [vmem:[%s11056_s21 + $0xc] sm:$0x3]  ;;  %v4178_v26 = vunpack.c.l.b16 %v10434_v31 }
 0x26a   : > { %v4032_v52 = vrot.slane %v4031_v9, 1  ;;  %v4148_v9 = vunpack.c.l.b16 %v10433_v38  ;;  %v10439_v38 = vld [vmem:[%s11056_s21 + $0x3c] sm:$0x3] }
 0x26b   : > { %v4091_v35 = vpack.c.b16 %v14319_v42, %v4090_v45  ;;  %v10440_v42 = vld [vmem:[%s11056_s21 + $0x44] sm:$0x3] }
 0x26d   : > { %v4092_v14 = vrot.slane %v4091_v35, 1 }
 0x26f   : > { %v3093_v56 = vpop.f32.mrf.mxu2  ;;  %v3109_v60 = vpop.f32.mrf.mxu3 }
 0x270   : > { %v3145_v28 = vpop.f32.mrf.mxu0  ;;  %v3161_v10 = vpop.f32.mrf.mxu1  ;;  %v4052_v60 = vrot.slane %v4051_v12, 1 }
 0x271   : > { %v12283_v5 = vadd.f32 %v3145_v28, %v12203_v47  ;;  %v12286_v23 = vadd.f32 %v3161_v10, %v12206_v25  ;;  %v4232_v10 = vunpack.c.l.b16 %v10436_v63 }
 0x273   : > { %10425 = vmatmul.msk.bf16.vlgmr.msra.gmra.mxu0 %vm192_vm2, %v3969_v43  ;;  %10426 = vmatmul.msk.bf16.vlgmr.msra.gmra.mxu1 %vm192_vm2, %v3992_v18  ;;  %v4072_v43 = vrot.slane %v4071_v30, 1 }
 0x274   : > { %10427 = vmatmul.msk.bf16.vlgmr.msra.gmra.mxu2 %vm192_vm2, %v4012_v21  ;;  %10428 = vmatmul.msk.bf16.vlgmr.msra.gmra.mxu3 %vm192_vm2, %v4032_v52  ;;  %v4149_v21 = vpack.c.b16 %v4148_v9, %v3786_v36  ;;  %v4179_v52 = vpack.c.b16 %v4178_v26, %v3809_v24  ;;  %v4313_v9 = vunpack.c.l.b16 %v10439_v38  ;;  %v4340_v26 = vunpack.c.l.b16 %v10440_v42 }
 0x275   : > { %4225 = vmatpush.bf16.msra.mxu2 %v4162_v40  ;;  %4252 = vmatpush.bf16.msra.mxu3 %v4162_v40 }
 0x276   : > { %4171 = vmatpush.bf16.msra.mxu0 %v4162_v40  ;;  %4198 = vmatpush.bf16.msra.mxu1 %v4162_v40  ;;  %v4151_v13 = vshrl.u32 %v4149_v21, 16  ;;  %v4154_v36 = vshll.u32 %v4149_v21, 16  ;;  %v4181_v22 = vshrl.u32 %v4179_v52, 16  ;;  %v4184_v24 = vshll.u32 %v4179_v52, 16 }
 0x277   : > { %v3177_v47 = vpop.f32.mrf.mxu2  ;;  %v3193_v25 = vpop.f32.mrf.mxu3 }
 0x278   : > { %v12298_v4 = vadd.f32 %v3177_v47, %v12228_v59  ;;  %v12301_v11 = vadd.f32 %v3193_v25, %v12231_v44  ;;  %v3147_v57 = vpop.f32.mrf.mxu0  ;;  %v3163_v2 = vpop.f32.mrf.mxu1  ;;  %v14320_v59 = vunpack.c.l.b16 %v12117_v34  ;;  %v10435_v44 = vld [vmem:[%s11056_s21 + $0x1c] sm:$0x3]  ;;  %v4153_v25 = vrot.slane %v4151_v13, 1 }
 0x279   : > { %v4205_v27 = vunpack.c.l.b16 %v10435_v44  ;;  %v4156_v6 = vrot.slane %v4154_v36, 2  ;;  %v4183_v19 = vrot.slane %v4181_v22, 1  ;;  %v4186_v57 = vrot.slane %v4184_v24, 2 }
 0x27a   : > { %v4111_v16 = vpack.c.b16 %v14320_v59, %v4110_v61  ;;  %v10437_v61 = vld [vmem:[%s11056_s21 + $0x2c] sm:$0x3] }
 0x27b   : > { %v4206_v39 = vpack.c.b16 %v4205_v27, %v3829_v7  ;;  %v4259_v35 = vunpack.c.l.b16 %v10437_v61  ;;  %v4157_v31 = vor.u32 %v4156_v6, %v4153_v25  ;;  %v4187_v44 = vor.u32 %v4186_v57, %v4183_v19 }
 0x27c   : > { %v4112_v28 = vrot.slane %v4111_v16, 1 }
 0x27d   : > { %v4208_v17 = vshrl.u32 %v4206_v39, 16  ;;  %v4211_v7 = vshll.u32 %v4206_v39, 16 }
 0x27f   : > { %v3179_v1 = vpop.f32.mrf.mxu2  ;;  %v3195_v56 = vpop.f32.mrf.mxu3  ;;  %v4210_v2 = vrot.slane %v4208_v17, 1  ;;  %v4213_v45 = vrot.slane %v4211_v7, 2 }
 0x280   : > { %v3209_v18 = vpop.f32.mrf.mxu0  ;;  %v3225_v51 = vpop.f32.mrf.mxu1 }
 0x281   : > { %v12316_v53 = vadd.f32 %v3209_v18, %v12252_v55  ;;  %v12319_v34 = vadd.f32 %v3225_v51, %v12255_v37  ;;  %v4233_v55 = vpack.c.b16 %v4232_v10, %v3849_v58  ;;  %v4314_v10 = vpack.c.b16 %v4313_v9, %v3909_v49 }
 0x283   : > { %10429 = vmatmul.msk.bf16.vlgmr.msrb.gmra.mxu0 %vm192_vm2, %v4052_v60  ;;  %10430 = vmatmul.msk.bf16.vlgmr.msrb.gmra.mxu1 %vm192_vm2, %v4072_v43  ;;  %v4235_v47 = vshrl.u32 %v4233_v55, 16  ;;  %v4214_v60 = vor.u32 %v4213_v45, %v4210_v2  ;;  %v4316_v52 = vshrl.u32 %v4314_v10, 16  ;;  %v4319_v29 = vshll.u32 %v4314_v10, 16  ;;  %v10455_v10 = vld [vmem:[%s11056_s21 + $0xe0] sm:$0xf] }
 0x284   : > { %10431 = vmatmul.msk.bf16.vlgmr.msrb.gmra.mxu2 %vm192_vm2, %v4092_v14  ;;  %10432 = vmatmul.msk.bf16.vlgmr.msrb.gmra.mxu3 %vm192_vm2, %v4112_v28  ;;  %v4260_v14 = vpack.c.b16 %v4259_v35, %v3869_v50 }
 0x285   : > { %4333 = vmatpush.bf16.msrb.mxu2 %v4162_v40  ;;  %4360 = vmatpush.bf16.msrb.mxu3 %v4162_v40  ;;  %v4237_v12 = vrot.slane %v4235_v47, 1  ;;  %v4318_v24 = vrot.slane %v4316_v52, 1  ;;  %v4321_v17 = vrot.slane %v4319_v29, 2 }
 0x286   : > { %4279 = vmatpush.bf16.msrb.mxu0 %v4162_v40  ;;  %4306 = vmatpush.bf16.msrb.mxu1 %v4162_v40  ;;  %v4238_v40 = vshll.u32 %v4233_v55, 16  ;;  %v4262_v41 = vshrl.u32 %v4260_v14, 16  ;;  %v4265_v50 = vshll.u32 %v4260_v14, 16 }
 0x287   : > { %v3241_v37 = vpop.f32.mrf.mxu2  ;;  %v3257_v48 = vpop.f32.mrf.mxu3  ;;  %v4322_v19 = vor.u32 %v4321_v17, %v4318_v24  ;;  %v10469_v24 = vld [vmem:[%s11056_s21 + $0x120] sm:$0xf]  ;;  %v10470_v17 = vld [vmem:[%s11056_s21 + $0x128] sm:$0xf] }
 0x288   : > { %v12334_v33 = vadd.f32 %v3241_v37, %v12266_v0  ;;  %v12337_v62 = vadd.f32 %v3257_v48, %v12269_v20  ;;  %v3211_v58 = vpop.f32.mrf.mxu0  ;;  %v3227_v15 = vpop.f32.mrf.mxu1  ;;  %v4240_v30 = vrot.slane %v4238_v40, 2  ;;  %v10438_v0 = vld [vmem:[%s11056_s21 + $0x34] sm:$0x3]  ;;  %v10458_v20 = vld [vmem:[%s14302_s1 + $0x2a] sm:$0x3]  ;;  %v4264_v36 = vrot.slane %v4262_v41, 1 }
 0x289   : > { %v4286_v63 = vunpack.c.l.b16 %v10438_v0  ;;  %v4389_v51 = vand.u32 %v10458_v20, %v11044_v3  ;;  %v4267_v37 = vrot.slane %v4265_v50, 2  ;;  %v10475_v0 = vld [vmem:[%s14302_s1 + $0x2c] sm:$0x3]  ;;  %v10456_v50 = vld [vmem:[%s11056_s21 + $0xe8] sm:$0xf] }
 0x28a   : > { %v4241_v43 = vor.u32 %v4240_v30, %v4237_v12 }
 0x28b   : > { %v4287_v28 = vpack.c.b16 %v4286_v63, %v3889_v8  ;;  %v4268_v40 = vor.u32 %v4267_v37, %v4264_v36  ;;  %v10452_v63 = vld [vmem:[%s11056_s21 + $0xc8] sm:$0xf]  ;;  %v10467_v36 = vld [vmem:[%s11056_s21 + $0x110] sm:$0xf]  ;;  %v10468_v37 = vld [vmem:[%s11056_s21 + $0x118] sm:$0xf] }
 0x28d   : > { %v4289_v32 = vshrl.u32 %v4287_v28, 16  ;;  %v4292_v8 = vshll.u32 %v4287_v28, 16  ;;  %v10454_v28 = vld [vmem:[%s11056_s21 + $0xd8] sm:$0xf] }
 0x28f   : > { %v3243_v59 = vpop.f32.mrf.mxu2  ;;  %v3259_v16 = vpop.f32.mrf.mxu3  ;;  %v4291_v48 = vrot.slane %v4289_v32, 1  ;;  %v4294_v22 = vrot.slane %v4292_v8, 2 }
 0x290   : > { %v3314_v1 = vpop.f32.mrf.mxu0  ;;  %v3342_v56 = vpop.f32.mrf.mxu1  ;;  %v10450_v59 = vld [vmem:[%s11056_s21 + $0xb8] sm:$0xf]  ;;  %v10451_v16 = vld [vmem:[%s11056_s21 + $0xc0] sm:$0xf] }
 0x291   : > { %v12347_v27 = vadd.f32 %v3314_v1, %v12283_v5  ;;  %v12350_v18 = vadd.f32 %v3342_v56, %v12286_v23  ;;  %v4341_v5 = vpack.c.b16 %v4340_v26, %v3929_v46  ;;  %v4295_v25 = vor.u32 %v4294_v22, %v4291_v48 }
 0x293   : > { %10442 = vmatmul.msk.bf16.vlgmr.msra.gmra.mxu0 %vm192_vm2, %v4157_v31  ;;  %10443 = vmatmul.msk.bf16.vlgmr.msra.gmra.mxu1 %vm192_vm2, %v4187_v44  ;;  %v4343_v54 = vshrl.u32 %v4341_v5, 16  ;;  %v4346_v46 = vshll.u32 %v4341_v5, 16 }
 0x294   : > { %10444 = vmatmul.msk.bf16.vlgmr.msra.gmra.mxu2 %vm192_vm2, %v4214_v60  ;;  %10445 = vmatmul.msk.bf16.vlgmr.msra.gmra.mxu3 %vm192_vm2, %v4241_v43 }
 0x295   : > { %4430 = vmatpush.bf16.msra.mxu2 %v4389_v51  ;;  %4446 = vmatpush.bf16.msra.mxu3 %v4389_v51  ;;  %v4345_v7 = vrot.slane %v4343_v54, 1  ;;  %v4348_v58 = vrot.slane %v4346_v46, 2 }
 0x296   : > { %4398 = vmatpush.bf16.msra.mxu0 %v4389_v51  ;;  %4414 = vmatpush.bf16.msra.mxu1 %v4389_v51 }
 0x297   : > { %v3370_v23 = vpop.f32.mrf.mxu2  ;;  %v3398_v21 = vpop.f32.mrf.mxu3 }
 0x298   : > { %v3516_v49 = vadd.f32 %v3370_v23, %v12298_v4  ;;  %v3517_v39 = vadd.f32 %v3398_v21, %v12301_v11  ;;  %v3316_v55 = vpop.f32.mrf.mxu0  ;;  %v3344_v13 = vpop.f32.mrf.mxu1  ;;  %v4349_v11 = vor.u32 %v4348_v58, %v4345_v7  ;;  %v10457_v23 = vld [vmem:[%s11056_s21 + $0xf0] sm:$0xf] }
 0x29f   : > { %v3372_v15 = vpop.f32.mrf.mxu2  ;;  %v3400_v47 = vpop.f32.mrf.mxu3 }
 0x2a0   : > { %v3426_v6 = vpop.f32.mrf.mxu0  ;;  %v3454_v4 = vpop.f32.mrf.mxu1 }
 0x2a1   : > { %v3518_v57 = vadd.f32 %v3426_v6, %v12316_v53  ;;  %v3519_v2 = vadd.f32 %v3454_v4, %v12319_v34  ;;  %v10484_v4 = vld [vmem:[%s11056_s21 + $0xb8] sm:$0xf] }
 0x2a3   : > { %10446 = vmatmul.msk.bf16.vlgmr.msrb.gmra.mxu0 %vm192_vm2, %v4268_v40  ;;  %10447 = vmatmul.msk.bf16.vlgmr.msrb.gmra.mxu1 %vm192_vm2, %v4295_v25 }
 0x2a4   : > { %10448 = vmatmul.msk.bf16.vlgmr.msrb.gmra.mxu2 %vm192_vm2, %v4322_v19  ;;  %10449 = vmatmul.msk.bf16.vlgmr.msrb.gmra.mxu3 %vm192_vm2, %v4349_v11  ;;  %v12427_v19 = vld [vmem:[%s11056_s21 + $0xbc] sm:$0x1]  ;;  %v10486_v11 = vld [vmem:[%s11056_s21 + $0xc0] sm:$0xf] }
 0x2a5   : > { %4494 = vmatpush.bf16.msrb.mxu2 %v4389_v51  ;;  %4510 = vmatpush.bf16.msrb.mxu3 %v4389_v51 }
 0x2a6   : > { %4462 = vmatpush.bf16.msrb.mxu0 %v4389_v51  ;;  %4478 = vmatpush.bf16.msrb.mxu1 %v4389_v51 }
 0x2a7   : > { %v3482_v45 = vpop.f32.mrf.mxu2  ;;  %v3510_v53 = vpop.f32.mrf.mxu3 }
 0x2a8   : > { %v3520_v34 = vadd.f32 %v3482_v45, %v12334_v33  ;;  %v3521_v61 = vadd.f32 %v3510_v53, %v12337_v62  ;;  %v3428_v12 = vpop.f32.mrf.mxu0  ;;  %v3456_v30 = vpop.f32.mrf.mxu1  ;;  %v10453_v33 = vld [vmem:[%s11056_s21 + $0xd0] sm:$0xf]  ;;  %v4539_v62 = vand.u32 %v10475_v0, %v11044_v3  ;;  %v12435_v45 = vld [vmem:[%s11056_s21 + $0xcc] sm:$0x1] }
 0x2a9   : > { %v10490_v53 = vld [vmem:[%s11056_s21 + $0xd0] sm:$0xf]  ;;  %v4695_v12 = vunpack.c.l.b16 %v12427_v19  ;;  %v10559_v19 = vld [vmem:[%s14302_s1 + $0x34] sm:$0x3] }
 0x2af   : > { %v3484_v38 = vpop.f32.mrf.mxu2  ;;  %v3512_v42 = vpop.f32.mrf.mxu3 }
 0x2b0   : > { %v3567_v35 = vpop.f32.mrf.mxu0  ;;  %v3595_v20 = vpop.f32.mrf.mxu1  ;;  %v4725_v38 = vunpack.c.l.b16 %v10486_v11 }
 0x2b1   : > { %v3767_v31 = vadd.f32 %v3567_v35, %v12347_v27  ;;  %v3768_v44 = vadd.f32 %v3595_v20, %v12350_v18  ;;  %v4754_v20 = vunpack.c.l.b16 %v12435_v45 }
 0x2b3   : > { %10459 = vmatmul.msk.bf16.vlgmr.msra.gmra.mxu0 %vm192_vm2, %v10450_v59  ;;  %10460 = vmatmul.msk.bf16.vlgmr.msra.gmra.mxu1 %vm192_vm2, %v10451_v16 }
 0x2b4   : > { %10461 = vmatmul.msk.bf16.vlgmr.msra.gmra.mxu2 %vm192_vm2, %v10452_v63  ;;  %10462 = vmatmul.msk.bf16.vlgmr.msra.gmra.mxu3 %vm192_vm2, %v10453_v33  ;;  %v4781_v63 = vunpack.c.l.b16 %v10490_v53 }
 0x2b5   : > { %4580 = vmatpush.bf16.msra.mxu2 %v4539_v62  ;;  %4596 = vmatpush.bf16.msra.mxu3 %v4539_v62 }
 0x2b6   : > { %4548 = vmatpush.bf16.msra.mxu0 %v4539_v62  ;;  %4564 = vmatpush.bf16.msra.mxu1 %v4539_v62 }
 0x2b7   : > { %v3623_v9 = vpop.f32.mrf.mxu2  ;;  %v3651_v1 = vpop.f32.mrf.mxu3 }
 0x2b8   : > { %v3769_v56 = vadd.f32 %v3623_v9, %v3516_v49  ;;  %v3770_v60 = vadd.f32 %v3651_v1, %v3517_v39  ;;  %v3569_v43 = vpop.f32.mrf.mxu0  ;;  %v3597_v26 = vpop.f32.mrf.mxu1  ;;  %v10500_v39 = vld [vmem:[%s14302_s1 + $0x2e] sm:$0x3]  ;;  %v10473_v1 = vld [vmem:[%s11056_s21 + $0x140] sm:$0xf] }
 0x2b9   : > { %v4708_v7 = vand.u32 %v10500_v39, %v11044_v3 }
 0x2bf   : > { %v3625_v27 = vpop.f32.mrf.mxu2  ;;  %v3653_v18 = vpop.f32.mrf.mxu3 }
 0x2c0   : > { %v3679_v51 = vpop.f32.mrf.mxu0  ;;  %v3707_v14 = vpop.f32.mrf.mxu1 }
 0x2c1   : > { %v12391_v5 = vadd.f32 %v3679_v51, %v3518_v57  ;;  %v12393_v41 = vadd.f32 %v3707_v14, %v3519_v2  ;;  %v12431_v57 = vld [vmem:[%s11056_s21 + $0xc4] sm:$0x1]  ;;  %v10488_v2 = vld [vmem:[%s11056_s21 + $0xc8] sm:$0xf] }
 0x2c2   : > { %v4726_v42 = vunpack.c.l.b16 %v12431_v57  ;;  %v4753_v35 = vunpack.c.l.b16 %v10488_v2  ;;  %v10525_v2 = vld [vmem:[%s14302_s1 + $0x30] sm:$0x3] }
 0x2c3   : > { %10463 = vmatmul.msk.bf16.vlgmr.msrb.gmra.mxu0 %vm192_vm2, %v10454_v28  ;;  %10464 = vmatmul.msk.bf16.vlgmr.msrb.gmra.mxu1 %vm192_vm2, %v10455_v10 }
 0x2c4   : > { %10465 = vmatmul.msk.bf16.vlgmr.msrb.gmra.mxu2 %vm192_vm2, %v10456_v50  ;;  %10466 = vmatmul.msk.bf16.vlgmr.msrb.gmra.mxu3 %vm192_vm2, %v10457_v23  ;;  %v4727_v43 = vpack.c.b16 %v4726_v42, %v4725_v38  ;;  %v4755_v26 = vpack.c.b16 %v4754_v20, %v4753_v35 }
 0x2c5   : > { %4644 = vmatpush.bf16.msrb.mxu2 %v4539_v62  ;;  %4660 = vmatpush.bf16.msrb.mxu3 %v4539_v62 }
 0x2c6   : > { %4612 = vmatpush.bf16.msrb.mxu0 %v4539_v62  ;;  %4628 = vmatpush.bf16.msrb.mxu1 %v4539_v62  ;;  %v4731_v28 = vshll.u32 %v4727_v43, 16  ;;  %v4759_v10 = vshll.u32 %v4755_v26, 16 }
 0x2c7   : > { %v3735_v21 = vpop.f32.mrf.mxu2  ;;  %v3763_v32 = vpop.f32.mrf.mxu3 }
 0x2c8   : > { %v12401_v8 = vadd.f32 %v3735_v21, %v3520_v34  ;;  %v12403_v52 = vadd.f32 %v3763_v32, %v3521_v61  ;;  %v3681_v29 = vpop.f32.mrf.mxu0  ;;  %v3709_v49 = vpop.f32.mrf.mxu1  ;;  %v12439_v34 = vld [vmem:[%s11056_s21 + $0xd4] sm:$0x1]  ;;  %v4694_v61 = vunpack.c.l.b16 %v10484_v4  ;;  %v10492_v32 = vld [vmem:[%s11056_s21 + $0xd8] sm:$0xf] }
 0x2c9   : > { %v4782_v33 = vunpack.c.l.b16 %v12439_v34  ;;  %v12475_v29 = vld [vmem:[%s11056_s21 + $0xdc] sm:$0x1]  ;;  %v12489_v4 = vld [vmem:[%s11056_s21 + $0xf4] sm:$0x1] }
 0x2cb   : > { %v4783_v27 = vpack.c.b16 %v4782_v33, %v4781_v63 }
 0x2cd   : > { %v4787_v21 = vshll.u32 %v4783_v27, 16 }
 0x2cf   : > { %v3737_v55 = vpop.f32.mrf.mxu2  ;;  %v3765_v13 = vpop.f32.mrf.mxu3 }
 0x2d0   : > { %v3804_v54 = vpop.f32.mrf.mxu0  ;;  %v3824_v46 = vpop.f32.mrf.mxu1  ;;  %v10494_v55 = vld [vmem:[%s11056_s21 + $0xe0] sm:$0xf]  ;;  %v12479_v13 = vld [vmem:[%s11056_s21 + $0xe4] sm:$0x1] }
 0x2d1   : > { %v12410_v48 = vadd.f32 %v3804_v54, %v3767_v31  ;;  %v12412_v22 = vadd.f32 %v3824_v46, %v3768_v44  ;;  %v10471_v31 = vld [vmem:[%s11056_s21 + $0x130] sm:$0xf]  ;;  %v10472_v44 = vld [vmem:[%s11056_s21 + $0x138] sm:$0xf]  ;;  %v4733_v54 = vrot.slane %v4731_v28, 1  ;;  %v4757_v46 = vshrl.u32 %v4755_v26, 16 }
 0x2d2   : > { %v12507_v26 = vand.u32 %v10525_v2, %v11044_v3 }
 0x2d3   : > { %10476 = vmatmul.msk.bf16.vlgmr.msra.gmra.mxu0 %vm192_vm2, %v10467_v36  ;;  %10477 = vmatmul.msk.bf16.vlgmr.msra.gmra.mxu1 %vm192_vm2, %v10468_v37  ;;  %v4785_v36 = vshrl.u32 %v4783_v27, 16  ;;  %v4789_v37 = vrot.slane %v4787_v21, 1 }
 0x2d4   : > { %10478 = vmatmul.msk.bf16.vlgmr.msra.gmra.mxu2 %vm192_vm2, %v10469_v24  ;;  %10479 = vmatmul.msk.bf16.vlgmr.msra.gmra.mxu3 %vm192_vm2, %v10470_v17  ;;  %v4809_v24 = vunpack.c.l.b16 %v10492_v32  ;;  %v4810_v17 = vunpack.c.l.b16 %v12475_v29 }
 0x2d5   : > { %4773 = vmatpush.bf16.msra.mxu2 %v4708_v7  ;;  %4801 = vmatpush.bf16.msra.mxu3 %v4708_v7 }
 0x2d6   : > { %4717 = vmatpush.bf16.msra.mxu0 %v4708_v7  ;;  %4745 = vmatpush.bf16.msra.mxu1 %v4708_v7 }
 0x2d7   : > { %v3844_v58 = vpop.f32.mrf.mxu2  ;;  %v3864_v15 = vpop.f32.mrf.mxu3 }
 0x2d8   : > { %v12421_v47 = vadd.f32 %v3844_v58, %v3769_v56  ;;  %v12423_v40 = vadd.f32 %v3864_v15, %v3770_v60  ;;  %v3806_v25 = vpop.f32.mrf.mxu0  ;;  %v3826_v6 = vpop.f32.mrf.mxu1  ;;  %v10474_v56 = vld [vmem:[%s11056_s21 + $0x148] sm:$0xf]  ;;  %v4696_v60 = vpack.c.b16 %v4695_v12, %v4694_v61  ;;  %v12484_v58 = vld [vmem:[%s11056_s21 + $0xec] sm:$0x1]  ;;  %v4837_v15 = vunpack.c.l.b16 %v10494_v55 }
 0x2d9   : > { %v4838_v25 = vunpack.c.l.b16 %v12479_v13  ;;  %v10498_v6 = vld [vmem:[%s11056_s21 + $0xf0] sm:$0xf]  ;;  %v4866_v35 = vunpack.c.l.b16 %v12484_v58 }
 0x2da   : > { %v4700_v18 = vshll.u32 %v4696_v60, 16  ;;  %v4698_v49 = vshrl.u32 %v4696_v60, 16  ;;  %v4893_v63 = vunpack.c.l.b16 %v10498_v6 }
 0x2dc   : > { %v4702_v39 = vrot.slane %v4700_v18, 1 }
 0x2de   : > { %v4703_v11 = vor.u32 %v4702_v39, %v4698_v49 }
 0x2df   : > { %v3846_v30 = vpop.f32.mrf.mxu2  ;;  %v3866_v0 = vpop.f32.mrf.mxu3 }
 0x2e0   : > { %v3884_v59 = vpop.f32.mrf.mxu0  ;;  %v3904_v16 = vpop.f32.mrf.mxu1 }
 0x2e1   : > { %v12448_v62 = vadd.f32 %v3884_v59, %v12391_v5  ;;  %v12451_v9 = vadd.f32 %v3904_v16, %v12393_v41 }
 0x2e3   : > { %10480 = vmatmul.msk.bf16.vlgmr.msrb.gmra.mxu0 %vm192_vm2, %v10471_v31  ;;  %10481 = vmatmul.msk.bf16.vlgmr.msrb.gmra.mxu1 %vm192_vm2, %v10472_v44  ;;  %v4790_v31 = vor.u32 %v4789_v37, %v4785_v36  ;;  %v4811_v44 = vpack.c.b16 %v4810_v17, %v4809_v24  ;;  %v12533_v36 = vld [vmem:[%s11056_s21 + $0x11c] sm:$0x1]  ;;  %v10513_v37 = vld [vmem:[%s11056_s21 + $0x120] sm:$0xf]  ;;  %v12537_v24 = vld [vmem:[%s11056_s21 + $0x124] sm:$0x1] }
 0x2e4   : > { %10482 = vmatmul.msk.bf16.vlgmr.msrb.gmra.mxu2 %vm192_vm2, %v10473_v1  ;;  %10483 = vmatmul.msk.bf16.vlgmr.msrb.gmra.mxu3 %vm192_vm2, %v10474_v56  ;;  %v4894_v1 = vunpack.c.l.b16 %v12489_v4  ;;  %v10551_v4 = vld [vmem:[%s11056_s21 + $0x110] sm:$0xe] }
 0x2e5   : > { %4885 = vmatpush.bf16.msrb.mxu2 %v4708_v7  ;;  %4913 = vmatpush.bf16.msrb.mxu3 %v4708_v7  ;;  %v4813_v28 = vshrl.u32 %v4811_v44, 16 }
 0x2e6   : > { %4829 = vmatpush.bf16.msrb.mxu0 %v4708_v7  ;;  %4857 = vmatpush.bf16.msrb.mxu1 %v4708_v7  ;;  %v10496_v7 = vld [vmem:[%s11056_s21 + $0xe8] sm:$0xf] }
 0x2e7   : > { %v3924_v51 = vpop.f32.mrf.mxu2  ;;  %v3944_v14 = vpop.f32.mrf.mxu3  ;;  %v4865_v38 = vunpack.c.l.b16 %v10496_v7  ;;  %v12541_v7 = vld [vmem:[%s11056_s21 + $0x12c] sm:$0x1] }
 0x2e8   : > { %v12468_v5 = vadd.f32 %v3924_v51, %v12401_v8  ;;  %v12471_v41 = vadd.f32 %v3944_v14, %v12403_v52  ;;  %v3886_v50 = vpop.f32.mrf.mxu0  ;;  %v3906_v23 = vpop.f32.mrf.mxu1  ;;  %v4729_v8 = vshrl.u32 %v4727_v43, 16  ;;  %v4761_v52 = vrot.slane %v4759_v10, 1 }
 0x2e9   : > { %v4839_v43 = vpack.c.b16 %v4838_v25, %v4837_v15  ;;  %v4867_v27 = vpack.c.b16 %v4866_v35, %v4865_v38  ;;  %v5007_v38 = vunpack.c.l.b16 %v12537_v24 }
 0x2ea   : > { %v4734_v30 = vor.u32 %v4733_v54, %v4729_v8  ;;  %v4762_v0 = vor.u32 %v4761_v52, %v4757_v46  ;;  %v10509_v54 = vld [vmem:[%s11056_s21 + $0x110] sm:$0xf]  ;;  %v12529_v46 = vld [vmem:[%s11056_s21 + $0x114] sm:$0x1]  ;;  %v10511_v52 = vld [vmem:[%s11056_s21 + $0x118] sm:$0xf] }
 0x2eb   : > { %v4843_v18 = vshll.u32 %v4839_v43, 16  ;;  %v4871_v10 = vshll.u32 %v4867_v27, 16  ;;  %v4841_v55 = vshrl.u32 %v4839_v43, 16  ;;  %v4947_v2 = vunpack.c.l.b16 %v10509_v54 }
 0x2ed   : > { %v4845_v8 = vrot.slane %v4843_v18, 1  ;;  %v4873_v15 = vrot.slane %v4871_v10, 1 }
 0x2ef   : > { %v3926_v53 = vpop.f32.mrf.mxu2  ;;  %v3946_v61 = vpop.f32.mrf.mxu3  ;;  %v4846_v43 = vor.u32 %v4845_v8, %v4841_v55 }
 0x2f0   : > { %v3985_v59 = vpop.f32.mrf.mxu0  ;;  %v4005_v16 = vpop.f32.mrf.mxu1  ;;  %v4948_v53 = vunpack.c.l.b16 %v12529_v46  ;;  %v4978_v61 = vunpack.c.l.b16 %v10511_v52 }
 0x2f1   : > { %v12499_v56 = vadd.f32 %v3985_v59, %v12410_v48  ;;  %v12502_v60 = vadd.f32 %v4005_v16, %v12412_v22  ;;  %v4815_v48 = vshll.u32 %v4811_v44, 16  ;;  %v4895_v22 = vpack.c.b16 %v4894_v1, %v4893_v63 }
 0x2f2   : > { %v5035_v16 = vunpack.c.l.b16 %v12541_v7  ;;  %v4949_v10 = vpack.c.b16 %v4948_v53, %v4947_v2 }
 0x2f3   : > { %10501 = vmatmul.msk.bf16.vlgmr.msra.gmra.mxu0 %vm192_vm2, %v4703_v11  ;;  %10502 = vmatmul.msk.bf16.vlgmr.msra.gmra.mxu1 %vm192_vm2, %v4734_v30  ;;  %v4817_v49 = vrot.slane %v4815_v48, 1  ;;  %v4899_v39 = vshll.u32 %v4895_v22, 16  ;;  %v4897_v6 = vshrl.u32 %v4895_v22, 16  ;;  %v4979_v30 = vunpack.c.l.b16 %v12533_v36 }
 0x2f4   : > { %10503 = vmatmul.msk.bf16.vlgmr.msra.gmra.mxu2 %vm192_vm2, %v4762_v0  ;;  %10504 = vmatmul.msk.bf16.vlgmr.msra.gmra.mxu3 %vm192_vm2, %v4790_v31  ;;  %v5006_v0 = vunpack.c.l.b16 %v10513_v37 }
 0x2f5   : > { %5026 = vmatpush.bf16.msra.mxu2 %v12507_v26  ;;  %5054 = vmatpush.bf16.msra.mxu3 %v12507_v26  ;;  %v4901_v11 = vrot.slane %v4899_v39, 1  ;;  %v4818_v63 = vor.u32 %v4817_v49, %v4813_v28 }
 0x2f6   : > { %4970 = vmatpush.bf16.msra.mxu0 %v12507_v26  ;;  %4998 = vmatpush.bf16.msra.mxu1 %v12507_v26  ;;  %v5008_v28 = vpack.c.b16 %v5007_v38, %v5006_v0 }
 0x2f7   : > { %v4025_v51 = vpop.f32.mrf.mxu2  ;;  %v4045_v14 = vpop.f32.mrf.mxu3  ;;  %v4902_v18 = vor.u32 %v4901_v11, %v4897_v6 }
 0x2f8   : > { %v12522_v50 = vadd.f32 %v4025_v51, %v12421_v47  ;;  %v12525_v23 = vadd.f32 %v4045_v14, %v12423_v40  ;;  %v3987_v21 = vpop.f32.mrf.mxu0  ;;  %v4007_v32 = vpop.f32.mrf.mxu1  ;;  %v10515_v47 = vld [vmem:[%s11056_s21 + $0x128] sm:$0xf]  ;;  %v4869_v40 = vshrl.u32 %v4867_v27, 16  ;;  %v5012_v49 = vshll.u32 %v5008_v28, 16 }
 0x2f9   : > { %v5034_v59 = vunpack.c.l.b16 %v10515_v47  ;;  %v4980_v21 = vpack.c.b16 %v4979_v30, %v4978_v61  ;;  %v5010_v6 = vshrl.u32 %v5008_v28, 16 }
 0x2fa   : > { %v4874_v22 = vor.u32 %v4873_v15, %v4869_v40  ;;  %v4951_v40 = vshrl.u32 %v4949_v10, 16  ;;  %v5014_v2 = vrot.slane %v5012_v49, 1 }
 0x2fb   : > { %v5036_v32 = vpack.c.b16 %v5035_v16, %v5034_v59  ;;  %v10517_v59 = vld [vmem:[%s11056_s21 + $0x130] sm:$0xf] }
 0x2fd   : > { %v5040_v39 = vshll.u32 %v5036_v32, 16  ;;  %v5038_v61 = vshrl.u32 %v5036_v32, 16 }
 0x2ff   : > { %v4027_v31 = vpop.f32.mrf.mxu2  ;;  %v4047_v44 = vpop.f32.mrf.mxu3  ;;  %v5042_v0 = vrot.slane %v5040_v39, 1 }
 0x300   : > { %v4065_v27 = vpop.f32.mrf.mxu0  ;;  %v4085_v48 = vpop.f32.mrf.mxu1  ;;  %v10519_v31 = vld [vmem:[%s11056_s21 + $0x138] sm:$0xf]  ;;  %v12581_v44 = vld [vmem:[%s11056_s21 + $0x13c] sm:$0x1] }
 0x301   : > { %v12548_v51 = vadd.f32 %v4065_v27, %v12448_v62  ;;  %v12551_v14 = vadd.f32 %v4085_v48, %v12451_v9  ;;  %v4953_v62 = vshll.u32 %v4949_v10, 16  ;;  %v4984_v9 = vshll.u32 %v4980_v21, 16  ;;  %v12589_v27 = vld [vmem:[%s11056_s21 + $0x14c] sm:$0x1] }
 0x302   : > { %v5043_v10 = vor.u32 %v5042_v0, %v5038_v61  ;;  %v5090_v49 = vunpack.c.l.b16 %v10519_v31  ;;  %v5091_v39 = vunpack.c.l.b16 %v12581_v44 }
 0x303   : > { %10505 = vmatmul.msk.bf16.vlgmr.msrb.gmra.mxu0 %vm192_vm2, %v4818_v63  ;;  %10506 = vmatmul.msk.bf16.vlgmr.msrb.gmra.mxu1 %vm192_vm2, %v4846_v43  ;;  %v4955_v15 = vrot.slane %v4953_v62, 1  ;;  %v4986_v11 = vrot.slane %v4984_v9, 1  ;;  %v12585_v63 = vld [vmem:[%s11056_s21 + $0x144] sm:$0x1]  ;;  %v10523_v43 = vld [vmem:[%s11056_s21 + $0x148] sm:$0xf]  ;;  %v5062_v62 = vunpack.c.l.b16 %v10517_v59 }
 0x304   : > { %10507 = vmatmul.msk.bf16.vlgmr.msrb.gmra.mxu2 %vm192_vm2, %v4874_v22  ;;  %10508 = vmatmul.msk.bf16.vlgmr.msrb.gmra.mxu3 %vm192_vm2, %v4902_v18  ;;  %v5015_v18 = vor.u32 %v5014_v2, %v5010_v6  ;;  %v5092_v61 = vpack.c.b16 %v5091_v39, %v5090_v49 }
 0x305   : > { %5138 = vmatpush.bf16.msrb.mxu2 %v12507_v26  ;;  %5166 = vmatpush.bf16.msrb.mxu3 %v12507_v26  ;;  %v4956_v48 = vor.u32 %v4955_v15, %v4951_v40  ;;  %v5146_v40 = vunpack.c.l.b16 %v10523_v43  ;;  %v14309_v15 = vunpack.c.l.b16 %v12589_v27 }
 0x306   : > { %5082 = vmatpush.bf16.msrb.mxu0 %v12507_v26  ;;  %5110 = vmatpush.bf16.msrb.mxu1 %v12507_v26  ;;  %v4982_v26 = vshrl.u32 %v4980_v21, 16  ;;  %v10542_v21 = vld [vmem:[%s14302_s1 + $0x32] sm:$0x3] }
 0x307   : > { %v4105_v55 = vpop.f32.mrf.mxu2  ;;  %v4125_v8 = vpop.f32.mrf.mxu3 }
 0x308   : > { %v12570_v54 = vadd.f32 %v4105_v55, %v12468_v5  ;;  %v12573_v52 = vadd.f32 %v4125_v8, %v12471_v41  ;;  %v4067_v37 = vpop.f32.mrf.mxu0  ;;  %v4087_v47 = vpop.f32.mrf.mxu1  ;;  %v12577_v5 = vld [vmem:[%s11056_s21 + $0x134] sm:$0x1]  ;;  %v10521_v41 = vld [vmem:[%s11056_s21 + $0x140] sm:$0xf]  ;;  %v4987_v22 = vor.u32 %v4986_v11, %v4982_v26  ;;  %v5198_v11 = vand.u32 %v10542_v21, %v11044_v3 }
 0x309   : > { %v5063_v9 = vunpack.c.l.b16 %v12577_v5  ;;  %v5118_v37 = vunpack.c.l.b16 %v10521_v41  ;;  %v14310_v47 = vunpack.c.l.b16 %v12585_v63  ;;  %v5096_v41 = vshll.u32 %v5092_v61, 16 }
 0x30b   : > { %v5064_v2 = vpack.c.b16 %v5063_v9, %v5062_v62  ;;  %v5094_v62 = vshrl.u32 %v5092_v61, 16  ;;  %v5098_v49 = vrot.slane %v5096_v41, 1 }
 0x30d   : > { %v5068_v31 = vshll.u32 %v5064_v2, 16 }
 0x30f   : > { %v4107_v28 = vpop.f32.mrf.mxu2  ;;  %v4127_v32 = vpop.f32.mrf.mxu3 }
 0x310   : > { %v4173_v55 = vpop.f32.mrf.mxu0  ;;  %v4200_v8 = vpop.f32.mrf.mxu1  ;;  %v5066_v28 = vshrl.u32 %v5064_v2, 16  ;;  %v5070_v32 = vrot.slane %v5068_v31, 1  ;;  %v12643_v31 = vld [vmem:[%s11056_s21 + $0xd0] sm:$0xe] }
 0x311   : > { %v12599_v26 = vadd.f32 %v4173_v55, %v12499_v56  ;;  %v12602_v6 = vadd.f32 %v4200_v8, %v12502_v60  ;;  %v5120_v56 = vpack.c.b16 %v14310_v47, %v5118_v37  ;;  %v5148_v60 = vpack.c.b16 %v14309_v15, %v5146_v40 }
 0x313   : > { %10526 = vmatmul.msk.bf16.vlgmr.msra.gmra.mxu0 %vm192_vm2, %v4956_v48  ;;  %10527 = vmatmul.msk.bf16.vlgmr.msra.gmra.mxu1 %vm192_vm2, %v4987_v22  ;;  %v5152_v21 = vshll.u32 %v5148_v60, 16  ;;  %v5122_v55 = vshrl.u32 %v5120_v56, 16  ;;  %v5150_v37 = vshrl.u32 %v5148_v60, 16  ;;  %v12640_v60 = vld [vmem:[%s11056_s21 + $0xc8] sm:$0xe] }
 0x314   : > { %10528 = vmatmul.msk.bf16.vlgmr.msra.gmra.mxu2 %vm192_vm2, %v5015_v18  ;;  %10529 = vmatmul.msk.bf16.vlgmr.msra.gmra.mxu3 %vm192_vm2, %v5043_v10  ;;  %v5124_v10 = vshll.u32 %v5120_v56, 16  ;;  %v12637_v56 = vld [vmem:[%s11056_s21 + $0xc0] sm:$0xe] }
 0x315   : > { %5247 = vmatpush.bf16.msra.mxu2 %v5198_v11  ;;  %5267 = vmatpush.bf16.msra.mxu3 %v5198_v11  ;;  %v5154_v40 = vrot.slane %v5152_v21, 1 }
 0x316   : > { %5207 = vmatpush.bf16.msra.mxu0 %v5198_v11  ;;  %5227 = vmatpush.bf16.msra.mxu1 %v5198_v11  ;;  %v5126_v8 = vrot.slane %v5124_v10, 1  ;;  %v5214_v10 = vunpack.c.l.b16 %v12637_v56 }
 0x317   : > { %v4227_v0 = vpop.f32.mrf.mxu2  ;;  %v4254_v59 = vpop.f32.mrf.mxu3  ;;  %v5155_v47 = vor.u32 %v5154_v40, %v5150_v37 }
 0x318   : > { %v12618_v43 = vadd.f32 %v4227_v0, %v12522_v50  ;;  %v12621_v48 = vadd.f32 %v4254_v59, %v12525_v23  ;;  %v4175_v22 = vpop.f32.mrf.mxu0  ;;  %v4202_v18 = vpop.f32.mrf.mxu1  ;;  %v5071_v23 = vor.u32 %v5070_v32, %v5066_v28  ;;  %v5099_v0 = vor.u32 %v5098_v49, %v5094_v62 }
 0x319   : > { %v5127_v18 = vor.u32 %v5126_v8, %v5122_v55  ;;  %v5234_v62 = vunpack.c.l.b16 %v12640_v60  ;;  %v5254_v49 = vunpack.c.l.b16 %v12643_v31 }
 0x31b   : > { %v5255_v55 = vpack.c.b16 %v4782_v33, %v5254_v49  ;;  %v5379_v33 = vand.u32 %v10559_v19, %v11044_v3 }
 0x31d   : > { %v5256_v40 = vrot.slane %v5255_v55, 1 }
 0x31f   : > { %v4229_v15 = vpop.f32.mrf.mxu2  ;;  %v4256_v50 = vpop.f32.mrf.mxu3 }
 0x320   : > { %v4281_v59 = vpop.f32.mrf.mxu0  ;;  %v4308_v22 = vpop.f32.mrf.mxu1  ;;  %v12634_v15 = vld [vmem:[%s11056_s21 + $0xb8] sm:$0xe] }
 0x321   : > { %v12624_v2 = vadd.f32 %v4281_v59, %v12548_v51  ;;  %v12627_v61 = vadd.f32 %v4308_v22, %v12551_v14  ;;  %v5191_v41 = vunpack.c.l.b16 %v12634_v15  ;;  %v12692_v59 = vld [vmem:[%s11056_s21 + $0xe8] sm:$0xe] }
 0x323   : > { %10530 = vmatmul.msk.bf16.vlgmr.msrb.gmra.mxu0 %vm192_vm2, %v5071_v23  ;;  %10531 = vmatmul.msk.bf16.vlgmr.msrb.gmra.mxu1 %vm192_vm2, %v5099_v0  ;;  %v12686_v23 = vld [vmem:[%s11056_s21 + $0xd8] sm:$0xe]  ;;  %v12689_v0 = vld [vmem:[%s11056_s21 + $0xe0] sm:$0xe] }
 0x324   : > { %10532 = vmatmul.msk.bf16.vlgmr.msrb.gmra.mxu2 %vm192_vm2, %v5127_v18  ;;  %10533 = vmatmul.msk.bf16.vlgmr.msrb.gmra.mxu3 %vm192_vm2, %v5155_v47  ;;  %v5274_v18 = vunpack.c.l.b16 %v12686_v23 }
 0x325   : > { %5327 = vmatpush.bf16.msrb.mxu2 %v5198_v11  ;;  %5347 = vmatpush.bf16.msrb.mxu3 %v5198_v11 }
 0x326   : > { %5287 = vmatpush.bf16.msrb.mxu0 %v5198_v11  ;;  %5307 = vmatpush.bf16.msrb.mxu1 %v5198_v11  ;;  %v5192_v11 = vpack.c.b16 %v4695_v12, %v5191_v41  ;;  %v5275_v55 = vpack.c.b16 %v4810_v17, %v5274_v18 }
 0x327   : > { %v4335_v51 = vpop.f32.mrf.mxu2  ;;  %v4362_v14 = vpop.f32.mrf.mxu3 }
 0x328   : > { %v12648_v47 = vadd.f32 %v4335_v51, %v12570_v54  ;;  %v12651_v21 = vadd.f32 %v4362_v14, %v12573_v52  ;;  %v4283_v28 = vpop.f32.mrf.mxu0  ;;  %v4310_v32 = vpop.f32.mrf.mxu1  ;;  %v5215_v54 = vpack.c.b16 %v4726_v42, %v5214_v10  ;;  %v5235_v52 = vpack.c.b16 %v4754_v20, %v5234_v62 }
 0x329   : > { %v5193_v57 = vrot.slane %v5192_v11, 1  ;;  %v5294_v51 = vunpack.c.l.b16 %v12689_v0  ;;  %v5276_v17 = vrot.slane %v5275_v55, 1 }
 0x32a   : > { %v5216_v42 = vrot.slane %v5215_v54, 1  ;;  %v5236_v20 = vrot.slane %v5235_v52, 1  ;;  %v5314_v54 = vunpack.c.l.b16 %v12692_v59 }
 0x32f   : > { %v4337_v12 = vpop.f32.mrf.mxu2  ;;  %v4364_v8 = vpop.f32.mrf.mxu3 }
 0x330   : > { %v4400_v37 = vpop.f32.mrf.mxu0  ;;  %v4416_v45 = vpop.f32.mrf.mxu1 }
 0x331   : > { %v12675_v50 = vadd.f32 %v4400_v37, %v12599_v26  ;;  %v12678_v34 = vadd.f32 %v4416_v45, %v12602_v6  ;;  %v12695_v26 = vld [vmem:[%s11056_s21 + $0xf0] sm:$0xe]  ;;  %v10553_v37 = vld [vmem:[%s11056_s21 + $0x120] sm:$0xe]  ;;  %v10554_v45 = vld [vmem:[%s11056_s21 + $0x128] sm:$0xe] }
 0x332   : > { %v5334_v52 = vunpack.c.l.b16 %v12695_v26  ;;  %v5415_v55 = vunpack.c.l.b16 %v10553_v37 }
 0x333   : > { %10543 = vmatmul.msk.bf16.vlgmr.msra.gmra.mxu0 %vm192_vm2, %v5193_v57  ;;  %10544 = vmatmul.msk.bf16.vlgmr.msra.gmra.mxu1 %vm192_vm2, %v5216_v42 }
 0x334   : > { %10545 = vmatmul.msk.bf16.vlgmr.msra.gmra.mxu2 %vm192_vm2, %v5236_v20  ;;  %10546 = vmatmul.msk.bf16.vlgmr.msra.gmra.mxu3 %vm192_vm2, %v5256_v40  ;;  %v5335_v19 = vpack.c.b16 %v4894_v1, %v5334_v52  ;;  %v10552_v1 = vld [vmem:[%s11056_s21 + $0x118] sm:$0xe] }
 0x335   : > { %5428 = vmatpush.bf16.msra.mxu2 %v5379_v33  ;;  %5448 = vmatpush.bf16.msra.mxu3 %v5379_v33  ;;  %v5395_v40 = vunpack.c.l.b16 %v10552_v1 }
 0x336   : > { %5388 = vmatpush.bf16.msra.mxu0 %v5379_v33  ;;  %5408 = vmatpush.bf16.msra.mxu1 %v5379_v33  ;;  %v5336_v42 = vrot.slane %v5335_v19, 1  ;;  %v5416_v19 = vpack.c.b16 %v5007_v38, %v5415_v55  ;;  %v14321_v55 = vunpack.c.l.b16 %v12585_v63 }
 0x337   : > { %v4432_v6 = vpop.f32.mrf.mxu2  ;;  %v4448_v22 = vpop.f32.mrf.mxu3 }
 0x338   : > { %v12700_v14 = vadd.f32 %v4432_v6, %v12618_v43  ;;  %v12703_v28 = vadd.f32 %v4448_v22, %v12621_v48  ;;  %v4402_v32 = vpop.f32.mrf.mxu0  ;;  %v4418_v11 = vpop.f32.mrf.mxu1  ;;  %v5295_v43 = vpack.c.b16 %v4838_v25, %v5294_v51  ;;  %v5315_v48 = vpack.c.b16 %v4866_v35, %v5314_v54 }
 0x33a   : > { %v5296_v8 = vrot.slane %v5295_v43, 1  ;;  %v5316_v57 = vrot.slane %v5315_v48, 1  ;;  %v5435_v43 = vunpack.c.l.b16 %v10554_v45 }
 0x33f   : > { %v4434_v12 = vpop.f32.mrf.mxu2  ;;  %v4450_v29 = vpop.f32.mrf.mxu3 }
 0x340   : > { %v4464_v13 = vpop.f32.mrf.mxu0  ;;  %v4480_v25 = vpop.f32.mrf.mxu1 }
 0x341   : > { %v12724_v58 = vadd.f32 %v4464_v13, %v12624_v2  ;;  %v12727_v35 = vadd.f32 %v4480_v25, %v12627_v61  ;;  %v5372_v61 = vunpack.c.l.b16 %v10551_v4  ;;  %v10556_v13 = vld [vmem:[%s11056_s21 + $0x138] sm:$0xe]  ;;  %v10557_v25 = vld [vmem:[%s11056_s21 + $0x140] sm:$0xe] }
 0x342   : > { %v5475_v4 = vunpack.c.l.b16 %v10556_v13 }
 0x343   : > { %10547 = vmatmul.msk.bf16.vlgmr.msrb.gmra.mxu0 %vm192_vm2, %v5276_v17  ;;  %10548 = vmatmul.msk.bf16.vlgmr.msrb.gmra.mxu1 %vm192_vm2, %v5296_v8  ;;  %v5373_v48 = vpack.c.b16 %v4948_v53, %v5372_v61  ;;  %v5417_v17 = vrot.slane %v5416_v19, 1  ;;  %v10555_v8 = vld [vmem:[%s11056_s21 + $0x130] sm:$0xe]  ;;  %v10571_v19 = vld [vmem:[%s11056_s21 + $0xd4] sm:$0x3] }
 0x344   : > { %10549 = vmatmul.msk.bf16.vlgmr.msrb.gmra.mxu2 %vm192_vm2, %v5316_v57  ;;  %10550 = vmatmul.msk.bf16.vlgmr.msrb.gmra.mxu3 %vm192_vm2, %v5336_v42  ;;  %v10558_v57 = vld [vmem:[%s11056_s21 + $0x148] sm:$0xe]  ;;  %v5455_v42 = vunpack.c.l.b16 %v10555_v8 }
 0x345   : > { %5508 = vmatpush.bf16.msrb.mxu2 %v5379_v33  ;;  %5528 = vmatpush.bf16.msrb.mxu3 %v5379_v33  ;;  %v5374_v46 = vrot.slane %v5373_v48, 1  ;;  %v5515_v61 = vunpack.c.l.b16 %v10558_v57 }
 0x346   : > { %5468 = vmatpush.bf16.msrb.mxu0 %v5379_v33  ;;  %5488 = vmatpush.bf16.msrb.mxu1 %v5379_v33  ;;  %v5396_v33 = vpack.c.b16 %v4979_v30, %v5395_v40  ;;  %v5456_v40 = vpack.c.b16 %v5063_v9, %v5455_v42 }
 0x347   : > { %v4496_v2 = vpop.f32.mrf.mxu2  ;;  %v4512_v20 = vpop.f32.mrf.mxu3 }
 0x348   : > { %v12738_v6 = vadd.f32 %v4496_v2, %v12648_v47  ;;  %v12741_v22 = vadd.f32 %v4512_v20, %v12651_v21  ;;  %v4466_v32 = vpop.f32.mrf.mxu0  ;;  %v4482_v11 = vpop.f32.mrf.mxu1  ;;  %v5436_v47 = vpack.c.b16 %v5035_v16, %v5435_v43  ;;  %v10576_v21 = vld [vmem:[%s14302_s1 + $0x36] sm:$0x3]  ;;  %v5397_v53 = vrot.slane %v5396_v33, 1  ;;  %v10569_v33 = vld [vmem:[%s11056_s21 + $0xc4] sm:$0x3] }
 0x349   : > { %v5567_v16 = vand.u32 %v10576_v21, %v11044_v3  ;;  %v5495_v20 = vunpack.c.l.b16 %v10557_v25  ;;  %v5476_v32 = vpack.c.b16 %v5091_v39, %v5475_v4  ;;  %v10568_v11 = vld [vmem:[%s11056_s21 + $0xbc] sm:$0x3]  ;;  %v5583_v5 = vunpack.c.l.b16 %v10569_v33 }
 0x34a   : > { %v5437_v24 = vrot.slane %v5436_v47, 1  ;;  %v5553_v47 = vunpack.c.l.b16 %v10568_v11  ;;  %v10574_v11 = vld [vmem:[%s11056_s21 + $0xec] sm:$0x3] }
 0x34b   : > { %v5496_v43 = vpack.c.b16 %v14321_v55, %v5495_v20  ;;  %v10575_v55 = vld [vmem:[%s11056_s21 + $0xf4] sm:$0x3] }
 0x34d   : > { %v5497_v39 = vrot.slane %v5496_v43, 1 }
 0x34f   : > { %v4498_v12 = vpop.f32.mrf.mxu2  ;;  %v4514_v29 = vpop.f32.mrf.mxu3 }
 0x350   : > { %v4550_v36 = vpop.f32.mrf.mxu0  ;;  %v4566_v30 = vpop.f32.mrf.mxu1  ;;  %v5457_v29 = vrot.slane %v5456_v40, 1 }
 0x351   : > { %v12755_v38 = vadd.f32 %v4550_v36, %v12675_v50  ;;  %v12758_v7 = vadd.f32 %v4566_v30, %v12678_v34  ;;  %v5637_v30 = vunpack.c.l.b16 %v10571_v19 }
 0x353   : > { %10560 = vmatmul.msk.bf16.vlgmr.msra.gmra.mxu0 %vm192_vm2, %v5374_v46  ;;  %10561 = vmatmul.msk.bf16.vlgmr.msra.gmra.mxu1 %vm192_vm2, %v5397_v53  ;;  %v5477_v46 = vrot.slane %v5476_v32, 1 }
 0x354   : > { %10562 = vmatmul.msk.bf16.vlgmr.msra.gmra.mxu2 %vm192_vm2, %v5417_v17  ;;  %10563 = vmatmul.msk.bf16.vlgmr.msra.gmra.mxu3 %vm192_vm2, %v5437_v24  ;;  %v5554_v17 = vpack.c.b16 %v5553_v47, %v5191_v41  ;;  %v5584_v24 = vpack.c.b16 %v5583_v5, %v5214_v10  ;;  %v5718_v47 = vunpack.c.l.b16 %v10574_v11  ;;  %v5745_v5 = vunpack.c.l.b16 %v10575_v55 }
 0x355   : > { %5630 = vmatpush.bf16.msra.mxu2 %v5567_v16  ;;  %5657 = vmatpush.bf16.msra.mxu3 %v5567_v16 }
 0x356   : > { %5576 = vmatpush.bf16.msra.mxu0 %v5567_v16  ;;  %5603 = vmatpush.bf16.msra.mxu1 %v5567_v16  ;;  %v5556_v15 = vshrl.u32 %v5554_v17, 16  ;;  %v5559_v41 = vshll.u32 %v5554_v17, 16  ;;  %v5586_v56 = vshrl.u32 %v5584_v24, 16  ;;  %v5589_v10 = vshll.u32 %v5584_v24, 16 }
 0x357   : > { %v4582_v50 = vpop.f32.mrf.mxu2  ;;  %v4598_v34 = vpop.f32.mrf.mxu3 }
 0x358   : > { %v12770_v1 = vadd.f32 %v4582_v50, %v12700_v14  ;;  %v12773_v37 = vadd.f32 %v4598_v34, %v12703_v28  ;;  %v4552_v45 = vpop.f32.mrf.mxu0  ;;  %v4568_v2 = vpop.f32.mrf.mxu1  ;;  %v14322_v14 = vunpack.c.l.b16 %v12589_v27  ;;  %v10570_v28 = vld [vmem:[%s11056_s21 + $0xcc] sm:$0x3]  ;;  %v5558_v34 = vrot.slane %v5556_v15, 1 }
 0x359   : > { %v5610_v9 = vunpack.c.l.b16 %v10570_v28  ;;  %v5561_v42 = vrot.slane %v5559_v41, 2  ;;  %v5588_v4 = vrot.slane %v5586_v56, 1  ;;  %v5591_v45 = vrot.slane %v5589_v10, 2 }
 0x35a   : > { %v5516_v48 = vpack.c.b16 %v14322_v14, %v5515_v61  ;;  %v10572_v61 = vld [vmem:[%s11056_s21 + $0xdc] sm:$0x3] }
 0x35b   : > { %v5611_v8 = vpack.c.b16 %v5610_v9, %v5234_v62  ;;  %v5664_v43 = vunpack.c.l.b16 %v10572_v61  ;;  %v5562_v33 = vor.u32 %v5561_v42, %v5558_v34  ;;  %v5592_v28 = vor.u32 %v5591_v45, %v5588_v4 }
 0x35c   : > { %v5517_v36 = vrot.slane %v5516_v48, 1 }
 0x35d   : > { %v5613_v60 = vshrl.u32 %v5611_v8, 16  ;;  %v5616_v62 = vshll.u32 %v5611_v8, 16 }
 0x35f   : > { %v4584_v21 = vpop.f32.mrf.mxu2  ;;  %v4600_v12 = vpop.f32.mrf.mxu3  ;;  %v5615_v2 = vrot.slane %v5613_v60, 1  ;;  %v5618_v20 = vrot.slane %v5616_v62, 2 }
 0x360   : > { %v4614_v53 = vpop.f32.mrf.mxu0  ;;  %v4630_v44 = vpop.f32.mrf.mxu1 }
 0x361   : > { %v12788_v63 = vadd.f32 %v4614_v53, %v12724_v58  ;;  %v12791_v27 = vadd.f32 %v4630_v44, %v12727_v35  ;;  %v5638_v58 = vpack.c.b16 %v5637_v30, %v5254_v49  ;;  %v5719_v30 = vpack.c.b16 %v5718_v47, %v5314_v54 }
 0x363   : > { %10564 = vmatmul.msk.bf16.vlgmr.msrb.gmra.mxu0 %vm192_vm2, %v5457_v29  ;;  %10565 = vmatmul.msk.bf16.vlgmr.msrb.gmra.mxu1 %vm192_vm2, %v5477_v46  ;;  %v5640_v50 = vshrl.u32 %v5638_v58, 16  ;;  %v5619_v29 = vor.u32 %v5618_v20, %v5615_v2  ;;  %v5721_v24 = vshrl.u32 %v5719_v30, 16  ;;  %v5724_v59 = vshll.u32 %v5719_v30, 16  ;;  %v10590_v30 = vld [vmem:[%s11056_s21 + $0x38] sm:$0xf] }
 0x364   : > { %10566 = vmatmul.msk.bf16.vlgmr.msrb.gmra.mxu2 %vm192_vm2, %v5497_v39  ;;  %10567 = vmatmul.msk.bf16.vlgmr.msrb.gmra.mxu3 %vm192_vm2, %v5517_v36  ;;  %v5665_v39 = vpack.c.b16 %v5664_v43, %v5274_v18 }
 0x365   : > { %5738 = vmatpush.bf16.msrb.mxu2 %v5567_v16  ;;  %5765 = vmatpush.bf16.msrb.mxu3 %v5567_v16  ;;  %v5642_v40 = vrot.slane %v5640_v50, 1  ;;  %v5723_v10 = vrot.slane %v5721_v24, 1  ;;  %v5726_v60 = vrot.slane %v5724_v59, 2 }
 0x366   : > { %5684 = vmatpush.bf16.msrb.mxu0 %v5567_v16  ;;  %5711 = vmatpush.bf16.msrb.mxu1 %v5567_v16  ;;  %v5643_v16 = vshll.u32 %v5638_v58, 16  ;;  %v5667_v23 = vshrl.u32 %v5665_v39, 16  ;;  %v5670_v18 = vshll.u32 %v5665_v39, 16 }
 0x367   : > { %v4646_v35 = vpop.f32.mrf.mxu2  ;;  %v4662_v13 = vpop.f32.mrf.mxu3  ;;  %v5727_v4 = vor.u32 %v5726_v60, %v5723_v10  ;;  %v10604_v10 = vld [vmem:[%s11056_s21 + $0x78] sm:$0xf]  ;;  %v10605_v60 = vld [vmem:[%s11056_s21 + $0x80] sm:$0xf] }
 0x368   : > { %v12806_v25 = vadd.f32 %v4646_v35, %v12738_v6  ;;  %v12809_v31 = vadd.f32 %v4662_v13, %v12741_v22  ;;  %v4616_v49 = vpop.f32.mrf.mxu0  ;;  %v4632_v57 = vpop.f32.mrf.mxu1  ;;  %v5645_v32 = vrot.slane %v5643_v16, 2  ;;  %v10573_v6 = vld [vmem:[%s11056_s21 + $0xe4] sm:$0x3]  ;;  %v10593_v22 = vld [vmem:[%s14302_s1 + $0x38] sm:$0x3]  ;;  %v5669_v41 = vrot.slane %v5667_v23, 1 }
 0x369   : > { %v5691_v19 = vunpack.c.l.b16 %v10573_v6  ;;  %v5794_v44 = vand.u32 %v10593_v22, %v11044_v3  ;;  %v5672_v35 = vrot.slane %v5670_v18, 2  ;;  %v10610_v6 = vld [vmem:[%s14302_s1 + $0x3a] sm:$0x3]  ;;  %v10591_v18 = vld [vmem:[%s11056_s21 + $0x40] sm:$0xf] }
 0x36a   : > { %v5646_v46 = vor.u32 %v5645_v32, %v5642_v40 }
 0x36b   : > { %v5692_v36 = vpack.c.b16 %v5691_v19, %v5294_v51  ;;  %v5673_v16 = vor.u32 %v5672_v35, %v5669_v41  ;;  %v10587_v19 = vld [vmem:[%s11056_s21 + $0x20] sm:$0xf]  ;;  %v10602_v41 = vld [vmem:[%s11056_s21 + $0x68] sm:$0xf]  ;;  %v10603_v35 = vld [vmem:[%s11056_s21 + $0x70] sm:$0xf] }
 0x36d   : > { %v5694_v0 = vshrl.u32 %v5692_v36, 16  ;;  %v5697_v51 = vshll.u32 %v5692_v36, 16  ;;  %v10589_v36 = vld [vmem:[%s11056_s21 + $0x30] sm:$0xf] }
 0x36f   : > { %v4648_v14 = vpop.f32.mrf.mxu2  ;;  %v4664_v48 = vpop.f32.mrf.mxu3  ;;  %v5696_v13 = vrot.slane %v5694_v0, 1  ;;  %v5699_v56 = vrot.slane %v5697_v51, 2 }
 0x370   : > { %v4719_v21 = vpop.f32.mrf.mxu0  ;;  %v4747_v12 = vpop.f32.mrf.mxu1  ;;  %v10585_v14 = vld [vmem:[%s11056_s21 + $0x10] sm:$0xf]  ;;  %v10586_v48 = vld [vmem:[%s11056_s21 + $0x18] sm:$0xf] }
 0x371   : > { %v12819_v9 = vadd.f32 %v4719_v21, %v12755_v38  ;;  %v12822_v53 = vadd.f32 %v4747_v12, %v12758_v7  ;;  %v5746_v38 = vpack.c.b16 %v5745_v5, %v5334_v52  ;;  %v5700_v34 = vor.u32 %v5699_v56, %v5696_v13 }
 0x373   : > { %10577 = vmatmul.msk.bf16.vlgmr.msra.gmra.mxu0 %vm192_vm2, %v5562_v33  ;;  %10578 = vmatmul.msk.bf16.vlgmr.msra.gmra.mxu1 %vm192_vm2, %v5592_v28  ;;  %v5748_v26 = vshrl.u32 %v5746_v38, 16  ;;  %v5751_v52 = vshll.u32 %v5746_v38, 16 }
 0x374   : > { %10579 = vmatmul.msk.bf16.vlgmr.msra.gmra.mxu2 %vm192_vm2, %v5619_v29  ;;  %10580 = vmatmul.msk.bf16.vlgmr.msra.gmra.mxu3 %vm192_vm2, %v5646_v46 }
 0x375   : > { %5835 = vmatpush.bf16.msra.mxu2 %v5794_v44  ;;  %5851 = vmatpush.bf16.msra.mxu3 %v5794_v44  ;;  %v5750_v62 = vrot.slane %v5748_v26, 1  ;;  %v5753_v49 = vrot.slane %v5751_v52, 2 }
 0x376   : > { %5803 = vmatpush.bf16.msra.mxu0 %v5794_v44  ;;  %5819 = vmatpush.bf16.msra.mxu1 %v5794_v44 }
 0x377   : > { %v4775_v7 = vpop.f32.mrf.mxu2  ;;  %v4803_v17 = vpop.f32.mrf.mxu3 }
 0x378   : > { %v4921_v54 = vadd.f32 %v4775_v7, %v12770_v1  ;;  %v4922_v8 = vadd.f32 %v4803_v17, %v12773_v37  ;;  %v4721_v58 = vpop.f32.mrf.mxu0  ;;  %v4749_v15 = vpop.f32.mrf.mxu1  ;;  %v5754_v37 = vor.u32 %v5753_v49, %v5750_v62  ;;  %v10592_v7 = vld [vmem:[%s11056_s21 + $0x48] sm:$0xf] }
 0x37f   : > { %v4777_v57 = vpop.f32.mrf.mxu2  ;;  %v4805_v50 = vpop.f32.mrf.mxu3 }
 0x380   : > { %v4831_v42 = vpop.f32.mrf.mxu0  ;;  %v4859_v1 = vpop.f32.mrf.mxu1 }
 0x381   : > { %v4923_v45 = vadd.f32 %v4831_v42, %v12788_v63  ;;  %v4924_v2 = vadd.f32 %v4859_v1, %v12791_v27  ;;  %v10619_v1 = vld [vmem:[%s11056_s21 + $0x10] sm:$0xf] }
 0x383   : > { %10581 = vmatmul.msk.bf16.vlgmr.msrb.gmra.mxu0 %vm192_vm2, %v5673_v16  ;;  %10582 = vmatmul.msk.bf16.vlgmr.msrb.gmra.mxu1 %vm192_vm2, %v5700_v34 }
 0x384   : > { %10583 = vmatmul.msk.bf16.vlgmr.msrb.gmra.mxu2 %vm192_vm2, %v5727_v4  ;;  %10584 = vmatmul.msk.bf16.vlgmr.msrb.gmra.mxu3 %vm192_vm2, %v5754_v37  ;;  %v12899_v4 = vld [vmem:[%s11056_s21 + $0x14] sm:$0x1]  ;;  %v10621_v37 = vld [vmem:[%s11056_s21 + $0x18] sm:$0xf] }
 0x385   : > { %5899 = vmatpush.bf16.msrb.mxu2 %v5794_v44  ;;  %5915 = vmatpush.bf16.msrb.mxu3 %v5794_v44 }
 0x386   : > { %5867 = vmatpush.bf16.msrb.mxu0 %v5794_v44  ;;  %5883 = vmatpush.bf16.msrb.mxu1 %v5794_v44 }
 0x387   : > { %v4887_v20 = vpop.f32.mrf.mxu2  ;;  %v4915_v63 = vpop.f32.mrf.mxu3 }
 0x388   : > { %v4925_v27 = vadd.f32 %v4887_v20, %v12806_v25  ;;  %v4926_v61 = vadd.f32 %v4915_v63, %v12809_v31  ;;  %v4833_v40 = vpop.f32.mrf.mxu0  ;;  %v4861_v32 = vpop.f32.mrf.mxu1  ;;  %v10588_v25 = vld [vmem:[%s11056_s21 + $0x28] sm:$0xf]  ;;  %v5944_v31 = vand.u32 %v10610_v6, %v11044_v3  ;;  %v12907_v20 = vld [vmem:[%s11056_s21 + $0x24] sm:$0x1] }
 0x389   : > { %v10625_v63 = vld [vmem:[%s11056_s21 + $0x28] sm:$0xf]  ;;  %v6100_v40 = vunpack.c.l.b16 %v12899_v4  ;;  %v10694_v4 = vld [vmem:[%s14302_s1 + $0x42] sm:$0x3] }
 0x38f   : > { %v4889_v11 = vpop.f32.mrf.mxu2  ;;  %v4917_v55 = vpop.f32.mrf.mxu3 }
 0x390   : > { %v4972_v43 = vpop.f32.mrf.mxu0  ;;  %v5000_v22 = vpop.f32.mrf.mxu1  ;;  %v6130_v11 = vunpack.c.l.b16 %v10621_v37 }
 0x391   : > { %v5172_v33 = vadd.f32 %v4972_v43, %v12819_v9  ;;  %v5173_v28 = vadd.f32 %v5000_v22, %v12822_v53  ;;  %v6159_v22 = vunpack.c.l.b16 %v12907_v20 }
 0x393   : > { %10594 = vmatmul.msk.bf16.vlgmr.msra.gmra.mxu0 %vm192_vm2, %v10585_v14  ;;  %10595 = vmatmul.msk.bf16.vlgmr.msra.gmra.mxu1 %vm192_vm2, %v10586_v48 }
 0x394   : > { %10596 = vmatmul.msk.bf16.vlgmr.msra.gmra.mxu2 %vm192_vm2, %v10587_v19  ;;  %10597 = vmatmul.msk.bf16.vlgmr.msra.gmra.mxu3 %vm192_vm2, %v10588_v25  ;;  %v6186_v19 = vunpack.c.l.b16 %v10625_v63 }
 0x395   : > { %5985 = vmatpush.bf16.msra.mxu2 %v5944_v31  ;;  %6001 = vmatpush.bf16.msra.mxu3 %v5944_v31 }
 0x396   : > { %5953 = vmatpush.bf16.msra.mxu0 %v5944_v31  ;;  %5969 = vmatpush.bf16.msra.mxu1 %v5944_v31 }
 0x397   : > { %v5028_v47 = vpop.f32.mrf.mxu2  ;;  %v5056_v21 = vpop.f32.mrf.mxu3 }
 0x398   : > { %v5174_v12 = vadd.f32 %v5028_v47, %v4921_v54  ;;  %v5175_v29 = vadd.f32 %v5056_v21, %v4922_v8  ;;  %v4974_v46 = vpop.f32.mrf.mxu0  ;;  %v5002_v5 = vpop.f32.mrf.mxu1  ;;  %v10635_v8 = vld [vmem:[%s14302_s1 + $0x3c] sm:$0x3]  ;;  %v10608_v21 = vld [vmem:[%s11056_s21 + $0x98] sm:$0xf] }
 0x399   : > { %v6113_v62 = vand.u32 %v10635_v8, %v11044_v3 }
 0x39f   : > { %v5030_v9 = vpop.f32.mrf.mxu2  ;;  %v5058_v53 = vpop.f32.mrf.mxu3 }
 0x3a0   : > { %v5084_v44 = vpop.f32.mrf.mxu0  ;;  %v5112_v39 = vpop.f32.mrf.mxu1 }
 0x3a1   : > { %v12863_v38 = vadd.f32 %v5084_v44, %v4923_v45  ;;  %v12865_v23 = vadd.f32 %v5112_v39, %v4924_v2  ;;  %v12903_v45 = vld [vmem:[%s11056_s21 + $0x1c] sm:$0x1]  ;;  %v10623_v2 = vld [vmem:[%s11056_s21 + $0x20] sm:$0xf] }
 0x3a2   : > { %v6131_v55 = vunpack.c.l.b16 %v12903_v45  ;;  %v6158_v43 = vunpack.c.l.b16 %v10623_v2  ;;  %v10660_v2 = vld [vmem:[%s14302_s1 + $0x3e] sm:$0x3] }
 0x3a3   : > { %10598 = vmatmul.msk.bf16.vlgmr.msrb.gmra.mxu0 %vm192_vm2, %v10589_v36  ;;  %10599 = vmatmul.msk.bf16.vlgmr.msrb.gmra.mxu1 %vm192_vm2, %v10590_v30 }
 0x3a4   : > { %10600 = vmatmul.msk.bf16.vlgmr.msrb.gmra.mxu2 %vm192_vm2, %v10591_v18  ;;  %10601 = vmatmul.msk.bf16.vlgmr.msrb.gmra.mxu3 %vm192_vm2, %v10592_v7  ;;  %v6132_v46 = vpack.c.b16 %v6131_v55, %v6130_v11  ;;  %v6160_v5 = vpack.c.b16 %v6159_v22, %v6158_v43 }
 0x3a5   : > { %6049 = vmatpush.bf16.msrb.mxu2 %v5944_v31  ;;  %6065 = vmatpush.bf16.msrb.mxu3 %v5944_v31 }
 0x3a6   : > { %6017 = vmatpush.bf16.msrb.mxu0 %v5944_v31  ;;  %6033 = vmatpush.bf16.msrb.mxu1 %v5944_v31  ;;  %v6136_v36 = vshll.u32 %v6132_v46, 16  ;;  %v6164_v30 = vshll.u32 %v6160_v5, 16 }
 0x3a7   : > { %v5140_v17 = vpop.f32.mrf.mxu2  ;;  %v5168_v0 = vpop.f32.mrf.mxu3 }
 0x3a8   : > { %v12873_v51 = vadd.f32 %v5140_v17, %v4925_v27  ;;  %v12875_v24 = vadd.f32 %v5168_v0, %v4926_v61  ;;  %v5086_v59 = vpop.f32.mrf.mxu0  ;;  %v5114_v54 = vpop.f32.mrf.mxu1  ;;  %v12911_v27 = vld [vmem:[%s11056_s21 + $0x2c] sm:$0x1]  ;;  %v6099_v61 = vunpack.c.l.b16 %v10619_v1  ;;  %v10627_v0 = vld [vmem:[%s11056_s21 + $0x30] sm:$0xf] }
 0x3a9   : > { %v6187_v25 = vunpack.c.l.b16 %v12911_v27  ;;  %v12947_v59 = vld [vmem:[%s11056_s21 + $0x34] sm:$0x1]  ;;  %v12961_v1 = vld [vmem:[%s11056_s21 + $0x4c] sm:$0x1] }
 0x3ab   : > { %v6188_v9 = vpack.c.b16 %v6187_v25, %v6186_v19 }
 0x3ad   : > { %v6192_v17 = vshll.u32 %v6188_v9, 16 }
 0x3af   : > { %v5142_v58 = vpop.f32.mrf.mxu2  ;;  %v5170_v15 = vpop.f32.mrf.mxu3 }
 0x3b0   : > { %v5209_v26 = vpop.f32.mrf.mxu0  ;;  %v5229_v52 = vpop.f32.mrf.mxu1  ;;  %v10629_v58 = vld [vmem:[%s11056_s21 + $0x38] sm:$0xf]  ;;  %v12951_v15 = vld [vmem:[%s11056_s21 + $0x3c] sm:$0x1] }
 0x3b1   : > { %v12882_v13 = vadd.f32 %v5209_v26, %v5172_v33  ;;  %v12884_v56 = vadd.f32 %v5229_v52, %v5173_v28  ;;  %v10606_v33 = vld [vmem:[%s11056_s21 + $0x88] sm:$0xf]  ;;  %v10607_v28 = vld [vmem:[%s11056_s21 + $0x90] sm:$0xf]  ;;  %v6138_v26 = vrot.slane %v6136_v36, 1  ;;  %v6162_v52 = vshrl.u32 %v6160_v5, 16 }
 0x3b2   : > { %v12979_v5 = vand.u32 %v10660_v2, %v11044_v3 }
 0x3b3   : > { %10611 = vmatmul.msk.bf16.vlgmr.msra.gmra.mxu0 %vm192_vm2, %v10602_v41  ;;  %10612 = vmatmul.msk.bf16.vlgmr.msra.gmra.mxu1 %vm192_vm2, %v10603_v35  ;;  %v6190_v41 = vshrl.u32 %v6188_v9, 16  ;;  %v6194_v35 = vrot.slane %v6192_v17, 1 }
 0x3b4   : > { %10613 = vmatmul.msk.bf16.vlgmr.msra.gmra.mxu2 %vm192_vm2, %v10604_v10  ;;  %10614 = vmatmul.msk.bf16.vlgmr.msra.gmra.mxu3 %vm192_vm2, %v10605_v60  ;;  %v6214_v10 = vunpack.c.l.b16 %v10627_v0  ;;  %v6215_v60 = vunpack.c.l.b16 %v12947_v59 }
 0x3b5   : > { %6178 = vmatpush.bf16.msra.mxu2 %v6113_v62  ;;  %6206 = vmatpush.bf16.msra.mxu3 %v6113_v62 }
 0x3b6   : > { %6122 = vmatpush.bf16.msra.mxu0 %v6113_v62  ;;  %6150 = vmatpush.bf16.msra.mxu1 %v6113_v62 }
 0x3b7   : > { %v5249_v49 = vpop.f32.mrf.mxu2  ;;  %v5269_v57 = vpop.f32.mrf.mxu3 }
 0x3b8   : > { %v12893_v50 = vadd.f32 %v5249_v49, %v5174_v12  ;;  %v12895_v16 = vadd.f32 %v5269_v57, %v5175_v29  ;;  %v5211_v34 = vpop.f32.mrf.mxu0  ;;  %v5231_v42 = vpop.f32.mrf.mxu1  ;;  %v10609_v12 = vld [vmem:[%s11056_s21 + $0xa0] sm:$0xf]  ;;  %v6101_v29 = vpack.c.b16 %v6100_v40, %v6099_v61  ;;  %v12956_v49 = vld [vmem:[%s11056_s21 + $0x44] sm:$0x1]  ;;  %v6242_v57 = vunpack.c.l.b16 %v10629_v58 }
 0x3b9   : > { %v6243_v34 = vunpack.c.l.b16 %v12951_v15  ;;  %v10633_v42 = vld [vmem:[%s11056_s21 + $0x48] sm:$0xf]  ;;  %v6271_v43 = vunpack.c.l.b16 %v12956_v49 }
 0x3ba   : > { %v6105_v53 = vshll.u32 %v6101_v29, 16  ;;  %v6103_v54 = vshrl.u32 %v6101_v29, 16  ;;  %v6298_v19 = vunpack.c.l.b16 %v10633_v42 }
 0x3bc   : > { %v6107_v8 = vrot.slane %v6105_v53, 1 }
 0x3be   : > { %v6108_v37 = vor.u32 %v6107_v8, %v6103_v54 }
 0x3bf   : > { %v5251_v32 = vpop.f32.mrf.mxu2  ;;  %v5271_v6 = vpop.f32.mrf.mxu3 }
 0x3c0   : > { %v5289_v14 = vpop.f32.mrf.mxu0  ;;  %v5309_v48 = vpop.f32.mrf.mxu1 }
 0x3c1   : > { %v12920_v31 = vadd.f32 %v5289_v14, %v12863_v38  ;;  %v12923_v47 = vadd.f32 %v5309_v48, %v12865_v23 }
 0x3c3   : > { %10615 = vmatmul.msk.bf16.vlgmr.msrb.gmra.mxu0 %vm192_vm2, %v10606_v33  ;;  %10616 = vmatmul.msk.bf16.vlgmr.msrb.gmra.mxu1 %vm192_vm2, %v10607_v28  ;;  %v6195_v33 = vor.u32 %v6194_v35, %v6190_v41  ;;  %v6216_v28 = vpack.c.b16 %v6215_v60, %v6214_v10  ;;  %v13005_v41 = vld [vmem:[%s11056_s21 + $0x74] sm:$0x1]  ;;  %v10648_v35 = vld [vmem:[%s11056_s21 + $0x78] sm:$0xf]  ;;  %v13009_v10 = vld [vmem:[%s11056_s21 + $0x7c] sm:$0x1] }
 0x3c4   : > { %10617 = vmatmul.msk.bf16.vlgmr.msrb.gmra.mxu2 %vm192_vm2, %v10608_v21  ;;  %10618 = vmatmul.msk.bf16.vlgmr.msrb.gmra.mxu3 %vm192_vm2, %v10609_v12  ;;  %v6299_v21 = vunpack.c.l.b16 %v12961_v1  ;;  %v10686_v1 = vld [vmem:[%s11056_s21 + $0x68] sm:$0xe] }
 0x3c5   : > { %6290 = vmatpush.bf16.msrb.mxu2 %v6113_v62  ;;  %6318 = vmatpush.bf16.msrb.mxu3 %v6113_v62  ;;  %v6218_v36 = vshrl.u32 %v6216_v28, 16 }
 0x3c6   : > { %6234 = vmatpush.bf16.msrb.mxu0 %v6113_v62  ;;  %6262 = vmatpush.bf16.msrb.mxu1 %v6113_v62  ;;  %v10631_v62 = vld [vmem:[%s11056_s21 + $0x40] sm:$0xf] }
 0x3c7   : > { %v5329_v44 = vpop.f32.mrf.mxu2  ;;  %v5349_v39 = vpop.f32.mrf.mxu3  ;;  %v6270_v11 = vunpack.c.l.b16 %v10631_v62  ;;  %v13013_v62 = vld [vmem:[%s11056_s21 + $0x84] sm:$0x1] }
 0x3c8   : > { %v12940_v38 = vadd.f32 %v5329_v44, %v12873_v51  ;;  %v12943_v23 = vadd.f32 %v5349_v39, %v12875_v24  ;;  %v5291_v18 = vpop.f32.mrf.mxu0  ;;  %v5311_v7 = vpop.f32.mrf.mxu1  ;;  %v6134_v51 = vshrl.u32 %v6132_v46, 16  ;;  %v6166_v24 = vrot.slane %v6164_v30, 1 }
 0x3c9   : > { %v6244_v46 = vpack.c.b16 %v6243_v34, %v6242_v57  ;;  %v6272_v9 = vpack.c.b16 %v6271_v43, %v6270_v11  ;;  %v6412_v11 = vunpack.c.l.b16 %v13009_v10 }
 0x3ca   : > { %v6139_v32 = vor.u32 %v6138_v26, %v6134_v51  ;;  %v6167_v6 = vor.u32 %v6166_v24, %v6162_v52  ;;  %v10644_v26 = vld [vmem:[%s11056_s21 + $0x68] sm:$0xf]  ;;  %v13001_v52 = vld [vmem:[%s11056_s21 + $0x6c] sm:$0x1]  ;;  %v10646_v24 = vld [vmem:[%s11056_s21 + $0x70] sm:$0xf] }
 0x3cb   : > { %v6248_v53 = vshll.u32 %v6244_v46, 16  ;;  %v6276_v30 = vshll.u32 %v6272_v9, 16  ;;  %v6246_v58 = vshrl.u32 %v6244_v46, 16  ;;  %v6352_v2 = vunpack.c.l.b16 %v10644_v26 }
 0x3cd   : > { %v6250_v51 = vrot.slane %v6248_v53, 1  ;;  %v6278_v57 = vrot.slane %v6276_v30, 1 }
 0x3cf   : > { %v5331_v63 = vpop.f32.mrf.mxu2  ;;  %v5351_v61 = vpop.f32.mrf.mxu3  ;;  %v6251_v46 = vor.u32 %v6250_v51, %v6246_v58 }
 0x3d0   : > { %v5390_v14 = vpop.f32.mrf.mxu0  ;;  %v5410_v48 = vpop.f32.mrf.mxu1  ;;  %v6353_v63 = vunpack.c.l.b16 %v13001_v52  ;;  %v6383_v61 = vunpack.c.l.b16 %v10646_v24 }
 0x3d1   : > { %v12971_v12 = vadd.f32 %v5390_v14, %v12882_v13  ;;  %v12974_v29 = vadd.f32 %v5410_v48, %v12884_v56  ;;  %v6220_v13 = vshll.u32 %v6216_v28, 16  ;;  %v6300_v56 = vpack.c.b16 %v6299_v21, %v6298_v19 }
 0x3d2   : > { %v6440_v48 = vunpack.c.l.b16 %v13013_v62  ;;  %v6354_v30 = vpack.c.b16 %v6353_v63, %v6352_v2 }
 0x3d3   : > { %10636 = vmatmul.msk.bf16.vlgmr.msra.gmra.mxu0 %vm192_vm2, %v6108_v37  ;;  %10637 = vmatmul.msk.bf16.vlgmr.msra.gmra.mxu1 %vm192_vm2, %v6139_v32  ;;  %v6222_v54 = vrot.slane %v6220_v13, 1  ;;  %v6304_v8 = vshll.u32 %v6300_v56, 16  ;;  %v6302_v42 = vshrl.u32 %v6300_v56, 16  ;;  %v6384_v32 = vunpack.c.l.b16 %v13005_v41 }
 0x3d4   : > { %10638 = vmatmul.msk.bf16.vlgmr.msra.gmra.mxu2 %vm192_vm2, %v6167_v6  ;;  %10639 = vmatmul.msk.bf16.vlgmr.msra.gmra.mxu3 %vm192_vm2, %v6195_v33  ;;  %v6411_v6 = vunpack.c.l.b16 %v10648_v35 }
 0x3d5   : > { %6431 = vmatpush.bf16.msra.mxu2 %v12979_v5  ;;  %6459 = vmatpush.bf16.msra.mxu3 %v12979_v5  ;;  %v6306_v37 = vrot.slane %v6304_v8, 1  ;;  %v6223_v19 = vor.u32 %v6222_v54, %v6218_v36 }
 0x3d6   : > { %6375 = vmatpush.bf16.msra.mxu0 %v12979_v5  ;;  %6403 = vmatpush.bf16.msra.mxu1 %v12979_v5  ;;  %v6413_v36 = vpack.c.b16 %v6412_v11, %v6411_v6 }
 0x3d7   : > { %v5430_v44 = vpop.f32.mrf.mxu2  ;;  %v5450_v39 = vpop.f32.mrf.mxu3  ;;  %v6307_v53 = vor.u32 %v6306_v37, %v6302_v42 }
 0x3d8   : > { %v12994_v18 = vadd.f32 %v5430_v44, %v12893_v50  ;;  %v12997_v7 = vadd.f32 %v5450_v39, %v12895_v16  ;;  %v5392_v17 = vpop.f32.mrf.mxu0  ;;  %v5412_v0 = vpop.f32.mrf.mxu1  ;;  %v10650_v50 = vld [vmem:[%s11056_s21 + $0x80] sm:$0xf]  ;;  %v6274_v16 = vshrl.u32 %v6272_v9, 16  ;;  %v6417_v54 = vshll.u32 %v6413_v36, 16 }
 0x3d9   : > { %v6439_v14 = vunpack.c.l.b16 %v10650_v50  ;;  %v6385_v17 = vpack.c.b16 %v6384_v32, %v6383_v61  ;;  %v6415_v42 = vshrl.u32 %v6413_v36, 16 }
 0x3da   : > { %v6279_v56 = vor.u32 %v6278_v57, %v6274_v16  ;;  %v6356_v16 = vshrl.u32 %v6354_v30, 16  ;;  %v6419_v2 = vrot.slane %v6417_v54, 1 }
 0x3db   : > { %v6441_v0 = vpack.c.b16 %v6440_v48, %v6439_v14  ;;  %v10652_v14 = vld [vmem:[%s11056_s21 + $0x88] sm:$0xf] }
 0x3dd   : > { %v6445_v8 = vshll.u32 %v6441_v0, 16  ;;  %v6443_v61 = vshrl.u32 %v6441_v0, 16 }
 0x3df   : > { %v5432_v33 = vpop.f32.mrf.mxu2  ;;  %v5452_v28 = vpop.f32.mrf.mxu3  ;;  %v6447_v6 = vrot.slane %v6445_v8, 1 }
 0x3e0   : > { %v5470_v9 = vpop.f32.mrf.mxu0  ;;  %v5490_v13 = vpop.f32.mrf.mxu1  ;;  %v10654_v33 = vld [vmem:[%s11056_s21 + $0x90] sm:$0xf]  ;;  %v13053_v28 = vld [vmem:[%s11056_s21 + $0x94] sm:$0x1] }
 0x3e1   : > { %v13020_v44 = vadd.f32 %v5470_v9, %v12920_v31  ;;  %v13023_v39 = vadd.f32 %v5490_v13, %v12923_v47  ;;  %v6358_v31 = vshll.u32 %v6354_v30, 16  ;;  %v6389_v47 = vshll.u32 %v6385_v17, 16  ;;  %v13061_v9 = vld [vmem:[%s11056_s21 + $0xa4] sm:$0x1] }
 0x3e2   : > { %v6448_v30 = vor.u32 %v6447_v6, %v6443_v61  ;;  %v6495_v54 = vunpack.c.l.b16 %v10654_v33  ;;  %v6496_v8 = vunpack.c.l.b16 %v13053_v28 }
 0x3e3   : > { %10640 = vmatmul.msk.bf16.vlgmr.msrb.gmra.mxu0 %vm192_vm2, %v6223_v19  ;;  %10641 = vmatmul.msk.bf16.vlgmr.msrb.gmra.mxu1 %vm192_vm2, %v6251_v46  ;;  %v6360_v57 = vrot.slane %v6358_v31, 1  ;;  %v6391_v37 = vrot.slane %v6389_v47, 1  ;;  %v13057_v19 = vld [vmem:[%s11056_s21 + $0x9c] sm:$0x1]  ;;  %v10658_v46 = vld [vmem:[%s11056_s21 + $0xa0] sm:$0xf]  ;;  %v6467_v31 = vunpack.c.l.b16 %v10652_v14 }
 0x3e4   : > { %10642 = vmatmul.msk.bf16.vlgmr.msrb.gmra.mxu2 %vm192_vm2, %v6279_v56  ;;  %10643 = vmatmul.msk.bf16.vlgmr.msrb.gmra.mxu3 %vm192_vm2, %v6307_v53  ;;  %v6420_v53 = vor.u32 %v6419_v2, %v6415_v42  ;;  %v6497_v61 = vpack.c.b16 %v6496_v8, %v6495_v54 }
 0x3e5   : > { %6543 = vmatpush.bf16.msrb.mxu2 %v12979_v5  ;;  %6571 = vmatpush.bf16.msrb.mxu3 %v12979_v5  ;;  %v6361_v13 = vor.u32 %v6360_v57, %v6356_v16  ;;  %v6551_v16 = vunpack.c.l.b16 %v10658_v46  ;;  %v14311_v57 = vunpack.c.l.b16 %v13061_v9 }
 0x3e6   : > { %6487 = vmatpush.bf16.msrb.mxu0 %v12979_v5  ;;  %6515 = vmatpush.bf16.msrb.mxu1 %v12979_v5  ;;  %v6387_v5 = vshrl.u32 %v6385_v17, 16  ;;  %v10677_v17 = vld [vmem:[%s14302_s1 + $0x40] sm:$0x3] }
 0x3e7   : > { %v5510_v58 = vpop.f32.mrf.mxu2  ;;  %v5530_v51 = vpop.f32.mrf.mxu3 }
 0x3e8   : > { %v13042_v26 = vadd.f32 %v5510_v58, %v12940_v38  ;;  %v13045_v24 = vadd.f32 %v5530_v51, %v12943_v23  ;;  %v5472_v35 = vpop.f32.mrf.mxu0  ;;  %v5492_v50 = vpop.f32.mrf.mxu1  ;;  %v13049_v38 = vld [vmem:[%s11056_s21 + $0x8c] sm:$0x1]  ;;  %v10656_v23 = vld [vmem:[%s11056_s21 + $0x98] sm:$0xf]  ;;  %v6392_v56 = vor.u32 %v6391_v37, %v6387_v5  ;;  %v6603_v37 = vand.u32 %v10677_v17, %v11044_v3 }
 0x3e9   : > { %v6468_v47 = vunpack.c.l.b16 %v13049_v38  ;;  %v6523_v35 = vunpack.c.l.b16 %v10656_v23  ;;  %v14312_v50 = vunpack.c.l.b16 %v13057_v19  ;;  %v6501_v23 = vshll.u32 %v6497_v61, 16 }
 0x3eb   : > { %v6469_v2 = vpack.c.b16 %v6468_v47, %v6467_v31  ;;  %v6499_v31 = vshrl.u32 %v6497_v61, 16  ;;  %v6503_v54 = vrot.slane %v6501_v23, 1 }
 0x3ed   : > { %v6473_v33 = vshll.u32 %v6469_v2, 16 }
 0x3ef   : > { %v5512_v36 = vpop.f32.mrf.mxu2  ;;  %v5532_v0 = vpop.f32.mrf.mxu3 }
 0x3f0   : > { %v5578_v58 = vpop.f32.mrf.mxu0  ;;  %v5605_v51 = vpop.f32.mrf.mxu1  ;;  %v6471_v36 = vshrl.u32 %v6469_v2, 16  ;;  %v6475_v0 = vrot.slane %v6473_v33, 1  ;;  %v13115_v33 = vld [vmem:[%s11056_s21 + $0x28] sm:$0xe] }
 0x3f1   : > { %v13071_v5 = vadd.f32 %v5578_v58, %v12971_v12  ;;  %v13074_v42 = vadd.f32 %v5605_v51, %v12974_v29  ;;  %v6525_v12 = vpack.c.b16 %v14312_v50, %v6523_v35  ;;  %v6553_v29 = vpack.c.b16 %v14311_v57, %v6551_v16 }
 0x3f3   : > { %10661 = vmatmul.msk.bf16.vlgmr.msra.gmra.mxu0 %vm192_vm2, %v6361_v13  ;;  %10662 = vmatmul.msk.bf16.vlgmr.msra.gmra.mxu1 %vm192_vm2, %v6392_v56  ;;  %v6557_v17 = vshll.u32 %v6553_v29, 16  ;;  %v6527_v58 = vshrl.u32 %v6525_v12, 16  ;;  %v6555_v35 = vshrl.u32 %v6553_v29, 16  ;;  %v13112_v29 = vld [vmem:[%s11056_s21 + $0x20] sm:$0xe] }
 0x3f4   : > { %10663 = vmatmul.msk.bf16.vlgmr.msra.gmra.mxu2 %vm192_vm2, %v6420_v53  ;;  %10664 = vmatmul.msk.bf16.vlgmr.msra.gmra.mxu3 %vm192_vm2, %v6448_v30  ;;  %v6529_v30 = vshll.u32 %v6525_v12, 16  ;;  %v13109_v12 = vld [vmem:[%s11056_s21 + $0x18] sm:$0xe] }
 0x3f5   : > { %6652 = vmatpush.bf16.msra.mxu2 %v6603_v37  ;;  %6672 = vmatpush.bf16.msra.mxu3 %v6603_v37  ;;  %v6559_v16 = vrot.slane %v6557_v17, 1 }
 0x3f6   : > { %6612 = vmatpush.bf16.msra.mxu0 %v6603_v37  ;;  %6632 = vmatpush.bf16.msra.mxu1 %v6603_v37  ;;  %v6531_v51 = vrot.slane %v6529_v30, 1  ;;  %v6619_v30 = vunpack.c.l.b16 %v13109_v12 }
 0x3f7   : > { %v5632_v6 = vpop.f32.mrf.mxu2  ;;  %v5659_v14 = vpop.f32.mrf.mxu3  ;;  %v6560_v50 = vor.u32 %v6559_v16, %v6555_v35 }
 0x3f8   : > { %v13090_v46 = vadd.f32 %v5632_v6, %v12994_v18  ;;  %v13093_v13 = vadd.f32 %v5659_v14, %v12997_v7  ;;  %v5580_v56 = vpop.f32.mrf.mxu0  ;;  %v5607_v53 = vpop.f32.mrf.mxu1  ;;  %v6476_v7 = vor.u32 %v6475_v0, %v6471_v36  ;;  %v6504_v6 = vor.u32 %v6503_v54, %v6499_v31 }
 0x3f9   : > { %v6532_v53 = vor.u32 %v6531_v51, %v6527_v58  ;;  %v6639_v31 = vunpack.c.l.b16 %v13112_v29  ;;  %v6659_v54 = vunpack.c.l.b16 %v13115_v33 }
 0x3fb   : > { %v6660_v58 = vpack.c.b16 %v6187_v25, %v6659_v54  ;;  %v6784_v25 = vand.u32 %v10694_v4, %v11044_v3 }
 0x3fd   : > { %v6661_v16 = vrot.slane %v6660_v58, 1 }
 0x3ff   : > { %v5634_v57 = vpop.f32.mrf.mxu2  ;;  %v5661_v18 = vpop.f32.mrf.mxu3 }
 0x400   : > { %v5686_v14 = vpop.f32.mrf.mxu0  ;;  %v5713_v56 = vpop.f32.mrf.mxu1  ;;  %v13106_v57 = vld [vmem:[%s11056_s21 + $0x10] sm:$0xe] }
 0x401   : > { %v13096_v2 = vadd.f32 %v5686_v14, %v13020_v44  ;;  %v13099_v61 = vadd.f32 %v5713_v56, %v13023_v39  ;;  %v6596_v23 = vunpack.c.l.b16 %v13106_v57  ;;  %v13164_v14 = vld [vmem:[%s11056_s21 + $0x40] sm:$0xe] }
 0x403   : > { %10665 = vmatmul.msk.bf16.vlgmr.msrb.gmra.mxu0 %vm192_vm2, %v6476_v7  ;;  %10666 = vmatmul.msk.bf16.vlgmr.msrb.gmra.mxu1 %vm192_vm2, %v6504_v6  ;;  %v13158_v7 = vld [vmem:[%s11056_s21 + $0x30] sm:$0xe]  ;;  %v13161_v6 = vld [vmem:[%s11056_s21 + $0x38] sm:$0xe] }
 0x404   : > { %10667 = vmatmul.msk.bf16.vlgmr.msrb.gmra.mxu2 %vm192_vm2, %v6532_v53  ;;  %10668 = vmatmul.msk.bf16.vlgmr.msrb.gmra.mxu3 %vm192_vm2, %v6560_v50  ;;  %v6679_v53 = vunpack.c.l.b16 %v13158_v7 }
 0x405   : > { %6732 = vmatpush.bf16.msrb.mxu2 %v6603_v37  ;;  %6752 = vmatpush.bf16.msrb.mxu3 %v6603_v37 }
 0x406   : > { %6692 = vmatpush.bf16.msrb.mxu0 %v6603_v37  ;;  %6712 = vmatpush.bf16.msrb.mxu1 %v6603_v37  ;;  %v6597_v37 = vpack.c.b16 %v6100_v40, %v6596_v23  ;;  %v6680_v58 = vpack.c.b16 %v6215_v60, %v6679_v53 }
 0x407   : > { %v5740_v44 = vpop.f32.mrf.mxu2  ;;  %v5767_v39 = vpop.f32.mrf.mxu3 }
 0x408   : > { %v13120_v50 = vadd.f32 %v5740_v44, %v13042_v26  ;;  %v13123_v17 = vadd.f32 %v5767_v39, %v13045_v24  ;;  %v5688_v36 = vpop.f32.mrf.mxu0  ;;  %v5715_v0 = vpop.f32.mrf.mxu1  ;;  %v6620_v26 = vpack.c.b16 %v6131_v55, %v6619_v30  ;;  %v6640_v24 = vpack.c.b16 %v6159_v22, %v6639_v31 }
 0x409   : > { %v6598_v45 = vrot.slane %v6597_v37, 1  ;;  %v6699_v44 = vunpack.c.l.b16 %v13161_v6  ;;  %v6681_v60 = vrot.slane %v6680_v58, 1 }
 0x40a   : > { %v6621_v55 = vrot.slane %v6620_v26, 1  ;;  %v6641_v22 = vrot.slane %v6640_v24, 1  ;;  %v6719_v26 = vunpack.c.l.b16 %v13164_v14 }
 0x40f   : > { %v5742_v40 = vpop.f32.mrf.mxu2  ;;  %v5769_v51 = vpop.f32.mrf.mxu3 }
 0x410   : > { %v5805_v35 = vpop.f32.mrf.mxu0  ;;  %v5821_v20 = vpop.f32.mrf.mxu1 }
 0x411   : > { %v13147_v18 = vadd.f32 %v5805_v35, %v13071_v5  ;;  %v13150_v27 = vadd.f32 %v5821_v20, %v13074_v42  ;;  %v13167_v5 = vld [vmem:[%s11056_s21 + $0x48] sm:$0xe]  ;;  %v10688_v35 = vld [vmem:[%s11056_s21 + $0x78] sm:$0xe]  ;;  %v10689_v20 = vld [vmem:[%s11056_s21 + $0x80] sm:$0xe] }
 0x412   : > { %v6739_v24 = vunpack.c.l.b16 %v13167_v5  ;;  %v6820_v58 = vunpack.c.l.b16 %v10688_v35 }
 0x413   : > { %10678 = vmatmul.msk.bf16.vlgmr.msra.gmra.mxu0 %vm192_vm2, %v6598_v45  ;;  %10679 = vmatmul.msk.bf16.vlgmr.msra.gmra.mxu1 %vm192_vm2, %v6621_v55 }
 0x414   : > { %10680 = vmatmul.msk.bf16.vlgmr.msra.gmra.mxu2 %vm192_vm2, %v6641_v22  ;;  %10681 = vmatmul.msk.bf16.vlgmr.msra.gmra.mxu3 %vm192_vm2, %v6661_v16  ;;  %v6740_v4 = vpack.c.b16 %v6299_v21, %v6739_v24  ;;  %v10687_v21 = vld [vmem:[%s11056_s21 + $0x70] sm:$0xe] }
 0x415   : > { %6833 = vmatpush.bf16.msra.mxu2 %v6784_v25  ;;  %6853 = vmatpush.bf16.msra.mxu3 %v6784_v25  ;;  %v6800_v16 = vunpack.c.l.b16 %v10687_v21 }
 0x416   : > { %6793 = vmatpush.bf16.msra.mxu0 %v6784_v25  ;;  %6813 = vmatpush.bf16.msra.mxu1 %v6784_v25  ;;  %v6741_v55 = vrot.slane %v6740_v4, 1  ;;  %v6821_v4 = vpack.c.b16 %v6412_v11, %v6820_v58  ;;  %v14323_v58 = vunpack.c.l.b16 %v13057_v19 }
 0x417   : > { %v5837_v42 = vpop.f32.mrf.mxu2  ;;  %v5853_v56 = vpop.f32.mrf.mxu3 }
 0x418   : > { %v13172_v39 = vadd.f32 %v5837_v42, %v13090_v46  ;;  %v13175_v36 = vadd.f32 %v5853_v56, %v13093_v13  ;;  %v5807_v0 = vpop.f32.mrf.mxu0  ;;  %v5823_v37 = vpop.f32.mrf.mxu1  ;;  %v6700_v46 = vpack.c.b16 %v6243_v34, %v6699_v44  ;;  %v6720_v13 = vpack.c.b16 %v6271_v43, %v6719_v26 }
 0x41a   : > { %v6701_v51 = vrot.slane %v6700_v46, 1  ;;  %v6721_v45 = vrot.slane %v6720_v13, 1  ;;  %v6840_v46 = vunpack.c.l.b16 %v10689_v20 }
 0x41f   : > { %v5839_v40 = vpop.f32.mrf.mxu2  ;;  %v5855_v59 = vpop.f32.mrf.mxu3 }
 0x420   : > { %v5869_v15 = vpop.f32.mrf.mxu0  ;;  %v5885_v34 = vpop.f32.mrf.mxu1 }
 0x421   : > { %v13196_v49 = vadd.f32 %v5869_v15, %v13096_v2  ;;  %v13199_v43 = vadd.f32 %v5885_v34, %v13099_v61  ;;  %v6777_v61 = vunpack.c.l.b16 %v10686_v1  ;;  %v10691_v15 = vld [vmem:[%s11056_s21 + $0x90] sm:$0xe]  ;;  %v10692_v34 = vld [vmem:[%s11056_s21 + $0x98] sm:$0xe] }
 0x422   : > { %v6880_v1 = vunpack.c.l.b16 %v10691_v15 }
 0x423   : > { %10682 = vmatmul.msk.bf16.vlgmr.msrb.gmra.mxu0 %vm192_vm2, %v6681_v60  ;;  %10683 = vmatmul.msk.bf16.vlgmr.msrb.gmra.mxu1 %vm192_vm2, %v6701_v51  ;;  %v6778_v13 = vpack.c.b16 %v6353_v63, %v6777_v61  ;;  %v6822_v60 = vrot.slane %v6821_v4, 1  ;;  %v10690_v51 = vld [vmem:[%s11056_s21 + $0x88] sm:$0xe]  ;;  %v10706_v4 = vld [vmem:[%s11056_s21 + $0x2c] sm:$0x3] }
 0x424   : > { %10684 = vmatmul.msk.bf16.vlgmr.msrb.gmra.mxu2 %vm192_vm2, %v6721_v45  ;;  %10685 = vmatmul.msk.bf16.vlgmr.msrb.gmra.mxu3 %vm192_vm2, %v6741_v55  ;;  %v10693_v45 = vld [vmem:[%s11056_s21 + $0xa0] sm:$0xe]  ;;  %v6860_v55 = vunpack.c.l.b16 %v10690_v51 }
 0x425   : > { %6913 = vmatpush.bf16.msrb.mxu2 %v6784_v25  ;;  %6933 = vmatpush.bf16.msrb.mxu3 %v6784_v25  ;;  %v6779_v52 = vrot.slane %v6778_v13, 1  ;;  %v6920_v61 = vunpack.c.l.b16 %v10693_v45 }
 0x426   : > { %6873 = vmatpush.bf16.msrb.mxu0 %v6784_v25  ;;  %6893 = vmatpush.bf16.msrb.mxu1 %v6784_v25  ;;  %v6801_v25 = vpack.c.b16 %v6384_v32, %v6800_v16  ;;  %v6861_v16 = vpack.c.b16 %v6468_v47, %v6860_v55 }
 0x427   : > { %v5901_v2 = vpop.f32.mrf.mxu2  ;;  %v5917_v22 = vpop.f32.mrf.mxu3 }
 0x428   : > { %v13210_v42 = vadd.f32 %v5901_v2, %v13120_v50  ;;  %v13213_v56 = vadd.f32 %v5917_v22, %v13123_v17  ;;  %v5871_v0 = vpop.f32.mrf.mxu0  ;;  %v5887_v37 = vpop.f32.mrf.mxu1  ;;  %v6841_v50 = vpack.c.b16 %v6440_v48, %v6840_v46  ;;  %v10711_v17 = vld [vmem:[%s14302_s1 + $0x44] sm:$0x3]  ;;  %v6802_v63 = vrot.slane %v6801_v25, 1  ;;  %v10704_v25 = vld [vmem:[%s11056_s21 + $0x1c] sm:$0x3] }
 0x429   : > { %v6972_v48 = vand.u32 %v10711_v17, %v11044_v3  ;;  %v6900_v22 = vunpack.c.l.b16 %v10692_v34  ;;  %v6881_v0 = vpack.c.b16 %v6496_v8, %v6880_v1  ;;  %v10703_v37 = vld [vmem:[%s11056_s21 + $0x14] sm:$0x3]  ;;  %v6988_v38 = vunpack.c.l.b16 %v10704_v25 }
 0x42a   : > { %v6842_v10 = vrot.slane %v6841_v50, 1  ;;  %v6958_v50 = vunpack.c.l.b16 %v10703_v37  ;;  %v10709_v37 = vld [vmem:[%s11056_s21 + $0x44] sm:$0x3] }
 0x42b   : > { %v6901_v46 = vpack.c.b16 %v14323_v58, %v6900_v22  ;;  %v10710_v58 = vld [vmem:[%s11056_s21 + $0x4c] sm:$0x3] }
 0x42d   : > { %v6902_v8 = vrot.slane %v6901_v46, 1 }
 0x42f   : > { %v5903_v40 = vpop.f32.mrf.mxu2  ;;  %v5919_v59 = vpop.f32.mrf.mxu3 }
 0x430   : > { %v5955_v41 = vpop.f32.mrf.mxu0  ;;  %v5971_v32 = vpop.f32.mrf.mxu1  ;;  %v6862_v59 = vrot.slane %v6861_v16, 1 }
 0x431   : > { %v13227_v11 = vadd.f32 %v5955_v41, %v13147_v18  ;;  %v13230_v62 = vadd.f32 %v5971_v32, %v13150_v27  ;;  %v7042_v32 = vunpack.c.l.b16 %v10706_v4 }
 0x433   : > { %10695 = vmatmul.msk.bf16.vlgmr.msra.gmra.mxu0 %vm192_vm2, %v6779_v52  ;;  %10696 = vmatmul.msk.bf16.vlgmr.msra.gmra.mxu1 %vm192_vm2, %v6802_v63  ;;  %v6882_v52 = vrot.slane %v6881_v0, 1 }
 0x434   : > { %10697 = vmatmul.msk.bf16.vlgmr.msra.gmra.mxu2 %vm192_vm2, %v6822_v60  ;;  %10698 = vmatmul.msk.bf16.vlgmr.msra.gmra.mxu3 %vm192_vm2, %v6842_v10  ;;  %v6959_v60 = vpack.c.b16 %v6958_v50, %v6596_v23  ;;  %v6989_v10 = vpack.c.b16 %v6988_v38, %v6619_v30  ;;  %v7123_v50 = vunpack.c.l.b16 %v10709_v37  ;;  %v7150_v38 = vunpack.c.l.b16 %v10710_v58 }
 0x435   : > { %7035 = vmatpush.bf16.msra.mxu2 %v6972_v48  ;;  %7062 = vmatpush.bf16.msra.mxu3 %v6972_v48 }
 0x436   : > { %6981 = vmatpush.bf16.msra.mxu0 %v6972_v48  ;;  %7008 = vmatpush.bf16.msra.mxu1 %v6972_v48  ;;  %v6961_v57 = vshrl.u32 %v6959_v60, 16  ;;  %v6964_v23 = vshll.u32 %v6959_v60, 16  ;;  %v6991_v12 = vshrl.u32 %v6989_v10, 16  ;;  %v6994_v30 = vshll.u32 %v6989_v10, 16 }
 0x437   : > { %v5987_v18 = vpop.f32.mrf.mxu2  ;;  %v6003_v27 = vpop.f32.mrf.mxu3 }
 0x438   : > { %v13242_v21 = vadd.f32 %v5987_v18, %v13172_v39  ;;  %v13245_v35 = vadd.f32 %v6003_v27, %v13175_v36  ;;  %v5957_v20 = vpop.f32.mrf.mxu0  ;;  %v5973_v2 = vpop.f32.mrf.mxu1  ;;  %v14324_v39 = vunpack.c.l.b16 %v13061_v9  ;;  %v10705_v36 = vld [vmem:[%s11056_s21 + $0x24] sm:$0x3]  ;;  %v6963_v27 = vrot.slane %v6961_v57, 1 }
 0x439   : > { %v7015_v47 = vunpack.c.l.b16 %v10705_v36  ;;  %v6966_v55 = vrot.slane %v6964_v23, 2  ;;  %v6993_v1 = vrot.slane %v6991_v12, 1  ;;  %v6996_v20 = vrot.slane %v6994_v30, 2 }
 0x43a   : > { %v6921_v13 = vpack.c.b16 %v14324_v39, %v6920_v61  ;;  %v10707_v61 = vld [vmem:[%s11056_s21 + $0x34] sm:$0x3] }
 0x43b   : > { %v7016_v51 = vpack.c.b16 %v7015_v47, %v6639_v31  ;;  %v7069_v46 = vunpack.c.l.b16 %v10707_v61  ;;  %v6967_v25 = vor.u32 %v6966_v55, %v6963_v27  ;;  %v6997_v36 = vor.u32 %v6996_v20, %v6993_v1 }
 0x43c   : > { %v6922_v41 = vrot.slane %v6921_v13, 1 }
 0x43d   : > { %v7018_v29 = vshrl.u32 %v7016_v51, 16  ;;  %v7021_v31 = vshll.u32 %v7016_v51, 16 }
 0x43f   : > { %v5989_v17 = vpop.f32.mrf.mxu2  ;;  %v6005_v40 = vpop.f32.mrf.mxu3  ;;  %v7020_v2 = vrot.slane %v7018_v29, 1  ;;  %v7023_v22 = vrot.slane %v7021_v31, 2 }
 0x440   : > { %v6019_v63 = vpop.f32.mrf.mxu0  ;;  %v6035_v28 = vpop.f32.mrf.mxu1 }
 0x441   : > { %v13260_v19 = vadd.f32 %v6019_v63, %v13196_v49  ;;  %v13263_v9 = vadd.f32 %v6035_v28, %v13199_v43  ;;  %v7043_v49 = vpack.c.b16 %v7042_v32, %v6659_v54  ;;  %v7124_v32 = vpack.c.b16 %v7123_v50, %v6719_v26 }
 0x443   : > { %10699 = vmatmul.msk.bf16.vlgmr.msrb.gmra.mxu0 %vm192_vm2, %v6862_v59  ;;  %10700 = vmatmul.msk.bf16.vlgmr.msrb.gmra.mxu1 %vm192_vm2, %v6882_v52  ;;  %v7045_v18 = vshrl.u32 %v7043_v49, 16  ;;  %v7024_v59 = vor.u32 %v7023_v22, %v7020_v2  ;;  %v7126_v10 = vshrl.u32 %v7124_v32, 16  ;;  %v7129_v14 = vshll.u32 %v7124_v32, 16  ;;  %v10725_v32 = vld [vmem:[%s11056_s21 + $0xe8] sm:$0xf] }
 0x444   : > { %10701 = vmatmul.msk.bf16.vlgmr.msrb.gmra.mxu2 %vm192_vm2, %v6902_v8  ;;  %10702 = vmatmul.msk.bf16.vlgmr.msrb.gmra.mxu3 %vm192_vm2, %v6922_v41  ;;  %v7070_v8 = vpack.c.b16 %v7069_v46, %v6679_v53 }
 0x445   : > { %7143 = vmatpush.bf16.msrb.mxu2 %v6972_v48  ;;  %7170 = vmatpush.bf16.msrb.mxu3 %v6972_v48  ;;  %v7047_v16 = vrot.slane %v7045_v18, 1  ;;  %v7128_v30 = vrot.slane %v7126_v10, 1  ;;  %v7131_v29 = vrot.slane %v7129_v14, 2 }
 0x446   : > { %7089 = vmatpush.bf16.msrb.mxu0 %v6972_v48  ;;  %7116 = vmatpush.bf16.msrb.mxu1 %v6972_v48  ;;  %v7048_v48 = vshll.u32 %v7043_v49, 16  ;;  %v7072_v7 = vshrl.u32 %v7070_v8, 16  ;;  %v7075_v53 = vshll.u32 %v7070_v8, 16 }
 0x447   : > { %v6051_v43 = vpop.f32.mrf.mxu2  ;;  %v6067_v15 = vpop.f32.mrf.mxu3  ;;  %v7132_v1 = vor.u32 %v7131_v29, %v7128_v30  ;;  %v10739_v30 = vld [vmem:[%s11056_s21 + $0x128] sm:$0xf]  ;;  %v10740_v29 = vld [vmem:[%s11056_s21 + $0x130] sm:$0xf] }
 0x448   : > { %v13278_v34 = vadd.f32 %v6051_v43, %v13210_v42  ;;  %v13281_v33 = vadd.f32 %v6067_v15, %v13213_v56  ;;  %v6021_v54 = vpop.f32.mrf.mxu0  ;;  %v6037_v45 = vpop.f32.mrf.mxu1  ;;  %v7050_v0 = vrot.slane %v7048_v48, 2  ;;  %v10708_v42 = vld [vmem:[%s11056_s21 + $0x3c] sm:$0x3]  ;;  %v10728_v56 = vld [vmem:[%s14302_s1 + $0x46] sm:$0x3]  ;;  %v7074_v23 = vrot.slane %v7072_v7, 1 }
 0x449   : > { %v7096_v4 = vunpack.c.l.b16 %v10708_v42  ;;  %v7199_v28 = vand.u32 %v10728_v56, %v11044_v3  ;;  %v7077_v43 = vrot.slane %v7075_v53, 2  ;;  %v10745_v42 = vld [vmem:[%s14302_s1 + $0x48] sm:$0x3]  ;;  %v10726_v53 = vld [vmem:[%s11056_s21 + $0xf0] sm:$0xf] }
 0x44a   : > { %v7051_v52 = vor.u32 %v7050_v0, %v7047_v16 }
 0x44b   : > { %v7097_v41 = vpack.c.b16 %v7096_v4, %v6699_v44  ;;  %v7078_v48 = vor.u32 %v7077_v43, %v7074_v23  ;;  %v10722_v4 = vld [vmem:[%s11056_s21 + $0xd0] sm:$0xf]  ;;  %v10737_v23 = vld [vmem:[%s11056_s21 + $0x118] sm:$0xf]  ;;  %v10738_v43 = vld [vmem:[%s11056_s21 + $0x120] sm:$0xf] }
 0x44d   : > { %v7099_v6 = vshrl.u32 %v7097_v41, 16  ;;  %v7102_v44 = vshll.u32 %v7097_v41, 16  ;;  %v10724_v41 = vld [vmem:[%s11056_s21 + $0xe0] sm:$0xf] }
 0x44f   : > { %v6053_v39 = vpop.f32.mrf.mxu2  ;;  %v6069_v13 = vpop.f32.mrf.mxu3  ;;  %v7101_v15 = vrot.slane %v7099_v6, 1  ;;  %v7104_v12 = vrot.slane %v7102_v44, 2 }
 0x450   : > { %v6124_v17 = vpop.f32.mrf.mxu0  ;;  %v6152_v40 = vpop.f32.mrf.mxu1  ;;  %v10720_v39 = vld [vmem:[%s11056_s21 + $0xc0] sm:$0xf]  ;;  %v10721_v13 = vld [vmem:[%s11056_s21 + $0xc8] sm:$0xf] }
 0x451   : > { %v13291_v47 = vadd.f32 %v6124_v17, %v13227_v11  ;;  %v13294_v63 = vadd.f32 %v6152_v40, %v13230_v62  ;;  %v7151_v11 = vpack.c.b16 %v7150_v38, %v6739_v24  ;;  %v7105_v27 = vor.u32 %v7104_v12, %v7101_v15 }
 0x453   : > { %10712 = vmatmul.msk.bf16.vlgmr.msra.gmra.mxu0 %vm192_vm2, %v6967_v25  ;;  %10713 = vmatmul.msk.bf16.vlgmr.msra.gmra.mxu1 %vm192_vm2, %v6997_v36  ;;  %v7153_v5 = vshrl.u32 %v7151_v11, 16  ;;  %v7156_v24 = vshll.u32 %v7151_v11, 16 }
 0x454   : > { %10714 = vmatmul.msk.bf16.vlgmr.msra.gmra.mxu2 %vm192_vm2, %v7024_v59  ;;  %10715 = vmatmul.msk.bf16.vlgmr.msra.gmra.mxu3 %vm192_vm2, %v7051_v52 }
 0x455   : > { %7240 = vmatpush.bf16.msra.mxu2 %v7199_v28  ;;  %7256 = vmatpush.bf16.msra.mxu3 %v7199_v28  ;;  %v7155_v31 = vrot.slane %v7153_v5, 1  ;;  %v7158_v54 = vrot.slane %v7156_v24, 2 }
 0x456   : > { %7208 = vmatpush.bf16.msra.mxu0 %v7199_v28  ;;  %7224 = vmatpush.bf16.msra.mxu1 %v7199_v28 }
 0x457   : > { %v6180_v62 = vpop.f32.mrf.mxu2  ;;  %v6208_v60 = vpop.f32.mrf.mxu3 }
 0x458   : > { %v6326_v26 = vadd.f32 %v6180_v62, %v13242_v21  ;;  %v6327_v51 = vadd.f32 %v6208_v60, %v13245_v35  ;;  %v6126_v49 = vpop.f32.mrf.mxu0  ;;  %v6154_v57 = vpop.f32.mrf.mxu1  ;;  %v7159_v35 = vor.u32 %v7158_v54, %v7155_v31  ;;  %v10727_v62 = vld [vmem:[%s11056_s21 + $0xf8] sm:$0xf] }
 0x45f   : > { %v6182_v45 = vpop.f32.mrf.mxu2  ;;  %v6210_v18 = vpop.f32.mrf.mxu3 }
 0x460   : > { %v6236_v55 = vpop.f32.mrf.mxu0  ;;  %v6264_v21 = vpop.f32.mrf.mxu1 }
 0x461   : > { %v6328_v20 = vadd.f32 %v6236_v55, %v13260_v19  ;;  %v6329_v2 = vadd.f32 %v6264_v21, %v13263_v9  ;;  %v10754_v21 = vld [vmem:[%s11056_s21 + $0xc0] sm:$0xf] }
 0x463   : > { %10716 = vmatmul.msk.bf16.vlgmr.msrb.gmra.mxu0 %vm192_vm2, %v7078_v48  ;;  %10717 = vmatmul.msk.bf16.vlgmr.msrb.gmra.mxu1 %vm192_vm2, %v7105_v27 }
 0x464   : > { %10718 = vmatmul.msk.bf16.vlgmr.msrb.gmra.mxu2 %vm192_vm2, %v7132_v1  ;;  %10719 = vmatmul.msk.bf16.vlgmr.msrb.gmra.mxu3 %vm192_vm2, %v7159_v35  ;;  %v13371_v1 = vld [vmem:[%s11056_s21 + $0xc4] sm:$0x1]  ;;  %v10756_v35 = vld [vmem:[%s11056_s21 + $0xc8] sm:$0xf] }
 0x465   : > { %7304 = vmatpush.bf16.msrb.mxu2 %v7199_v28  ;;  %7320 = vmatpush.bf16.msrb.mxu3 %v7199_v28 }
 0x466   : > { %7272 = vmatpush.bf16.msrb.mxu0 %v7199_v28  ;;  %7288 = vmatpush.bf16.msrb.mxu1 %v7199_v28 }
 0x467   : > { %v6292_v22 = vpop.f32.mrf.mxu2  ;;  %v6320_v19 = vpop.f32.mrf.mxu3 }
 0x468   : > { %v6330_v9 = vadd.f32 %v6292_v22, %v13278_v34  ;;  %v6331_v61 = vadd.f32 %v6320_v19, %v13281_v33  ;;  %v6238_v16 = vpop.f32.mrf.mxu0  ;;  %v6266_v0 = vpop.f32.mrf.mxu1  ;;  %v10723_v34 = vld [vmem:[%s11056_s21 + $0xd8] sm:$0xf]  ;;  %v7349_v33 = vand.u32 %v10745_v42, %v11044_v3  ;;  %v13379_v22 = vld [vmem:[%s11056_s21 + $0xd4] sm:$0x1] }
 0x469   : > { %v10760_v19 = vld [vmem:[%s11056_s21 + $0xd8] sm:$0xf]  ;;  %v7505_v16 = vunpack.c.l.b16 %v13371_v1  ;;  %v10829_v1 = vld [vmem:[%s14302_s1 + $0x50] sm:$0x3] }
 0x46f   : > { %v6294_v37 = vpop.f32.mrf.mxu2  ;;  %v6322_v58 = vpop.f32.mrf.mxu3 }
 0x470   : > { %v6377_v46 = vpop.f32.mrf.mxu0  ;;  %v6405_v56 = vpop.f32.mrf.mxu1  ;;  %v7535_v37 = vunpack.c.l.b16 %v10756_v35 }
 0x471   : > { %v6577_v25 = vadd.f32 %v6377_v46, %v13291_v47  ;;  %v6578_v36 = vadd.f32 %v6405_v56, %v13294_v63  ;;  %v7564_v56 = vunpack.c.l.b16 %v13379_v22 }
 0x473   : > { %10729 = vmatmul.msk.bf16.vlgmr.msra.gmra.mxu0 %vm192_vm2, %v10720_v39  ;;  %10730 = vmatmul.msk.bf16.vlgmr.msra.gmra.mxu1 %vm192_vm2, %v10721_v13 }
 0x474   : > { %10731 = vmatmul.msk.bf16.vlgmr.msra.gmra.mxu2 %vm192_vm2, %v10722_v4  ;;  %10732 = vmatmul.msk.bf16.vlgmr.msra.gmra.mxu3 %vm192_vm2, %v10723_v34  ;;  %v7591_v4 = vunpack.c.l.b16 %v10760_v19 }
 0x475   : > { %7390 = vmatpush.bf16.msra.mxu2 %v7349_v33  ;;  %7406 = vmatpush.bf16.msra.mxu3 %v7349_v33 }
 0x476   : > { %7358 = vmatpush.bf16.msra.mxu0 %v7349_v33  ;;  %7374 = vmatpush.bf16.msra.mxu1 %v7349_v33 }
 0x477   : > { %v6433_v50 = vpop.f32.mrf.mxu2  ;;  %v6461_v17 = vpop.f32.mrf.mxu3 }
 0x478   : > { %v6579_v40 = vadd.f32 %v6433_v50, %v6326_v26  ;;  %v6580_v59 = vadd.f32 %v6461_v17, %v6327_v51  ;;  %v6379_v52 = vpop.f32.mrf.mxu0  ;;  %v6407_v38 = vpop.f32.mrf.mxu1  ;;  %v10770_v51 = vld [vmem:[%s14302_s1 + $0x4a] sm:$0x3] }
 0x479   : > { %v7518_v31 = vand.u32 %v10770_v51, %v11044_v3  ;;  %v10743_v17 = vld [vmem:[%s11056_s21 + $0x148] sm:$0xf] }
 0x47f   : > { %v6435_v47 = vpop.f32.mrf.mxu2  ;;  %v6463_v63 = vpop.f32.mrf.mxu3 }
 0x480   : > { %v6489_v28 = vpop.f32.mrf.mxu0  ;;  %v6517_v8 = vpop.f32.mrf.mxu1 }
 0x481   : > { %v13335_v11 = vadd.f32 %v6489_v28, %v6328_v20  ;;  %v13337_v7 = vadd.f32 %v6517_v8, %v6329_v2  ;;  %v13375_v20 = vld [vmem:[%s11056_s21 + $0xcc] sm:$0x1]  ;;  %v10758_v2 = vld [vmem:[%s11056_s21 + $0xd0] sm:$0xf] }
 0x482   : > { %v7536_v58 = vunpack.c.l.b16 %v13375_v20  ;;  %v7563_v46 = vunpack.c.l.b16 %v10758_v2  ;;  %v10795_v2 = vld [vmem:[%s14302_s1 + $0x4c] sm:$0x3] }
 0x483   : > { %10733 = vmatmul.msk.bf16.vlgmr.msrb.gmra.mxu0 %vm192_vm2, %v10724_v41  ;;  %10734 = vmatmul.msk.bf16.vlgmr.msrb.gmra.mxu1 %vm192_vm2, %v10725_v32 }
 0x484   : > { %10735 = vmatmul.msk.bf16.vlgmr.msrb.gmra.mxu2 %vm192_vm2, %v10726_v53  ;;  %10736 = vmatmul.msk.bf16.vlgmr.msrb.gmra.mxu3 %vm192_vm2, %v10727_v62  ;;  %v7537_v52 = vpack.c.b16 %v7536_v58, %v7535_v37  ;;  %v7565_v38 = vpack.c.b16 %v7564_v56, %v7563_v46 }
 0x485   : > { %7454 = vmatpush.bf16.msrb.mxu2 %v7349_v33  ;;  %7470 = vmatpush.bf16.msrb.mxu3 %v7349_v33 }
 0x486   : > { %7422 = vmatpush.bf16.msrb.mxu0 %v7349_v33  ;;  %7438 = vmatpush.bf16.msrb.mxu1 %v7349_v33  ;;  %v7541_v41 = vshll.u32 %v7537_v52, 16  ;;  %v7569_v32 = vshll.u32 %v7565_v38, 16 }
 0x487   : > { %v6545_v60 = vpop.f32.mrf.mxu2  ;;  %v6573_v6 = vpop.f32.mrf.mxu3 }
 0x488   : > { %v13345_v44 = vadd.f32 %v6545_v60, %v6330_v9  ;;  %v13347_v10 = vadd.f32 %v6573_v6, %v6331_v61  ;;  %v6491_v14 = vpop.f32.mrf.mxu0  ;;  %v6519_v26 = vpop.f32.mrf.mxu1  ;;  %v13383_v9 = vld [vmem:[%s11056_s21 + $0xdc] sm:$0x1]  ;;  %v7504_v61 = vunpack.c.l.b16 %v10754_v21  ;;  %v10762_v6 = vld [vmem:[%s11056_s21 + $0xe0] sm:$0xf] }
 0x489   : > { %v7592_v34 = vunpack.c.l.b16 %v13383_v9  ;;  %v13419_v14 = vld [vmem:[%s11056_s21 + $0xe4] sm:$0x1]  ;;  %v13433_v21 = vld [vmem:[%s11056_s21 + $0xfc] sm:$0x1] }
 0x48b   : > { %v7593_v47 = vpack.c.b16 %v7592_v34, %v7591_v4 }
 0x48d   : > { %v7597_v60 = vshll.u32 %v7593_v47, 16 }
 0x48f   : > { %v6547_v49 = vpop.f32.mrf.mxu2  ;;  %v6575_v57 = vpop.f32.mrf.mxu3 }
 0x490   : > { %v6614_v5 = vpop.f32.mrf.mxu0  ;;  %v6634_v24 = vpop.f32.mrf.mxu1  ;;  %v10764_v49 = vld [vmem:[%s11056_s21 + $0xe8] sm:$0xf]  ;;  %v13423_v57 = vld [vmem:[%s11056_s21 + $0xec] sm:$0x1] }
 0x491   : > { %v13354_v15 = vadd.f32 %v6614_v5, %v6577_v25  ;;  %v13356_v12 = vadd.f32 %v6634_v24, %v6578_v36  ;;  %v10741_v25 = vld [vmem:[%s11056_s21 + $0x138] sm:$0xf]  ;;  %v10742_v36 = vld [vmem:[%s11056_s21 + $0x140] sm:$0xf]  ;;  %v7543_v5 = vrot.slane %v7541_v41, 1  ;;  %v7567_v24 = vshrl.u32 %v7565_v38, 16 }
 0x492   : > { %v13451_v38 = vand.u32 %v10795_v2, %v11044_v3 }
 0x493   : > { %10746 = vmatmul.msk.bf16.vlgmr.msra.gmra.mxu0 %vm192_vm2, %v10737_v23  ;;  %10747 = vmatmul.msk.bf16.vlgmr.msra.gmra.mxu1 %vm192_vm2, %v10738_v43  ;;  %v7595_v23 = vshrl.u32 %v7593_v47, 16  ;;  %v7599_v43 = vrot.slane %v7597_v60, 1 }
 0x494   : > { %10748 = vmatmul.msk.bf16.vlgmr.msra.gmra.mxu2 %vm192_vm2, %v10739_v30  ;;  %10749 = vmatmul.msk.bf16.vlgmr.msra.gmra.mxu3 %vm192_vm2, %v10740_v29  ;;  %v7619_v30 = vunpack.c.l.b16 %v10762_v6  ;;  %v7620_v29 = vunpack.c.l.b16 %v13419_v14 }
 0x495   : > { %7583 = vmatpush.bf16.msra.mxu2 %v7518_v31  ;;  %7611 = vmatpush.bf16.msra.mxu3 %v7518_v31 }
 0x496   : > { %7527 = vmatpush.bf16.msra.mxu0 %v7518_v31  ;;  %7555 = vmatpush.bf16.msra.mxu1 %v7518_v31 }
 0x497   : > { %v6654_v54 = vpop.f32.mrf.mxu2  ;;  %v6674_v45 = vpop.f32.mrf.mxu3 }
 0x498   : > { %v13365_v18 = vadd.f32 %v6654_v54, %v6579_v40  ;;  %v13367_v48 = vadd.f32 %v6674_v45, %v6580_v59  ;;  %v6616_v27 = vpop.f32.mrf.mxu0  ;;  %v6636_v55 = vpop.f32.mrf.mxu1  ;;  %v10744_v40 = vld [vmem:[%s11056_s21 + $0x150] sm:$0xf]  ;;  %v7506_v59 = vpack.c.b16 %v7505_v16, %v7504_v61  ;;  %v13428_v54 = vld [vmem:[%s11056_s21 + $0xf4] sm:$0x1]  ;;  %v7647_v45 = vunpack.c.l.b16 %v10764_v49 }
 0x499   : > { %v7648_v27 = vunpack.c.l.b16 %v13423_v57  ;;  %v10768_v55 = vld [vmem:[%s11056_s21 + $0xf8] sm:$0xf]  ;;  %v7676_v46 = vunpack.c.l.b16 %v13428_v54 }
 0x49a   : > { %v7510_v63 = vshll.u32 %v7506_v59, 16  ;;  %v7508_v26 = vshrl.u32 %v7506_v59, 16  ;;  %v7703_v4 = vunpack.c.l.b16 %v10768_v55 }
 0x49c   : > { %v7512_v51 = vrot.slane %v7510_v63, 1 }
 0x49e   : > { %v7513_v35 = vor.u32 %v7512_v51, %v7508_v26 }
 0x49f   : > { %v6656_v0 = vpop.f32.mrf.mxu2  ;;  %v6676_v42 = vpop.f32.mrf.mxu3 }
 0x4a0   : > { %v6694_v39 = vpop.f32.mrf.mxu0  ;;  %v6714_v13 = vpop.f32.mrf.mxu1 }
 0x4a1   : > { %v13392_v33 = vadd.f32 %v6694_v39, %v13335_v11  ;;  %v13395_v50 = vadd.f32 %v6714_v13, %v13337_v7 }
 0x4a3   : > { %10750 = vmatmul.msk.bf16.vlgmr.msrb.gmra.mxu0 %vm192_vm2, %v10741_v25  ;;  %10751 = vmatmul.msk.bf16.vlgmr.msrb.gmra.mxu1 %vm192_vm2, %v10742_v36  ;;  %v7600_v25 = vor.u32 %v7599_v43, %v7595_v23  ;;  %v7621_v36 = vpack.c.b16 %v7620_v29, %v7619_v30  ;;  %v13477_v23 = vld [vmem:[%s11056_s21 + $0x124] sm:$0x1]  ;;  %v10783_v43 = vld [vmem:[%s11056_s21 + $0x128] sm:$0xf]  ;;  %v13481_v30 = vld [vmem:[%s11056_s21 + $0x12c] sm:$0x1] }
 0x4a4   : > { %10752 = vmatmul.msk.bf16.vlgmr.msrb.gmra.mxu2 %vm192_vm2, %v10743_v17  ;;  %10753 = vmatmul.msk.bf16.vlgmr.msrb.gmra.mxu3 %vm192_vm2, %v10744_v40  ;;  %v7704_v17 = vunpack.c.l.b16 %v13433_v21  ;;  %v10821_v21 = vld [vmem:[%s11056_s21 + $0x118] sm:$0xe] }
 0x4a5   : > { %7695 = vmatpush.bf16.msrb.mxu2 %v7518_v31  ;;  %7723 = vmatpush.bf16.msrb.mxu3 %v7518_v31  ;;  %v7623_v41 = vshrl.u32 %v7621_v36, 16 }
 0x4a6   : > { %7639 = vmatpush.bf16.msrb.mxu0 %v7518_v31  ;;  %7667 = vmatpush.bf16.msrb.mxu1 %v7518_v31  ;;  %v10766_v31 = vld [vmem:[%s11056_s21 + $0xf0] sm:$0xf] }
 0x4a7   : > { %v6734_v28 = vpop.f32.mrf.mxu2  ;;  %v6754_v8 = vpop.f32.mrf.mxu3  ;;  %v7675_v37 = vunpack.c.l.b16 %v10766_v31  ;;  %v13485_v31 = vld [vmem:[%s11056_s21 + $0x134] sm:$0x1] }
 0x4a8   : > { %v13412_v11 = vadd.f32 %v6734_v28, %v13345_v44  ;;  %v13415_v7 = vadd.f32 %v6754_v8, %v13347_v10  ;;  %v6696_v53 = vpop.f32.mrf.mxu0  ;;  %v6716_v62 = vpop.f32.mrf.mxu1  ;;  %v7539_v44 = vshrl.u32 %v7537_v52, 16  ;;  %v7571_v10 = vrot.slane %v7569_v32, 1 }
 0x4a9   : > { %v7649_v52 = vpack.c.b16 %v7648_v27, %v7647_v45  ;;  %v7677_v47 = vpack.c.b16 %v7676_v46, %v7675_v37  ;;  %v7817_v37 = vunpack.c.l.b16 %v13481_v30 }
 0x4aa   : > { %v7544_v0 = vor.u32 %v7543_v5, %v7539_v44  ;;  %v7572_v42 = vor.u32 %v7571_v10, %v7567_v24  ;;  %v10779_v5 = vld [vmem:[%s11056_s21 + $0x118] sm:$0xf]  ;;  %v13473_v24 = vld [vmem:[%s11056_s21 + $0x11c] sm:$0x1]  ;;  %v10781_v10 = vld [vmem:[%s11056_s21 + $0x120] sm:$0xf] }
 0x4ab   : > { %v7653_v63 = vshll.u32 %v7649_v52, 16  ;;  %v7681_v32 = vshll.u32 %v7677_v47, 16  ;;  %v7651_v49 = vshrl.u32 %v7649_v52, 16  ;;  %v7757_v2 = vunpack.c.l.b16 %v10779_v5 }
 0x4ad   : > { %v7655_v44 = vrot.slane %v7653_v63, 1  ;;  %v7683_v45 = vrot.slane %v7681_v32, 1 }
 0x4af   : > { %v6736_v19 = vpop.f32.mrf.mxu2  ;;  %v6756_v61 = vpop.f32.mrf.mxu3  ;;  %v7656_v52 = vor.u32 %v7655_v44, %v7651_v49 }
 0x4b0   : > { %v6795_v39 = vpop.f32.mrf.mxu0  ;;  %v6815_v13 = vpop.f32.mrf.mxu1  ;;  %v7758_v19 = vunpack.c.l.b16 %v13473_v24  ;;  %v7788_v61 = vunpack.c.l.b16 %v10781_v10 }
 0x4b1   : > { %v13443_v40 = vadd.f32 %v6795_v39, %v13354_v15  ;;  %v13446_v59 = vadd.f32 %v6815_v13, %v13356_v12  ;;  %v7625_v15 = vshll.u32 %v7621_v36, 16  ;;  %v7705_v12 = vpack.c.b16 %v7704_v17, %v7703_v4 }
 0x4b2   : > { %v7845_v13 = vunpack.c.l.b16 %v13485_v31  ;;  %v7759_v32 = vpack.c.b16 %v7758_v19, %v7757_v2 }
 0x4b3   : > { %10771 = vmatmul.msk.bf16.vlgmr.msra.gmra.mxu0 %vm192_vm2, %v7513_v35  ;;  %10772 = vmatmul.msk.bf16.vlgmr.msra.gmra.mxu1 %vm192_vm2, %v7544_v0  ;;  %v7627_v26 = vrot.slane %v7625_v15, 1  ;;  %v7709_v51 = vshll.u32 %v7705_v12, 16  ;;  %v7707_v55 = vshrl.u32 %v7705_v12, 16  ;;  %v7789_v0 = vunpack.c.l.b16 %v13477_v23 }
 0x4b4   : > { %10773 = vmatmul.msk.bf16.vlgmr.msra.gmra.mxu2 %vm192_vm2, %v7572_v42  ;;  %10774 = vmatmul.msk.bf16.vlgmr.msra.gmra.mxu3 %vm192_vm2, %v7600_v25  ;;  %v7816_v42 = vunpack.c.l.b16 %v10783_v43 }
 0x4b5   : > { %7836 = vmatpush.bf16.msra.mxu2 %v13451_v38  ;;  %7864 = vmatpush.bf16.msra.mxu3 %v13451_v38  ;;  %v7711_v35 = vrot.slane %v7709_v51, 1  ;;  %v7628_v4 = vor.u32 %v7627_v26, %v7623_v41 }
 0x4b6   : > { %7780 = vmatpush.bf16.msra.mxu0 %v13451_v38  ;;  %7808 = vmatpush.bf16.msra.mxu1 %v13451_v38  ;;  %v7818_v41 = vpack.c.b16 %v7817_v37, %v7816_v42 }
 0x4b7   : > { %v6835_v28 = vpop.f32.mrf.mxu2  ;;  %v6855_v8 = vpop.f32.mrf.mxu3  ;;  %v7712_v63 = vor.u32 %v7711_v35, %v7707_v55 }
 0x4b8   : > { %v13466_v53 = vadd.f32 %v6835_v28, %v13365_v18  ;;  %v13469_v62 = vadd.f32 %v6855_v8, %v13367_v48  ;;  %v6797_v60 = vpop.f32.mrf.mxu0  ;;  %v6817_v6 = vpop.f32.mrf.mxu1  ;;  %v10785_v18 = vld [vmem:[%s11056_s21 + $0x130] sm:$0xf]  ;;  %v7679_v48 = vshrl.u32 %v7677_v47, 16  ;;  %v7822_v26 = vshll.u32 %v7818_v41, 16 }
 0x4b9   : > { %v7844_v39 = vunpack.c.l.b16 %v10785_v18  ;;  %v7790_v60 = vpack.c.b16 %v7789_v0, %v7788_v61  ;;  %v7820_v55 = vshrl.u32 %v7818_v41, 16 }
 0x4ba   : > { %v7684_v12 = vor.u32 %v7683_v45, %v7679_v48  ;;  %v7761_v48 = vshrl.u32 %v7759_v32, 16  ;;  %v7824_v2 = vrot.slane %v7822_v26, 1 }
 0x4bb   : > { %v7846_v6 = vpack.c.b16 %v7845_v13, %v7844_v39  ;;  %v10787_v39 = vld [vmem:[%s11056_s21 + $0x138] sm:$0xf] }
 0x4bd   : > { %v7850_v51 = vshll.u32 %v7846_v6, 16  ;;  %v7848_v61 = vshrl.u32 %v7846_v6, 16 }
 0x4bf   : > { %v6837_v25 = vpop.f32.mrf.mxu2  ;;  %v6857_v36 = vpop.f32.mrf.mxu3  ;;  %v7852_v42 = vrot.slane %v7850_v51, 1 }
 0x4c0   : > { %v6875_v47 = vpop.f32.mrf.mxu0  ;;  %v6895_v15 = vpop.f32.mrf.mxu1  ;;  %v10789_v25 = vld [vmem:[%s11056_s21 + $0x140] sm:$0xf]  ;;  %v13525_v36 = vld [vmem:[%s11056_s21 + $0x144] sm:$0x1] }
 0x4c1   : > { %v13492_v28 = vadd.f32 %v6875_v47, %v13392_v33  ;;  %v13495_v8 = vadd.f32 %v6895_v15, %v13395_v50  ;;  %v7763_v33 = vshll.u32 %v7759_v32, 16  ;;  %v7794_v50 = vshll.u32 %v7790_v60, 16  ;;  %v13533_v47 = vld [vmem:[%s11056_s21 + $0x154] sm:$0x1] }
 0x4c2   : > { %v7853_v32 = vor.u32 %v7852_v42, %v7848_v61  ;;  %v7900_v26 = vunpack.c.l.b16 %v10789_v25  ;;  %v7901_v51 = vunpack.c.l.b16 %v13525_v36 }
 0x4c3   : > { %10775 = vmatmul.msk.bf16.vlgmr.msrb.gmra.mxu0 %vm192_vm2, %v7628_v4  ;;  %10776 = vmatmul.msk.bf16.vlgmr.msrb.gmra.mxu1 %vm192_vm2, %v7656_v52  ;;  %v7765_v45 = vrot.slane %v7763_v33, 1  ;;  %v7796_v35 = vrot.slane %v7794_v50, 1  ;;  %v13529_v4 = vld [vmem:[%s11056_s21 + $0x14c] sm:$0x1]  ;;  %v10793_v52 = vld [vmem:[%s11056_s21 + $0x150] sm:$0xf]  ;;  %v7872_v33 = vunpack.c.l.b16 %v10787_v39 }
 0x4c4   : > { %10777 = vmatmul.msk.bf16.vlgmr.msrb.gmra.mxu2 %vm192_vm2, %v7684_v12  ;;  %10778 = vmatmul.msk.bf16.vlgmr.msrb.gmra.mxu3 %vm192_vm2, %v7712_v63  ;;  %v7825_v63 = vor.u32 %v7824_v2, %v7820_v55  ;;  %v7902_v61 = vpack.c.b16 %v7901_v51, %v7900_v26 }
 0x4c5   : > { %7948 = vmatpush.bf16.msrb.mxu2 %v13451_v38  ;;  %7976 = vmatpush.bf16.msrb.mxu3 %v13451_v38  ;;  %v7766_v15 = vor.u32 %v7765_v45, %v7761_v48  ;;  %v7956_v48 = vunpack.c.l.b16 %v10793_v52  ;;  %v14313_v45 = vunpack.c.l.b16 %v13533_v47 }
 0x4c6   : > { %7892 = vmatpush.bf16.msrb.mxu0 %v13451_v38  ;;  %7920 = vmatpush.bf16.msrb.mxu1 %v13451_v38  ;;  %v7792_v38 = vshrl.u32 %v7790_v60, 16  ;;  %v10812_v60 = vld [vmem:[%s14302_s1 + $0x4e] sm:$0x3] }
 0x4c7   : > { %v6915_v49 = vpop.f32.mrf.mxu2  ;;  %v6935_v44 = vpop.f32.mrf.mxu3 }
 0x4c8   : > { %v13514_v5 = vadd.f32 %v6915_v49, %v13412_v11  ;;  %v13517_v10 = vadd.f32 %v6935_v44, %v13415_v7  ;;  %v6877_v43 = vpop.f32.mrf.mxu0  ;;  %v6897_v18 = vpop.f32.mrf.mxu1  ;;  %v13521_v11 = vld [vmem:[%s11056_s21 + $0x13c] sm:$0x1]  ;;  %v10791_v7 = vld [vmem:[%s11056_s21 + $0x148] sm:$0xf]  ;;  %v7797_v12 = vor.u32 %v7796_v35, %v7792_v38  ;;  %v8008_v35 = vand.u32 %v10812_v60, %v11044_v3 }
 0x4c9   : > { %v7873_v50 = vunpack.c.l.b16 %v13521_v11  ;;  %v7928_v43 = vunpack.c.l.b16 %v10791_v7  ;;  %v14314_v18 = vunpack.c.l.b16 %v13529_v4  ;;  %v7906_v7 = vshll.u32 %v7902_v61, 16 }
 0x4cb   : > { %v7874_v2 = vpack.c.b16 %v7873_v50, %v7872_v33  ;;  %v7904_v33 = vshrl.u32 %v7902_v61, 16  ;;  %v7908_v26 = vrot.slane %v7906_v7, 1 }
 0x4cd   : > { %v7878_v25 = vshll.u32 %v7874_v2, 16 }
 0x4cf   : > { %v6917_v41 = vpop.f32.mrf.mxu2  ;;  %v6937_v6 = vpop.f32.mrf.mxu3 }
 0x4d0   : > { %v6983_v49 = vpop.f32.mrf.mxu0  ;;  %v7010_v44 = vpop.f32.mrf.mxu1  ;;  %v7876_v41 = vshrl.u32 %v7874_v2, 16  ;;  %v7880_v6 = vrot.slane %v7878_v25, 1  ;;  %v13587_v25 = vld [vmem:[%s11056_s21 + $0xd8] sm:$0xe] }
 0x4d1   : > { %v13543_v38 = vadd.f32 %v6983_v49, %v13443_v40  ;;  %v13546_v55 = vadd.f32 %v7010_v44, %v13446_v59  ;;  %v7930_v40 = vpack.c.b16 %v14314_v18, %v7928_v43  ;;  %v7958_v59 = vpack.c.b16 %v14313_v45, %v7956_v48 }
 0x4d3   : > { %10796 = vmatmul.msk.bf16.vlgmr.msra.gmra.mxu0 %vm192_vm2, %v7766_v15  ;;  %10797 = vmatmul.msk.bf16.vlgmr.msra.gmra.mxu1 %vm192_vm2, %v7797_v12  ;;  %v7962_v60 = vshll.u32 %v7958_v59, 16  ;;  %v7932_v49 = vshrl.u32 %v7930_v40, 16  ;;  %v7960_v43 = vshrl.u32 %v7958_v59, 16  ;;  %v13584_v59 = vld [vmem:[%s11056_s21 + $0xd0] sm:$0xe] }
 0x4d4   : > { %10798 = vmatmul.msk.bf16.vlgmr.msra.gmra.mxu2 %vm192_vm2, %v7825_v63  ;;  %10799 = vmatmul.msk.bf16.vlgmr.msra.gmra.mxu3 %vm192_vm2, %v7853_v32  ;;  %v7934_v32 = vshll.u32 %v7930_v40, 16  ;;  %v13581_v40 = vld [vmem:[%s11056_s21 + $0xc8] sm:$0xe] }
 0x4d5   : > { %8057 = vmatpush.bf16.msra.mxu2 %v8008_v35  ;;  %8077 = vmatpush.bf16.msra.mxu3 %v8008_v35  ;;  %v7964_v48 = vrot.slane %v7962_v60, 1 }
 0x4d6   : > { %8017 = vmatpush.bf16.msra.mxu0 %v8008_v35  ;;  %8037 = vmatpush.bf16.msra.mxu1 %v8008_v35  ;;  %v7936_v44 = vrot.slane %v7934_v32, 1  ;;  %v8024_v32 = vunpack.c.l.b16 %v13581_v40 }
 0x4d7   : > { %v7037_v42 = vpop.f32.mrf.mxu2  ;;  %v7064_v39 = vpop.f32.mrf.mxu3  ;;  %v7965_v18 = vor.u32 %v7964_v48, %v7960_v43 }
 0x4d8   : > { %v13562_v52 = vadd.f32 %v7037_v42, %v13466_v53  ;;  %v13565_v15 = vadd.f32 %v7064_v39, %v13469_v62  ;;  %v6985_v12 = vpop.f32.mrf.mxu0  ;;  %v7012_v63 = vpop.f32.mrf.mxu1  ;;  %v7881_v62 = vor.u32 %v7880_v6, %v7876_v41  ;;  %v7909_v42 = vor.u32 %v7908_v26, %v7904_v33 }
 0x4d9   : > { %v7937_v63 = vor.u32 %v7936_v44, %v7932_v49  ;;  %v8044_v33 = vunpack.c.l.b16 %v13584_v59  ;;  %v8064_v26 = vunpack.c.l.b16 %v13587_v25 }
 0x4db   : > { %v8065_v49 = vpack.c.b16 %v7592_v34, %v8064_v26  ;;  %v8189_v34 = vand.u32 %v10829_v1, %v11044_v3 }
 0x4dd   : > { %v8066_v48 = vrot.slane %v8065_v49, 1 }
 0x4df   : > { %v7039_v45 = vpop.f32.mrf.mxu2  ;;  %v7066_v53 = vpop.f32.mrf.mxu3 }
 0x4e0   : > { %v7091_v39 = vpop.f32.mrf.mxu0  ;;  %v7118_v12 = vpop.f32.mrf.mxu1  ;;  %v13578_v45 = vld [vmem:[%s11056_s21 + $0xc0] sm:$0xe] }
 0x4e1   : > { %v13568_v2 = vadd.f32 %v7091_v39, %v13492_v28  ;;  %v13571_v61 = vadd.f32 %v7118_v12, %v13495_v8  ;;  %v8001_v7 = vunpack.c.l.b16 %v13578_v45  ;;  %v13636_v39 = vld [vmem:[%s11056_s21 + $0xf0] sm:$0xe] }
 0x4e3   : > { %10800 = vmatmul.msk.bf16.vlgmr.msrb.gmra.mxu0 %vm192_vm2, %v7881_v62  ;;  %10801 = vmatmul.msk.bf16.vlgmr.msrb.gmra.mxu1 %vm192_vm2, %v7909_v42  ;;  %v13630_v62 = vld [vmem:[%s11056_s21 + $0xe0] sm:$0xe]  ;;  %v13633_v42 = vld [vmem:[%s11056_s21 + $0xe8] sm:$0xe] }
 0x4e4   : > { %10802 = vmatmul.msk.bf16.vlgmr.msrb.gmra.mxu2 %vm192_vm2, %v7937_v63  ;;  %10803 = vmatmul.msk.bf16.vlgmr.msrb.gmra.mxu3 %vm192_vm2, %v7965_v18  ;;  %v8084_v63 = vunpack.c.l.b16 %v13630_v62 }
 0x4e5   : > { %8137 = vmatpush.bf16.msrb.mxu2 %v8008_v35  ;;  %8157 = vmatpush.bf16.msrb.mxu3 %v8008_v35 }
 0x4e6   : > { %8097 = vmatpush.bf16.msrb.mxu0 %v8008_v35  ;;  %8117 = vmatpush.bf16.msrb.mxu1 %v8008_v35  ;;  %v8002_v35 = vpack.c.b16 %v7505_v16, %v8001_v7  ;;  %v8085_v49 = vpack.c.b16 %v7620_v29, %v8084_v63 }
 0x4e7   : > { %v7145_v28 = vpop.f32.mrf.mxu2  ;;  %v7172_v8 = vpop.f32.mrf.mxu3 }
 0x4e8   : > { %v13592_v18 = vadd.f32 %v7145_v28, %v13514_v5  ;;  %v13595_v60 = vadd.f32 %v7172_v8, %v13517_v10  ;;  %v7093_v41 = vpop.f32.mrf.mxu0  ;;  %v7120_v6 = vpop.f32.mrf.mxu1  ;;  %v8025_v5 = vpack.c.b16 %v7536_v58, %v8024_v32  ;;  %v8045_v10 = vpack.c.b16 %v7564_v56, %v8044_v33 }
 0x4e9   : > { %v8003_v20 = vrot.slane %v8002_v35, 1  ;;  %v8104_v28 = vunpack.c.l.b16 %v13633_v42  ;;  %v8086_v29 = vrot.slane %v8085_v49, 1 }
 0x4ea   : > { %v8026_v58 = vrot.slane %v8025_v5, 1  ;;  %v8046_v56 = vrot.slane %v8045_v10, 1  ;;  %v8124_v5 = vunpack.c.l.b16 %v13636_v39 }
 0x4ef   : > { %v7147_v16 = vpop.f32.mrf.mxu2  ;;  %v7174_v44 = vpop.f32.mrf.mxu3 }
 0x4f0   : > { %v7210_v43 = vpop.f32.mrf.mxu0  ;;  %v7226_v22 = vpop.f32.mrf.mxu1 }
 0x4f1   : > { %v13619_v53 = vadd.f32 %v7210_v43, %v13543_v38  ;;  %v13622_v9 = vadd.f32 %v7226_v22, %v13546_v55  ;;  %v13639_v38 = vld [vmem:[%s11056_s21 + $0xf8] sm:$0xe]  ;;  %v10823_v43 = vld [vmem:[%s11056_s21 + $0x128] sm:$0xe]  ;;  %v10824_v22 = vld [vmem:[%s11056_s21 + $0x130] sm:$0xe] }
 0x4f2   : > { %v8144_v10 = vunpack.c.l.b16 %v13639_v38  ;;  %v8225_v49 = vunpack.c.l.b16 %v10823_v43 }
 0x4f3   : > { %10813 = vmatmul.msk.bf16.vlgmr.msra.gmra.mxu0 %vm192_vm2, %v8003_v20  ;;  %10814 = vmatmul.msk.bf16.vlgmr.msra.gmra.mxu1 %vm192_vm2, %v8026_v58 }
 0x4f4   : > { %10815 = vmatmul.msk.bf16.vlgmr.msra.gmra.mxu2 %vm192_vm2, %v8046_v56  ;;  %10816 = vmatmul.msk.bf16.vlgmr.msra.gmra.mxu3 %vm192_vm2, %v8066_v48  ;;  %v8145_v1 = vpack.c.b16 %v7704_v17, %v8144_v10  ;;  %v10822_v17 = vld [vmem:[%s11056_s21 + $0x120] sm:$0xe] }
 0x4f5   : > { %8238 = vmatpush.bf16.msra.mxu2 %v8189_v34  ;;  %8258 = vmatpush.bf16.msra.mxu3 %v8189_v34  ;;  %v8205_v48 = vunpack.c.l.b16 %v10822_v17 }
 0x4f6   : > { %8198 = vmatpush.bf16.msra.mxu0 %v8189_v34  ;;  %8218 = vmatpush.bf16.msra.mxu1 %v8189_v34  ;;  %v8146_v58 = vrot.slane %v8145_v1, 1  ;;  %v8226_v1 = vpack.c.b16 %v7817_v37, %v8225_v49  ;;  %v14325_v49 = vunpack.c.l.b16 %v13529_v4 }
 0x4f7   : > { %v7242_v55 = vpop.f32.mrf.mxu2  ;;  %v7258_v12 = vpop.f32.mrf.mxu3 }
 0x4f8   : > { %v13644_v8 = vadd.f32 %v7242_v55, %v13562_v52  ;;  %v13647_v41 = vadd.f32 %v7258_v12, %v13565_v15  ;;  %v7212_v6 = vpop.f32.mrf.mxu0  ;;  %v7228_v35 = vpop.f32.mrf.mxu1  ;;  %v8105_v52 = vpack.c.b16 %v7648_v27, %v8104_v28  ;;  %v8125_v15 = vpack.c.b16 %v7676_v46, %v8124_v5 }
 0x4fa   : > { %v8106_v44 = vrot.slane %v8105_v52, 1  ;;  %v8126_v20 = vrot.slane %v8125_v15, 1  ;;  %v8245_v52 = vunpack.c.l.b16 %v10824_v22 }
 0x4ff   : > { %v7244_v16 = vpop.f32.mrf.mxu2  ;;  %v7260_v14 = vpop.f32.mrf.mxu3 }
 0x500   : > { %v7274_v57 = vpop.f32.mrf.mxu0  ;;  %v7290_v27 = vpop.f32.mrf.mxu1 }
 0x501   : > { %v13668_v54 = vadd.f32 %v7274_v57, %v13568_v2  ;;  %v13671_v46 = vadd.f32 %v7290_v27, %v13571_v61  ;;  %v8182_v61 = vunpack.c.l.b16 %v10821_v21  ;;  %v10826_v57 = vld [vmem:[%s11056_s21 + $0x140] sm:$0xe]  ;;  %v10827_v27 = vld [vmem:[%s11056_s21 + $0x148] sm:$0xe] }
 0x502   : > { %v8285_v21 = vunpack.c.l.b16 %v10826_v57 }
 0x503   : > { %10817 = vmatmul.msk.bf16.vlgmr.msrb.gmra.mxu0 %vm192_vm2, %v8086_v29  ;;  %10818 = vmatmul.msk.bf16.vlgmr.msrb.gmra.mxu1 %vm192_vm2, %v8106_v44  ;;  %v8183_v15 = vpack.c.b16 %v7758_v19, %v8182_v61  ;;  %v8227_v29 = vrot.slane %v8226_v1, 1  ;;  %v10825_v44 = vld [vmem:[%s11056_s21 + $0x138] sm:$0xe]  ;;  %v10841_v1 = vld [vmem:[%s11056_s21 + $0xdc] sm:$0x3] }
 0x504   : > { %10819 = vmatmul.msk.bf16.vlgmr.msrb.gmra.mxu2 %vm192_vm2, %v8126_v20  ;;  %10820 = vmatmul.msk.bf16.vlgmr.msrb.gmra.mxu3 %vm192_vm2, %v8146_v58  ;;  %v10828_v20 = vld [vmem:[%s11056_s21 + $0x150] sm:$0xe]  ;;  %v8265_v58 = vunpack.c.l.b16 %v10825_v44 }
 0x505   : > { %8318 = vmatpush.bf16.msrb.mxu2 %v8189_v34  ;;  %8338 = vmatpush.bf16.msrb.mxu3 %v8189_v34  ;;  %v8184_v24 = vrot.slane %v8183_v15, 1  ;;  %v8325_v61 = vunpack.c.l.b16 %v10828_v20 }
 0x506   : > { %8278 = vmatpush.bf16.msrb.mxu0 %v8189_v34  ;;  %8298 = vmatpush.bf16.msrb.mxu1 %v8189_v34  ;;  %v8206_v34 = vpack.c.b16 %v7789_v0, %v8205_v48  ;;  %v8266_v48 = vpack.c.b16 %v7873_v50, %v8265_v58 }
 0x507   : > { %v7306_v2 = vpop.f32.mrf.mxu2  ;;  %v7322_v56 = vpop.f32.mrf.mxu3 }
 0x508   : > { %v13682_v55 = vadd.f32 %v7306_v2, %v13592_v18  ;;  %v13685_v12 = vadd.f32 %v7322_v56, %v13595_v60  ;;  %v7276_v6 = vpop.f32.mrf.mxu0  ;;  %v7292_v35 = vpop.f32.mrf.mxu1  ;;  %v8246_v18 = vpack.c.b16 %v7845_v13, %v8245_v52  ;;  %v10846_v60 = vld [vmem:[%s14302_s1 + $0x52] sm:$0x3]  ;;  %v8207_v19 = vrot.slane %v8206_v34, 1  ;;  %v10839_v34 = vld [vmem:[%s11056_s21 + $0xcc] sm:$0x3] }
 0x509   : > { %v8377_v13 = vand.u32 %v10846_v60, %v11044_v3  ;;  %v8305_v56 = vunpack.c.l.b16 %v10827_v27  ;;  %v8286_v6 = vpack.c.b16 %v7901_v51, %v8285_v21  ;;  %v10838_v35 = vld [vmem:[%s11056_s21 + $0xc4] sm:$0x3]  ;;  %v8393_v11 = vunpack.c.l.b16 %v10839_v34 }
 0x50a   : > { %v8247_v30 = vrot.slane %v8246_v18, 1  ;;  %v8363_v18 = vunpack.c.l.b16 %v10838_v35  ;;  %v10844_v35 = vld [vmem:[%s11056_s21 + $0xf4] sm:$0x3] }
 0x50b   : > { %v8306_v52 = vpack.c.b16 %v14325_v49, %v8305_v56  ;;  %v10845_v49 = vld [vmem:[%s11056_s21 + $0xfc] sm:$0x3] }
 0x50d   : > { %v8307_v51 = vrot.slane %v8306_v52, 1 }
 0x50f   : > { %v7308_v16 = vpop.f32.mrf.mxu2  ;;  %v7324_v14 = vpop.f32.mrf.mxu3 }
 0x510   : > { %v7360_v23 = vpop.f32.mrf.mxu0  ;;  %v7376_v0 = vpop.f32.mrf.mxu1  ;;  %v8267_v14 = vrot.slane %v8266_v48, 1 }
 0x511   : > { %v13699_v37 = vadd.f32 %v7360_v23, %v13619_v53  ;;  %v13702_v31 = vadd.f32 %v7376_v0, %v13622_v9  ;;  %v8447_v0 = vunpack.c.l.b16 %v10841_v1 }
 0x513   : > { %10830 = vmatmul.msk.bf16.vlgmr.msra.gmra.mxu0 %vm192_vm2, %v8184_v24  ;;  %10831 = vmatmul.msk.bf16.vlgmr.msra.gmra.mxu1 %vm192_vm2, %v8207_v19  ;;  %v8287_v24 = vrot.slane %v8286_v6, 1 }
 0x514   : > { %10832 = vmatmul.msk.bf16.vlgmr.msra.gmra.mxu2 %vm192_vm2, %v8227_v29  ;;  %10833 = vmatmul.msk.bf16.vlgmr.msra.gmra.mxu3 %vm192_vm2, %v8247_v30  ;;  %v8364_v29 = vpack.c.b16 %v8363_v18, %v8001_v7  ;;  %v8394_v30 = vpack.c.b16 %v8393_v11, %v8024_v32  ;;  %v8528_v18 = vunpack.c.l.b16 %v10844_v35  ;;  %v8555_v11 = vunpack.c.l.b16 %v10845_v49 }
 0x515   : > { %8440 = vmatpush.bf16.msra.mxu2 %v8377_v13  ;;  %8467 = vmatpush.bf16.msra.mxu3 %v8377_v13 }
 0x516   : > { %8386 = vmatpush.bf16.msra.mxu0 %v8377_v13  ;;  %8413 = vmatpush.bf16.msra.mxu1 %v8377_v13  ;;  %v8366_v45 = vshrl.u32 %v8364_v29, 16  ;;  %v8369_v7 = vshll.u32 %v8364_v29, 16  ;;  %v8396_v40 = vshrl.u32 %v8394_v30, 16  ;;  %v8399_v32 = vshll.u32 %v8394_v30, 16 }
 0x517   : > { %v7392_v53 = vpop.f32.mrf.mxu2  ;;  %v7408_v9 = vpop.f32.mrf.mxu3 }
 0x518   : > { %v13714_v17 = vadd.f32 %v7392_v53, %v13644_v8  ;;  %v13717_v43 = vadd.f32 %v7408_v9, %v13647_v41  ;;  %v7362_v22 = vpop.f32.mrf.mxu0  ;;  %v7378_v2 = vpop.f32.mrf.mxu1  ;;  %v14326_v8 = vunpack.c.l.b16 %v13533_v47  ;;  %v10840_v41 = vld [vmem:[%s11056_s21 + $0xd4] sm:$0x3]  ;;  %v8368_v9 = vrot.slane %v8366_v45, 1 }
 0x519   : > { %v8420_v50 = vunpack.c.l.b16 %v10840_v41  ;;  %v8371_v58 = vrot.slane %v8369_v7, 2  ;;  %v8398_v21 = vrot.slane %v8396_v40, 1  ;;  %v8401_v22 = vrot.slane %v8399_v32, 2 }
 0x51a   : > { %v8326_v15 = vpack.c.b16 %v14326_v8, %v8325_v61  ;;  %v10842_v61 = vld [vmem:[%s11056_s21 + $0xe4] sm:$0x3] }
 0x51b   : > { %v8421_v44 = vpack.c.b16 %v8420_v50, %v8044_v33  ;;  %v8474_v52 = vunpack.c.l.b16 %v10842_v61  ;;  %v8372_v34 = vor.u32 %v8371_v58, %v8368_v9  ;;  %v8402_v41 = vor.u32 %v8401_v22, %v8398_v21 }
 0x51c   : > { %v8327_v23 = vrot.slane %v8326_v15, 1 }
 0x51d   : > { %v8423_v59 = vshrl.u32 %v8421_v44, 16  ;;  %v8426_v33 = vshll.u32 %v8421_v44, 16 }
 0x51f   : > { %v7394_v60 = vpop.f32.mrf.mxu2  ;;  %v7410_v16 = vpop.f32.mrf.mxu3  ;;  %v8425_v2 = vrot.slane %v8423_v59, 1  ;;  %v8428_v56 = vrot.slane %v8426_v33, 2 }
 0x520   : > { %v7424_v19 = vpop.f32.mrf.mxu0  ;;  %v7440_v36 = vpop.f32.mrf.mxu1 }
 0x521   : > { %v13732_v4 = vadd.f32 %v7424_v19, %v13668_v54  ;;  %v13735_v47 = vadd.f32 %v7440_v36, %v13671_v46  ;;  %v8448_v54 = vpack.c.b16 %v8447_v0, %v8064_v26  ;;  %v8529_v0 = vpack.c.b16 %v8528_v18, %v8124_v5 }
 0x523   : > { %10834 = vmatmul.msk.bf16.vlgmr.msrb.gmra.mxu0 %vm192_vm2, %v8267_v14  ;;  %10835 = vmatmul.msk.bf16.vlgmr.msrb.gmra.mxu1 %vm192_vm2, %v8287_v24  ;;  %v8450_v53 = vshrl.u32 %v8448_v54, 16  ;;  %v8429_v14 = vor.u32 %v8428_v56, %v8425_v2  ;;  %v8531_v30 = vshrl.u32 %v8529_v0, 16  ;;  %v8534_v39 = vshll.u32 %v8529_v0, 16  ;;  %v10860_v0 = vld [vmem:[%s11056_s21 + $0x40] sm:$0xf] }
 0x524   : > { %10836 = vmatmul.msk.bf16.vlgmr.msrb.gmra.mxu2 %vm192_vm2, %v8307_v51  ;;  %10837 = vmatmul.msk.bf16.vlgmr.msrb.gmra.mxu3 %vm192_vm2, %v8327_v23  ;;  %v8475_v51 = vpack.c.b16 %v8474_v52, %v8084_v63 }
 0x525   : > { %8548 = vmatpush.bf16.msrb.mxu2 %v8377_v13  ;;  %8575 = vmatpush.bf16.msrb.mxu3 %v8377_v13  ;;  %v8452_v48 = vrot.slane %v8450_v53, 1  ;;  %v8533_v32 = vrot.slane %v8531_v30, 1  ;;  %v8536_v59 = vrot.slane %v8534_v39, 2 }
 0x526   : > { %8494 = vmatpush.bf16.msrb.mxu0 %v8377_v13  ;;  %8521 = vmatpush.bf16.msrb.mxu1 %v8377_v13  ;;  %v8453_v13 = vshll.u32 %v8448_v54, 16  ;;  %v8477_v62 = vshrl.u32 %v8475_v51, 16  ;;  %v8480_v63 = vshll.u32 %v8475_v51, 16 }
 0x527   : > { %v7456_v46 = vpop.f32.mrf.mxu2  ;;  %v7472_v57 = vpop.f32.mrf.mxu3  ;;  %v8537_v21 = vor.u32 %v8536_v59, %v8533_v32  ;;  %v10874_v32 = vld [vmem:[%s11056_s21 + $0x80] sm:$0xf]  ;;  %v10875_v59 = vld [vmem:[%s11056_s21 + $0x88] sm:$0xf] }
 0x528   : > { %v13750_v27 = vadd.f32 %v7456_v46, %v13682_v55  ;;  %v13753_v25 = vadd.f32 %v7472_v57, %v13685_v12  ;;  %v7426_v26 = vpop.f32.mrf.mxu0  ;;  %v7442_v20 = vpop.f32.mrf.mxu1  ;;  %v8455_v6 = vrot.slane %v8453_v13, 2  ;;  %v10843_v55 = vld [vmem:[%s11056_s21 + $0xec] sm:$0x3]  ;;  %v10863_v12 = vld [vmem:[%s14302_s1 + $0x54] sm:$0x3]  ;;  %v8479_v7 = vrot.slane %v8477_v62, 1 }
 0x529   : > { %v8501_v1 = vunpack.c.l.b16 %v10843_v55  ;;  %v8604_v36 = vand.u32 %v10863_v12, %v11044_v3  ;;  %v8482_v46 = vrot.slane %v8480_v63, 2  ;;  %v10880_v55 = vld [vmem:[%s14302_s1 + $0x56] sm:$0x3]  ;;  %v10861_v63 = vld [vmem:[%s11056_s21 + $0x48] sm:$0xf] }
 0x52a   : > { %v8456_v24 = vor.u32 %v8455_v6, %v8452_v48 }
 0x52b   : > { %v8502_v23 = vpack.c.b16 %v8501_v1, %v8104_v28  ;;  %v8483_v13 = vor.u32 %v8482_v46, %v8479_v7  ;;  %v10857_v1 = vld [vmem:[%s11056_s21 + $0x28] sm:$0xf]  ;;  %v10872_v7 = vld [vmem:[%s11056_s21 + $0x70] sm:$0xf]  ;;  %v10873_v46 = vld [vmem:[%s11056_s21 + $0x78] sm:$0xf] }
 0x52d   : > { %v8504_v42 = vshrl.u32 %v8502_v23, 16  ;;  %v8507_v28 = vshll.u32 %v8502_v23, 16  ;;  %v10859_v23 = vld [vmem:[%s11056_s21 + $0x38] sm:$0xf] }
 0x52f   : > { %v7458_v8 = vpop.f32.mrf.mxu2  ;;  %v7474_v15 = vpop.f32.mrf.mxu3  ;;  %v8506_v57 = vrot.slane %v8504_v42, 1  ;;  %v8509_v40 = vrot.slane %v8507_v28, 2 }
 0x530   : > { %v7529_v60 = vpop.f32.mrf.mxu0  ;;  %v7557_v16 = vpop.f32.mrf.mxu1  ;;  %v10855_v8 = vld [vmem:[%s11056_s21 + $0x18] sm:$0xf]  ;;  %v10856_v15 = vld [vmem:[%s11056_s21 + $0x20] sm:$0xf] }
 0x531   : > { %v13763_v50 = vadd.f32 %v7529_v60, %v13699_v37  ;;  %v13766_v19 = vadd.f32 %v7557_v16, %v13702_v31  ;;  %v8556_v37 = vpack.c.b16 %v8555_v11, %v8144_v10  ;;  %v8510_v9 = vor.u32 %v8509_v40, %v8506_v57 }
 0x533   : > { %10847 = vmatmul.msk.bf16.vlgmr.msra.gmra.mxu0 %vm192_vm2, %v8372_v34  ;;  %10848 = vmatmul.msk.bf16.vlgmr.msra.gmra.mxu1 %vm192_vm2, %v8402_v41  ;;  %v8558_v38 = vshrl.u32 %v8556_v37, 16  ;;  %v8561_v10 = vshll.u32 %v8556_v37, 16 }
 0x534   : > { %10849 = vmatmul.msk.bf16.vlgmr.msra.gmra.mxu2 %vm192_vm2, %v8429_v14  ;;  %10850 = vmatmul.msk.bf16.vlgmr.msra.gmra.mxu3 %vm192_vm2, %v8456_v24 }
 0x535   : > { %8645 = vmatpush.bf16.msra.mxu2 %v8604_v36  ;;  %8661 = vmatpush.bf16.msra.mxu3 %v8604_v36  ;;  %v8560_v33 = vrot.slane %v8558_v38, 1  ;;  %v8563_v26 = vrot.slane %v8561_v10, 2 }
 0x536   : > { %8613 = vmatpush.bf16.msra.mxu0 %v8604_v36  ;;  %8629 = vmatpush.bf16.msra.mxu1 %v8604_v36 }
 0x537   : > { %v7585_v31 = vpop.f32.mrf.mxu2  ;;  %v7613_v29 = vpop.f32.mrf.mxu3 }
 0x538   : > { %v7731_v5 = vadd.f32 %v7585_v31, %v13714_v17  ;;  %v7732_v44 = vadd.f32 %v7613_v29, %v13717_v43  ;;  %v7531_v54 = vpop.f32.mrf.mxu0  ;;  %v7559_v45 = vpop.f32.mrf.mxu1  ;;  %v8564_v43 = vor.u32 %v8563_v26, %v8560_v33  ;;  %v10862_v31 = vld [vmem:[%s11056_s21 + $0x50] sm:$0xf] }
 0x53f   : > { %v7587_v20 = vpop.f32.mrf.mxu2  ;;  %v7615_v53 = vpop.f32.mrf.mxu3 }
 0x540   : > { %v7641_v58 = vpop.f32.mrf.mxu0  ;;  %v7669_v17 = vpop.f32.mrf.mxu1 }
 0x541   : > { %v7733_v22 = vadd.f32 %v7641_v58, %v13732_v4  ;;  %v7734_v2 = vadd.f32 %v7669_v17, %v13735_v47  ;;  %v10889_v17 = vld [vmem:[%s11056_s21 + $0x18] sm:$0xf] }
 0x543   : > { %10851 = vmatmul.msk.bf16.vlgmr.msrb.gmra.mxu0 %vm192_vm2, %v8483_v13  ;;  %10852 = vmatmul.msk.bf16.vlgmr.msrb.gmra.mxu1 %vm192_vm2, %v8510_v9 }
 0x544   : > { %10853 = vmatmul.msk.bf16.vlgmr.msrb.gmra.mxu2 %vm192_vm2, %v8537_v21  ;;  %10854 = vmatmul.msk.bf16.vlgmr.msrb.gmra.mxu3 %vm192_vm2, %v8564_v43  ;;  %v13843_v21 = vld [vmem:[%s11056_s21 + $0x1c] sm:$0x1]  ;;  %v10891_v43 = vld [vmem:[%s11056_s21 + $0x20] sm:$0xf] }
 0x545   : > { %8709 = vmatpush.bf16.msrb.mxu2 %v8604_v36  ;;  %8725 = vmatpush.bf16.msrb.mxu3 %v8604_v36 }
 0x546   : > { %8677 = vmatpush.bf16.msrb.mxu0 %v8604_v36  ;;  %8693 = vmatpush.bf16.msrb.mxu1 %v8604_v36 }
 0x547   : > { %v7697_v56 = vpop.f32.mrf.mxu2  ;;  %v7725_v4 = vpop.f32.mrf.mxu3 }
 0x548   : > { %v7735_v47 = vadd.f32 %v7697_v56, %v13750_v27  ;;  %v7736_v61 = vadd.f32 %v7725_v4, %v13753_v25  ;;  %v7643_v48 = vpop.f32.mrf.mxu0  ;;  %v7671_v6 = vpop.f32.mrf.mxu1  ;;  %v10858_v27 = vld [vmem:[%s11056_s21 + $0x30] sm:$0xf]  ;;  %v8754_v25 = vand.u32 %v10880_v55, %v11044_v3  ;;  %v13851_v56 = vld [vmem:[%s11056_s21 + $0x2c] sm:$0x1] }
 0x549   : > { %v10895_v4 = vld [vmem:[%s11056_s21 + $0x30] sm:$0xf]  ;;  %v8910_v48 = vunpack.c.l.b16 %v13843_v21  ;;  %v10964_v21 = vld [vmem:[%s14302_s1 + $0x5e] sm:$0x3] }
 0x54f   : > { %v7699_v35 = vpop.f32.mrf.mxu2  ;;  %v7727_v49 = vpop.f32.mrf.mxu3 }
 0x550   : > { %v7782_v52 = vpop.f32.mrf.mxu0  ;;  %v7810_v12 = vpop.f32.mrf.mxu1  ;;  %v8940_v35 = vunpack.c.l.b16 %v10891_v43 }
 0x551   : > { %v7982_v34 = vadd.f32 %v7782_v52, %v13763_v50  ;;  %v7983_v41 = vadd.f32 %v7810_v12, %v13766_v19  ;;  %v8969_v12 = vunpack.c.l.b16 %v13851_v56 }
 0x553   : > { %10864 = vmatmul.msk.bf16.vlgmr.msra.gmra.mxu0 %vm192_vm2, %v10855_v8  ;;  %10865 = vmatmul.msk.bf16.vlgmr.msra.gmra.mxu1 %vm192_vm2, %v10856_v15 }
 0x554   : > { %10866 = vmatmul.msk.bf16.vlgmr.msra.gmra.mxu2 %vm192_vm2, %v10857_v1  ;;  %10867 = vmatmul.msk.bf16.vlgmr.msra.gmra.mxu3 %vm192_vm2, %v10858_v27  ;;  %v8996_v1 = vunpack.c.l.b16 %v10895_v4 }
 0x555   : > { %8795 = vmatpush.bf16.msra.mxu2 %v8754_v25  ;;  %8811 = vmatpush.bf16.msra.mxu3 %v8754_v25 }
 0x556   : > { %8763 = vmatpush.bf16.msra.mxu0 %v8754_v25  ;;  %8779 = vmatpush.bf16.msra.mxu1 %v8754_v25 }
 0x557   : > { %v7838_v18 = vpop.f32.mrf.mxu2  ;;  %v7866_v60 = vpop.f32.mrf.mxu3 }
 0x558   : > { %v7984_v16 = vadd.f32 %v7838_v18, %v7731_v5  ;;  %v7985_v14 = vadd.f32 %v7866_v60, %v7732_v44  ;;  %v7784_v24 = vpop.f32.mrf.mxu0  ;;  %v7812_v11 = vpop.f32.mrf.mxu1  ;;  %v10905_v44 = vld [vmem:[%s14302_s1 + $0x58] sm:$0x3]  ;;  %v10878_v60 = vld [vmem:[%s11056_s21 + $0xa0] sm:$0xf] }
 0x559   : > { %v8923_v33 = vand.u32 %v10905_v44, %v11044_v3 }
 0x55f   : > { %v7840_v50 = vpop.f32.mrf.mxu2  ;;  %v7868_v19 = vpop.f32.mrf.mxu3 }
 0x560   : > { %v7894_v36 = vpop.f32.mrf.mxu0  ;;  %v7922_v51 = vpop.f32.mrf.mxu1 }
 0x561   : > { %v13807_v37 = vadd.f32 %v7894_v36, %v7733_v22  ;;  %v13809_v62 = vadd.f32 %v7922_v51, %v7734_v2  ;;  %v13847_v22 = vld [vmem:[%s11056_s21 + $0x24] sm:$0x1]  ;;  %v10893_v2 = vld [vmem:[%s11056_s21 + $0x28] sm:$0xf] }
 0x562   : > { %v8941_v49 = vunpack.c.l.b16 %v13847_v22  ;;  %v8968_v52 = vunpack.c.l.b16 %v10893_v2  ;;  %v10930_v2 = vld [vmem:[%s14302_s1 + $0x5a] sm:$0x3] }
 0x563   : > { %10868 = vmatmul.msk.bf16.vlgmr.msrb.gmra.mxu0 %vm192_vm2, %v10859_v23  ;;  %10869 = vmatmul.msk.bf16.vlgmr.msrb.gmra.mxu1 %vm192_vm2, %v10860_v0 }
 0x564   : > { %10870 = vmatmul.msk.bf16.vlgmr.msrb.gmra.mxu2 %vm192_vm2, %v10861_v63  ;;  %10871 = vmatmul.msk.bf16.vlgmr.msrb.gmra.mxu3 %vm192_vm2, %v10862_v31  ;;  %v8942_v24 = vpack.c.b16 %v8941_v49, %v8940_v35  ;;  %v8970_v11 = vpack.c.b16 %v8969_v12, %v8968_v52 }
 0x565   : > { %8859 = vmatpush.bf16.msrb.mxu2 %v8754_v25  ;;  %8875 = vmatpush.bf16.msrb.mxu3 %v8754_v25 }
 0x566   : > { %8827 = vmatpush.bf16.msrb.mxu0 %v8754_v25  ;;  %8843 = vmatpush.bf16.msrb.mxu1 %v8754_v25  ;;  %v8946_v23 = vshll.u32 %v8942_v24, 16  ;;  %v8974_v0 = vshll.u32 %v8970_v11, 16 }
 0x567   : > { %v7950_v29 = vpop.f32.mrf.mxu2  ;;  %v7978_v42 = vpop.f32.mrf.mxu3 }
 0x568   : > { %v13817_v28 = vadd.f32 %v7950_v29, %v7735_v47  ;;  %v13819_v30 = vadd.f32 %v7978_v42, %v7736_v61  ;;  %v7896_v39 = vpop.f32.mrf.mxu0  ;;  %v7924_v5 = vpop.f32.mrf.mxu1  ;;  %v13855_v47 = vld [vmem:[%s11056_s21 + $0x34] sm:$0x1]  ;;  %v8909_v61 = vunpack.c.l.b16 %v10889_v17  ;;  %v10897_v42 = vld [vmem:[%s11056_s21 + $0x38] sm:$0xf] }
 0x569   : > { %v8997_v27 = vunpack.c.l.b16 %v13855_v47  ;;  %v13891_v39 = vld [vmem:[%s11056_s21 + $0x3c] sm:$0x1]  ;;  %v13905_v17 = vld [vmem:[%s11056_s21 + $0x54] sm:$0x1] }
 0x56b   : > { %v8998_v50 = vpack.c.b16 %v8997_v27, %v8996_v1 }
 0x56d   : > { %v9002_v29 = vshll.u32 %v8998_v50, 16 }
 0x56f   : > { %v7952_v54 = vpop.f32.mrf.mxu2  ;;  %v7980_v45 = vpop.f32.mrf.mxu3 }
 0x570   : > { %v8019_v38 = vpop.f32.mrf.mxu0  ;;  %v8039_v10 = vpop.f32.mrf.mxu1  ;;  %v10899_v54 = vld [vmem:[%s11056_s21 + $0x40] sm:$0xf]  ;;  %v13895_v45 = vld [vmem:[%s11056_s21 + $0x44] sm:$0x1] }
 0x571   : > { %v13826_v57 = vadd.f32 %v8019_v38, %v7982_v34  ;;  %v13828_v40 = vadd.f32 %v8039_v10, %v7983_v41  ;;  %v10876_v34 = vld [vmem:[%s11056_s21 + $0x90] sm:$0xf]  ;;  %v10877_v41 = vld [vmem:[%s11056_s21 + $0x98] sm:$0xf]  ;;  %v8948_v38 = vrot.slane %v8946_v23, 1  ;;  %v8972_v10 = vshrl.u32 %v8970_v11, 16 }
 0x572   : > { %v13923_v11 = vand.u32 %v10930_v2, %v11044_v3 }
 0x573   : > { %10881 = vmatmul.msk.bf16.vlgmr.msra.gmra.mxu0 %vm192_vm2, %v10872_v7  ;;  %10882 = vmatmul.msk.bf16.vlgmr.msra.gmra.mxu1 %vm192_vm2, %v10873_v46  ;;  %v9000_v7 = vshrl.u32 %v8998_v50, 16  ;;  %v9004_v46 = vrot.slane %v9002_v29, 1 }
 0x574   : > { %10883 = vmatmul.msk.bf16.vlgmr.msra.gmra.mxu2 %vm192_vm2, %v10874_v32  ;;  %10884 = vmatmul.msk.bf16.vlgmr.msra.gmra.mxu3 %vm192_vm2, %v10875_v59  ;;  %v9024_v32 = vunpack.c.l.b16 %v10897_v42  ;;  %v9025_v59 = vunpack.c.l.b16 %v13891_v39 }
 0x575   : > { %8988 = vmatpush.bf16.msra.mxu2 %v8923_v33  ;;  %9016 = vmatpush.bf16.msra.mxu3 %v8923_v33 }
 0x576   : > { %8932 = vmatpush.bf16.msra.mxu0 %v8923_v33  ;;  %8960 = vmatpush.bf16.msra.mxu1 %v8923_v33 }
 0x577   : > { %v8059_v26 = vpop.f32.mrf.mxu2  ;;  %v8079_v20 = vpop.f32.mrf.mxu3 }
 0x578   : > { %v13837_v53 = vadd.f32 %v8059_v26, %v7984_v16  ;;  %v13839_v13 = vadd.f32 %v8079_v20, %v7985_v14  ;;  %v8021_v9 = vpop.f32.mrf.mxu0  ;;  %v8041_v58 = vpop.f32.mrf.mxu1  ;;  %v10879_v16 = vld [vmem:[%s11056_s21 + $0xa8] sm:$0xf]  ;;  %v8911_v14 = vpack.c.b16 %v8910_v48, %v8909_v61  ;;  %v13900_v26 = vld [vmem:[%s11056_s21 + $0x4c] sm:$0x1]  ;;  %v9052_v20 = vunpack.c.l.b16 %v10899_v54 }
 0x579   : > { %v9053_v9 = vunpack.c.l.b16 %v13895_v45  ;;  %v10903_v58 = vld [vmem:[%s11056_s21 + $0x50] sm:$0xf]  ;;  %v9081_v52 = vunpack.c.l.b16 %v13900_v26 }
 0x57a   : > { %v8915_v19 = vshll.u32 %v8911_v14, 16  ;;  %v8913_v5 = vshrl.u32 %v8911_v14, 16  ;;  %v9108_v1 = vunpack.c.l.b16 %v10903_v58 }
 0x57c   : > { %v8917_v44 = vrot.slane %v8915_v19, 1 }
 0x57e   : > { %v8918_v43 = vor.u32 %v8917_v44, %v8913_v5 }
 0x57f   : > { %v8061_v6 = vpop.f32.mrf.mxu2  ;;  %v8081_v55 = vpop.f32.mrf.mxu3 }
 0x580   : > { %v8099_v8 = vpop.f32.mrf.mxu0  ;;  %v8119_v15 = vpop.f32.mrf.mxu1 }
 0x581   : > { %v13864_v25 = vadd.f32 %v8099_v8, %v13807_v37  ;;  %v13867_v18 = vadd.f32 %v8119_v15, %v13809_v62 }
 0x583   : > { %10885 = vmatmul.msk.bf16.vlgmr.msrb.gmra.mxu0 %vm192_vm2, %v10876_v34  ;;  %10886 = vmatmul.msk.bf16.vlgmr.msrb.gmra.mxu1 %vm192_vm2, %v10877_v41  ;;  %v9005_v34 = vor.u32 %v9004_v46, %v9000_v7  ;;  %v9026_v41 = vpack.c.b16 %v9025_v59, %v9024_v32  ;;  %v13949_v7 = vld [vmem:[%s11056_s21 + $0x7c] sm:$0x1]  ;;  %v10918_v46 = vld [vmem:[%s11056_s21 + $0x80] sm:$0xf]  ;;  %v13953_v32 = vld [vmem:[%s11056_s21 + $0x84] sm:$0x1] }
 0x584   : > { %10887 = vmatmul.msk.bf16.vlgmr.msrb.gmra.mxu2 %vm192_vm2, %v10878_v60  ;;  %10888 = vmatmul.msk.bf16.vlgmr.msrb.gmra.mxu3 %vm192_vm2, %v10879_v16  ;;  %v9109_v60 = vunpack.c.l.b16 %v13905_v17  ;;  %v10956_v17 = vld [vmem:[%s11056_s21 + $0x70] sm:$0xe] }
 0x585   : > { %9100 = vmatpush.bf16.msrb.mxu2 %v8923_v33  ;;  %9128 = vmatpush.bf16.msrb.mxu3 %v8923_v33  ;;  %v9028_v23 = vshrl.u32 %v9026_v41, 16 }
 0x586   : > { %9044 = vmatpush.bf16.msrb.mxu0 %v8923_v33  ;;  %9072 = vmatpush.bf16.msrb.mxu1 %v8923_v33  ;;  %v10901_v33 = vld [vmem:[%s11056_s21 + $0x48] sm:$0xf] }
 0x587   : > { %v8139_v36 = vpop.f32.mrf.mxu2  ;;  %v8159_v51 = vpop.f32.mrf.mxu3  ;;  %v9080_v35 = vunpack.c.l.b16 %v10901_v33  ;;  %v13957_v33 = vld [vmem:[%s11056_s21 + $0x8c] sm:$0x1] }
 0x588   : > { %v13884_v37 = vadd.f32 %v8139_v36, %v13817_v28  ;;  %v13887_v62 = vadd.f32 %v8159_v51, %v13819_v30  ;;  %v8101_v63 = vpop.f32.mrf.mxu0  ;;  %v8121_v31 = vpop.f32.mrf.mxu1  ;;  %v8944_v28 = vshrl.u32 %v8942_v24, 16  ;;  %v8976_v30 = vrot.slane %v8974_v0, 1 }
 0x589   : > { %v9054_v24 = vpack.c.b16 %v9053_v9, %v9052_v20  ;;  %v9082_v50 = vpack.c.b16 %v9081_v52, %v9080_v35  ;;  %v9222_v35 = vunpack.c.l.b16 %v13953_v32 }
 0x58a   : > { %v8949_v6 = vor.u32 %v8948_v38, %v8944_v28  ;;  %v8977_v55 = vor.u32 %v8976_v30, %v8972_v10  ;;  %v10914_v38 = vld [vmem:[%s11056_s21 + $0x70] sm:$0xf]  ;;  %v13945_v10 = vld [vmem:[%s11056_s21 + $0x74] sm:$0x1]  ;;  %v10916_v30 = vld [vmem:[%s11056_s21 + $0x78] sm:$0xf] }
 0x58b   : > { %v9058_v19 = vshll.u32 %v9054_v24, 16  ;;  %v9086_v0 = vshll.u32 %v9082_v50, 16  ;;  %v9056_v54 = vshrl.u32 %v9054_v24, 16  ;;  %v9162_v2 = vunpack.c.l.b16 %v10914_v38 }
 0x58d   : > { %v9060_v28 = vrot.slane %v9058_v19, 1  ;;  %v9088_v20 = vrot.slane %v9086_v0, 1 }
 0x58f   : > { %v8141_v4 = vpop.f32.mrf.mxu2  ;;  %v8161_v61 = vpop.f32.mrf.mxu3  ;;  %v9061_v24 = vor.u32 %v9060_v28, %v9056_v54 }
 0x590   : > { %v8200_v8 = vpop.f32.mrf.mxu0  ;;  %v8220_v15 = vpop.f32.mrf.mxu1  ;;  %v9163_v4 = vunpack.c.l.b16 %v13945_v10  ;;  %v9193_v61 = vunpack.c.l.b16 %v10916_v30 }
 0x591   : > { %v13915_v16 = vadd.f32 %v8200_v8, %v13826_v57  ;;  %v13918_v14 = vadd.f32 %v8220_v15, %v13828_v40  ;;  %v9030_v57 = vshll.u32 %v9026_v41, 16  ;;  %v9110_v40 = vpack.c.b16 %v9109_v60, %v9108_v1 }
 0x592   : > { %v9250_v15 = vunpack.c.l.b16 %v13957_v33  ;;  %v9164_v0 = vpack.c.b16 %v9163_v4, %v9162_v2 }
 0x593   : > { %10906 = vmatmul.msk.bf16.vlgmr.msra.gmra.mxu0 %vm192_vm2, %v8918_v43  ;;  %10907 = vmatmul.msk.bf16.vlgmr.msra.gmra.mxu1 %vm192_vm2, %v8949_v6  ;;  %v9032_v5 = vrot.slane %v9030_v57, 1  ;;  %v9114_v44 = vshll.u32 %v9110_v40, 16  ;;  %v9112_v58 = vshrl.u32 %v9110_v40, 16  ;;  %v9194_v6 = vunpack.c.l.b16 %v13949_v7 }
 0x594   : > { %10908 = vmatmul.msk.bf16.vlgmr.msra.gmra.mxu2 %vm192_vm2, %v8977_v55  ;;  %10909 = vmatmul.msk.bf16.vlgmr.msra.gmra.mxu3 %vm192_vm2, %v9005_v34  ;;  %v9221_v55 = vunpack.c.l.b16 %v10918_v46 }
 0x595   : > { %9241 = vmatpush.bf16.msra.mxu2 %v13923_v11  ;;  %9269 = vmatpush.bf16.msra.mxu3 %v13923_v11  ;;  %v9116_v43 = vrot.slane %v9114_v44, 1  ;;  %v9033_v1 = vor.u32 %v9032_v5, %v9028_v23 }
 0x596   : > { %9185 = vmatpush.bf16.msra.mxu0 %v13923_v11  ;;  %9213 = vmatpush.bf16.msra.mxu1 %v13923_v11  ;;  %v9223_v23 = vpack.c.b16 %v9222_v35, %v9221_v55 }
 0x597   : > { %v8240_v36 = vpop.f32.mrf.mxu2  ;;  %v8260_v51 = vpop.f32.mrf.mxu3  ;;  %v9117_v19 = vor.u32 %v9116_v43, %v9112_v58 }
 0x598   : > { %v13938_v63 = vadd.f32 %v8240_v36, %v13837_v53  ;;  %v13941_v31 = vadd.f32 %v8260_v51, %v13839_v13  ;;  %v8202_v29 = vpop.f32.mrf.mxu0  ;;  %v8222_v42 = vpop.f32.mrf.mxu1  ;;  %v10920_v53 = vld [vmem:[%s11056_s21 + $0x88] sm:$0xf]  ;;  %v9084_v13 = vshrl.u32 %v9082_v50, 16  ;;  %v9227_v5 = vshll.u32 %v9223_v23, 16 }
 0x599   : > { %v9249_v8 = vunpack.c.l.b16 %v10920_v53  ;;  %v9195_v29 = vpack.c.b16 %v9194_v6, %v9193_v61  ;;  %v9225_v58 = vshrl.u32 %v9223_v23, 16 }
 0x59a   : > { %v9089_v40 = vor.u32 %v9088_v20, %v9084_v13  ;;  %v9166_v13 = vshrl.u32 %v9164_v0, 16  ;;  %v9229_v2 = vrot.slane %v9227_v5, 1 }
 0x59b   : > { %v9251_v42 = vpack.c.b16 %v9250_v15, %v9249_v8  ;;  %v10922_v8 = vld [vmem:[%s11056_s21 + $0x90] sm:$0xf] }
 0x59d   : > { %v9255_v44 = vshll.u32 %v9251_v42, 16  ;;  %v9253_v61 = vshrl.u32 %v9251_v42, 16 }
 0x59f   : > { %v8242_v34 = vpop.f32.mrf.mxu2  ;;  %v8262_v41 = vpop.f32.mrf.mxu3  ;;  %v9257_v55 = vrot.slane %v9255_v44, 1 }
 0x5a0   : > { %v8280_v50 = vpop.f32.mrf.mxu0  ;;  %v8300_v57 = vpop.f32.mrf.mxu1  ;;  %v10924_v34 = vld [vmem:[%s11056_s21 + $0x98] sm:$0xf]  ;;  %v13997_v41 = vld [vmem:[%s11056_s21 + $0x9c] sm:$0x1] }
 0x5a1   : > { %v13964_v36 = vadd.f32 %v8280_v50, %v13864_v25  ;;  %v13967_v51 = vadd.f32 %v8300_v57, %v13867_v18  ;;  %v9168_v25 = vshll.u32 %v9164_v0, 16  ;;  %v9199_v18 = vshll.u32 %v9195_v29, 16  ;;  %v14005_v50 = vld [vmem:[%s11056_s21 + $0xac] sm:$0x1] }
 0x5a2   : > { %v9258_v0 = vor.u32 %v9257_v55, %v9253_v61  ;;  %v9305_v5 = vunpack.c.l.b16 %v10924_v34  ;;  %v9306_v44 = vunpack.c.l.b16 %v13997_v41 }
 0x5a3   : > { %10910 = vmatmul.msk.bf16.vlgmr.msrb.gmra.mxu0 %vm192_vm2, %v9033_v1  ;;  %10911 = vmatmul.msk.bf16.vlgmr.msrb.gmra.mxu1 %vm192_vm2, %v9061_v24  ;;  %v9170_v20 = vrot.slane %v9168_v25, 1  ;;  %v9201_v43 = vrot.slane %v9199_v18, 1  ;;  %v14001_v1 = vld [vmem:[%s11056_s21 + $0xa4] sm:$0x1]  ;;  %v10928_v24 = vld [vmem:[%s11056_s21 + $0xa8] sm:$0xf]  ;;  %v9277_v25 = vunpack.c.l.b16 %v10922_v8 }
 0x5a4   : > { %10912 = vmatmul.msk.bf16.vlgmr.msrb.gmra.mxu2 %vm192_vm2, %v9089_v40  ;;  %10913 = vmatmul.msk.bf16.vlgmr.msrb.gmra.mxu3 %vm192_vm2, %v9117_v19  ;;  %v9230_v19 = vor.u32 %v9229_v2, %v9225_v58  ;;  %v9307_v61 = vpack.c.b16 %v9306_v44, %v9305_v5 }
 0x5a5   : > { %9353 = vmatpush.bf16.msrb.mxu2 %v13923_v11  ;;  %9381 = vmatpush.bf16.msrb.mxu3 %v13923_v11  ;;  %v9171_v57 = vor.u32 %v9170_v20, %v9166_v13  ;;  %v9361_v13 = vunpack.c.l.b16 %v10928_v24  ;;  %v14315_v20 = vunpack.c.l.b16 %v14005_v50 }
 0x5a6   : > { %9297 = vmatpush.bf16.msrb.mxu0 %v13923_v11  ;;  %9325 = vmatpush.bf16.msrb.mxu1 %v13923_v11  ;;  %v9197_v11 = vshrl.u32 %v9195_v29, 16  ;;  %v10947_v29 = vld [vmem:[%s14302_s1 + $0x5c] sm:$0x3] }
 0x5a7   : > { %v8320_v54 = vpop.f32.mrf.mxu2  ;;  %v8340_v28 = vpop.f32.mrf.mxu3 }
 0x5a8   : > { %v13986_v38 = vadd.f32 %v8320_v54, %v13884_v37  ;;  %v13989_v30 = vadd.f32 %v8340_v28, %v13887_v62  ;;  %v8282_v46 = vpop.f32.mrf.mxu0  ;;  %v8302_v53 = vpop.f32.mrf.mxu1  ;;  %v13993_v37 = vld [vmem:[%s11056_s21 + $0x94] sm:$0x1]  ;;  %v10926_v62 = vld [vmem:[%s11056_s21 + $0xa0] sm:$0xf]  ;;  %v9202_v40 = vor.u32 %v9201_v43, %v9197_v11  ;;  %v9413_v43 = vand.u32 %v10947_v29, %v11044_v3 }
 0x5a9   : > { %v9278_v18 = vunpack.c.l.b16 %v13993_v37  ;;  %v9333_v46 = vunpack.c.l.b16 %v10926_v62  ;;  %v14316_v53 = vunpack.c.l.b16 %v14001_v1  ;;  %v9311_v62 = vshll.u32 %v9307_v61, 16 }
 0x5ab   : > { %v9279_v2 = vpack.c.b16 %v9278_v18, %v9277_v25  ;;  %v9309_v25 = vshrl.u32 %v9307_v61, 16  ;;  %v9313_v5 = vrot.slane %v9311_v62, 1 }
 0x5ad   : > { %v9283_v34 = vshll.u32 %v9279_v2, 16 }
 0x5af   : > { %v8322_v23 = vpop.f32.mrf.mxu2  ;;  %v8342_v42 = vpop.f32.mrf.mxu3 }
 0x5b0   : > { %v8388_v54 = vpop.f32.mrf.mxu0  ;;  %v8415_v28 = vpop.f32.mrf.mxu1  ;;  %v9281_v23 = vshrl.u32 %v9279_v2, 16  ;;  %v9285_v42 = vrot.slane %v9283_v34, 1  ;;  %v14059_v34 = vld [vmem:[%s11056_s21 + $0x30] sm:$0xe] }
 0x5b1   : > { %v14015_v11 = vadd.f32 %v8388_v54, %v13915_v16  ;;  %v14018_v58 = vadd.f32 %v8415_v28, %v13918_v14  ;;  %v9335_v16 = vpack.c.b16 %v14316_v53, %v9333_v46  ;;  %v9363_v14 = vpack.c.b16 %v14315_v20, %v9361_v13 }
 0x5b3   : > { %10931 = vmatmul.msk.bf16.vlgmr.msra.gmra.mxu0 %vm192_vm2, %v9171_v57  ;;  %10932 = vmatmul.msk.bf16.vlgmr.msra.gmra.mxu1 %vm192_vm2, %v9202_v40  ;;  %v9367_v29 = vshll.u32 %v9363_v14, 16  ;;  %v9337_v54 = vshrl.u32 %v9335_v16, 16  ;;  %v9365_v46 = vshrl.u32 %v9363_v14, 16  ;;  %v14056_v14 = vld [vmem:[%s11056_s21 + $0x28] sm:$0xe] }
 0x5b4   : > { %10933 = vmatmul.msk.bf16.vlgmr.msra.gmra.mxu2 %vm192_vm2, %v9230_v19  ;;  %10934 = vmatmul.msk.bf16.vlgmr.msra.gmra.mxu3 %vm192_vm2, %v9258_v0  ;;  %v9339_v0 = vshll.u32 %v9335_v16, 16  ;;  %v14053_v16 = vld [vmem:[%s11056_s21 + $0x20] sm:$0xe] }
 0x5b5   : > { %9462 = vmatpush.bf16.msra.mxu2 %v9413_v43  ;;  %9482 = vmatpush.bf16.msra.mxu3 %v9413_v43  ;;  %v9369_v13 = vrot.slane %v9367_v29, 1 }
 0x5b6   : > { %9422 = vmatpush.bf16.msra.mxu0 %v9413_v43  ;;  %9442 = vmatpush.bf16.msra.mxu1 %v9413_v43  ;;  %v9341_v28 = vrot.slane %v9339_v0, 1  ;;  %v9429_v0 = vunpack.c.l.b16 %v14053_v16 }
 0x5b7   : > { %v8442_v55 = vpop.f32.mrf.mxu2  ;;  %v8469_v8 = vpop.f32.mrf.mxu3  ;;  %v9370_v53 = vor.u32 %v9369_v13, %v9365_v46 }
 0x5b8   : > { %v14034_v24 = vadd.f32 %v8442_v55, %v13938_v63  ;;  %v14037_v57 = vadd.f32 %v8469_v8, %v13941_v31  ;;  %v8390_v40 = vpop.f32.mrf.mxu0  ;;  %v8417_v19 = vpop.f32.mrf.mxu1  ;;  %v9286_v31 = vor.u32 %v9285_v42, %v9281_v23  ;;  %v9314_v55 = vor.u32 %v9313_v5, %v9309_v25 }
 0x5b9   : > { %v9342_v19 = vor.u32 %v9341_v28, %v9337_v54  ;;  %v9449_v25 = vunpack.c.l.b16 %v14056_v14  ;;  %v9469_v5 = vunpack.c.l.b16 %v14059_v34 }
 0x5bb   : > { %v9470_v54 = vpack.c.b16 %v8997_v27, %v9469_v5  ;;  %v9594_v27 = vand.u32 %v10964_v21, %v11044_v3 }
 0x5bd   : > { %v9471_v13 = vrot.slane %v9470_v54, 1 }
 0x5bf   : > { %v8444_v20 = vpop.f32.mrf.mxu2  ;;  %v8471_v63 = vpop.f32.mrf.mxu3 }
 0x5c0   : > { %v8496_v8 = vpop.f32.mrf.mxu0  ;;  %v8523_v40 = vpop.f32.mrf.mxu1  ;;  %v14050_v20 = vld [vmem:[%s11056_s21 + $0x18] sm:$0xe] }
 0x5c1   : > { %v14040_v2 = vadd.f32 %v8496_v8, %v13964_v36  ;;  %v14043_v61 = vadd.f32 %v8523_v40, %v13967_v51  ;;  %v9406_v62 = vunpack.c.l.b16 %v14050_v20  ;;  %v14108_v8 = vld [vmem:[%s11056_s21 + $0x48] sm:$0xe] }
 0x5c3   : > { %10935 = vmatmul.msk.bf16.vlgmr.msrb.gmra.mxu0 %vm192_vm2, %v9286_v31  ;;  %10936 = vmatmul.msk.bf16.vlgmr.msrb.gmra.mxu1 %vm192_vm2, %v9314_v55  ;;  %v14102_v31 = vld [vmem:[%s11056_s21 + $0x38] sm:$0xe]  ;;  %v14105_v55 = vld [vmem:[%s11056_s21 + $0x40] sm:$0xe] }
 0x5c4   : > { %10937 = vmatmul.msk.bf16.vlgmr.msrb.gmra.mxu2 %vm192_vm2, %v9342_v19  ;;  %10938 = vmatmul.msk.bf16.vlgmr.msrb.gmra.mxu3 %vm192_vm2, %v9370_v53  ;;  %v9489_v19 = vunpack.c.l.b16 %v14102_v31 }
 0x5c5   : > { %9542 = vmatpush.bf16.msrb.mxu2 %v9413_v43  ;;  %9562 = vmatpush.bf16.msrb.mxu3 %v9413_v43 }
 0x5c6   : > { %9502 = vmatpush.bf16.msrb.mxu0 %v9413_v43  ;;  %9522 = vmatpush.bf16.msrb.mxu1 %v9413_v43  ;;  %v9407_v43 = vpack.c.b16 %v8910_v48, %v9406_v62  ;;  %v9490_v54 = vpack.c.b16 %v9025_v59, %v9489_v19 }
 0x5c7   : > { %v8550_v36 = vpop.f32.mrf.mxu2  ;;  %v8577_v51 = vpop.f32.mrf.mxu3 }
 0x5c8   : > { %v14064_v53 = vadd.f32 %v8550_v36, %v13986_v38  ;;  %v14067_v29 = vadd.f32 %v8577_v51, %v13989_v30  ;;  %v8498_v23 = vpop.f32.mrf.mxu0  ;;  %v8525_v42 = vpop.f32.mrf.mxu1  ;;  %v9430_v38 = vpack.c.b16 %v8941_v49, %v9429_v0  ;;  %v9450_v30 = vpack.c.b16 %v8969_v12, %v9449_v25 }
 0x5c9   : > { %v9408_v22 = vrot.slane %v9407_v43, 1  ;;  %v9509_v36 = vunpack.c.l.b16 %v14105_v55  ;;  %v9491_v59 = vrot.slane %v9490_v54, 1 }
 0x5ca   : > { %v9431_v49 = vrot.slane %v9430_v38, 1  ;;  %v9451_v12 = vrot.slane %v9450_v30, 1  ;;  %v9529_v38 = vunpack.c.l.b16 %v14108_v8 }
 0x5cf   : > { %v8552_v48 = vpop.f32.mrf.mxu2  ;;  %v8579_v28 = vpop.f32.mrf.mxu3 }
 0x5d0   : > { %v8615_v46 = vpop.f32.mrf.mxu0  ;;  %v8631_v56 = vpop.f32.mrf.mxu1 }
 0x5d1   : > { %v14091_v63 = vadd.f32 %v8615_v46, %v14015_v11  ;;  %v14094_v47 = vadd.f32 %v8631_v56, %v14018_v58  ;;  %v14111_v11 = vld [vmem:[%s11056_s21 + $0x50] sm:$0xe]  ;;  %v10958_v46 = vld [vmem:[%s11056_s21 + $0x80] sm:$0xe]  ;;  %v10959_v56 = vld [vmem:[%s11056_s21 + $0x88] sm:$0xe] }
 0x5d2   : > { %v9549_v30 = vunpack.c.l.b16 %v14111_v11  ;;  %v9630_v54 = vunpack.c.l.b16 %v10958_v46 }
 0x5d3   : > { %10948 = vmatmul.msk.bf16.vlgmr.msra.gmra.mxu0 %vm192_vm2, %v9408_v22  ;;  %10949 = vmatmul.msk.bf16.vlgmr.msra.gmra.mxu1 %vm192_vm2, %v9431_v49 }
 0x5d4   : > { %10950 = vmatmul.msk.bf16.vlgmr.msra.gmra.mxu2 %vm192_vm2, %v9451_v12  ;;  %10951 = vmatmul.msk.bf16.vlgmr.msra.gmra.mxu3 %vm192_vm2, %v9471_v13  ;;  %v9550_v21 = vpack.c.b16 %v9109_v60, %v9549_v30  ;;  %v10957_v60 = vld [vmem:[%s11056_s21 + $0x78] sm:$0xe] }
 0x5d5   : > { %9643 = vmatpush.bf16.msra.mxu2 %v9594_v27  ;;  %9663 = vmatpush.bf16.msra.mxu3 %v9594_v27  ;;  %v9610_v13 = vunpack.c.l.b16 %v10957_v60 }
 0x5d6   : > { %9603 = vmatpush.bf16.msra.mxu0 %v9594_v27  ;;  %9623 = vmatpush.bf16.msra.mxu1 %v9594_v27  ;;  %v9551_v49 = vrot.slane %v9550_v21, 1  ;;  %v9631_v21 = vpack.c.b16 %v9222_v35, %v9630_v54 }
 0x5d7   : > { %v8647_v58 = vpop.f32.mrf.mxu2  ;;  %v8663_v40 = vpop.f32.mrf.mxu3 }
 0x5d8   : > { %v14116_v51 = vadd.f32 %v8647_v58, %v14034_v24  ;;  %v14119_v23 = vadd.f32 %v8663_v40, %v14037_v57  ;;  %v8617_v42 = vpop.f32.mrf.mxu0  ;;  %v8633_v43 = vpop.f32.mrf.mxu1  ;;  %v9510_v24 = vpack.c.b16 %v9053_v9, %v9509_v36  ;;  %v9530_v57 = vpack.c.b16 %v9081_v52, %v9529_v38 }
 0x5da   : > { %v9511_v28 = vrot.slane %v9510_v24, 1  ;;  %v9531_v22 = vrot.slane %v9530_v57, 1  ;;  %v9650_v24 = vunpack.c.l.b16 %v10959_v56 }
 0x5df   : > { %v8649_v48 = vpop.f32.mrf.mxu2  ;;  %v8665_v39 = vpop.f32.mrf.mxu3 }
 0x5e0   : > { %v8679_v45 = vpop.f32.mrf.mxu0  ;;  %v8695_v9 = vpop.f32.mrf.mxu1 }
 0x5e1   : > { %v14140_v26 = vadd.f32 %v8679_v45, %v14040_v2  ;;  %v14143_v52 = vadd.f32 %v8695_v9, %v14043_v61  ;;  %v9587_v61 = vunpack.c.l.b16 %v10956_v17  ;;  %v10961_v45 = vld [vmem:[%s11056_s21 + $0x98] sm:$0xe]  ;;  %v10962_v9 = vld [vmem:[%s11056_s21 + $0xa0] sm:$0xe] }
 0x5e3   : > { %10952 = vmatmul.msk.bf16.vlgmr.msrb.gmra.mxu0 %vm192_vm2, %v9491_v59  ;;  %10953 = vmatmul.msk.bf16.vlgmr.msrb.gmra.mxu1 %vm192_vm2, %v9511_v28  ;;  %v9588_v57 = vpack.c.b16 %v9163_v4, %v9587_v61  ;;  %v9632_v59 = vrot.slane %v9631_v21, 1  ;;  %v10960_v28 = vld [vmem:[%s11056_s21 + $0x90] sm:$0xe] }
 0x5e4   : > { %10954 = vmatmul.msk.bf16.vlgmr.msrb.gmra.mxu2 %vm192_vm2, %v9531_v22  ;;  %10955 = vmatmul.msk.bf16.vlgmr.msrb.gmra.mxu3 %vm192_vm2, %v9551_v49  ;;  %v10963_v22 = vld [vmem:[%s11056_s21 + $0xa8] sm:$0xe]  ;;  %v9690_v49 = vunpack.c.l.b16 %v10961_v45 }
 0x5e5   : > { %9723 = vmatpush.bf16.msrb.mxu2 %v9594_v27  ;;  %9743 = vmatpush.bf16.msrb.mxu3 %v9594_v27  ;;  %v9589_v10 = vrot.slane %v9588_v57, 1  ;;  %v10974_v57 = vld [vmem:[%s11056_s21 + $0x24] sm:$0x3] }
 0x5e6   : > { %9683 = vmatpush.bf16.msrb.mxu0 %v9594_v27  ;;  %9703 = vmatpush.bf16.msrb.mxu1 %v9594_v27  ;;  %v9611_v27 = vpack.c.b16 %v9194_v6, %v9610_v13  ;;  %v9691_v13 = vpack.c.b16 %v9306_v44, %v9690_v49  ;;  %v9798_v37 = vunpack.c.l.b16 %v10974_v57 }
 0x5e7   : > { %v8711_v2 = vpop.f32.mrf.mxu2  ;;  %v8727_v12 = vpop.f32.mrf.mxu3 }
 0x5e8   : > { %v14154_v58 = vadd.f32 %v8711_v2, %v14064_v53  ;;  %v14157_v40 = vadd.f32 %v8727_v12, %v14067_v29  ;;  %v8681_v42 = vpop.f32.mrf.mxu0  ;;  %v8697_v43 = vpop.f32.mrf.mxu1  ;;  %v9651_v53 = vpack.c.b16 %v9250_v15, %v9650_v24  ;;  %v10981_v29 = vld [vmem:[%s14302_s1 + $0x60] sm:$0x3]  ;;  %v9612_v4 = vrot.slane %v9611_v27, 1  ;;  %v10976_v27 = vld [vmem:[%s11056_s21 + $0x34] sm:$0x3] }
 0x5e9   : > { %v9782_v15 = vand.u32 %v10981_v29, %v11044_v3  ;;  %v9710_v2 = vunpack.c.l.b16 %v10962_v9  ;;  %v9730_v12 = vunpack.c.l.b16 %v10963_v22  ;;  %v10973_v42 = vld [vmem:[%s11056_s21 + $0x1c] sm:$0x3]  ;;  %v14327_v43 = vunpack.c.l.b16 %v14001_v1 }
 0x5ea   : > { %v9652_v32 = vrot.slane %v9651_v53, 1  ;;  %v9768_v21 = vunpack.c.l.b16 %v10973_v42  ;;  %v10980_v42 = vld [vmem:[%s11056_s21 + $0x54] sm:$0x3] }
 0x5eb   : > { %v9711_v54 = vpack.c.b16 %v14327_v43, %v9710_v2  ;;  %v10977_v2 = vld [vmem:[%s11056_s21 + $0x3c] sm:$0x3] }
 0x5ec   : > { %v9879_v43 = vunpack.c.l.b16 %v10977_v2 }
 0x5ed   : > { %v9712_v44 = vrot.slane %v9711_v54, 1 }
 0x5ef   : > { %v8713_v48 = vpop.f32.mrf.mxu2  ;;  %v8729_v39 = vpop.f32.mrf.mxu3 }
 0x5f0   : > { %v8765_v7 = vpop.f32.mrf.mxu0  ;;  %v8781_v6 = vpop.f32.mrf.mxu1  ;;  %v9692_v39 = vrot.slane %v9691_v13, 1  ;;  %v10979_v13 = vld [vmem:[%s11056_s21 + $0x4c] sm:$0x3] }
 0x5f1   : > { %v14171_v35 = vadd.f32 %v8765_v7, %v14091_v63  ;;  %v14174_v33 = vadd.f32 %v8781_v6, %v14094_v47  ;;  %v9670_v47 = vunpack.c.l.b16 %v10960_v28  ;;  %v9852_v7 = vunpack.c.l.b16 %v10976_v27 }
 0x5f2   : > { %v9769_v6 = vpack.c.b16 %v9768_v21, %v9406_v62 }
 0x5f3   : > { %10965 = vmatmul.msk.bf16.vlgmr.msra.gmra.mxu0 %vm192_vm2, %v9589_v10  ;;  %10966 = vmatmul.msk.bf16.vlgmr.msra.gmra.mxu1 %vm192_vm2, %v9612_v4  ;;  %v9671_v61 = vpack.c.b16 %v9278_v18, %v9670_v47 }
 0x5f4   : > { %10967 = vmatmul.msk.bf16.vlgmr.msra.gmra.mxu2 %vm192_vm2, %v9632_v59  ;;  %10968 = vmatmul.msk.bf16.vlgmr.msra.gmra.mxu3 %vm192_vm2, %v9652_v32  ;;  %v9799_v59 = vpack.c.b16 %v9798_v37, %v9429_v0  ;;  %v9771_v20 = vshrl.u32 %v9769_v6, 16  ;;  %v9774_v62 = vshll.u32 %v9769_v6, 16 }
 0x5f5   : > { %9845 = vmatpush.bf16.msra.mxu2 %v9782_v15  ;;  %9872 = vmatpush.bf16.msra.mxu3 %v9782_v15  ;;  %v9672_v48 = vrot.slane %v9671_v61, 1 }
 0x5f6   : > { %9791 = vmatpush.bf16.msra.mxu0 %v9782_v15  ;;  %9818 = vmatpush.bf16.msra.mxu1 %v9782_v15  ;;  %v9801_v16 = vshrl.u32 %v9799_v59, 16  ;;  %v9804_v0 = vshll.u32 %v9799_v59, 16 }
 0x5f7   : > { %v8797_v63 = vpop.f32.mrf.mxu2  ;;  %v8813_v3 = vpop.f32.mrf.mxu3 }
 0x5f8   : > { %v14186_v17 = vadd.f32 %v8797_v63, %v14116_v51  ;;  %v14189_v60 = vadd.f32 %v8813_v3, %v14119_v23  ;;  %v8767_v46 = vpop.f32.mrf.mxu0  ;;  %v8783_v56 = vpop.f32.mrf.mxu1  ;;  %v14328_v51 = vunpack.c.l.b16 %v14005_v50  ;;  %v10975_v23 = vld [vmem:[%s11056_s21 + $0x2c] sm:$0x3]  ;;  %v9773_v63 = vrot.slane %v9771_v20, 1 }
 0x5f9   : > { %v9825_v18 = vunpack.c.l.b16 %v10975_v23  ;;  %v9776_v3 = vrot.slane %v9774_v62, 2  ;;  %v9803_v47 = vrot.slane %v9801_v16, 1  ;;  %v9806_v49 = vrot.slane %v9804_v0, 2 }
 0x5fa   : > { %v9731_v24 = vpack.c.b16 %v14328_v51, %v9730_v12  ;;  %v9933_v23 = vunpack.c.l.b16 %v10979_v13 }
 0x5fb   : > { %v9826_v32 = vpack.c.b16 %v9825_v18, %v9449_v25  ;;  %v9777_v51 = vor.u32 %v9776_v3, %v9773_v63  ;;  %v9880_v18 = vpack.c.b16 %v9879_v43, %v9489_v19 }
 0x5fc   : > { %v9732_v4 = vrot.slane %v9731_v24, 1  ;;  %v9807_v24 = vor.u32 %v9806_v49, %v9803_v47 }
 0x5fd   : > { %v9828_v14 = vshrl.u32 %v9826_v32, 16  ;;  %v9831_v25 = vshll.u32 %v9826_v32, 16  ;;  %v9885_v31 = vshll.u32 %v9880_v18, 16 }
 0x5ff   : > { %v8799_v53 = vpop.f32.mrf.mxu2  ;;  %v8815_v29 = vpop.f32.mrf.mxu3  ;;  %v9830_v46 = vrot.slane %v9828_v14, 1  ;;  %v9833_v56 = vrot.slane %v9831_v25, 2  ;;  %v9887_v62 = vrot.slane %v9885_v31, 2 }
 0x600   : > { %v8829_v10 = vpop.f32.mrf.mxu0  ;;  %v8845_v41 = vpop.f32.mrf.mxu1 }
 0x601   : > { %v14204_v1 = vadd.f32 %v8829_v10, %v14140_v26  ;;  %v14207_v50 = vadd.f32 %v8845_v41, %v14143_v52  ;;  %v9853_v26 = vpack.c.b16 %v9852_v7, %v9469_v5  ;;  %v9834_v53 = vor.u32 %v9833_v56, %v9830_v46 }
 0x602   : > { %v9934_v41 = vpack.c.b16 %v9933_v23, %v9529_v38 }
 0x603   : > { %10969 = vmatmul.msk.bf16.vlgmr.msrb.gmra.mxu0 %vm192_vm2, %v9672_v48  ;;  %10970 = vmatmul.msk.bf16.vlgmr.msrb.gmra.mxu1 %vm192_vm2, %v9692_v39  ;;  %v9855_v22 = vshrl.u32 %v9853_v26, 16  ;;  %v9960_v48 = vunpack.c.l.b16 %v10980_v42 }
 0x604   : > { %10971 = vmatmul.msk.bf16.vlgmr.msrb.gmra.mxu2 %vm192_vm2, %v9712_v44  ;;  %10972 = vmatmul.msk.bf16.vlgmr.msrb.gmra.mxu3 %vm192_vm2, %v9732_v4  ;;  %v9936_v6 = vshrl.u32 %v9934_v41, 16  ;;  %v9939_v59 = vshll.u32 %v9934_v41, 16 }
 0x605   : > { %9953 = vmatpush.bf16.msrb.mxu2 %v9782_v15  ;;  %9980 = vmatpush.bf16.msrb.mxu3 %v9782_v15  ;;  %v9857_v12 = vrot.slane %v9855_v22, 1 }
 0x606   : > { %9899 = vmatpush.bf16.msrb.mxu0 %v9782_v15  ;;  %9926 = vmatpush.bf16.msrb.mxu1 %v9782_v15  ;;  %v9858_v15 = vshll.u32 %v9853_v26, 16 }
 0x607   : > { %v8861_v52 = vpop.f32.mrf.mxu2  ;;  %v8877_v28 = vpop.f32.mrf.mxu3 }
 0x608   : > { %v14222_v45 = vadd.f32 %v8861_v52, %v14154_v58  ;;  %v14225_v34 = vadd.f32 %v8877_v28, %v14157_v40  ;;  %v8831_v5 = vpop.f32.mrf.mxu0  ;;  %v8847_v9 = vpop.f32.mrf.mxu1  ;;  %v9860_v61 = vrot.slane %v9858_v15, 2  ;;  %v10978_v58 = vld [vmem:[%s11056_s21 + $0x44] sm:$0x3]  ;;  %v9938_v52 = vrot.slane %v9936_v6, 1 }
 0x609   : > { %v9906_v57 = vunpack.c.l.b16 %v10978_v58  ;;  %v9941_v28 = vrot.slane %v9939_v59, 2 }
 0x60a   : > { %v9861_v29 = vor.u32 %v9860_v61, %v9857_v12 }
 0x60b   : > { %v9907_v10 = vpack.c.b16 %v9906_v57, %v9509_v36  ;;  %v9942_v15 = vor.u32 %v9941_v28, %v9938_v52 }
 0x60d   : > { %v9909_v4 = vshrl.u32 %v9907_v10, 16  ;;  %v9912_v7 = vshll.u32 %v9907_v10, 16 }
 0x60f   : > { %v8863_v40 = vpop.f32.mrf.mxu2  ;;  %v8879_v54 = vpop.f32.mrf.mxu3  ;;  %v9911_v11 = vrot.slane %v9909_v4, 1 }
 0x610   : > { %v8934_v27 = vpop.f32.mrf.mxu0  ;;  %v8962_v21 = vpop.f32.mrf.mxu1 }
 0x611   : > { %v9134_v39 = vadd.f32 %v8934_v27, %v14171_v35  ;;  %v9135_v37 = vadd.f32 %v8962_v21, %v14174_v33  ;;  %v9961_v35 = vpack.c.b16 %v9960_v48, %v9549_v30  ;;  %v9882_v33 = vshrl.u32 %v9880_v18, 16 }
 0x612   : > { %v9914_v30 = vrot.slane %v9912_v7, 2 }
 0x613   : > { %10982 = vmatmul.msk.bf16.vlgmr.msra.gmra.mxu0 %vm192_vm2, %v9777_v51  ;;  %10983 = vmatmul.msk.bf16.vlgmr.msra.gmra.mxu1 %vm192_vm2, %v9807_v24  ;;  %v9963_v32 = vshrl.u32 %v9961_v35, 16  ;;  %v9966_v26 = vshll.u32 %v9961_v35, 16  ;;  %v9884_v20 = vrot.slane %v9882_v33, 1 }
 0x614   : > { %10984 = vmatmul.msk.bf16.vlgmr.msra.gmra.mxu2 %vm192_vm2, %v9834_v53  ;;  %10985 = vmatmul.msk.bf16.vlgmr.msra.gmra.mxu3 %vm192_vm2, %v9861_v29  ;;  %v9915_v9 = vor.u32 %v9914_v30, %v9911_v11 }
 0x615   : > { %v9965_v16 = vrot.slane %v9963_v32, 1  ;;  %v9968_v0 = vrot.slane %v9966_v26, 2  ;;  %v9888_v5 = vor.u32 %v9887_v62, %v9884_v20 }
 0x617   : > { %v8990_v19 = vpop.f32.mrf.mxu2  ;;  %v9018_v44 = vpop.f32.mrf.mxu3 }
 0x618   : > { %v9136_v55 = vadd.f32 %v8990_v19, %v14186_v17  ;;  %v9137_v8 = vadd.f32 %v9018_v44, %v14189_v60  ;;  %v8936_v36 = vpop.f32.mrf.mxu0  ;;  %v8964_v38 = vpop.f32.mrf.mxu1  ;;  %v9969_v60 = vor.u32 %v9968_v0, %v9965_v16 }
 0x61f   : > { %v8992_v14 = vpop.f32.mrf.mxu2  ;;  %v9020_v25 = vpop.f32.mrf.mxu3 }
 0x620   : > { %v9046_v22 = vpop.f32.mrf.mxu0  ;;  %v9074_v17 = vpop.f32.mrf.mxu1 }
 0x621   : > { %v9138_v63 = vadd.f32 %v9046_v22, %v14204_v1  ;;  %v9139_v3 = vadd.f32 %v9074_v17, %v14207_v50 }
 0x623   : > { %10986 = vmatmul.msk.bf16.vlgmr.msrb.gmra.mxu0 %vm192_vm2, %v9888_v5  ;;  %10987 = vmatmul.msk.bf16.vlgmr.msrb.gmra.mxu1 %vm192_vm2, %v9915_v9 }
 0x624   : > { %10988 = vmatmul.msk.bf16.vlgmr.msrb.gmra.mxu2 %vm192_vm2, %v9942_v15  ;;  %10989 = vmatmul.msk.bf16.vlgmr.msrb.gmra.mxu3 %vm192_vm2, %v9969_v60 }
 0x627   : > { %v9102_v47 = vpop.f32.mrf.mxu2  ;;  %v9130_v49 = vpop.f32.mrf.mxu3 }
 0x628   : > { %v9140_v46 = vadd.f32 %v9102_v47, %v14222_v45  ;;  %v9141_v56 = vadd.f32 %v9130_v49, %v14225_v34  ;;  %v9048_v2 = vpop.f32.mrf.mxu0  ;;  %v9076_v12 = vpop.f32.mrf.mxu1 }
 0x629   : > { %v11003_v2 = vld [vmem:[%s14303_s2] ss:$0 sm:$0xff] }
 0x62f   : > { %v9104_v61 = vpop.f32.mrf.mxu2  ;;  %v9132_v1 = vpop.f32.mrf.mxu3 }
 0x630   : > { %v9187_v58 = vpop.f32.mrf.mxu0  ;;  %v9215_v50 = vpop.f32.mrf.mxu1 }
 0x631   : > { %v9387_v13 = vadd.f32 %v9187_v58, %v9134_v39  ;;  %v9388_v42 = vadd.f32 %v9215_v50, %v9135_v37 }
 0x637   : > { %v9243_v43 = vpop.f32.mrf.mxu2  ;;  %v9271_v40 = vpop.f32.mrf.mxu3 }
 0x638   : > { %v9389_v54 = vadd.f32 %v9243_v43, %v9136_v55  ;;  %v9390_v51 = vadd.f32 %v9271_v40, %v9137_v8  ;;  %v9189_v24 = vpop.f32.mrf.mxu0  ;;  %v9217_v57 = vpop.f32.mrf.mxu1 }
 0x63f   : > { %v9245_v23 = vpop.f32.mrf.mxu2  ;;  %v9273_v27 = vpop.f32.mrf.mxu3 }
 0x640   : > { %v9299_v21 = vpop.f32.mrf.mxu0  ;;  %v9327_v45 = vpop.f32.mrf.mxu1 }
 0x641   : > { %v14255_v53 = vadd.f32 %v9299_v21, %v9138_v63  ;;  %v14257_v34 = vadd.f32 %v9327_v45, %v9139_v3 }
 0x647   : > { %v9355_v29 = vpop.f32.mrf.mxu2  ;;  %v9383_v48 = vpop.f32.mrf.mxu3 }
 0x648   : > { %v14259_v18 = vadd.f32 %v9355_v29, %v9140_v46  ;;  %v14261_v39 = vadd.f32 %v9383_v48, %v9141_v56  ;;  %v9301_v37 = vpop.f32.mrf.mxu0  ;;  %v9329_v10 = vpop.f32.mrf.mxu1 }
 0x64f   : > { %v9357_v41 = vpop.f32.mrf.mxu2  ;;  %v9385_v35 = vpop.f32.mrf.mxu3 }
 0x650   : > { %v9424_v33 = vpop.f32.mrf.mxu0  ;;  %v9444_v31 = vpop.f32.mrf.mxu1 }
 0x651   : > { %v9568_v63 = vadd.f32 %v9424_v33, %v9387_v13  ;;  %v9569_v3 = vadd.f32 %v9444_v31, %v9388_v42 }
 0x657   : > { %v9464_v19 = vpop.f32.mrf.mxu2  ;;  %v9484_v44 = vpop.f32.mrf.mxu3 }
 0x658   : > { %v9426_v4 = vpop.f32.mrf.mxu0  ;;  %v9446_v7 = vpop.f32.mrf.mxu1  ;;  %v9570_v40 = vadd.f32 %v9464_v19, %v9389_v54  ;;  %v9571_v24 = vadd.f32 %v9484_v44, %v9390_v51 }
 0x65f   : > { %v9466_v6 = vpop.f32.mrf.mxu2  ;;  %v9486_v59 = vpop.f32.mrf.mxu3 }
 0x660   : > { %v9504_v55 = vpop.f32.mrf.mxu0  ;;  %v9524_v8 = vpop.f32.mrf.mxu1 }
 0x661   : > { %v9572_v35 = vadd.f32 %v9504_v55, %v14255_v53  ;;  %v9573_v33 = vadd.f32 %v9524_v8, %v14257_v34 }
 0x667   : > { %v14263_v36 = vpop.f32.mrf.mxu2  ;;  %v14265_v38 = vpop.f32.mrf.mxu3 }
 0x668   : > { %v9506_v32 = vpop.f32.mrf.mxu0  ;;  %v9526_v26 = vpop.f32.mrf.mxu1  ;;  %v9574_v53 = vadd.f32 %v14263_v36, %v14259_v18  ;;  %v9575_v34 = vadd.f32 %v14265_v38, %v14261_v39 }
 0x66f   : > { %v9546_v20 = vpop.f32.mrf.mxu2  ;;  %v9566_v62 = vpop.f32.mrf.mxu3 }
 0x670   : > { %v9605_v11 = vpop.f32.mrf.mxu0  ;;  %v9625_v30 = vpop.f32.mrf.mxu1 }
 0x671   : > { %v9749_v47 = vadd.f32 %v9605_v11, %v9568_v63  ;;  %v9750_v49 = vadd.f32 %v9625_v30, %v9569_v3 }
 0x677   : > { %v9645_v52 = vpop.f32.mrf.mxu2  ;;  %v9665_v28 = vpop.f32.mrf.mxu3 }
 0x678   : > { %v9607_v16 = vpop.f32.mrf.mxu0  ;;  %v9627_v0 = vpop.f32.mrf.mxu1  ;;  %v9751_v57 = vadd.f32 %v9645_v52, %v9570_v40  ;;  %v9752_v23 = vadd.f32 %v9665_v28, %v9571_v24 }
 0x67f   : > { %v9647_v14 = vpop.f32.mrf.mxu2  ;;  %v9667_v25 = vpop.f32.mrf.mxu3 }
 0x680   : > { %v9685_v5 = vpop.f32.mrf.mxu0  ;;  %v9705_v9 = vpop.f32.mrf.mxu1 }
 0x681   : > { %v9753_v31 = vadd.f32 %v9685_v5, %v9572_v35  ;;  %v9754_v19 = vadd.f32 %v9705_v9, %v9573_v33 }
 0x687   : > { %v9725_v22 = vpop.f32.mrf.mxu2  ;;  %v9745_v17 = vpop.f32.mrf.mxu3 }
 0x688   : > { %v9687_v15 = vpop.f32.mrf.mxu0  ;;  %v9707_v60 = vpop.f32.mrf.mxu1  ;;  %v9755_v62 = vadd.f32 %v9725_v22, %v9574_v53  ;;  %v9756_v11 = vadd.f32 %v9745_v17, %v9575_v34 }
 0x68f   : > { %v9727_v46 = vpop.f32.mrf.mxu2  ;;  %v9747_v56 = vpop.f32.mrf.mxu3 }
 0x690   : > { %v9793_v12 = vpop.f32.mrf.mxu0  ;;  %v9820_v61 = vpop.f32.mrf.mxu1 }
 0x691   : > { %v9986_v1 = vadd.f32 %v9793_v12, %v9749_v47  ;;  %v9987_v58 = vadd.f32 %v9820_v61, %v9750_v49 }
 0x693   : > { %v9998_v50 = vadd.f32 %v11003_v2, %v9986_v1  ;;  %v9999_v43 = vadd.f32 %v11003_v2, %v9987_v58 }
 0x695   : > { %v10006_v13 = vmax.f32 %v9998_v50, 0.0  ;;  %v10007_v42 = vmax.f32 %v9999_v43, 0.0 }
 0x697   : > { %10015 = vst.msk [vmem:[%s14274_s24] sm:$0xff] %vm10014_vm3, %v10006_v13  ;;  %v9847_v27 = vpop.f32.mrf.mxu2  ;;  %v9874_v21 = vpop.f32.mrf.mxu3 }
 0x698   : > { %10016 = vst.msk [vmem:[%s14274_s24 + $0x8] sm:$0xff] %vm10014_vm3, %v10007_v42  ;;  %v9988_v54 = vadd.f32 %v9847_v27, %v9751_v57  ;;  %v9989_v51 = vadd.f32 %v9874_v21, %v9752_v23  ;;  %v9795_v45 = vpop.f32.mrf.mxu0  ;;  %v9822_v29 = vpop.f32.mrf.mxu1 }
 0x69a   : > { %v10000_v48 = vadd.f32 %v11003_v2, %v9988_v54  ;;  %v10001_v37 = vadd.f32 %v11003_v2, %v9989_v51 }
 0x69c   : > { %v10008_v10 = vmax.f32 %v10000_v48, 0.0  ;;  %v10009_v41 = vmax.f32 %v10001_v37, 0.0 }
 0x69e   : > { %10017 = vst.msk [vmem:[%s14274_s24 + $0x10] sm:$0xff] %vm10014_vm3, %v10008_v10 }
 0x69f   : > { %10018 = vst.msk [vmem:[%s14274_s24 + $0x18] sm:$0xff] %vm10014_vm3, %v10009_v41  ;;  %v9849_v44 = vpop.f32.mrf.mxu2  ;;  %v9876_v4 = vpop.f32.mrf.mxu3 }
 0x6a0   : > { %v9901_v7 = vpop.f32.mrf.mxu0  ;;  %v9928_v6 = vpop.f32.mrf.mxu1 }
 0x6a1   : > { %v9990_v59 = vadd.f32 %v9901_v7, %v9753_v31  ;;  %v9991_v32 = vadd.f32 %v9928_v6, %v9754_v19 }
 0x6a3   : > { %v10002_v26 = vadd.f32 %v11003_v2, %v9990_v59  ;;  %v10003_v20 = vadd.f32 %v11003_v2, %v9991_v32 }
 0x6a5   : > { %v10010_v55 = vmax.f32 %v10002_v26, 0.0  ;;  %v10011_v8 = vmax.f32 %v10003_v20, 0.0 }
 0x6a7   : > { %10019 = vst.msk [vmem:[%s14274_s24 + $0x20] sm:$0xff] %vm10014_vm3, %v10010_v55  ;;  %v9955_v30 = vpop.f32.mrf.mxu2  ;;  %v9982_v52 = vpop.f32.mrf.mxu3 }
 0x6a8   : > { %10020 = vst.msk [vmem:[%s14274_s24 + $0x28] sm:$0xff] %vm10014_vm3, %v10011_v8  ;;  %v9992_v28 = vadd.f32 %v9955_v30, %v9755_v62  ;;  %v9993_v16 = vadd.f32 %v9982_v52, %v9756_v11  ;;  %v9903_v0 = vpop.f32.mrf.mxu0  ;;  %v9930_v14 = vpop.f32.mrf.mxu1 }
 0x6aa   : > { %v10004_v18 = vadd.f32 %v11003_v2, %v9992_v28  ;;  %v10005_v36 = vadd.f32 %v11003_v2, %v9993_v16 }
 0x6ac   : > { %v10012_v25 = vmax.f32 %v10004_v18, 0.0  ;;  %v10013_v39 = vmax.f32 %v10005_v36, 0.0 }
 0x6ae   : > { %10021 = vst.msk [vmem:[%s14274_s24 + $0x30] sm:$0xff] %vm10014_vm3, %v10012_v25 }
 0x6af   : > { %10022 = vst.msk [vmem:[%s14274_s24 + $0x38] sm:$0xff] %vm10014_vm3, %v10013_v39  ;;  %v9957_v38 = vpop.f32.mrf.mxu2  ;;  %v9984_v5 = vpop.f32.mrf.mxu3 }
 0x6b0 PF: > { %s13_s12 = sadd.s32 1, %s11010_s12  }
 0x6b1   : > { %p10_p4 = scmp.ge.s32.totalorder %s13_s12, 4  }
 0x6b3   :  { %12 = sbr.rel (!%p10_p4) target bundleno = 1 (0x1), region = 123 }

</bundles_post_ra>
